<compile_context>
chip_gen: v7x
topology: tpu7x:2x2x1
jax: 0.10.0
libtpu: 0.0.40
codegen_flags: <defaults>
</compile_context>

<pallas_src>
import functools
import math

import numpy as np

import jax
import jax.numpy as jnp
from jax import lax
from jax.experimental import pallas as pl
from jax.experimental.pallas import tpu as pltpu


def _round_up(x, m):
    return (x + m - 1) // m * m


# ------------------------------ Pallas kernel ------------------------------ #

def _cnn_map_encoder_kernel(x_ref, *refs, stage_geoms, negative_slope):
    """Fused conv stack + FC.

    x_ref : (bn, H0, W0*C0)   input rows (bf16), minor dim flattened as (w, c)
    refs  : (wb_0, b_0, wb_1, b_1, ..., wb_L, b_L, o_ref)
            wb_l : (KH_l, Win_l*Cin_l, Wout_l*Cout_l) stacked banded weights
            b_l  : (1, Wout_l*Cout_l) f32 bias tiled across the output width
    o_ref : (bn, out_padded) f32

    Each stage l computes, for every output row (n, oh):
        acc[(n, oh), :] = sum_kh a[n, oh*s + kh, :] @ wb_l[kh]   (+bias, lrelu)
    i.e. a VALID conv with the (kw, cin) taps folded into zero-banded wb_l.
    The FC is the same computation with Hout == Wout == 1 and no activation.
    All matmuls are bf16 x bf16 -> f32 accumulation.
    """
    o_ref = refs[-1]
    params = refs[:-1]
    a = x_ref[...]                      # (bn, H, W*C) bf16
    bn = a.shape[0]
    acc = None
    n_stages = len(stage_geoms)
    for li, (kh_taps, stride, hout, wcout, apply_act) in enumerate(stage_geoms):
        wb_ref = params[2 * li]         # (KH, WCin, WCout)
        b_ref = params[2 * li + 1]      # (1, WCout) f32
        wcin = wb_ref.shape[1]
        acc = None
        for kh in range(kh_taps):
            if stride == 1:
                rows = a[:, kh:kh + hout, :]
            else:
                # TODO(synk): strided sublane slicing is unexercised by the
                # test config (strides=[1,1]); revalidate codegen before use.
                rows = a[:, kh:kh + (hout - 1) * stride + 1:stride, :]
            part = jnp.dot(rows.reshape(bn * hout, wcin), wb_ref[kh],
                           preferred_element_type=jnp.float32)
            acc = part if acc is None else acc + part
        acc = acc + b_ref[...]
        if apply_act:
            acc = jnp.maximum(acc, negative_slope * acc)
        if li + 1 < n_stages:
            # cast back to bf16 for the next stage's matmul input
            a = acc.reshape(bn, hout, wcout).astype(x_ref.dtype)
    o_ref[...] = acc.astype(o_ref.dtype)


# ------------------------------ Python wrapper ------------------------------ #

class CNNMapEncoderPallas:
    """JAX/Pallas re-implementation of the PyTorch CNNMapEncoder forward."""

    LANE = 128       # lane width -> lane-dense output padding
    BN_ALIGN = 16    # bf16 packs 16 sublanes per vreg
    BN_MAX = 128     # batch rows per grid step (review: 128-256)

    def __init__(self, map_channels, hidden_channels, output_size, masks,
                 strides, patch_size, key, param_dtype=jnp.bfloat16):
        self.in_c = map_channels
        self.in_h = patch_size[0] + patch_size[2]
        self.in_w = patch_size[1] + patch_size[3]
        self.output_size = output_size
        self.out_padded = _round_up(output_size, self.LANE)
        self.negative_slope = 0.2
        self.param_dtype = param_dtype

        keys = jax.random.split(key, 2 * len(hidden_channels) + 2)

        self.stage_ws = []      # (KH, Win*Cin, Wout*Cout) banded weight stacks
        self.stage_bs = []      # (1, Wout*Cout) f32 bias rows
        self.stage_geoms = []   # (KH, stride, Hout, Wout*Cout, apply_act)

        # Originals kept only for the pure-JAX (f32) reference check.
        self._ref_ws, self._ref_bs = [], []

        h, w, cin = self.in_h, self.in_w, map_channels
        for i, cout in enumerate(hidden_channels):
            k, s = masks[i], strides[i]
            fan_in = cin * k * k
            bound = 1.0 / math.sqrt(fan_in)
            # PyTorch Conv2d weight is OIHW; init deterministically, go HWIO.
            w_oihw = jax.random.uniform(keys[2 * i], (cout, cin, k, k),
                                        jnp.float32, -bound, bound)
            b = jax.random.uniform(keys[2 * i + 1], (cout,),
                                   jnp.float32, -bound, bound)
            w_hwio = jnp.transpose(w_oihw, (2, 3, 1, 0))    # (k, k, cin, cout)
            ho = (h - k) // s + 1
            wo = (w - k) // s + 1

            # Fold (kw, cin) taps into zero-banded matrices: one big matmul
            # per kh tap instead of KH*KW tiny K=cin matmuls.
            wb = np.zeros((k, w * cin, wo * cout), np.float32)
            w_np = np.asarray(w_hwio)
            for kh in range(k):
                for ow in range(wo):
                    for kw in range(k):
                        wi = ow * s + kw
                        wb[kh, wi * cin:(wi + 1) * cin,
                           ow * cout:(ow + 1) * cout] = w_np[kh, kw]
            self.stage_ws.append(jnp.asarray(wb, dtype=param_dtype))
            self.stage_bs.append(
                jnp.tile(b, wo).reshape(1, wo * cout).astype(jnp.float32))
            self.stage_geoms.append((k, s, ho, wo * cout, True))

            self._ref_ws.append(w_hwio)
            self._ref_bs.append(b)
            h, w, cin = ho, wo, cout

        # Fully-connected layer, expressed in the same per-row matmul form.
        flat = cin * h * w
        bound = 1.0 / math.sqrt(flat)
        # PyTorch Linear weight is (out, in) with `in` in (c, h, w) order.
        w_fc = jax.random.uniform(keys[-2], (output_size, flat),
                                  jnp.float32, -bound, bound)
        b_fc = jax.random.uniform(keys[-1], (output_size,),
                                  jnp.float32, -bound, bound)
        # Our activation rows are (h, (w, c)); fold the flatten-order
        # permutation into the weight once (no runtime transpose), and pad the
        # output dim to a lane-dense multiple of 128 with zero columns.
        fc_w_hwc = (jnp.transpose(w_fc)                 # (flat, out), (c,h,w)
                    .reshape(cin, h, w, output_size)
                    .transpose(1, 2, 0, 3)              # (h, w, c, out)
                    .reshape(h, w * cin, output_size))  # per-h weight slabs
        fc_w_pad = np.zeros((h, w * cin, self.out_padded), np.float32)
        fc_w_pad[:, :, :output_size] = np.asarray(fc_w_hwc)
        fc_b_pad = np.zeros((1, self.out_padded), np.float32)
        fc_b_pad[0, :output_size] = np.asarray(b_fc)
        self.stage_ws.append(jnp.asarray(fc_w_pad, dtype=param_dtype))
        self.stage_bs.append(jnp.asarray(fc_b_pad))
        self.stage_geoms.append((h, 1, 1, self.out_padded, False))

        self._ref_fc_w = w_fc
        self._ref_fc_b = b_fc

    # ---- batch blocking: big blocks, 16-aligned, even grid for v7x megacore
    def _pick_batch_block(self, n):
        if n <= self.BN_MAX:
            return _round_up(max(n, 1), self.BN_ALIGN)
        grid_len = 2 * ((n + 2 * self.BN_MAX - 1) // (2 * self.BN_MAX))
        return _round_up((n + grid_len - 1) // grid_len, self.BN_ALIGN)

    def __call__(self, x_nchw, training=False):
        n = x_nchw.shape[0]
        h0, w0, c0 = self.in_h, self.in_w, self.in_c
        # NCHW -> (N, H, W*C) bf16: per-row pixels flattened as (w, c).
        # TODO(synk): this relayout remains one small XLA pass; folding it
        # into the kernel would need a per-row gather with no clean BlockSpec.
        x = (jnp.transpose(x_nchw, (0, 2, 3, 1))
             .reshape(n, h0, w0 * c0)
             .astype(self.param_dtype))

        bn = self._pick_batch_block(n)
        n_padded = _round_up(n, bn)
        if n_padded != n:
            x = jnp.pad(x, ((0, n_padded - n), (0, 0), (0, 0)))

        kernel = functools.partial(_cnn_map_encoder_kernel,
                                   stage_geoms=tuple(self.stage_geoms),
                                   negative_slope=self.negative_slope)

        in_specs = [pl.BlockSpec((bn, h0, w0 * c0), lambda i: (i, 0, 0))]
        args = [x]
        for wb, brow in zip(self.stage_ws, self.stage_bs):
            in_specs.append(pl.BlockSpec(wb.shape, lambda i: (0, 0, 0)))
            in_specs.append(pl.BlockSpec(brow.shape, lambda i: (0, 0)))
            args += [wb, brow]

        out = pl.pallas_call(
            kernel,
            out_shape=jax.ShapeDtypeStruct((n_padded, self.out_padded),
                                           jnp.float32),
            grid=(n_padded // bn,),
            in_specs=in_specs,
            out_specs=pl.BlockSpec((bn, self.out_padded), lambda i: (i, 0)),
            compiler_params=pltpu.CompilerParams(
                dimension_semantics=("parallel",),
                # bn=128 bf16 footprint is ~8 MiB + pipeline buffers; 32 MiB
                # gives safe headroom on every generation (= v6e/v7x default).
                vmem_limit_bytes=32 * 1024 * 1024,
            ),
        )(*args)
        return out[:n, :self.output_size]

    # Pure-JAX f32 reference (matches the PyTorch module) for validation only.
    def reference_forward(self, x_nchw):
        x = x_nchw
        for w_hwio, b, geom in zip(self._ref_ws, self._ref_bs,
                                   self.stage_geoms):
            s = geom[1]
            x = lax.conv_general_dilated(
                x, w_hwio, window_strides=(s, s), padding='VALID',
                dimension_numbers=('NCHW', 'HWIO', 'NCHW'),
                precision=lax.Precision.HIGHEST)
            x = x + b.reshape(1, -1, 1, 1)
            x = jnp.maximum(x, self.negative_slope * x)
        x = x.reshape(x.shape[0], -1)                    # (c, h, w) flatten
        return (jnp.dot(x, self._ref_fc_w.T, precision=lax.Precision.HIGHEST)
                + self._ref_fc_b)


# ---------------------------------- main ----------------------------------- #

if __name__ == "__main__":
    key = jax.random.PRNGKey(0)
    k_params, k_input = jax.random.split(key)

    map_channels = 4
    hidden_channels = [8, 16]
    output_size = 32
    masks = [3, 3]
    strides = [1, 1]
    patch_size = [8, 8, 8, 8]          # -> 16 x 16 input patch

    enc = CNNMapEncoderPallas(map_channels, hidden_channels, output_size,
                              masks, strides, patch_size, k_params)

    batch = 2
    x = jax.random.normal(
        k_input,
        (batch, map_channels, patch_size[0] + patch_size[2],
         patch_size[1] + patch_size[3]),
        dtype=jnp.float32)             # NCHW, like the PyTorch module

    out = jax.block_until_ready(enc(x, training=False))
    assert out.shape == (batch, output_size), out.shape

    ref = jax.block_until_ready(enc.reference_forward(x))
    # Tolerance covers the intentional bf16 weight/activation cast (f32 acc).
    rel_err = float(jnp.max(jnp.abs(out - ref)) /
                    (jnp.max(jnp.abs(ref)) + 1e-6))
    assert rel_err < 2e-2, f"numerical mismatch vs reference: {rel_err:.3e}"

    print("KERNEL_OK")
</pallas_src>

<mosaic_0001>
module attributes {stable_mosaic.version = 11 : i64} {
  func.func @_cnn_map_encoder_kernel(%arg0: i32, %arg1: memref<16x16x64xbf16, #tpu.memory_space<vmem>>, %arg2: memref<3x64x112xbf16, #tpu.memory_space<vmem>>, %arg3: memref<1x112xf32, #tpu.memory_space<vmem>>, %arg4: memref<3x112x192xbf16, #tpu.memory_space<vmem>>, %arg5: memref<1x192xf32, #tpu.memory_space<vmem>>, %arg6: memref<12x192x128xbf16, #tpu.memory_space<vmem>>, %arg7: memref<1x128xf32, #tpu.memory_space<vmem>>, %arg8: memref<16x128xf32, #tpu.memory_space<vmem>>) attributes {dimension_semantics = [#tpu.dimension_semantics<parallel>], iteration_bounds = array<i64: 1>, scalar_prefetch = 0 : i64, scratch_operands = 0 : i64, tpu.core_type = #tpu.core_type<tc>, window_params = [{transform_indices = @transform_0, window_bounds = array<i64: 16, 16, 64>}, {pipeline_mode = #tpu.pipeline_mode<synchronous>, transform_indices = @transform_1, window_bounds = array<i64: 3, 64, 112>}, {pipeline_mode = #tpu.pipeline_mode<synchronous>, transform_indices = @transform_2, window_bounds = array<i64: 1, 112>}, {pipeline_mode = #tpu.pipeline_mode<synchronous>, transform_indices = @transform_3, window_bounds = array<i64: 3, 112, 192>}, {pipeline_mode = #tpu.pipeline_mode<synchronous>, transform_indices = @transform_4, window_bounds = array<i64: 1, 192>}, {pipeline_mode = #tpu.pipeline_mode<synchronous>, transform_indices = @transform_5, window_bounds = array<i64: 12, 192, 128>}, {pipeline_mode = #tpu.pipeline_mode<synchronous>, transform_indices = @transform_6, window_bounds = array<i64: 1, 128>}, {transform_indices = @transform_7, window_bounds = array<i64: 16, 128>}]} {
    %c0 = arith.constant 0 : index
    %c0_0 = arith.constant 0 : index
    %c0_1 = arith.constant 0 : index
    %0 = vector.load %arg1[%c0, %c0_0, %c0_1] : memref<16x16x64xbf16, #tpu.memory_space<vmem>>, vector<16x16x64xbf16>
    %1 = vector.extract_strided_slice %0 {offsets = [0, 0, 0], sizes = [16, 14, 64], strides = [1, 1, 1]} : vector<16x16x64xbf16> to vector<16x14x64xbf16>
    %2 = vector.shape_cast %1 : vector<16x14x64xbf16> to vector<224x64xbf16>
    %c0_2 = arith.constant 0 : index
    %c0_3 = arith.constant 0 : index
    %c0_4 = arith.constant 0 : index
    %3 = vector.load %arg2[%c0_2, %c0_3, %c0_4] : memref<3x64x112xbf16, #tpu.memory_space<vmem>>, vector<1x64x112xbf16>
    %4 = vector.shape_cast %3 : vector<1x64x112xbf16> to vector<64x112xbf16>
    %cst = arith.constant dense<0.000000e+00> : vector<224x112xf32>
    %5 = tpu.matmul %2, %4, %cst {dimension_numbers = #tpu.dot_dimension_numbers<[1], [0], [0], [1], [0, 0, 1, 1], [], []>} : vector<224x64xbf16>, vector<64x112xbf16>, vector<224x112xf32> -> vector<224x112xf32>
    %6 = vector.extract_strided_slice %0 {offsets = [0, 1, 0], sizes = [16, 14, 64], strides = [1, 1, 1]} : vector<16x16x64xbf16> to vector<16x14x64xbf16>
    %7 = vector.shape_cast %6 : vector<16x14x64xbf16> to vector<224x64xbf16>
    %c1 = arith.constant 1 : index
    %c0_5 = arith.constant 0 : index
    %c0_6 = arith.constant 0 : index
    %8 = vector.load %arg2[%c1, %c0_5, %c0_6] : memref<3x64x112xbf16, #tpu.memory_space<vmem>>, vector<1x64x112xbf16>
    %9 = vector.shape_cast %8 : vector<1x64x112xbf16> to vector<64x112xbf16>
    %cst_7 = arith.constant dense<0.000000e+00> : vector<224x112xf32>
    %10 = tpu.matmul %7, %9, %cst_7 {dimension_numbers = #tpu.dot_dimension_numbers<[1], [0], [0], [1], [0, 0, 1, 1], [], []>} : vector<224x64xbf16>, vector<64x112xbf16>, vector<224x112xf32> -> vector<224x112xf32>
    %11 = arith.addf %5, %10 : vector<224x112xf32>
    %12 = vector.extract_strided_slice %0 {offsets = [0, 2, 0], sizes = [16, 14, 64], strides = [1, 1, 1]} : vector<16x16x64xbf16> to vector<16x14x64xbf16>
    %13 = vector.shape_cast %12 : vector<16x14x64xbf16> to vector<224x64xbf16>
    %c2 = arith.constant 2 : index
    %c0_8 = arith.constant 0 : index
    %c0_9 = arith.constant 0 : index
    %14 = vector.load %arg2[%c2, %c0_8, %c0_9] : memref<3x64x112xbf16, #tpu.memory_space<vmem>>, vector<1x64x112xbf16>
    %15 = vector.shape_cast %14 : vector<1x64x112xbf16> to vector<64x112xbf16>
    %cst_10 = arith.constant dense<0.000000e+00> : vector<224x112xf32>
    %16 = tpu.matmul %13, %15, %cst_10 {dimension_numbers = #tpu.dot_dimension_numbers<[1], [0], [0], [1], [0, 0, 1, 1], [], []>} : vector<224x64xbf16>, vector<64x112xbf16>, vector<224x112xf32> -> vector<224x112xf32>
    %17 = arith.addf %11, %16 : vector<224x112xf32>
    %c0_11 = arith.constant 0 : index
    %c0_12 = arith.constant 0 : index
    %18 = vector.load %arg3[%c0_11, %c0_12] : memref<1x112xf32, #tpu.memory_space<vmem>>, vector<1x112xf32>
    %19 = vector.broadcast %18 : vector<1x112xf32> to vector<224x112xf32>
    %20 = arith.addf %17, %19 : vector<224x112xf32>
    %cst_13 = arith.constant 2.000000e-01 : f32
    %21 = vector.broadcast %cst_13 : f32 to vector<224x112xf32>
    %22 = arith.mulf %21, %20 : vector<224x112xf32>
    %23 = arith.maximumf %20, %22 : vector<224x112xf32>
    %24 = vector.shape_cast %23 : vector<224x112xf32> to vector<16x14x112xf32>
    %25 = arith.truncf %24 : vector<16x14x112xf32> to vector<16x14x112xbf16>
    %26 = vector.extract_strided_slice %25 {offsets = [0, 0, 0], sizes = [16, 12, 112], strides = [1, 1, 1]} : vector<16x14x112xbf16> to vector<16x12x112xbf16>
    %27 = vector.shape_cast %26 : vector<16x12x112xbf16> to vector<192x112xbf16>
    %c0_14 = arith.constant 0 : index
    %c0_15 = arith.constant 0 : index
    %c0_16 = arith.constant 0 : index
    %28 = vector.load %arg4[%c0_14, %c0_15, %c0_16] : memref<3x112x192xbf16, #tpu.memory_space<vmem>>, vector<1x112x192xbf16>
    %29 = vector.shape_cast %28 : vector<1x112x192xbf16> to vector<112x192xbf16>
    %cst_17 = arith.constant dense<0.000000e+00> : vector<192x192xf32>
    %30 = tpu.matmul %27, %29, %cst_17 {dimension_numbers = #tpu.dot_dimension_numbers<[1], [0], [0], [1], [0, 0, 1, 1], [], []>} : vector<192x112xbf16>, vector<112x192xbf16>, vector<192x192xf32> -> vector<192x192xf32>
    %31 = vector.extract_strided_slice %25 {offsets = [0, 1, 0], sizes = [16, 12, 112], strides = [1, 1, 1]} : vector<16x14x112xbf16> to vector<16x12x112xbf16>
    %32 = vector.shape_cast %31 : vector<16x12x112xbf16> to vector<192x112xbf16>
    %c1_18 = arith.constant 1 : index
    %c0_19 = arith.constant 0 : index
    %c0_20 = arith.constant 0 : index
    %33 = vector.load %arg4[%c1_18, %c0_19, %c0_20] : memref<3x112x192xbf16, #tpu.memory_space<vmem>>, vector<1x112x192xbf16>
    %34 = vector.shape_cast %33 : vector<1x112x192xbf16> to vector<112x192xbf16>
    %cst_21 = arith.constant dense<0.000000e+00> : vector<192x192xf32>
    %35 = tpu.matmul %32, %34, %cst_21 {dimension_numbers = #tpu.dot_dimension_numbers<[1], [0], [0], [1], [0, 0, 1, 1], [], []>} : vector<192x112xbf16>, vector<112x192xbf16>, vector<192x192xf32> -> vector<192x192xf32>
    %36 = arith.addf %30, %35 : vector<192x192xf32>
    %37 = vector.extract_strided_slice %25 {offsets = [0, 2, 0], sizes = [16, 12, 112], strides = [1, 1, 1]} : vector<16x14x112xbf16> to vector<16x12x112xbf16>
    %38 = vector.shape_cast %37 : vector<16x12x112xbf16> to vector<192x112xbf16>
    %c2_22 = arith.constant 2 : index
    %c0_23 = arith.constant 0 : index
    %c0_24 = arith.constant 0 : index
    %39 = vector.load %arg4[%c2_22, %c0_23, %c0_24] : memref<3x112x192xbf16, #tpu.memory_space<vmem>>, vector<1x112x192xbf16>
    %40 = vector.shape_cast %39 : vector<1x112x192xbf16> to vector<112x192xbf16>
    %cst_25 = arith.constant dense<0.000000e+00> : vector<192x192xf32>
    %41 = tpu.matmul %38, %40, %cst_25 {dimension_numbers = #tpu.dot_dimension_numbers<[1], [0], [0], [1], [0, 0, 1, 1], [], []>} : vector<192x112xbf16>, vector<112x192xbf16>, vector<192x192xf32> -> vector<192x192xf32>
    %42 = arith.addf %36, %41 : vector<192x192xf32>
    %c0_26 = arith.constant 0 : index
    %c0_27 = arith.constant 0 : index
    %43 = vector.load %arg5[%c0_26, %c0_27] : memref<1x192xf32, #tpu.memory_space<vmem>>, vector<1x192xf32>
    %44 = vector.broadcast %43 : vector<1x192xf32> to vector<192x192xf32>
    %45 = arith.addf %42, %44 : vector<192x192xf32>
    %cst_28 = arith.constant 2.000000e-01 : f32
    %46 = vector.broadcast %cst_28 : f32 to vector<192x192xf32>
    %47 = arith.mulf %46, %45 : vector<192x192xf32>
    %48 = arith.maximumf %45, %47 : vector<192x192xf32>
    %49 = vector.shape_cast %48 : vector<192x192xf32> to vector<16x12x192xf32>
    %50 = arith.truncf %49 : vector<16x12x192xf32> to vector<16x12x192xbf16>
    %51 = vector.extract_strided_slice %50 {offsets = [0, 0, 0], sizes = [16, 1, 192], strides = [1, 1, 1]} : vector<16x12x192xbf16> to vector<16x1x192xbf16>
    %52 = vector.shape_cast %51 : vector<16x1x192xbf16> to vector<16x192xbf16>
    %c0_29 = arith.constant 0 : index
    %c0_30 = arith.constant 0 : index
    %c0_31 = arith.constant 0 : index
    %53 = vector.load %arg6[%c0_29, %c0_30, %c0_31] : memref<12x192x128xbf16, #tpu.memory_space<vmem>>, vector<1x192x128xbf16>
    %54 = vector.shape_cast %53 : vector<1x192x128xbf16> to vector<192x128xbf16>
    %cst_32 = arith.constant dense<0.000000e+00> : vector<16x128xf32>
    %55 = tpu.matmul %52, %54, %cst_32 {dimension_numbers = #tpu.dot_dimension_numbers<[1], [0], [0], [1], [0, 0, 1, 1], [], []>} : vector<16x192xbf16>, vector<192x128xbf16>, vector<16x128xf32> -> vector<16x128xf32>
    %56 = vector.extract_strided_slice %50 {offsets = [0, 1, 0], sizes = [16, 1, 192], strides = [1, 1, 1]} : vector<16x12x192xbf16> to vector<16x1x192xbf16>
    %57 = vector.shape_cast %56 : vector<16x1x192xbf16> to vector<16x192xbf16>
    %c1_33 = arith.constant 1 : index
    %c0_34 = arith.constant 0 : index
    %c0_35 = arith.constant 0 : index
    %58 = vector.load %arg6[%c1_33, %c0_34, %c0_35] : memref<12x192x128xbf16, #tpu.memory_space<vmem>>, vector<1x192x128xbf16>
    %59 = vector.shape_cast %58 : vector<1x192x128xbf16> to vector<192x128xbf16>
    %cst_36 = arith.constant dense<0.000000e+00> : vector<16x128xf32>
    %60 = tpu.matmul %57, %59, %cst_36 {dimension_numbers = #tpu.dot_dimension_numbers<[1], [0], [0], [1], [0, 0, 1, 1], [], []>} : vector<16x192xbf16>, vector<192x128xbf16>, vector<16x128xf32> -> vector<16x128xf32>
    %61 = arith.addf %55, %60 : vector<16x128xf32>
    %62 = vector.extract_strided_slice %50 {offsets = [0, 2, 0], sizes = [16, 1, 192], strides = [1, 1, 1]} : vector<16x12x192xbf16> to vector<16x1x192xbf16>
    %63 = vector.shape_cast %62 : vector<16x1x192xbf16> to vector<16x192xbf16>
    %c2_37 = arith.constant 2 : index
    %c0_38 = arith.constant 0 : index
    %c0_39 = arith.constant 0 : index
    %64 = vector.load %arg6[%c2_37, %c0_38, %c0_39] : memref<12x192x128xbf16, #tpu.memory_space<vmem>>, vector<1x192x128xbf16>
    %65 = vector.shape_cast %64 : vector<1x192x128xbf16> to vector<192x128xbf16>
    %cst_40 = arith.constant dense<0.000000e+00> : vector<16x128xf32>
    %66 = tpu.matmul %63, %65, %cst_40 {dimension_numbers = #tpu.dot_dimension_numbers<[1], [0], [0], [1], [0, 0, 1, 1], [], []>} : vector<16x192xbf16>, vector<192x128xbf16>, vector<16x128xf32> -> vector<16x128xf32>
    %67 = arith.addf %61, %66 : vector<16x128xf32>
    %68 = vector.extract_strided_slice %50 {offsets = [0, 3, 0], sizes = [16, 1, 192], strides = [1, 1, 1]} : vector<16x12x192xbf16> to vector<16x1x192xbf16>
    %69 = vector.shape_cast %68 : vector<16x1x192xbf16> to vector<16x192xbf16>
    %c3 = arith.constant 3 : index
    %c0_41 = arith.constant 0 : index
    %c0_42 = arith.constant 0 : index
    %70 = vector.load %arg6[%c3, %c0_41, %c0_42] : memref<12x192x128xbf16, #tpu.memory_space<vmem>>, vector<1x192x128xbf16>
    %71 = vector.shape_cast %70 : vector<1x192x128xbf16> to vector<192x128xbf16>
    %cst_43 = arith.constant dense<0.000000e+00> : vector<16x128xf32>
    %72 = tpu.matmul %69, %71, %cst_43 {dimension_numbers = #tpu.dot_dimension_numbers<[1], [0], [0], [1], [0, 0, 1, 1], [], []>} : vector<16x192xbf16>, vector<192x128xbf16>, vector<16x128xf32> -> vector<16x128xf32>
    %73 = arith.addf %67, %72 : vector<16x128xf32>
    %74 = vector.extract_strided_slice %50 {offsets = [0, 4, 0], sizes = [16, 1, 192], strides = [1, 1, 1]} : vector<16x12x192xbf16> to vector<16x1x192xbf16>
    %75 = vector.shape_cast %74 : vector<16x1x192xbf16> to vector<16x192xbf16>
    %c4 = arith.constant 4 : index
    %c0_44 = arith.constant 0 : index
    %c0_45 = arith.constant 0 : index
    %76 = vector.load %arg6[%c4, %c0_44, %c0_45] : memref<12x192x128xbf16, #tpu.memory_space<vmem>>, vector<1x192x128xbf16>
    %77 = vector.shape_cast %76 : vector<1x192x128xbf16> to vector<192x128xbf16>
    %cst_46 = arith.constant dense<0.000000e+00> : vector<16x128xf32>
    %78 = tpu.matmul %75, %77, %cst_46 {dimension_numbers = #tpu.dot_dimension_numbers<[1], [0], [0], [1], [0, 0, 1, 1], [], []>} : vector<16x192xbf16>, vector<192x128xbf16>, vector<16x128xf32> -> vector<16x128xf32>
    %79 = arith.addf %73, %78 : vector<16x128xf32>
    %80 = vector.extract_strided_slice %50 {offsets = [0, 5, 0], sizes = [16, 1, 192], strides = [1, 1, 1]} : vector<16x12x192xbf16> to vector<16x1x192xbf16>
    %81 = vector.shape_cast %80 : vector<16x1x192xbf16> to vector<16x192xbf16>
    %c5 = arith.constant 5 : index
    %c0_47 = arith.constant 0 : index
    %c0_48 = arith.constant 0 : index
    %82 = vector.load %arg6[%c5, %c0_47, %c0_48] : memref<12x192x128xbf16, #tpu.memory_space<vmem>>, vector<1x192x128xbf16>
    %83 = vector.shape_cast %82 : vector<1x192x128xbf16> to vector<192x128xbf16>
    %cst_49 = arith.constant dense<0.000000e+00> : vector<16x128xf32>
    %84 = tpu.matmul %81, %83, %cst_49 {dimension_numbers = #tpu.dot_dimension_numbers<[1], [0], [0], [1], [0, 0, 1, 1], [], []>} : vector<16x192xbf16>, vector<192x128xbf16>, vector<16x128xf32> -> vector<16x128xf32>
    %85 = arith.addf %79, %84 : vector<16x128xf32>
    %86 = vector.extract_strided_slice %50 {offsets = [0, 6, 0], sizes = [16, 1, 192], strides = [1, 1, 1]} : vector<16x12x192xbf16> to vector<16x1x192xbf16>
    %87 = vector.shape_cast %86 : vector<16x1x192xbf16> to vector<16x192xbf16>
    %c6 = arith.constant 6 : index
    %c0_50 = arith.constant 0 : index
    %c0_51 = arith.constant 0 : index
    %88 = vector.load %arg6[%c6, %c0_50, %c0_51] : memref<12x192x128xbf16, #tpu.memory_space<vmem>>, vector<1x192x128xbf16>
    %89 = vector.shape_cast %88 : vector<1x192x128xbf16> to vector<192x128xbf16>
    %cst_52 = arith.constant dense<0.000000e+00> : vector<16x128xf32>
    %90 = tpu.matmul %87, %89, %cst_52 {dimension_numbers = #tpu.dot_dimension_numbers<[1], [0], [0], [1], [0, 0, 1, 1], [], []>} : vector<16x192xbf16>, vector<192x128xbf16>, vector<16x128xf32> -> vector<16x128xf32>
    %91 = arith.addf %85, %90 : vector<16x128xf32>
    %92 = vector.extract_strided_slice %50 {offsets = [0, 7, 0], sizes = [16, 1, 192], strides = [1, 1, 1]} : vector<16x12x192xbf16> to vector<16x1x192xbf16>
    %93 = vector.shape_cast %92 : vector<16x1x192xbf16> to vector<16x192xbf16>
    %c7 = arith.constant 7 : index
    %c0_53 = arith.constant 0 : index
    %c0_54 = arith.constant 0 : index
    %94 = vector.load %arg6[%c7, %c0_53, %c0_54] : memref<12x192x128xbf16, #tpu.memory_space<vmem>>, vector<1x192x128xbf16>
    %95 = vector.shape_cast %94 : vector<1x192x128xbf16> to vector<192x128xbf16>
    %cst_55 = arith.constant dense<0.000000e+00> : vector<16x128xf32>
    %96 = tpu.matmul %93, %95, %cst_55 {dimension_numbers = #tpu.dot_dimension_numbers<[1], [0], [0], [1], [0, 0, 1, 1], [], []>} : vector<16x192xbf16>, vector<192x128xbf16>, vector<16x128xf32> -> vector<16x128xf32>
    %97 = arith.addf %91, %96 : vector<16x128xf32>
    %98 = vector.extract_strided_slice %50 {offsets = [0, 8, 0], sizes = [16, 1, 192], strides = [1, 1, 1]} : vector<16x12x192xbf16> to vector<16x1x192xbf16>
    %99 = vector.shape_cast %98 : vector<16x1x192xbf16> to vector<16x192xbf16>
    %c8 = arith.constant 8 : index
    %c0_56 = arith.constant 0 : index
    %c0_57 = arith.constant 0 : index
    %100 = vector.load %arg6[%c8, %c0_56, %c0_57] : memref<12x192x128xbf16, #tpu.memory_space<vmem>>, vector<1x192x128xbf16>
    %101 = vector.shape_cast %100 : vector<1x192x128xbf16> to vector<192x128xbf16>
    %cst_58 = arith.constant dense<0.000000e+00> : vector<16x128xf32>
    %102 = tpu.matmul %99, %101, %cst_58 {dimension_numbers = #tpu.dot_dimension_numbers<[1], [0], [0], [1], [0, 0, 1, 1], [], []>} : vector<16x192xbf16>, vector<192x128xbf16>, vector<16x128xf32> -> vector<16x128xf32>
    %103 = arith.addf %97, %102 : vector<16x128xf32>
    %104 = vector.extract_strided_slice %50 {offsets = [0, 9, 0], sizes = [16, 1, 192], strides = [1, 1, 1]} : vector<16x12x192xbf16> to vector<16x1x192xbf16>
    %105 = vector.shape_cast %104 : vector<16x1x192xbf16> to vector<16x192xbf16>
    %c9 = arith.constant 9 : index
    %c0_59 = arith.constant 0 : index
    %c0_60 = arith.constant 0 : index
    %106 = vector.load %arg6[%c9, %c0_59, %c0_60] : memref<12x192x128xbf16, #tpu.memory_space<vmem>>, vector<1x192x128xbf16>
    %107 = vector.shape_cast %106 : vector<1x192x128xbf16> to vector<192x128xbf16>
    %cst_61 = arith.constant dense<0.000000e+00> : vector<16x128xf32>
    %108 = tpu.matmul %105, %107, %cst_61 {dimension_numbers = #tpu.dot_dimension_numbers<[1], [0], [0], [1], [0, 0, 1, 1], [], []>} : vector<16x192xbf16>, vector<192x128xbf16>, vector<16x128xf32> -> vector<16x128xf32>
    %109 = arith.addf %103, %108 : vector<16x128xf32>
    %110 = vector.extract_strided_slice %50 {offsets = [0, 10, 0], sizes = [16, 1, 192], strides = [1, 1, 1]} : vector<16x12x192xbf16> to vector<16x1x192xbf16>
    %111 = vector.shape_cast %110 : vector<16x1x192xbf16> to vector<16x192xbf16>
    %c10 = arith.constant 10 : index
    %c0_62 = arith.constant 0 : index
    %c0_63 = arith.constant 0 : index
    %112 = vector.load %arg6[%c10, %c0_62, %c0_63] : memref<12x192x128xbf16, #tpu.memory_space<vmem>>, vector<1x192x128xbf16>
    %113 = vector.shape_cast %112 : vector<1x192x128xbf16> to vector<192x128xbf16>
    %cst_64 = arith.constant dense<0.000000e+00> : vector<16x128xf32>
    %114 = tpu.matmul %111, %113, %cst_64 {dimension_numbers = #tpu.dot_dimension_numbers<[1], [0], [0], [1], [0, 0, 1, 1], [], []>} : vector<16x192xbf16>, vector<192x128xbf16>, vector<16x128xf32> -> vector<16x128xf32>
    %115 = arith.addf %109, %114 : vector<16x128xf32>
    %116 = vector.extract_strided_slice %50 {offsets = [0, 11, 0], sizes = [16, 1, 192], strides = [1, 1, 1]} : vector<16x12x192xbf16> to vector<16x1x192xbf16>
    %117 = vector.shape_cast %116 : vector<16x1x192xbf16> to vector<16x192xbf16>
    %c11 = arith.constant 11 : index
    %c0_65 = arith.constant 0 : index
    %c0_66 = arith.constant 0 : index
    %118 = vector.load %arg6[%c11, %c0_65, %c0_66] : memref<12x192x128xbf16, #tpu.memory_space<vmem>>, vector<1x192x128xbf16>
    %119 = vector.shape_cast %118 : vector<1x192x128xbf16> to vector<192x128xbf16>
    %cst_67 = arith.constant dense<0.000000e+00> : vector<16x128xf32>
    %120 = tpu.matmul %117, %119, %cst_67 {dimension_numbers = #tpu.dot_dimension_numbers<[1], [0], [0], [1], [0, 0, 1, 1], [], []>} : vector<16x192xbf16>, vector<192x128xbf16>, vector<16x128xf32> -> vector<16x128xf32>
    %121 = arith.addf %115, %120 : vector<16x128xf32>
    %c0_68 = arith.constant 0 : index
    %c0_69 = arith.constant 0 : index
    %122 = vector.load %arg7[%c0_68, %c0_69] : memref<1x128xf32, #tpu.memory_space<vmem>>, vector<1x128xf32>
    %123 = vector.broadcast %122 : vector<1x128xf32> to vector<16x128xf32>
    %124 = arith.addf %121, %123 : vector<16x128xf32>
    %c0_70 = arith.constant 0 : index
    %c0_71 = arith.constant 0 : index
    %125 = vector.load %arg8[%c0_70, %c0_71] : memref<16x128xf32, #tpu.memory_space<vmem>>, vector<16x128xf32>
    tpu.vector_store %arg8[%c0_70, %c0_71], %124 {strides = array<i32>} : memref<16x128xf32, #tpu.memory_space<vmem>>, vector<16x128xf32>,
    return
  }
  func.func @transform_0(%arg0: i32) -> (i32, i32, i32) {
    %c0_i32 = arith.constant 0 : i32
    %c0_i32_0 = arith.constant 0 : i32
    %c0_i32_1 = arith.constant 0 : i32
    return %arg0, %c0_i32, %c0_i32_0 : i32, i32, i32
  }
  func.func @transform_1(%arg0: i32) -> (i32, i32, i32) {
    %c0_i32 = arith.constant 0 : i32
    %c0_i32_0 = arith.constant 0 : i32
    %c0_i32_1 = arith.constant 0 : i32
    %c0_i32_2 = arith.constant 0 : i32
    return %c0_i32, %c0_i32_0, %c0_i32_1 : i32, i32, i32
  }
  func.func @transform_2(%arg0: i32) -> (i32, i32) {
    %c0_i32 = arith.constant 0 : i32
    %c0_i32_0 = arith.constant 0 : i32
    %c0_i32_1 = arith.constant 0 : i32
    return %c0_i32, %c0_i32_0 : i32, i32
  }
  func.func @transform_3(%arg0: i32) -> (i32, i32, i32) {
    %c0_i32 = arith.constant 0 : i32
    %c0_i32_0 = arith.constant 0 : i32
    %c0_i32_1 = arith.constant 0 : i32
    %c0_i32_2 = arith.constant 0 : i32
    return %c0_i32, %c0_i32_0, %c0_i32_1 : i32, i32, i32
  }
  func.func @transform_4(%arg0: i32) -> (i32, i32) {
    %c0_i32 = arith.constant 0 : i32
    %c0_i32_0 = arith.constant 0 : i32
    %c0_i32_1 = arith.constant 0 : i32
    return %c0_i32, %c0_i32_0 : i32, i32
  }
  func.func @transform_5(%arg0: i32) -> (i32, i32, i32) {
    %c0_i32 = arith.constant 0 : i32
    %c0_i32_0 = arith.constant 0 : i32
    %c0_i32_1 = arith.constant 0 : i32
    %c0_i32_2 = arith.constant 0 : i32
    return %c0_i32, %c0_i32_0, %c0_i32_1 : i32, i32, i32
  }
  func.func @transform_6(%arg0: i32) -> (i32, i32) {
    %c0_i32 = arith.constant 0 : i32
    %c0_i32_0 = arith.constant 0 : i32
    %c0_i32_1 = arith.constant 0 : i32
    return %c0_i32, %c0_i32_0 : i32, i32
  }
  func.func @transform_7(%arg0: i32) -> (i32, i32) {
    %c0_i32 = arith.constant 0 : i32
    %c0_i32_0 = arith.constant 0 : i32
    return %arg0, %c0_i32 : i32, i32
  }
}

</mosaic_0001>

<bundles_post_ra>
// kernel: tpu_custom_call.1
= control target key start
LH: loop header
LB: loop body
LE: loop exit
PB: predicated region body
PF: predicated region fallthrough
CT: control target
= control target key end

     0   :  { %12 = vsyncpa [#allocation3], 0  ;;  %s16572_s0 = inlined_call_operand.vmem [shape: bf16[16,16,64], index: 0, kind: input, shape index: {}]   ;;  %s16573_s1 = inlined_call_operand.vmem [shape: bf16[3,64,112], index: 1, kind: input, shape index: {}]   ;;  %s16574_s2 = inlined_call_operand.vmem [shape: f32[1,112], index: 2, kind: input, shape index: {}]   ;;  %s16575_s3 = inlined_call_operand.vmem [shape: bf16[3,112,192], index: 3, kind: input, shape index: {}]   ;;  %s16576_s4 = inlined_call_operand.vmem [shape: f32[1,192], index: 4, kind: input, shape index: {}]   ;;  %s16577_s5 = inlined_call_operand.hbm [shape: bf16[12,192,128], index: 5, kind: input, shape index: {}]   ;;  %s16578_s6 = inlined_call_operand.vmem [shape: f32[1,128], index: 6, kind: input, shape index: {}]   ;;  %s16579_s7 = inlined_call_operand.hbm [shape: f32[16,128], index: 7, kind: output, shape index: {}]  }
   0x1   :  { %13 = vsyncpa [#allocation4], 0  ;;  %s12310_s24 = smov [#allocation2]   ;;  %s12262_s28 = scalar_lea.hbm %s16577_s5, 18432 }
   0x2   :  { %s29_s25 = sshll.u32 %s12310_s24, 4  ;;  %p12263_p0 = scmp.ne.s32.totalorder %s16577_s5, %s12262_s28  ;;  %s30_s25 = int_to_ptr.vmem [resolvable:$true] %s29_s25 }
   0x3   :  { %p12266_p1 = scmp.lt.u32.totalorder %s12262_s28, %s16577_s5 }
   0x5   :  { %p12268_p2 = pnand %p12266_p1, %p12263_p0 }
   0x7   :  { %12271 = shalt.err (!%p12268_p2)
}
   0x8   :  { %s12272_s10 = scalar_lea.vmem %s30_s25, 18432  ;;  %p12277_p4 = scmp.lt.s32.totalorder %s30_s25, %s30_s25 }
   0x9   :  { %p12273_p3 = scmp.ne.s32.totalorder %s30_s25, %s12272_s10  ;;  %p12278_p5 = scmp.lt.s32.totalorder %s12272_s10, %s12272_s10 }
   0xb   :  { %p12279_p6 = por %p12278_p5, %p12277_p4 }
   0xd   :  { %p12280_p7 = pnand %p12279_p6, %p12273_p3 }
   0xf   :  { %12283 = shalt.err (!%p12280_p7)
}
  0x10   :  { %s12311_s11 = smov 64   ;;  %s12312_s12 = smov 4  }
  0x11   :  { %35 = dma.hbm_to_vmem [thread:$0]  %s16577_s5, 18432, %s30_s25, [#allocation3], %s12311_s11, %s12311_s11, %s12312_s12  }
  0x12   :  { %12306 = dma.done.wait [#allocation3], 18432  }
  0x13   :  { %12307 = vsyncadd [#allocation3], 4294948864  ;;  %v117_v0 = vlaneseq  ;;  %vm882_vm0 = vsmask.f32 256  ;;  %v12313_v1 = vmov 1966171168  }
  0x14   :  { %v115_v2 = vunpack.c.l.s4 %v12313_v1  ;;  %vm883_vm1 = vsmask.f32 1284  ;;  %vm885_vm2 = vsmask.f32 2312  ;;  %vm887_vm3 = vsmask.f32 3340 }
  0x15   :  { %vm884_vm4 = vmor %vm882_vm0, %vm883_vm1  ;;  %vm889_vm6 = vsmask.f32 4368  ;;  %v12371_v4 = vshrl.u32 %v117_v0, 7  ;;  %vm891_vm9 = vsmask.f32 5396  ;;  %v12041_v5 = vld [vmem:[%s16573_s1 + $0x20] sm:$0xff]  }
  0x16   :  { %vm886_vm5 = vmor %vm884_vm4, %vm885_vm2  ;;  %v116_v3 = vunpack.c.0.s8 %v115_v2  ;;  %vm893_vm10 = vsmask.f32 6424  ;;  %v12042_v6 = vld [vmem:[%s16573_s1 + $0x28] sm:$0xff]   ;;  %11772 = vmatprep.subr.bf16.mxu0 %v12041_v5  ;;  %vm895_vm12 = vsmask.f32 7452  ;;  %v12043_v8 = vld [vmem:[%s16573_s1 + $0x30] sm:$0xff]  }
  0x17   :  { %16856 = vst [vmem:[#allocation8_spill] sm:$0xff] %v12371_v4  ;;  %vm888_vm7 = vmor %vm886_vm5, %vm887_vm3  ;;  %11773 = vmatpush3.bf16.msra.mxu0 %v12041_v5  ;;  %v11152_v9 = vld.sshfl [vmem:[%s16572_s0] sm:$0x33 pattern:$0x75316420]  ;;  %v12044_v20 = vld [vmem:[%s16573_s1 + $0x38] sm:$0xff]  }
  0x18   :  { %vm890_vm8 = vmor %vm888_vm7, %vm889_vm6  ;;  %v12380_v7 = vsub.s32 %v116_v3, %v12371_v4  ;;  %11774 = vmatprep.subr.bf16.mxu0 %v12042_v6  ;;  %v11153_v10 = vld.sshfl [vmem:[%s16572_s0 + $0x4] sm:$0x33 pattern:$0x75316420]  ;;  %v113_v11 = vcombine.high %v11152_v9, %v11152_v9  ;;  %vm2528_vm15 = vcmask 523264   ;;  %vm6860_vm7 = vcmask 916480  }
  0x19   :  { %vm892_vm11 = vmor %vm890_vm8, %vm891_vm9  ;;  %v11154_v13 = vld.sshfl [vmem:[%s16572_s0 + $0x8] sm:$0x33 pattern:$0x75316420]  ;;  %v137_v14 = vcombine.high %v11153_v10, %v11153_v10  ;;  %v12446_v34 = vld [vmem:[%s16573_s1] sm:$0xff]   ;;  %vm7513_vm8 = vcmask 1040384  }
  0x1a   :  { %v12392_v12 = vrot.slane %v11152_v9, %v12380_v7  ;;  %vm894_vm13 = vmor %vm892_vm11, %vm893_vm10  ;;  %v12398_v15 = vrot.slane %v11153_v10, %v12380_v7  ;;  %v12401_v16 = vrot.slane %v113_v11, %v12380_v7  ;;  %v160_v18 = vcombine.high %v11154_v13, %v11154_v13  ;;  %v11155_v47 = vld.sshfl [vmem:[%s16572_s0 + $0xc] sm:$0x33 pattern:$0x75316420]  ;;  %s12316_s16 = smov [#allocation5]  }
  0x1b   :  { %11775 = vmatpush3.bf16.msra.mxu0 %v12042_v6  ;;  %v12408_v19 = vrot.slane %v11154_v13, %v12380_v7  ;;  %v12414_v21 = vrot.slane %v137_v14, %v12380_v7  ;;  %vm12421_vm14 = vmor %vm894_vm13, %vm895_vm12  ;;  %v11156_v55 = vld.sshfl [vmem:[%s16572_s0 + $0x10] sm:$0x33 pattern:$0x75316420]  ;;  %v184_v60 = vcombine.high %v11155_v47, %v11155_v47  ;;  %v12492_v0 = vrot.slane %v11155_v47, %v12380_v7  ;;  %s11140_s17 = sshll.u32 %s12316_s16, 4  ;;  %s11141_s17 = int_to_ptr.vmem [resolvable:$true] %s11140_s17 }
  0x1c   :  { %v12405_v17 = vcombine.high %v12392_v12, %v12392_v12  ;;  %11776 = vmatprep.subr.bf16.mxu0 %v12043_v8  ;;  %v12418_v22 = vcombine.high %v12398_v15, %v12398_v15  ;;  %v898_v24 = vshrl.u32 %v12392_v12, 16  ;;  %v927_v25 = vshll.u32 %v12398_v15, 16  ;;  %v11157_v47 = vld.sshfl [vmem:[%s16572_s0 + $0x14] sm:$0x33 pattern:$0x75316420]  ;;  %p12289_p9 = scmp.lt.s32.totalorder %s11141_s17, %s11141_s17 }
  0x1d   :  { %v12429_v26 = vcombine.high %v12401_v16, %v12401_v16  ;;  %v12432_v27 = vrot.slane %v160_v18, %v12380_v7  ;;  %v903_v28 = vshll.u32 %v12401_v16, 16  ;;  %v906_v29 = vshrl.u32 %v12401_v16, 16  ;;  %s12284_s18 = scalar_lea.vmem %s11141_s17, 256 }
  0x1e   :  { %16857 = vst [vmem:[#allocation9_spill] sm:$0xff] %v12405_v17  ;;  %v12438_v30 = vcombine.high %v12414_v21, %v12414_v21  ;;  %v911_v31 = vshll.u32 %v12405_v17, 16  ;;  %v914_v32 = vshrl.u32 %v12405_v17, 16  ;;  %v930_v33 = vshrl.u32 %v12398_v15, 16  ;;  %p12285_p8 = scmp.ne.s32.totalorder %s11141_s17, %s12284_s18  ;;  %p12290_p10 = scmp.lt.s32.totalorder %s12284_s18, %s12284_s18 }
  0x1f   :  { %16860 = vst [vmem:[#allocation10_spill] sm:$0xff] %v12429_v26  ;;  %11777 = vmatpush3.bf16.msra.mxu0 %v12043_v8  ;;  %v905_v35 = vsel %vm12421_vm14, %v898_v24, %v903_v28  ;;  %v919_v36 = vshll.u32 %v12429_v26, 16  ;;  %v922_v37 = vshrl.u32 %v12429_v26, 16  ;;  %v935_v38 = vshll.u32 %v12414_v21, 16 }
  0x20   :  { %16861 = vst [vmem:[#allocation11_spill] sm:$0xff] %v12438_v30  ;;  %11778 = vmatprep.subr.bf16.mxu0 %v12044_v20  ;;  %v913_v39 = vsel %vm12421_vm14, %v906_v29, %v911_v31  ;;  %v938_v40 = vshrl.u32 %v12414_v21, 16  ;;  %v943_v41 = vshll.u32 %v12418_v22, 16  ;;  %v946_v42 = vshrl.u32 %v12418_v22, 16  ;;  %p12291_p11 = por %p12290_p10, %p12289_p9 }
  0x21   :  { %v921_v43 = vsel %vm12421_vm14, %v914_v32, %v919_v36  ;;  %v929_v44 = vsel %vm12421_vm14, %v922_v37, %v927_v25  ;;  %v937_v45 = vsel %vm12421_vm14, %v930_v33, %v935_v38  ;;  %v951_v46 = vshll.u32 %v12438_v30, 16 }
  0x22   :  { %v945_v48 = vsel %vm12421_vm14, %v938_v40, %v943_v41  ;;  %v955_v49 = vshrl.u32 %v12408_v19, 16  ;;  %v960_v50 = vshll.u32 %v12432_v27, 16  ;;  %v1818_v51 = vcombine.low %v905_v35, %v913_v39  ;;  %p12292_p12 = pnand %p12291_p11, %p12285_p8 }
  0x23   :  { %11779 = vmatpush3.bf16.msra.mxu0 %v12044_v20  ;;  %v953_v52 = vsel %vm12421_vm14, %v946_v42, %v951_v46  ;;  %v1819_v53 = vcombine.low %v921_v43, %v929_v44  ;;  %v1820_v54 = vcombine.low %v937_v45, %v945_v48  ;;  %v12479_v56 = vcombine.high %v12408_v19, %v12408_v19 }
  0x24   :  { %v962_v57 = vsel %vm12421_vm14, %v955_v49, %v960_v50  ;;  %v1828_v58 = vrot.slane %v1818_v51, %v12380_v7  ;;  %11808 = vmatprep.subr.bf16.mxu0 %v12446_v34  ;;  %v12487_v59 = vcombine.high %v12432_v27, %v12432_v27  ;;  %v12495_v1 = vrot.slane %v184_v60, %v12380_v7 }
  0x25   :  { %v1821_v61 = vcombine.low %v953_v52, %v962_v57  ;;  %v1835_v62 = vrot.slane %v1819_v53, %v12380_v7  ;;  %v1842_v63 = vrot.slane %v1820_v54, %v12380_v7  ;;  %v207_v2 = vcombine.high %v11156_v55, %v11156_v55  ;;  %v11158_v52 = vld.sshfl [vmem:[%s16572_s0 + $0x18] sm:$0x33 pattern:$0x75316420] }
  0x26   :  { %v12498_v3 = vrot.slane %v11156_v55, %v12380_v7  ;;  %v963_v5 = vshrl.u32 %v12432_v27, 16  ;;  %v12504_v9 = vcombine.high %v12492_v0, %v12492_v0  ;;  %v968_v10 = vshll.u32 %v12479_v56, 16 }
  0x27   :  { %v1849_v6 = vrot.slane %v1821_v61, %v12380_v7  ;;  %v1850_v8 = vcombine.low %v1828_v58, %v1835_v62  ;;  %v12508_v11 = vrot.slane %v207_v2, %v12380_v7  ;;  %v867_v14 = vcombine.high %v12495_v1, %v12495_v1 }
  0x28   :  { %v12512_v13 = vcombine.high %v12498_v3, %v12498_v3  ;;  %v971_v18 = vshrl.u32 %v12479_v56, 16  ;;  %v970_v25 = vsel %vm12421_vm14, %v963_v5, %v968_v10  ;;  %v976_v28 = vshll.u32 %v12487_v59, 16 }
  0x29   :  { %v1851_v20 = vcombine.low %v1842_v63, %v1849_v6  ;;  %v1858_v24 = vrot.slane %v1850_v8, %v12380_v7  ;;  %v979_v29 = vshrl.u32 %v12487_v59, 16  ;;  %v984_v31 = vshll.u32 %v12492_v0, 16 }
  0x2a   :  { %16862 = vst [vmem:[#allocation12_spill] sm:$0xff] %v12512_v13  ;;  %v987_v32 = vshrl.u32 %v12492_v0, 16  ;;  %v992_v33 = vshll.u32 %v12495_v1, 16  ;;  %v978_v36 = vsel %vm12421_vm14, %v971_v18, %v976_v28  ;;  %v995_v37 = vshrl.u32 %v12495_v1, 16 }
  0x2b   :  { %v1865_v35 = vrot.slane %v1851_v20, %v12380_v7  ;;  %v1000_v38 = vshll.u32 %v12504_v9, 16  ;;  %v986_v39 = vsel %vm12421_vm14, %v979_v29, %v984_v31  ;;  %v1003_v41 = vshrl.u32 %v12504_v9, 16 }
  0x2c   :  { %v994_v40 = vsel %vm12421_vm14, %v987_v32, %v992_v33  ;;  %v1008_v42 = vshll.u32 %v867_v14, 16  ;;  %v1012_v45 = vshrl.u32 %v12498_v3, 16  ;;  %v1017_v46 = vshll.u32 %v12508_v11, 16 }
  0x2d   :  { %v1866_v43 = vcombine.low %v1858_v24, %v1865_v35  ;;  %v1002_v44 = vsel %vm12421_vm14, %v995_v37, %v1000_v38  ;;  %v1020_v49 = vshrl.u32 %v12508_v11, 16  ;;  %v1025_v50 = vshll.u32 %v12512_v13, 16 }
  0x2e   :  { %v1010_v48 = vsel %vm12421_vm14, %v1003_v41, %v1008_v42  ;;  %v1867_v51 = vcombine.low %v970_v25, %v978_v36  ;;  %v1019_v53 = vsel %vm12421_vm14, %v1012_v45, %v1017_v46  ;;  %v1868_v54 = vcombine.low %v986_v39, %v994_v40 }
  0x2f   :  { %11780 = vmatprep.mubr.msk.bf16.mxu0 %vm2528_vm15, %v1866_v43  ;;  %v1869_v55 = vcombine.low %v1002_v44, %v1010_v48  ;;  %v12554_v57 = vcombine.high %v12508_v11, %v12508_v11  ;;  %v1027_v58 = vsel %vm12421_vm14, %v1020_v49, %v1025_v50  ;;  %v231_v61 = vcombine.high %v11157_v47, %v11157_v47  ;;  %v11159_v43 = vld.sshfl [vmem:[%s16572_s0 + $0x1c] sm:$0x33 pattern:$0x75316420]  ;;  %v12046_v48 = vld [vmem:[%s16573_s1 + $0x8] sm:$0xff]  }
  0x30   :  { %v1877_v60 = vrot.slane %v1867_v51, %v12380_v7  ;;  %v12560_v62 = vrot.slane %v11157_v47, %v12380_v7  ;;  %v1870_v63 = vcombine.low %v1019_v53, %v1027_v58  ;;  %v1884_v2 = vrot.slane %v1868_v54, %v12380_v7 }
  0x31   :  { %16863 = vst [vmem:[#allocation13_spill] sm:$0xff] %v12554_v57  ;;  %v1891_v5 = vrot.slane %v1869_v55, %v12380_v7  ;;  %v254_v6 = vcombine.high %v11158_v52, %v11158_v52  ;;  %v12565_v8 = vrot.slane %v231_v61, %v12380_v7  ;;  %v12572_v14 = vrot.slane %v11158_v52, %v12380_v7 }
  0x32   :  { %v12569_v10 = vcombine.high %v12560_v62, %v12560_v62  ;;  %v1028_v18 = vshrl.u32 %v12512_v13, 16  ;;  %v1898_v20 = vrot.slane %v1870_v63, %v12380_v7  ;;  %v1899_v24 = vcombine.low %v1877_v60, %v1884_v2  ;;  %v11160_v60 = vld.sshfl [vmem:[%s16572_s0 + $0x20] sm:$0x33 pattern:$0x75316420] }
  0x33   :  { %v12577_v25 = vrot.slane %v254_v6, %v12380_v7  ;;  %v1033_v28 = vshll.u32 %v12554_v57, 16  ;;  %v12582_v29 = vcombine.high %v12572_v14, %v12572_v14  ;;  %v12586_v31 = vcombine.high %v12565_v8, %v12565_v8 }
  0x34   :  { %v1036_v32 = vshrl.u32 %v12554_v57, 16  ;;  %v1041_v33 = vshll.u32 %v12560_v62, 16  ;;  %v1900_v35 = vcombine.low %v1891_v5, %v1898_v20  ;;  %v1907_v36 = vrot.slane %v1899_v24, %v12380_v7  ;;  %v12635_v24 = vld.sshfl [vmem:[%s16572_s0 + $0x24] sm:$0x33 pattern:$0x75316420] }
  0x35   :  { %16864 = vst [vmem:[#allocation14_spill] sm:$0xff] %v12586_v31  ;;  %v12593_v37 = vcombine.high %v12577_v25, %v12577_v25  ;;  %v1035_v38 = vsel %vm12421_vm14, %v1028_v18, %v1033_v28  ;;  %v1044_v40 = vshrl.u32 %v12560_v62, 16  ;;  %v1049_v41 = vshll.u32 %v12565_v8, 16 }
  0x36   :  { %v1043_v39 = vsel %vm12421_vm14, %v1036_v32, %v1041_v33  ;;  %v1052_v42 = vshrl.u32 %v12565_v8, 16  ;;  %v1914_v44 = vrot.slane %v1900_v35, %v12380_v7  ;;  %v1057_v45 = vshll.u32 %v12569_v10, 16 }
  0x37   :  { %v1060_v46 = vshrl.u32 %v12569_v10, 16  ;;  %v1065_v47 = vshll.u32 %v12586_v31, 16  ;;  %v1051_v49 = vsel %vm12421_vm14, %v1044_v40, %v1049_v41  ;;  %v1069_v50 = vshrl.u32 %v12572_v14, 16 }
  0x38   :  { %v1074_v51 = vshll.u32 %v12577_v25, 16  ;;  %v1077_v52 = vshrl.u32 %v12577_v25, 16  ;;  %v1915_v53 = vcombine.low %v1907_v36, %v1914_v44  ;;  %v1059_v54 = vsel %vm12421_vm14, %v1052_v42, %v1057_v45 }
  0x39   :  { %v1067_v55 = vsel %vm12421_vm14, %v1060_v46, %v1065_v47  ;;  %v1082_v58 = vshll.u32 %v12582_v29, 16  ;;  %v1085_v63 = vshrl.u32 %v12582_v29, 16  ;;  %v1090_v2 = vshll.u32 %v12593_v37, 16 }
  0x3a   :  { %v1076_v61 = vsel %vm12421_vm14, %v1069_v50, %v1074_v51  ;;  %v1916_v5 = vcombine.low %v1035_v38, %v1043_v39  ;;  %11781 = vmatmul.mubr.msk.bf16.vlgmr.msra.gmra.mrb[0].mxu0 %vm2528_vm15, %v1915_v53  ;;  %v1917_v18 = vcombine.low %v1051_v49, %v1059_v54  ;;  %v278_v28 = vcombine.high %v11159_v43, %v11159_v43  ;;  %v12048_v51 = vld [vmem:[%s16573_s1 + $0x18] sm:$0xff]  }
  0x3b   :  { %v1084_v6 = vsel %vm12421_vm14, %v1077_v52, %v1082_v58  ;;  %v1918_v20 = vcombine.low %v1067_v55, %v1076_v61  ;;  %11809 = vmatpush3.bf16.msra.mxu0 %v12446_v34  ;;  %v1092_v32 = vsel %vm12421_vm14, %v1085_v63, %v1090_v2  ;;  %v12642_v35 = vrot.slane %v11159_v43, %v12380_v7  ;;  %v12047_v34 = vld [vmem:[%s16573_s1 + $0x10] sm:$0xff]  }
  0x3c   :  { %v1926_v33 = vrot.slane %v1916_v5, %v12380_v7  ;;  %v301_v36 = vcombine.high %v11160_v60, %v11160_v60  ;;  %v1919_v38 = vcombine.low %v1084_v6, %v1092_v32  ;;  %v1933_v39 = vrot.slane %v1917_v18, %v12380_v7  ;;  %11810 = vmatprep.subr.bf16.mxu0 %v12046_v48 }
  0x3d   :  { %v1940_v40 = vrot.slane %v1918_v20, %v12380_v7  ;;  %v12647_v41 = vrot.slane %v278_v28, %v12380_v7  ;;  %v12654_v42 = vcombine.high %v12642_v35, %v12642_v35  ;;  %v12657_v43 = vrot.slane %v11160_v60, %v12380_v7 }
  0x3e   :  { %v12660_v44 = vrot.slane %v301_v36, %v12380_v7  ;;  %v12664_v45 = vrot.slane %v12635_v24, %v12380_v7  ;;  %v1947_v46 = vrot.slane %v1919_v38, %v12380_v7  ;;  %v1948_v47 = vcombine.low %v1926_v33, %v1933_v39  ;;  %v11162_v33 = vld.sshfl [vmem:[%s16572_s0 + $0x28] sm:$0x33 pattern:$0x75316420] }
  0x3f   :  { %v869_v49 = vcombine.high %v12647_v41, %v12647_v41  ;;  %v1093_v50 = vshrl.u32 %v12593_v37, 16  ;;  %v12675_v52 = vcombine.high %v12657_v43, %v12657_v43  ;;  %v1098_v54 = vshll.u32 %v12642_v35, 16  ;;  %11811 = vmatpush3.bf16.msra.mxu0 %v12046_v48 }
  0x40   :  { %v12679_v53 = vcombine.high %v12660_v44, %v12660_v44  ;;  %v1101_v55 = vshrl.u32 %v12642_v35, 16  ;;  %v1949_v58 = vcombine.low %v1940_v40, %v1947_v46  ;;  %v1956_v60 = vrot.slane %v1948_v47, %v12380_v7  ;;  %11812 = vmatprep.subr.bf16.mxu0 %v12047_v34 }
  0x41   :  { %16865 = vst [vmem:[#allocation15_spill] sm:$0xff] %v12675_v52  ;;  %v1106_v61 = vshll.u32 %v12647_v41, 16  ;;  %v1109_v63 = vshrl.u32 %v12647_v41, 16  ;;  %v1100_v2 = vsel %vm12421_vm14, %v1093_v50, %v1098_v54  ;;  %v1114_v5 = vshll.u32 %v12654_v42, 16 }
  0x42   :  { %16866 = vst [vmem:[#allocation16_spill] sm:$0xff] %v12679_v53  ;;  %v1117_v6 = vshrl.u32 %v12654_v42, 16  ;;  %v1122_v18 = vshll.u32 %v869_v49, 16  ;;  %v1963_v20 = vrot.slane %v1949_v58, %v12380_v7  ;;  %v1126_v28 = vshrl.u32 %v12657_v43, 16 }
  0x43   :  { %v1108_v48 = vsel %vm12421_vm14, %v1101_v55, %v1106_v61  ;;  %v1131_v32 = vshll.u32 %v12660_v44, 16  ;;  %v1116_v36 = vsel %vm12421_vm14, %v1109_v63, %v1114_v5  ;;  %v1134_v39 = vshrl.u32 %v12660_v44, 16  ;;  %11813 = vmatpush3.bf16.msra.mxu0 %v12047_v34  ;;  %v11163_v54 = vld.sshfl [vmem:[%s16572_s0 + $0x2c] sm:$0x33 pattern:$0x75316420] }
  0x44   :  { %v1124_v38 = vsel %vm12421_vm14, %v1117_v6, %v1122_v18  ;;  %v1139_v40 = vshll.u32 %v12675_v52, 16  ;;  %v1964_v46 = vcombine.low %v1956_v60, %v1963_v20  ;;  %v1142_v49 = vshrl.u32 %v12675_v52, 16  ;;  %11814 = vmatprep.subr.bf16.mxu0 %v12048_v51 }
  0x45   :  { %v1133_v47 = vsel %vm12421_vm14, %v1126_v28, %v1131_v32  ;;  %v1147_v50 = vshll.u32 %v12679_v53, 16  ;;  %v1150_v58 = vshrl.u32 %v12679_v53, 16  ;;  %v1155_v34 = vshll.u32 %v12664_v45, 16 }
  0x46   :  { %v1141_v55 = vsel %vm12421_vm14, %v1134_v39, %v1139_v40  ;;  %v1965_v60 = vcombine.low %v1100_v2, %v1108_v48  ;;  %11784 = vmatprep.mubr.msk.bf16.mxu0 %vm2528_vm15, %v1964_v46  ;;  %v1966_v63 = vcombine.low %v1116_v36, %v1124_v38  ;;  %v325_v6 = vcombine.high %v12635_v24, %v12635_v24 }
  0x47   :  { %v1149_v61 = vsel %vm12421_vm14, %v1142_v49, %v1147_v50  ;;  %v1967_v5 = vcombine.low %v1133_v47, %v1141_v55  ;;  %v1157_v18 = vsel %vm12421_vm14, %v1150_v58, %v1155_v34  ;;  %v12725_v28 = vcombine.high %v12664_v45, %v12664_v45  ;;  %11815 = vmatpush3.bf16.msra.mxu0 %v12048_v51 }
  0x48   :  { %v1975_v20 = vrot.slane %v1965_v60, %v12380_v7  ;;  %v348_v2 = vcombine.high %v11162_v33, %v11162_v33  ;;  %v1968_v48 = vcombine.low %v1149_v61, %v1157_v18  ;;  %v1982_v32 = vrot.slane %v1966_v63, %v12380_v7 }
  0x49   :  { %v1989_v36 = vrot.slane %v1967_v5, %v12380_v7  ;;  %v12730_v38 = vrot.slane %v325_v6, %v12380_v7  ;;  %v12733_v24 = vrot.slane %v11162_v33, %v12380_v7  ;;  %v372_v40 = vcombine.high %v11163_v54, %v11163_v54  ;;  %v12049_v5 = vld [vmem:[%s16573_s1 + $0x40] sm:$0xff]  }
  0x4a   :  { %v12736_v39 = vrot.slane %v348_v2, %v12380_v7  ;;  %v12739_v46 = vrot.slane %v11163_v54, %v12380_v7  ;;  %v1996_v51 = vrot.slane %v1968_v48, %v12380_v7  ;;  %v1997_v47 = vcombine.low %v1975_v20, %v1982_v32  ;;  %11844 = vmatprep.subr.bf16.mxu0 %v12049_v5  ;;  %v11165_v5 = vld.sshfl [vmem:[%s16572_s0 + $0x34] sm:$0x33 pattern:$0x75316420] }
  0x4b   :  { %v12744_v49 = vcombine.high %v12730_v38, %v12730_v38  ;;  %v1158_v50 = vshrl.u32 %v12664_v45, 16  ;;  %v12749_v33 = vcombine.high %v12733_v24, %v12733_v24  ;;  %v12756_v54 = vrot.slane %v372_v40, %v12380_v7 }
  0x4c   :  { %v12753_v55 = vcombine.high %v12736_v39, %v12736_v39  ;;  %v1163_v58 = vshll.u32 %v12730_v38, 16  ;;  %v1998_v34 = vcombine.low %v1989_v36, %v1996_v51  ;;  %v2005_v60 = vrot.slane %v1997_v47, %v12380_v7  ;;  %v11164_v51 = vld.sshfl [vmem:[%s16572_s0 + $0x30] sm:$0x33 pattern:$0x75316420] }
  0x4d   :  { %16867 = vst [vmem:[#allocation17_spill] sm:$0xff] %v12744_v49  ;;  %v1166_v61 = vshrl.u32 %v12730_v38, 16  ;;  %v1171_v63 = vshll.u32 %v12725_v28, 16  ;;  %v1174_v18 = vshrl.u32 %v12725_v28, 16  ;;  %v1179_v20 = vshll.u32 %v12744_v49, 16 }
  0x4e   :  { %v1165_v6 = vsel %vm12421_vm14, %v1158_v50, %v1163_v58  ;;  %v1183_v2 = vshrl.u32 %v12733_v24, 16  ;;  %v2012_v48 = vrot.slane %v1998_v34, %v12380_v7  ;;  %v1188_v36 = vshll.u32 %v12736_v39, 16 }
  0x4f   :  { %v1173_v32 = vsel %vm12421_vm14, %v1166_v61, %v1171_v63  ;;  %v1191_v40 = vshrl.u32 %v12736_v39, 16  ;;  %v1181_v47 = vsel %vm12421_vm14, %v1174_v18, %v1179_v20  ;;  %v1196_v50 = vshll.u32 %v12749_v33, 16 }
  0x50   :  { %v1199_v58 = vshrl.u32 %v12749_v33, 16  ;;  %v1204_v34 = vshll.u32 %v12753_v55, 16  ;;  %v2013_v4 = vcombine.low %v2005_v60, %v2012_v48  ;;  %v1190_v61 = vsel %vm12421_vm14, %v1183_v2, %v1188_v36 }
  0x51   :  { %v1207_v63 = vshrl.u32 %v12753_v55, 16  ;;  %v1212_v49 = vshll.u32 %v12739_v46, 16  ;;  %v1198_v18 = vsel %vm12421_vm14, %v1191_v40, %v1196_v50  ;;  %v1215_v53 = vshrl.u32 %v12739_v46, 16 }
  0x52   :  { %v1206_v20 = vsel %vm12421_vm14, %v1199_v58, %v1204_v34  ;;  %v1220_v60 = vshll.u32 %v12756_v54, 16  ;;  %11785 = vmatmul.mubr.msk.bf16.gmra.mrb[4].mxu0 %vm2528_vm15, %v2013_v4  ;;  %v2014_v48 = vcombine.low %v1165_v6, %v1173_v32  ;;  %v2015_v36 = vcombine.low %v1181_v47, %v1190_v61 }
  0x53   :  { %v1214_v2 = vsel %vm12421_vm14, %v1207_v63, %v1212_v49  ;;  %v2016_v52 = vcombine.low %v1198_v18, %v1206_v20  ;;  %v12803_v40 = vcombine.high %v12739_v46, %v12739_v46  ;;  %v395_v50 = vcombine.high %v11164_v51, %v11164_v51 }
  0x54   :  { %v1222_v31 = vsel %vm12421_vm14, %v1215_v53, %v1220_v60  ;;  %v12806_v58 = vrot.slane %v11164_v51, %v12380_v7  ;;  %v2024_v4 = vrot.slane %v2014_v48, %v12380_v7  ;;  %v2031_v57 = vrot.slane %v2015_v36, %v12380_v7 }
  0x55   :  { %v2017_v34 = vcombine.low %v1214_v2, %v1222_v31  ;;  %v2038_v49 = vrot.slane %v2016_v52, %v12380_v7  ;;  %v12812_v6 = vrot.slane %v395_v50, %v12380_v7  ;;  %v419_v32 = vcombine.high %v11165_v5, %v11165_v5 }
  0x56   :  { %16868 = vst [vmem:[#allocation18_spill] sm:$0xff] %v12806_v58  ;;  %v12816_v53 = vcombine.high %v12806_v58, %v12806_v58  ;;  %v12819_v47 = vrot.slane %v11165_v5, %v12380_v7  ;;  %v2046_v31 = vcombine.low %v2024_v4, %v2031_v57  ;;  %v871_v61 = vcombine.high %v12756_v54, %v12756_v54 }
  0x57   :  { %16869 = vst [vmem:[#allocation19_spill] sm:$0xff] %v12812_v6  ;;  %v2045_v51 = vrot.slane %v2017_v34, %v12380_v7  ;;  %v1223_v63 = vshrl.u32 %v12756_v54, 16  ;;  %v12827_v52 = vcombine.high %v12812_v6, %v12812_v6  ;;  %v12830_v18 = vrot.slane %v419_v32, %v12380_v7 }
  0x58   :  { %16870 = vst [vmem:[#allocation20_spill] sm:$0xff] %v12816_v53  ;;  %16871 = vst [vmem:[#allocation21_spill] sm:$0xff] %v12819_v47  ;;  %v12834_v20 = vcombine.high %v12819_v47, %v12819_v47  ;;  %v1228_v5 = vshll.u32 %v12803_v40, 16  ;;  %v2054_v57 = vrot.slane %v2046_v31, %v12380_v7  ;;  %v1231_v2 = vshrl.u32 %v12803_v40, 16 }
  0x59   :  { %16872 = vst [vmem:[#allocation22_spill] sm:$0xff] %v12827_v52  ;;  %16873 = vst [vmem:[#allocation23_spill] sm:$0xff] %v12830_v18  ;;  %v2047_v60 = vcombine.low %v2038_v49, %v2045_v51  ;;  %v1236_v48 = vshll.u32 %v871_v61, 16  ;;  %v1240_v50 = vshrl.u32 %v12806_v58, 16  ;;  %v1245_v34 = vshll.u32 %v12812_v6, 16 }
  0x5a   :  { %16874 = vst [vmem:[#allocation24_spill] sm:$0xff] %v12834_v20  ;;  %v1230_v36 = vsel %vm12421_vm14, %v1223_v63, %v1228_v5  ;;  %v1248_v4 = vshrl.u32 %v12812_v6, 16  ;;  %v1253_v49 = vshll.u32 %v12816_v53, 16  ;;  %v1256_v51 = vshrl.u32 %v12816_v53, 16 }
  0x5b   :  { %v2061_v32 = vrot.slane %v2047_v60, %v12380_v7  ;;  %v1238_v13 = vsel %vm12421_vm14, %v1231_v2, %v1236_v48  ;;  %v11166_v31 = vld.sshfl [vmem:[%s16572_s0 + $0x38] sm:$0x33 pattern:$0x75316420]  ;;  %v1247_v63 = vsel %vm12421_vm14, %v1240_v50, %v1245_v34  ;;  %v1261_v5 = vshll.u32 %v12827_v52, 16 }
  0x5c   :  { %v11167_v61 = vld.sshfl [vmem:[%s16572_s0 + $0x3c] sm:$0x33 pattern:$0x75316420]  ;;  %v1264_v60 = vshrl.u32 %v12827_v52, 16  ;;  %v1269_v2 = vshll.u32 %v12819_v47, 16  ;;  %v1255_v53 = vsel %vm12421_vm14, %v1248_v4, %v1253_v49  ;;  %v2063_v4 = vcombine.low %v1230_v36, %v1238_v13 }
  0x5d   :  { %v2062_v48 = vcombine.low %v2054_v57, %v2061_v32  ;;  %v1272_v30 = vshrl.u32 %v12819_v47, 16  ;;  %v1277_v26 = vshll.u32 %v12830_v18, 16  ;;  %v1263_v17 = vsel %vm12421_vm14, %v1256_v51, %v1261_v5 }
  0x5e   :  { %v1271_v50 = vsel %vm12421_vm14, %v1264_v60, %v1269_v2  ;;  %v1280_v34 = vshrl.u32 %v12830_v18, 16  ;;  %v1285_v52 = vshll.u32 %v12834_v20, 16  ;;  %v2064_v32 = vcombine.low %v1247_v63, %v1255_v53 }
  0x5f   :  { %11788 = vmatprep.mubr.msk.bf16.mxu0 %vm2528_vm15, %v2062_v48  ;;  %v1279_v57 = vsel %vm12421_vm14, %v1272_v30, %v1277_v26  ;;  %v2065_v49 = vcombine.low %v1263_v17, %v1271_v50  ;;  %v442_v58 = vcombine.high %v11166_v31, %v11166_v31  ;;  %v12876_v51 = vrot.slane %v11166_v31, %v12380_v7 }
  0x60   :  { %v1287_v47 = vsel %vm12421_vm14, %v1280_v34, %v1285_v52  ;;  %v466_v5 = vcombine.high %v11167_v61, %v11167_v61  ;;  %v2073_v2 = vrot.slane %v2063_v4, %v12380_v7  ;;  %v2080_v6 = vrot.slane %v2064_v32, %v12380_v7 }
  0x61   :  { %16875 = vst [vmem:[#allocation25_spill] sm:$0xff] %v12876_v51  ;;  %v2066_v60 = vcombine.low %v1279_v57, %v1287_v47  ;;  %v2087_v48 = vrot.slane %v2065_v49, %v12380_v7  ;;  %v12882_v26 = vrot.slane %v442_v58, %v12380_v7  ;;  %v12886_v17 = vcombine.high %v12876_v51, %v12876_v51 }
  0x62   :  { %v12889_v30 = vrot.slane %v11167_v61, %v12380_v7  ;;  %v12892_v13 = vrot.slane %v466_v5, %v12380_v7  ;;  %v2095_v47 = vcombine.low %v2073_v2, %v2080_v6  ;;  %v12897_v52 = vcombine.high %v12830_v18, %v12830_v18 }
  0x63   :  { %16876 = vst [vmem:[#allocation26_spill] sm:$0xff] %v12882_v26  ;;  %16877 = vst [vmem:[#allocation27_spill] sm:$0xff] %v12886_v17  ;;  %v2094_v53 = vrot.slane %v2066_v60, %v12380_v7  ;;  %v1288_v58 = vshrl.u32 %v12834_v20, 16  ;;  %v12902_v36 = vcombine.high %v12882_v26, %v12882_v26  ;;  %v1297_v63 = vshrl.u32 %v12876_v51, 16 }
  0x64   :  { %16878 = vst [vmem:[#allocation28_spill] sm:$0xff] %v12889_v30  ;;  %16879 = vst [vmem:[#allocation29_spill] sm:$0xff] %v12892_v13  ;;  %v12906_v31 = vcombine.high %v12889_v30, %v12889_v30  ;;  %v873_v61 = vcombine.high %v12892_v13, %v12892_v13  ;;  %v2103_v50 = vrot.slane %v2095_v47, %v12380_v7  ;;  %v1293_v34 = vshll.u32 %v12897_v52, 16 }
  0x65   :  { %16880 = vst [vmem:[#allocation30_spill] sm:$0xff] %v12897_v52  ;;  %16881 = vst [vmem:[#allocation31_spill] sm:$0xff] %v12902_v36  ;;  %v2096_v6 = vcombine.low %v2087_v48, %v2094_v53  ;;  %v1302_v57 = vshll.u32 %v12882_v26, 16  ;;  %v1305_v4 = vshrl.u32 %v12882_v26, 16  ;;  %v1310_v32 = vshll.u32 %v12886_v17, 16 }
  0x66   :  { %16882 = vst [vmem:[#allocation32_spill] sm:$0xff] %v12906_v31  ;;  %v1313_v49 = vshrl.u32 %v12886_v17, 16  ;;  %v1318_v5 = vshll.u32 %v12902_v36, 16  ;;  %v1295_v48 = vsel %vm12421_vm14, %v1288_v58, %v1293_v34  ;;  %v1321_v47 = vshrl.u32 %v12902_v36, 16 }
  0x67   :  { %v11168_v60 = vld.sshfl [vmem:[%s16572_s0 + $0x40] sm:$0x33 pattern:$0x75316420]  ;;  %v2110_v2 = vrot.slane %v2096_v6, %v12380_v7  ;;  %v1304_v53 = vsel %vm12421_vm14, %v1297_v63, %v1302_v57  ;;  %v1312_v52 = vsel %vm12421_vm14, %v1305_v4, %v1310_v32  ;;  %v1326_v17 = vshll.u32 %v12889_v30, 16 }
  0x68   :  { %v1320_v26 = vsel %vm12421_vm14, %v1313_v49, %v1318_v5  ;;  %v1329_v20 = vshrl.u32 %v12889_v30, 16  ;;  %v11169_v6 = vld.sshfl [vmem:[%s16572_s0 + $0x44] sm:$0x33 pattern:$0x75316420]  ;;  %v1334_v34 = vshll.u32 %v12892_v13, 16  ;;  %v2112_v36 = vcombine.low %v1295_v48, %v1304_v53 }
  0x69   :  { %v2111_v58 = vcombine.low %v2103_v50, %v2110_v2  ;;  %v1337_v63 = vshrl.u32 %v12892_v13, 16  ;;  %v1342_v57 = vshll.u32 %v12906_v31, 16  ;;  %v11170_v4 = vld.sshfl [vmem:[%s16572_s0 + $0x48] sm:$0x33 pattern:$0x75316420]  ;;  %v1328_v32 = vsel %vm12421_vm14, %v1321_v47, %v1326_v17 }
  0x6a   :  { %v1345_v49 = vshrl.u32 %v12906_v31, 16  ;;  %v1350_v5 = vshll.u32 %v873_v61, 16  ;;  %v1336_v50 = vsel %vm12421_vm14, %v1329_v20, %v1334_v34  ;;  %v2113_v13 = vcombine.low %v1312_v52, %v1320_v26 }
  0x6b   :  { %11789 = vmatmul.mubr.msk.bf16.gmra.mrb[8].mxu0 %vm2528_vm15, %v2111_v58  ;;  %v1344_v2 = vsel %vm12421_vm14, %v1337_v63, %v1342_v57  ;;  %v489_v30 = vcombine.high %v11168_v60, %v11168_v60  ;;  %v2114_v18 = vcombine.low %v1328_v32, %v1336_v50  ;;  %v2122_v17 = vrot.slane %v2112_v36, %v12380_v7 }
  0x6c   :  { %v1352_v51 = vsel %vm12421_vm14, %v1345_v49, %v1350_v5  ;;  %v12954_v47 = vrot.slane %v11168_v60, %v12380_v7  ;;  %v2129_v48 = vrot.slane %v2113_v13, %v12380_v7  ;;  %v513_v20 = vcombine.high %v11169_v6, %v11169_v6 }
  0x6d   :  { %v2115_v61 = vcombine.low %v1344_v2, %v1352_v51  ;;  %v12958_v53 = vrot.slane %v489_v30, %v12380_v7  ;;  %v2136_v58 = vrot.slane %v2114_v18, %v12380_v7  ;;  %v12966_v52 = vrot.slane %v11169_v6, %v12380_v7 }
  0x6e   :  { %16883 = vst [vmem:[#allocation33_spill] sm:$0xff] %v12954_v47  ;;  %v12963_v26 = vcombine.high %v12954_v47, %v12954_v47  ;;  %v536_v36 = vcombine.high %v11170_v4, %v11170_v4  ;;  %v2144_v34 = vcombine.low %v2122_v17, %v2129_v48  ;;  %v12974_v30 = vrot.slane %v513_v20, %v12380_v7 }
  0x6f   :  { %16884 = vst [vmem:[#allocation34_spill] sm:$0xff] %v12958_v53  ;;  %16886 = vst [vmem:[#allocation36_spill] sm:$0xff] %v12966_v52  ;;  %v2143_v60 = vrot.slane %v2115_v61, %v12380_v7  ;;  %v12971_v51 = vcombine.high %v12958_v53, %v12958_v53  ;;  %v12978_v18 = vcombine.high %v12966_v52, %v12966_v52  ;;  %v1354_v63 = vshrl.u32 %v12954_v47, 16 }
  0x70   :  { %16885 = vst [vmem:[#allocation35_spill] sm:$0xff] %v12963_v26  ;;  %16888 = vst [vmem:[#allocation38_spill] sm:$0xff] %v12974_v30  ;;  %v12981_v13 = vrot.slane %v11170_v4, %v12380_v7  ;;  %v12984_v6 = vrot.slane %v536_v36, %v12380_v7  ;;  %v2152_v32 = vrot.slane %v2144_v34, %v12380_v7  ;;  %v1359_v5 = vshll.u32 %v12958_v53, 16 }
  0x71   :  { %16887 = vst [vmem:[#allocation37_spill] sm:$0xff] %v12971_v51  ;;  %16889 = vst [vmem:[#allocation39_spill] sm:$0xff] %v12978_v18  ;;  %v2145_v57 = vcombine.low %v2136_v58, %v2143_v60  ;;  %v12990_v49 = vcombine.high %v12974_v30, %v12974_v30  ;;  %v1362_v50 = vshrl.u32 %v12958_v53, 16  ;;  %v1367_v2 = vshll.u32 %v12963_v26, 16 }
  0x72   :  { %16890 = vst [vmem:[#allocation40_spill] sm:$0xff] %v12981_v13  ;;  %16891 = vst [vmem:[#allocation41_spill] sm:$0xff] %v12984_v6  ;;  %v1370_v4 = vshrl.u32 %v12963_v26, 16  ;;  %v1375_v17 = vshll.u32 %v12971_v51, 16  ;;  %v1361_v48 = vsel %vm12421_vm14, %v1354_v63, %v1359_v5  ;;  %v1378_v20 = vshrl.u32 %v12971_v51, 16 }
  0x73   :  { %16892 = vst [vmem:[#allocation42_spill] sm:$0xff] %v12990_v49  ;;  %v2159_v61 = vrot.slane %v2145_v57, %v12380_v7  ;;  %v1383_v58 = vshll.u32 %v12966_v52, 16  ;;  %v1369_v36 = vsel %vm12421_vm14, %v1362_v50, %v1367_v2  ;;  %v1386_v34 = vshrl.u32 %v12966_v52, 16 }
  0x74   :  { %v1377_v60 = vsel %vm12421_vm14, %v1370_v4, %v1375_v17  ;;  %v1391_v26 = vshll.u32 %v12974_v30, 16  ;;  %v11171_v57 = vld.sshfl [vmem:[%s16572_s0 + $0x4c] sm:$0x33 pattern:$0x75316420]  ;;  %v1394_v5 = vshrl.u32 %v12974_v30, 16 }
  0x75   :  { %v2160_v47 = vcombine.low %v2152_v32, %v2159_v61  ;;  %v1385_v63 = vsel %vm12421_vm14, %v1378_v20, %v1383_v58  ;;  %v1399_v51 = vshll.u32 %v12978_v18, 16  ;;  %v11172_v50 = vld.sshfl [vmem:[%s16572_s0 + $0x50] sm:$0x33 pattern:$0x75316420]  ;;  %v1402_v4 = vshrl.u32 %v12978_v18, 16 }
  0x76   :  { %v1393_v2 = vsel %vm12421_vm14, %v1386_v34, %v1391_v26  ;;  %v1407_v17 = vshll.u32 %v12990_v49, 16  ;;  %v1411_v32 = vshrl.u32 %v12981_v13, 16  ;;  %v1416_v20 = vshll.u32 %v12984_v6, 16 }
  0x77   :  { %11792 = vmatprep.mubr.msk.bf16.mxu0 %vm2528_vm15, %v2160_v47  ;;  %v1401_v61 = vsel %vm12421_vm14, %v1394_v5, %v1399_v51  ;;  %v2161_v58 = vcombine.low %v1361_v48, %v1369_v36  ;;  %v2162_v52 = vcombine.low %v1377_v60, %v1385_v63  ;;  %v13031_v26 = vcombine.high %v12981_v13, %v12981_v13 }
  0x78   :  { %v1409_v30 = vsel %vm12421_vm14, %v1402_v4, %v1407_v17  ;;  %v2163_v53 = vcombine.low %v1393_v2, %v1401_v61  ;;  %v13035_v34 = vcombine.high %v12984_v6, %v12984_v6  ;;  %v1418_v47 = vsel %vm12421_vm14, %v1411_v32, %v1416_v20 }
  0x79   :  { %16893 = vst [vmem:[#allocation43_spill] sm:$0xff] %v13031_v26  ;;  %v2171_v51 = vrot.slane %v2161_v58, %v12380_v7  ;;  %v2178_v48 = vrot.slane %v2162_v52, %v12380_v7  ;;  %v560_v36 = vcombine.high %v11171_v57, %v11171_v57  ;;  %v2164_v60 = vcombine.low %v1409_v30, %v1418_v47 }
  0x7a   :  { %16894 = vst [vmem:[#allocation44_spill] sm:$0xff] %v13035_v34  ;;  %v2185_v63 = vrot.slane %v2163_v53, %v12380_v7  ;;  %v13043_v5 = vrot.slane %v11171_v57, %v12380_v7  ;;  %v583_v2 = vcombine.high %v11172_v50, %v11172_v50  ;;  %v13049_v61 = vrot.slane %v11172_v50, %v12380_v7 }
  0x7b   :  { %v2193_v4 = vcombine.low %v2171_v51, %v2178_v48  ;;  %v13046_v17 = vrot.slane %v560_v36, %v12380_v7  ;;  %v1419_v32 = vshrl.u32 %v12984_v6, 16  ;;  %v2192_v20 = vrot.slane %v2164_v60, %v12380_v7 }
  0x7c   :  { %16895 = vst [vmem:[#allocation45_spill] sm:$0xff] %v13043_v5  ;;  %16897 = vst [vmem:[#allocation47_spill] sm:$0xff] %v13049_v61  ;;  %v13055_v52 = vcombine.high %v13043_v5, %v13043_v5  ;;  %v13058_v53 = vrot.slane %v583_v2, %v12380_v7  ;;  %v1424_v30 = vshll.u32 %v13031_v26, 16  ;;  %v13064_v58 = vcombine.high %v13049_v61, %v13049_v61 }
  0x7d   :  { %16896 = vst [vmem:[#allocation46_spill] sm:$0xff] %v13046_v17  ;;  %v2201_v57 = vrot.slane %v2193_v4, %v12380_v7  ;;  %v875_v50 = vcombine.high %v13046_v17, %v13046_v17  ;;  %v1427_v47 = vshrl.u32 %v13031_v26, 16  ;;  %v2194_v51 = vcombine.low %v2185_v63, %v2192_v20  ;;  %v11173_v26 = vld.sshfl [vmem:[%s16572_s0 + $0x54] sm:$0x33 pattern:$0x75316420] }
  0x7e   :  { %16898 = vst [vmem:[#allocation48_spill] sm:$0xff] %v13055_v52  ;;  %16899 = vst [vmem:[#allocation49_spill] sm:$0xff] %v13058_v53  ;;  %v1426_v48 = vsel %vm12421_vm14, %v1419_v32, %v1424_v30  ;;  %v1432_v36 = vshll.u32 %v13035_v34, 16  ;;  %v1435_v60 = vshrl.u32 %v13035_v34, 16  ;;  %v1440_v2 = vshll.u32 %v13043_v5, 16 }
  0x7f   :  { %16900 = vst [vmem:[#allocation50_spill] sm:$0xff] %v13064_v58  ;;  %v1443_v4 = vshrl.u32 %v13043_v5, 16  ;;  %v1448_v49 = vshll.u32 %v13046_v17, 16  ;;  %v1451_v6 = vshrl.u32 %v13046_v17, 16  ;;  %v2208_v63 = vrot.slane %v2194_v51, %v12380_v7 }
  0x80   :  { %v1434_v32 = vsel %vm12421_vm14, %v1427_v47, %v1432_v36  ;;  %v1456_v20 = vshll.u32 %v13055_v52, 16  ;;  %v1459_v30 = vshrl.u32 %v13055_v52, 16  ;;  %v1442_v34 = vsel %vm12421_vm14, %v1435_v60, %v1440_v2  ;;  %v11174_v51 = vld.sshfl [vmem:[%s16572_s0 + $0x58] sm:$0x33 pattern:$0x75316420] }
  0x81   :  { %v1450_v5 = vsel %vm12421_vm14, %v1443_v4, %v1448_v49  ;;  %v1464_v17 = vshll.u32 %v875_v50, 16  ;;  %v1468_v18 = vshrl.u32 %v13049_v61, 16  ;;  %v2209_v13 = vcombine.low %v2201_v57, %v2208_v63 }
  0x82   :  { %v1458_v47 = vsel %vm12421_vm14, %v1451_v6, %v1456_v20  ;;  %v1473_v36 = vshll.u32 %v13058_v53, 16  ;;  %v1476_v52 = vshrl.u32 %v13058_v53, 16  ;;  %v1481_v49 = vshll.u32 %v13064_v58, 16 }
  0x83   :  { %v1466_v60 = vsel %vm12421_vm14, %v1459_v30, %v1464_v17  ;;  %v2210_v50 = vcombine.low %v1426_v48, %v1434_v32  ;;  %v2211_v2 = vcombine.low %v1442_v34, %v1450_v5  ;;  %11793 = vmatmul.mubr.msk.bf16.gmra.mrb[12].mxu0 %vm2528_vm15, %v2209_v13  ;;  %v13105_v6 = vcombine.high %v13058_v53, %v13058_v53 }
  0x84   :  { %v1475_v4 = vsel %vm12421_vm14, %v1468_v18, %v1473_v36  ;;  %v2212_v57 = vcombine.low %v1458_v47, %v1466_v60  ;;  %v607_v63 = vcombine.high %v11173_v26, %v11173_v26  ;;  %v1483_v20 = vsel %vm12421_vm14, %v1476_v52, %v1481_v49 }
  0x85   :  { %16901 = vst [vmem:[#allocation51_spill] sm:$0xff] %v13105_v6  ;;  %v2220_v17 = vrot.slane %v2210_v50, %v12380_v7  ;;  %v2227_v30 = vrot.slane %v2211_v2, %v12380_v7  ;;  %v13112_v34 = vrot.slane %v11173_v26, %v12380_v7  ;;  %v2213_v13 = vcombine.low %v1475_v4, %v1483_v20 }
  0x86   :  { %v2234_v5 = vrot.slane %v2212_v57, %v12380_v7  ;;  %v13116_v18 = vrot.slane %v607_v63, %v12380_v7  ;;  %v630_v48 = vcombine.high %v11174_v51, %v11174_v51  ;;  %v13123_v52 = vrot.slane %v11174_v51, %v12380_v7 }
  0x87   :  { %16902 = vst [vmem:[#allocation52_spill] sm:$0xff] %v13112_v34  ;;  %v2242_v32 = vcombine.low %v2220_v17, %v2227_v30  ;;  %v13120_v47 = vcombine.high %v13112_v34, %v13112_v34  ;;  %v1484_v36 = vshrl.u32 %v13064_v58, 16  ;;  %v2241_v26 = vrot.slane %v2213_v13, %v12380_v7 }
  0x88   :  { %16903 = vst [vmem:[#allocation53_spill] sm:$0xff] %v13116_v18  ;;  %16905 = vst [vmem:[#allocation55_spill] sm:$0xff] %v13123_v52  ;;  %v13128_v60 = vrot.slane %v630_v48, %v12380_v7  ;;  %v13132_v49 = vcombine.high %v13116_v18, %v13116_v18  ;;  %v1489_v50 = vshll.u32 %v13105_v6, 16  ;;  %v13138_v4 = vcombine.high %v13123_v52, %v13123_v52 }
  0x89   :  { %16904 = vst [vmem:[#allocation54_spill] sm:$0xff] %v13120_v47  ;;  %v2250_v2 = vrot.slane %v2242_v32, %v12380_v7  ;;  %v1492_v51 = vshrl.u32 %v13105_v6, 16  ;;  %v1497_v57 = vshll.u32 %v13112_v34, 16  ;;  %v2243_v63 = vcombine.low %v2234_v5, %v2241_v26 }
  0x8a   :  { %16906 = vst [vmem:[#allocation56_spill] sm:$0xff] %v13128_v60  ;;  %16907 = vst [vmem:[#allocation57_spill] sm:$0xff] %v13132_v49  ;;  %v13144_v20 = vcombine.high %v13128_v60, %v13128_v60  ;;  %v1491_v17 = vsel %vm12421_vm14, %v1484_v36, %v1489_v50  ;;  %v1500_v30 = vshrl.u32 %v13112_v34, 16  ;;  %v1505_v48 = vshll.u32 %v13116_v18, 16 }
  0x8b   :  { %v1499_v13 = vsel %vm12421_vm14, %v1492_v51, %v1497_v57  ;;  %v1508_v32 = vshrl.u32 %v13116_v18, 16  ;;  %v1513_v6 = vshll.u32 %v13120_v47, 16  ;;  %v11175_v5 = vld.sshfl [vmem:[%s16572_s0 + $0x5c] sm:$0x33 pattern:$0x75316420]  ;;  %v2257_v26 = vrot.slane %v2243_v63, %v12380_v7 }
  0x8c   :  { %16908 = vst [vmem:[#allocation58_spill] sm:$0xff] %v13144_v20  ;;  %v1516_v58 = vshrl.u32 %v13120_v47, 16  ;;  %v1521_v36 = vshll.u32 %v13132_v49, 16  ;;  %v1525_v50 = vshrl.u32 %v13123_v52, 16  ;;  %v1507_v57 = vsel %vm12421_vm14, %v1500_v30, %v1505_v48 }
  0x8d   :  { %v11176_v51 = vld.sshfl [vmem:[%s16572_s0 + $0x60] sm:$0x33 pattern:$0x75316420]  ;;  %v1515_v34 = vsel %vm12421_vm14, %v1508_v32, %v1513_v6  ;;  %v1530_v18 = vshll.u32 %v13128_v60, 16  ;;  %v1533_v63 = vshrl.u32 %v13128_v60, 16  ;;  %v2258_v61 = vcombine.low %v2250_v2, %v2257_v26 }
  0x8e   :  { %v1523_v49 = vsel %vm12421_vm14, %v1516_v58, %v1521_v36  ;;  %v1538_v47 = vshll.u32 %v13138_v4, 16  ;;  %v1541_v52 = vshrl.u32 %v13138_v4, 16  ;;  %v1546_v30 = vshll.u32 %v13144_v20, 16 }
  0x8f   :  { %v1532_v53 = vsel %vm12421_vm14, %v1525_v50, %v1530_v18  ;;  %v2259_v48 = vcombine.low %v1491_v17, %v1499_v13  ;;  %v2260_v31 = vcombine.low %v1507_v57, %v1515_v34  ;;  %11796 = vmatprep.mubr.msk.bf16.mxu0 %vm2528_vm15, %v2258_v61  ;;  %v11177_v58 = vld.sshfl [vmem:[%s16572_s0 + $0x64] sm:$0x33 pattern:$0x75316420]  ;;  %v654_v32 = vcombine.high %v11175_v5, %v11175_v5 }
  0x90   :  { %v1540_v6 = vsel %vm12421_vm14, %v1533_v63, %v1538_v47  ;;  %v2261_v2 = vcombine.low %v1523_v49, %v1532_v53  ;;  %v13184_v26 = vrot.slane %v11175_v5, %v12380_v7  ;;  %v1548_v18 = vsel %vm12421_vm14, %v1541_v52, %v1546_v30 }
  0x91   :  { %v2269_v17 = vrot.slane %v2259_v48, %v12380_v7  ;;  %v2276_v34 = vrot.slane %v2260_v31, %v12380_v7  ;;  %v677_v61 = vcombine.high %v11176_v51, %v11176_v51  ;;  %v2262_v13 = vcombine.low %v1540_v6, %v1548_v18 }
  0x92   :  { %16909 = vst [vmem:[#allocation59_spill] sm:$0xff] %v13184_v26  ;;  %v2283_v47 = vrot.slane %v2261_v2, %v12380_v7  ;;  %v13192_v53 = vrot.slane %v654_v32, %v12380_v7  ;;  %v13196_v49 = vcombine.high %v13184_v26, %v13184_v26  ;;  %v13199_v36 = vrot.slane %v11176_v51, %v12380_v7 }
  0x93   :  { %v2291_v5 = vcombine.low %v2269_v17, %v2276_v34  ;;  %v13202_v52 = vrot.slane %v677_v61, %v12380_v7  ;;  %v13205_v31 = vrot.slane %v11177_v58, %v12380_v7  ;;  %v2290_v50 = vrot.slane %v2262_v13, %v12380_v7 }
  0x94   :  { %16910 = vst [vmem:[#allocation60_spill] sm:$0xff] %v13192_v53  ;;  %16911 = vst [vmem:[#allocation61_spill] sm:$0xff] %v13196_v49  ;;  %v877_v57 = vcombine.high %v13192_v53, %v13192_v53  ;;  %v1549_v63 = vshrl.u32 %v13144_v20, 16  ;;  %v1554_v30 = vshll.u32 %v13184_v26, 16  ;;  %v13215_v51 = vcombine.high %v13199_v36, %v13199_v36 }
  0x95   :  { %16912 = vst [vmem:[#allocation62_spill] sm:$0xff] %v13199_v36  ;;  %16913 = vst [vmem:[#allocation63_spill] sm:$0xff] %v13202_v52  ;;  %v2299_v48 = vrot.slane %v2291_v5, %v12380_v7  ;;  %v13219_v6 = vcombine.high %v13202_v52, %v13202_v52  ;;  %v1557_v2 = vshrl.u32 %v13184_v26, 16  ;;  %v2292_v32 = vcombine.low %v2283_v47, %v2290_v50 }
  0x96   :  { %16914 = vst [vmem:[#allocation64_spill] sm:$0xff] %v13205_v31  ;;  %16915 = vst [vmem:[#allocation65_spill] sm:$0xff] %v13215_v51  ;;  %v1556_v18 = vsel %vm12421_vm14, %v1549_v63, %v1554_v30  ;;  %v1562_v17 = vshll.u32 %v13192_v53, 16  ;;  %v1565_v34 = vshrl.u32 %v13192_v53, 16  ;;  %v1570_v61 = vshll.u32 %v13196_v49, 16 }
  0x97   :  { %16916 = vst [vmem:[#allocation66_spill] sm:$0xff] %v13219_v6  ;;  %v1573_v13 = vshrl.u32 %v13196_v49, 16  ;;  %v1578_v5 = vshll.u32 %v877_v57, 16  ;;  %v1582_v20 = vshrl.u32 %v13199_v36, 16  ;;  %v2306_v60 = vrot.slane %v2292_v32, %v12380_v7 }
  0x98   :  { %v1564_v26 = vsel %vm12421_vm14, %v1557_v2, %v1562_v17  ;;  %v1587_v47 = vshll.u32 %v13202_v52, 16  ;;  %v1590_v50 = vshrl.u32 %v13202_v52, 16  ;;  %v11178_v63 = vld.sshfl [vmem:[%s16572_s0 + $0x68] sm:$0x33 pattern:$0x75316420]  ;;  %v1572_v30 = vsel %vm12421_vm14, %v1565_v34, %v1570_v61 }
  0x99   :  { %v1580_v57 = vsel %vm12421_vm14, %v1573_v13, %v1578_v5  ;;  %v1595_v36 = vshll.u32 %v13215_v51, 16  ;;  %v1598_v32 = vshrl.u32 %v13215_v51, 16  ;;  %v2307_v53 = vcombine.low %v2299_v48, %v2306_v60  ;;  %v11179_v49 = vld.sshfl [vmem:[%s16572_s0 + $0x6c] sm:$0x33 pattern:$0x75316420] }
  0x9a   :  { %v1589_v2 = vsel %vm12421_vm14, %v1582_v20, %v1587_v47  ;;  %v1603_v17 = vshll.u32 %v13219_v6, 16  ;;  %v1606_v52 = vshrl.u32 %v13219_v6, 16  ;;  %v1611_v61 = vshll.u32 %v13205_v31, 16 }
  0x9b   :  { %v1597_v34 = vsel %vm12421_vm14, %v1590_v50, %v1595_v36  ;;  %v2308_v13 = vcombine.low %v1556_v18, %v1564_v26  ;;  %v2309_v5 = vcombine.low %v1572_v30, %v1580_v57  ;;  %11797 = vmatmul.mubr.msk.bf16.gmra.mrb[16].mxu0 %vm2528_vm15, %v2307_v53  ;;  %v701_v48 = vcombine.high %v11177_v58, %v11177_v58 }
  0x9c   :  { %v1605_v60 = vsel %vm12421_vm14, %v1598_v32, %v1603_v17  ;;  %v2310_v20 = vcombine.low %v1589_v2, %v1597_v34  ;;  %v13258_v47 = vcombine.high %v13205_v31, %v13205_v31  ;;  %v1613_v6 = vsel %vm12421_vm14, %v1606_v52, %v1611_v61 }
  0x9d   :  { %v2318_v36 = vrot.slane %v2308_v13, %v12380_v7  ;;  %v2325_v50 = vrot.slane %v2309_v5, %v12380_v7  ;;  %v724_v26 = vcombine.high %v11178_v63, %v11178_v63  ;;  %v2311_v18 = vcombine.low %v1605_v60, %v1613_v6 }
  0x9e   :  { %16917 = vst [vmem:[#allocation67_spill] sm:$0xff] %v13258_v47  ;;  %v2332_v53 = vrot.slane %v2310_v20, %v12380_v7  ;;  %v13266_v30 = vrot.slane %v701_v48, %v12380_v7  ;;  %v13269_v58 = vrot.slane %v11178_v63, %v12380_v7  ;;  %v748_v2 = vcombine.high %v11179_v49, %v11179_v49 }
  0x9f   :  { %v2340_v57 = vcombine.low %v2318_v36, %v2325_v50  ;;  %v13272_v32 = vrot.slane %v724_v26, %v12380_v7  ;;  %v13275_v52 = vrot.slane %v11179_v49, %v12380_v7  ;;  %v2339_v17 = vrot.slane %v2311_v18, %v12380_v7 }
  0xa0   :  { %16918 = vst [vmem:[#allocation68_spill] sm:$0xff] %v13266_v30  ;;  %16919 = vst [vmem:[#allocation69_spill] sm:$0xff] %v13269_v58  ;;  %v13280_v6 = vcombine.high %v13269_v58, %v13269_v58  ;;  %v13284_v34 = vcombine.high %v13266_v30, %v13266_v30  ;;  %v1614_v63 = vshrl.u32 %v13205_v31, 16  ;;  %v13293_v49 = vrot.slane %v748_v2, %v12380_v7 }
  0xa1   :  { %16920 = vst [vmem:[#allocation70_spill] sm:$0xff] %v13272_v32  ;;  %16921 = vst [vmem:[#allocation71_spill] sm:$0xff] %v13275_v52  ;;  %v2348_v61 = vrot.slane %v2340_v57, %v12380_v7  ;;  %v13290_v13 = vcombine.high %v13272_v32, %v13272_v32  ;;  %v1619_v5 = vshll.u32 %v13266_v30, 16  ;;  %v2341_v60 = vcombine.low %v2332_v53, %v2339_v17 }
  0xa2   :  { %16922 = vst [vmem:[#allocation72_spill] sm:$0xff] %v13280_v6  ;;  %16923 = vst [vmem:[#allocation73_spill] sm:$0xff] %v13284_v34  ;;  %v1622_v20 = vshrl.u32 %v13266_v30, 16  ;;  %v1627_v48 = vshll.u32 %v13258_v47, 16  ;;  %v1630_v36 = vshrl.u32 %v13258_v47, 16  ;;  %v1635_v26 = vshll.u32 %v13284_v34, 16 }
  0xa3   :  { %16924 = vst [vmem:[#allocation74_spill] sm:$0xff] %v13290_v13  ;;  %16925 = vst [vmem:[#allocation75_spill] sm:$0xff] %v13293_v49  ;;  %v1621_v50 = vsel %vm12421_vm14, %v1614_v63, %v1619_v5  ;;  %v1639_v18 = vshrl.u32 %v13269_v58, 16  ;;  %v1644_v57 = vshll.u32 %v13272_v32, 16  ;;  %v2355_v2 = vrot.slane %v2341_v60, %v12380_v7 }
  0xa4   :  { %v1629_v53 = vsel %vm12421_vm14, %v1622_v20, %v1627_v48  ;;  %v1647_v17 = vshrl.u32 %v13272_v32, 16  ;;  %v1652_v51 = vshll.u32 %v13280_v6, 16  ;;  %v11180_v47 = vld.sshfl [vmem:[%s16572_s0 + $0x70] sm:$0x33 pattern:$0x75316420]  ;;  %v1637_v63 = vsel %vm12421_vm14, %v1630_v36, %v1635_v26 }
  0xa5   :  { %v1646_v5 = vsel %vm12421_vm14, %v1639_v18, %v1644_v57  ;;  %v1655_v34 = vshrl.u32 %v13280_v6, 16  ;;  %v1660_v60 = vshll.u32 %v13290_v13, 16  ;;  %v11181_v20 = vld.sshfl [vmem:[%s16572_s0 + $0x74] sm:$0x33 pattern:$0x75316420]  ;;  %v2356_v48 = vcombine.low %v2348_v61, %v2355_v2 }
  0xa6   :  { %v1654_v32 = vsel %vm12421_vm14, %v1647_v17, %v1652_v51  ;;  %v1663_v58 = vshrl.u32 %v13290_v13, 16  ;;  %v1668_v31 = vshll.u32 %v13275_v52, 16  ;;  %v1671_v26 = vshrl.u32 %v13275_v52, 16 }
  0xa7   :  { %v1662_v36 = vsel %vm12421_vm14, %v1655_v34, %v1660_v60  ;;  %v1676_v18 = vshll.u32 %v13293_v49, 16  ;;  %v2357_v57 = vcombine.low %v1621_v50, %v1629_v53  ;;  %11800 = vmatprep.mubr.msk.bf16.mxu0 %vm2528_vm15, %v2356_v48  ;;  %v2358_v2 = vcombine.low %v1637_v63, %v1646_v5 }
  0xa8   :  { %v1670_v61 = vsel %vm12421_vm14, %v1663_v58, %v1668_v31  ;;  %v2359_v6 = vcombine.low %v1654_v32, %v1662_v36  ;;  %v13334_v51 = vcombine.high %v13275_v52, %v13275_v52  ;;  %v771_v60 = vcombine.high %v11180_v47, %v11180_v47  ;;  %v11182_v52 = vld.sshfl [vmem:[%s16572_s0 + $0x78] sm:$0x33 pattern:$0x75316420] }
  0xa9   :  { %v1678_v17 = vsel %vm12421_vm14, %v1671_v26, %v1676_v18  ;;  %v2367_v34 = vrot.slane %v2357_v57, %v12380_v7  ;;  %v13340_v13 = vrot.slane %v11180_v47, %v12380_v7  ;;  %v2374_v53 = vrot.slane %v2358_v2, %v12380_v7 }
  0xaa   :  { %16926 = vst [vmem:[#allocation76_spill] sm:$0xff] %v13334_v51  ;;  %v2360_v50 = vcombine.low %v1670_v61, %v1678_v17  ;;  %v2381_v31 = vrot.slane %v2359_v6, %v12380_v7  ;;  %v795_v58 = vcombine.high %v11181_v20, %v11181_v20  ;;  %v13345_v32 = vrot.slane %v771_v60, %v12380_v7 }
  0xab   :  { %16927 = vst [vmem:[#allocation77_spill] sm:$0xff] %v13340_v13  ;;  %v13349_v63 = vcombine.high %v13340_v13, %v13340_v13  ;;  %v13352_v5 = vrot.slane %v11181_v20, %v12380_v7  ;;  %v879_v47 = vcombine.high %v13293_v49, %v13293_v49  ;;  %v2389_v36 = vcombine.low %v2367_v34, %v2374_v53 }
  0xac   :  { %16928 = vst [vmem:[#allocation78_spill] sm:$0xff] %v13345_v32  ;;  %v2388_v48 = vrot.slane %v2360_v50, %v12380_v7  ;;  %v13358_v26 = vrot.slane %v795_v58, %v12380_v7  ;;  %v1679_v6 = vshrl.u32 %v13293_v49, 16  ;;  %v13363_v18 = vcombine.high %v13345_v32, %v13345_v32 }
  0xad   :  { %16929 = vst [vmem:[#allocation79_spill] sm:$0xff] %v13349_v63  ;;  %16930 = vst [vmem:[#allocation80_spill] sm:$0xff] %v13352_v5  ;;  %v13367_v57 = vcombine.high %v13352_v5, %v13352_v5  ;;  %v1684_v20 = vshll.u32 %v13334_v51, 16  ;;  %v1687_v61 = vshrl.u32 %v13334_v51, 16  ;;  %v2397_v17 = vrot.slane %v2389_v36, %v12380_v7 }
  0xae   :  { %16931 = vst [vmem:[#allocation81_spill] sm:$0xff] %v13358_v26  ;;  %16932 = vst [vmem:[#allocation82_spill] sm:$0xff] %v13363_v18  ;;  %v2390_v2 = vcombine.low %v2381_v31, %v2388_v48  ;;  %v1692_v34 = vshll.u32 %v879_v47, 16  ;;  %v1696_v60 = vshrl.u32 %v13340_v13, 16  ;;  %v1701_v53 = vshll.u32 %v13345_v32, 16 }
  0xaf   :  { %16933 = vst [vmem:[#allocation83_spill] sm:$0xff] %v13367_v57  ;;  %v1686_v50 = vsel %vm12421_vm14, %v1679_v6, %v1684_v20  ;;  %v1704_v58 = vshrl.u32 %v13345_v32, 16  ;;  %v1709_v49 = vshll.u32 %v13349_v63, 16  ;;  %v1712_v48 = vshrl.u32 %v13349_v63, 16 }
  0xb0   :  { %v2404_v31 = vrot.slane %v2390_v2, %v12380_v7  ;;  %v1694_v47 = vsel %vm12421_vm14, %v1687_v61, %v1692_v34  ;;  %v1717_v36 = vshll.u32 %v13363_v18, 16  ;;  %v11183_v6 = vld.sshfl [vmem:[%s16572_s0 + $0x7c] sm:$0x33 pattern:$0x75316420]  ;;  %v1703_v20 = vsel %vm12421_vm14, %v1696_v60, %v1701_v53 }
  0xb1   :  { %v1711_v13 = vsel %vm12421_vm14, %v1704_v58, %v1709_v49  ;;  %v1720_v32 = vshrl.u32 %v13363_v18, 16  ;;  %v1725_v2 = vshll.u32 %v13352_v5, 16  ;;  %v1728_v34 = vshrl.u32 %v13352_v5, 16 }
  0xb2   :  { %v2405_v51 = vcombine.low %v2397_v17, %v2404_v31  ;;  %v1719_v61 = vsel %vm12421_vm14, %v1712_v48, %v1717_v36  ;;  %v1733_v63 = vshll.u32 %v13358_v26, 16  ;;  %v1736_v60 = vshrl.u32 %v13358_v26, 16 }
  0xb3   :  { %v1727_v30 = vsel %vm12421_vm14, %v1720_v32, %v1725_v2  ;;  %v1741_v53 = vshll.u32 %v13367_v57, 16  ;;  %v2406_v49 = vcombine.low %v1686_v50, %v1694_v47  ;;  %v2407_v58 = vcombine.low %v1703_v20, %v1711_v13 }
  0xb4   :  { %11801 = vmatmul.mubr.msk.bf16.gmra.mrb[20].mxu0 %vm2528_vm15, %v2405_v51  ;;  %v1735_v17 = vsel %vm12421_vm14, %v1728_v34, %v1733_v63  ;;  %v2408_v31 = vcombine.low %v1719_v61, %v1727_v30  ;;  %v818_v48 = vcombine.high %v11182_v52, %v11182_v52  ;;  %v13410_v32 = vrot.slane %v11182_v52, %v12380_v7 }
  0xb5   :  { %v1743_v36 = vsel %vm12421_vm14, %v1736_v60, %v1741_v53  ;;  %v2416_v18 = vrot.slane %v2406_v49, %v12380_v7  ;;  %v842_v2 = vcombine.high %v11183_v6, %v11183_v6  ;;  %v2423_v50 = vrot.slane %v2407_v58, %v12380_v7 }
  0xb6   :  { %16934 = vst [vmem:[#allocation84_spill] sm:$0xff] %v13410_v32  ;;  %v2409_v5 = vcombine.low %v1735_v17, %v1743_v36  ;;  %v2430_v51 = vrot.slane %v2408_v31, %v12380_v7  ;;  %v13415_v47 = vrot.slane %v818_v48, %v12380_v7  ;;  %v13419_v30 = vcombine.high %v13410_v32, %v13410_v32 }
  0xb7   :  { %v13422_v13 = vrot.slane %v11183_v6, %v12380_v7  ;;  %v13425_v63 = vrot.slane %v842_v2, %v12380_v7  ;;  %v13429_v52 = vcombine.high %v13358_v26, %v13358_v26  ;;  %v2438_v61 = vcombine.low %v2416_v18, %v2423_v50 }
  0xb8   :  { %16935 = vst [vmem:[#allocation85_spill] sm:$0xff] %v13415_v47  ;;  %16936 = vst [vmem:[#allocation86_spill] sm:$0xff] %v13419_v30  ;;  %v2437_v20 = vrot.slane %v2409_v5, %v12380_v7  ;;  %v13434_v34 = vcombine.high %v13415_v47, %v13415_v47  ;;  %v1744_v60 = vshrl.u32 %v13367_v57, 16  ;;  %v1753_v17 = vshrl.u32 %v13410_v32, 16 }
  0xb9   :  { %16937 = vst [vmem:[#allocation87_spill] sm:$0xff] %v13429_v52  ;;  %v13439_v6 = vcombine.high %v13422_v13, %v13422_v13  ;;  %v881_v53 = vcombine.high %v13425_v63, %v13425_v63  ;;  %v1749_v49 = vshll.u32 %v13429_v52, 16  ;;  %v2446_v5 = vrot.slane %v2438_v61, %v12380_v7 }
  0xba   :  { %16938 = vst [vmem:[#allocation88_spill] sm:$0xff] %v13434_v34  ;;  %v2439_v58 = vcombine.low %v2430_v51, %v2437_v20  ;;  %v1758_v18 = vshll.u32 %v13415_v47, 16  ;;  %v1761_v31 = vshrl.u32 %v13415_v47, 16  ;;  %v1766_v36 = vshll.u32 %v13419_v30, 16 }
  0xbb   :  { %v1751_v48 = vsel %vm12421_vm14, %v1744_v60, %v1749_v49  ;;  %v1769_v2 = vshrl.u32 %v13419_v30, 16  ;;  %v1774_v50 = vshll.u32 %v13434_v34, 16  ;;  %v1777_v20 = vshrl.u32 %v13434_v34, 16 }
  0xbc   :  { %v2453_v52 = vrot.slane %v2439_v58, %v12380_v7  ;;  %v1760_v51 = vsel %vm12421_vm14, %v1753_v17, %v1758_v18  ;;  %v1782_v61 = vshll.u32 %v13422_v13, 16  ;;  %v1768_v47 = vsel %vm12421_vm14, %v1761_v31, %v1766_v36 }
  0xbd   :  { %v1776_v60 = vsel %vm12421_vm14, %v1769_v2, %v1774_v50  ;;  %v1785_v49 = vshrl.u32 %v13422_v13, 16  ;;  %v1790_v30 = vshll.u32 %v13425_v63, 16  ;;  %v1793_v17 = vshrl.u32 %v13425_v63, 16 }
  0xbe   :  { %v2454_v57 = vcombine.low %v2446_v5, %v2453_v52  ;;  %v1784_v58 = vsel %vm12421_vm14, %v1777_v20, %v1782_v61  ;;  %v1798_v18 = vshll.u32 %v13439_v6, 16  ;;  %v1801_v31 = vshrl.u32 %v13439_v6, 16 }
  0xbf   :  { %v1792_v34 = vsel %vm12421_vm14, %v1785_v49, %v1790_v30  ;;  %v1806_v36 = vshll.u32 %v881_v53, 16  ;;  %v2455_v32 = vcombine.low %v1751_v48, %v1760_v51  ;;  %v2456_v52 = vcombine.low %v1768_v47, %v1776_v60 }
  0xc0   :  { %11804 = vmatprep.mubr.msk.bf16.mxu0 %vm2528_vm15, %v2454_v57  ;;  %v1800_v2 = vsel %vm12421_vm14, %v1793_v17, %v1798_v18  ;;  %v2457_v5 = vcombine.low %v1784_v58, %v1792_v34  ;;  %v2716_v50 = vcombine.low %v12392_v12, %v12401_v16  ;;  %v11322_v30 = vcombine.high %v12392_v12, %v12401_v16 }
  0xc1   :  { %v1808_v20 = vsel %vm12421_vm14, %v1801_v31, %v1806_v36  ;;  %v2465_v61 = vrot.slane %v2455_v32, %v12380_v7  ;;  %v2718_v53 = vcombine.low %v12398_v15, %v12414_v21  ;;  %v2472_v48 = vrot.slane %v2456_v52, %v12380_v7 }
  0xc2   :  { %v2458_v57 = vcombine.low %v1800_v2, %v1808_v20  ;;  %v2479_v47 = vrot.slane %v2457_v5, %v12380_v7  ;;  %v2719_v34 = vcombine.low %v12418_v22, %v12408_v19  ;;  %v2726_v51 = vrot.slane %v2716_v50, %v12380_v7 }
  0xc3   :  { %v2733_v23 = vrot.slane %v11322_v30, %v12380_v7  ;;  %v2740_v32 = vrot.slane %v2718_v53, %v12380_v7  ;;  %v2765_v12 = vcombine.low %v12432_v27, %v12479_v56  ;;  %v2487_v49 = vcombine.low %v2465_v61, %v2472_v48 }
  0xc4   :  { %v2486_v60 = vrot.slane %v2458_v57, %v12380_v7  ;;  %v2747_v58 = vrot.slane %v2719_v34, %v12380_v7  ;;  %v2766_v17 = vcombine.low %v12487_v59, %v12492_v0  ;;  %v2767_v31 = vcombine.low %v12495_v1, %v12504_v9 }
  0xc5   :  { %v2748_v18 = vcombine.low %v2726_v51, %v2733_v23  ;;  %v2768_v36 = vcombine.low %v12498_v3, %v12508_v11  ;;  %v2775_v2 = vrot.slane %v2765_v12, %v12380_v7  ;;  %v2495_v56 = vrot.slane %v2487_v49, %v12380_v7 }
  0xc6   :  { %v2488_v52 = vcombine.low %v2479_v47, %v2486_v60  ;;  %v2749_v5 = vcombine.low %v2740_v32, %v2747_v58  ;;  %v2782_v50 = vrot.slane %v2766_v17, %v12380_v7  ;;  %v2789_v61 = vrot.slane %v2767_v31, %v12380_v7 }
  0xc7   :  { %v2756_v20 = vrot.slane %v2748_v18, %v12380_v7  ;;  %v2796_v59 = vrot.slane %v2768_v36, %v12380_v7  ;;  %v11323_v9 = vcombine.high %v12498_v3, %v12508_v11  ;;  %v2815_v48 = vcombine.low %v12560_v62, %v12565_v8 }
  0xc8   :  { %v2502_v30 = vrot.slane %v2488_v52, %v12380_v7  ;;  %v2763_v53 = vrot.slane %v2749_v5, %v12380_v7  ;;  %v2797_v57 = vcombine.low %v2775_v2, %v2782_v50  ;;  %v2816_v34 = vcombine.low %v12569_v10, %v12572_v14 }
  0xc9   :  { %v2798_v47 = vcombine.low %v2789_v61, %v2796_v59  ;;  %v2817_v51 = vcombine.low %v12577_v25, %v12582_v29  ;;  %v2824_v23 = vrot.slane %v11323_v9, %v12380_v7  ;;  %v2831_v60 = vrot.slane %v2815_v48, %v12380_v7 }
  0xca   :  { %v2503_v32 = vcombine.low %v2495_v56, %v2502_v30  ;;  %v2764_v12 = vcombine.low %v2756_v20, %v2763_v53  ;;  %v2805_v3 = vrot.slane %v2797_v57, %v12380_v7  ;;  %v2838_v58 = vrot.slane %v2816_v34, %v12380_v7 }
  0xcb   :  { %v2812_v49 = vrot.slane %v2798_v47, %v12380_v7  ;;  %v2845_v17 = vrot.slane %v2817_v51, %v12380_v7  ;;  %v2863_v18 = vcombine.low %v12593_v37, %v12642_v35  ;;  %v2846_v29 = vcombine.low %v2824_v23, %v2831_v60  ;;  %v16940_v60 = vld [vmem:[#allocation18_spill] sm:$0xff] }
  0xcc   :  { %11805 = vmatmul.mubr.msk.bf16.gmra.mrb[24].mxu0 %vm2528_vm15, %v2503_v32  ;;  %v2864_v31 = vcombine.low %v12647_v41, %v12654_v42  ;;  %v2865_v36 = vcombine.low %v12657_v43, %v12660_v44  ;;  %v11324_v2 = vcombine.high %v12657_v43, %v12660_v44  ;;  %v2912_v37 = vcombine.low %v12664_v45, %v12730_v38 }
  0xcd   :  { %11816 = vmatprep.mubr.msk.bf16.mxu0 %vm2528_vm15, %v2764_v12  ;;  %v2813_v52 = vcombine.low %v2805_v3, %v2812_v49  ;;  %v2847_v56 = vcombine.low %v2838_v58, %v2845_v17  ;;  %v2873_v5 = vrot.slane %v2863_v18, %v12380_v7  ;;  %v2854_v50 = vrot.slane %v2846_v29, %v12380_v7  ;;  %v16939_v3 = vld [vmem:[#allocation19_spill] sm:$0xff]  ;;  %v16942_v29 = vld [vmem:[#allocation21_spill] sm:$0xff] }
  0xce   :  { %v2880_v20 = vrot.slane %v2864_v31, %v12380_v7  ;;  %v2887_v42 = vrot.slane %v2865_v36, %v12380_v7  ;;  %v2894_v61 = vrot.slane %v11324_v2, %v12380_v7  ;;  %v2913_v43 = vcombine.low %v12725_v28, %v12733_v24  ;;  %v16941_v18 = vld [vmem:[#allocation23_spill] sm:$0xff] }
  0xcf   :  { %v2861_v59 = vrot.slane %v2847_v56, %v12380_v7  ;;  %v2914_v9 = vcombine.low %v12736_v39, %v12749_v33  ;;  %v2915_v30 = vcombine.low %v12753_v55, %v12739_v46  ;;  %v2922_v48 = vrot.slane %v2912_v37, %v12380_v7  ;;  %v12050_v55 = vld [vmem:[%s16573_s1 + $0x48] sm:$0xff]   ;;  %v16943_v37 = vld [vmem:[#allocation25_spill] sm:$0xff] }
  0xd0   :  { %v2895_v53 = vcombine.low %v2873_v5, %v2880_v20  ;;  %v2896_v57 = vcombine.low %v2887_v42, %v2894_v61  ;;  %v2961_v47 = vcombine.low %v12756_v54, %v12803_v40  ;;  %v2929_v51 = vrot.slane %v2913_v43, %v12380_v7  ;;  %v12260_v42 = vld [vmem:[%s16573_s1 + $0x40] sm:$0xff]  }
  0xd1   :  { %v2862_v34 = vcombine.low %v2854_v50, %v2861_v59  ;;  %v2936_v23 = vrot.slane %v2914_v9, %v12380_v7  ;;  %v2943_v32 = vrot.slane %v2915_v30, %v12380_v7  ;;  %v2962_v49 = vcombine.low %v16940_v60, %v16939_v3  ;;  %v16944_v50 = vld [vmem:[#allocation24_spill] sm:$0xff]  ;;  %v16945_v9 = vld [vmem:[#allocation27_spill] sm:$0xff]  ;;  %v16946_v30 = vld [vmem:[#allocation26_spill] sm:$0xff] }
  0xd2   :  { %v2903_v12 = vrot.slane %v2895_v53, %v12380_v7  ;;  %v2910_v33 = vrot.slane %v2896_v57, %v12380_v7  ;;  %v11325_v40 = vcombine.high %v16940_v60, %v16939_v3  ;;  %v2944_v58 = vcombine.low %v2922_v48, %v2929_v51  ;;  %v16947_v57 = vld [vmem:[#allocation28_spill] sm:$0xff]  ;;  %v16948_v48 = vld [vmem:[#allocation31_spill] sm:$0xff] }
  0xd3   :  { %v2945_v17 = vcombine.low %v2936_v23, %v2943_v32  ;;  %v2964_v31 = vcombine.low %v16942_v29, %v16941_v18  ;;  %v2971_v36 = vrot.slane %v2961_v47, %v12380_v7  ;;  %v2978_v56 = vrot.slane %v2962_v49, %v12380_v7  ;;  %v16949_v51 = vld [vmem:[#allocation32_spill] sm:$0xff]  ;;  %v16950_v23 = vld [vmem:[#allocation29_spill] sm:$0xff]  ;;  %v16951_v49 = vld [vmem:[#allocation34_spill] sm:$0xff] }
  0xd4   :  { %11817 = vmatmul.mubr.msk.bf16.vlgmr.msra.gmra.mrb[0].mxu0 %vm2528_vm15, %v2813_v52  ;;  %v2911_v2 = vcombine.low %v2903_v12, %v2910_v33  ;;  %v2985_v5 = vrot.slane %v11325_v40, %v12380_v7  ;;  %v3010_v20 = vcombine.low %v16944_v50, %v16943_v37  ;;  %v2952_v61 = vrot.slane %v2944_v58, %v12380_v7  ;;  %v16952_v40 = vld [vmem:[#allocation33_spill] sm:$0xff]  ;;  %v16985_v37 = vld [vmem:[#allocation75_spill] sm:$0xff] }
  0xd5   :  { %11845 = vmatpush3.bf16.msra.mxu0 %v12260_v42  ;;  %11820 = vmatprep.mubr.msk.bf16.mxu0 %vm2528_vm15, %v2862_v34  ;;  %v2959_v59 = vrot.slane %v2945_v17, %v12380_v7  ;;  %v2992_v52 = vrot.slane %v2964_v31, %v12380_v7  ;;  %v2993_v43 = vcombine.low %v2971_v36, %v2978_v56  ;;  %v12051_v34 = vld [vmem:[%s16573_s1 + $0x50] sm:$0xff]   ;;  %vm6020_vm0 = vsmask.f32 1280 }
  0xd6   :  { %11846 = vmatprep.subr.bf16.mxu0 %v12050_v55  ;;  %v3011_v53 = vcombine.low %v16946_v30, %v16945_v9  ;;  %v3012_v47 = vcombine.low %v16948_v48, %v16947_v57  ;;  %v3013_v32 = vcombine.low %v16950_v23, %v16949_v51  ;;  %v3020_v60 = vrot.slane %v3010_v20, %v12380_v7  ;;  %v16956_v9 = vld [vmem:[#allocation39_spill] sm:$0xff]  ;;  %v16958_v57 = vld [vmem:[#allocation41_spill] sm:$0xff]  ;;  %v16984_v23 = vld [vmem:[#allocation76_spill] sm:$0xff] }
  0xd7   :  { %v2960_v12 = vcombine.low %v2952_v61, %v2959_v59  ;;  %v2994_v33 = vcombine.low %v2985_v5, %v2992_v52  ;;  %v3059_v58 = vcombine.low %v16952_v40, %v16951_v49  ;;  %v3001_v17 = vrot.slane %v2993_v43, %v12380_v7  ;;  %v16953_v5 = vld [vmem:[#allocation38_spill] sm:$0xff]  ;;  %v16954_v59 = vld [vmem:[#allocation36_spill] sm:$0xff] }
  0xd8   :  { %v3027_v31 = vrot.slane %v3011_v53, %v12380_v7  ;;  %v3034_v36 = vrot.slane %v3012_v47, %v12380_v7  ;;  %v3041_v56 = vrot.slane %v3013_v32, %v12380_v7  ;;  %v11326_v61 = vcombine.high %v16952_v40, %v16951_v49  ;;  %v16955_v52 = vld [vmem:[#allocation40_spill] sm:$0xff]  ;;  %v16957_v47 = vld [vmem:[#allocation43_spill] sm:$0xff] }
  0xd9   :  { %11847 = vmatpush3.bf16.msra.mxu0 %v12050_v55  ;;  %v3008_v42 = vrot.slane %v2994_v33, %v12380_v7  ;;  %v3061_v20 = vcombine.low %v16954_v59, %v16953_v5  ;;  %v3062_v48 = vcombine.low %v16956_v9, %v16955_v52  ;;  %v3069_v53 = vrot.slane %v3059_v58, %v12380_v7  ;;  %v12052_v55 = vld [vmem:[%s16573_s1 + $0x58] sm:$0xff]   ;;  %v16962_v52 = vld [vmem:[#allocation46_spill] sm:$0xff]  ;;  %v16964_v59 = vld [vmem:[#allocation47_spill] sm:$0xff] }
  0xda   :  { %v3042_v51 = vcombine.low %v3020_v60, %v3027_v31  ;;  %v3043_v43 = vcombine.low %v3034_v36, %v3041_v56  ;;  %11848 = vmatprep.subr.bf16.mxu0 %v12051_v34  ;;  %v3108_v32 = vcombine.low %v16958_v57, %v16957_v47  ;;  %v3076_v33 = vrot.slane %v11326_v61, %v12380_v7  ;;  %v16959_v31 = vld [vmem:[#allocation45_spill] sm:$0xff]  ;;  %v16960_v36 = vld [vmem:[#allocation44_spill] sm:$0xff] }
  0xdb   :  { %v3083_v40 = vrot.slane %v3061_v20, %v12380_v7  ;;  %v3090_v5 = vrot.slane %v3062_v48, %v12380_v7  ;;  %v3109_v56 = vcombine.low %v16960_v36, %v16959_v31  ;;  %v16961_v47 = vld [vmem:[#allocation48_spill] sm:$0xff]  ;;  %v16963_v20 = vld [vmem:[#allocation49_spill] sm:$0xff]  ;;  %v3009_v49 = vcombine.low %v3001_v17, %v3008_v42  ;;  %v16967_v17 = vld [vmem:[#allocation55_spill] sm:$0xff] }
  0xdc   :  { %11821 = vmatmul.mubr.msk.bf16.gmra.mrb[4].mxu0 %vm2528_vm15, %v2911_v2  ;;  %v3050_v60 = vrot.slane %v3042_v51, %v12380_v7  ;;  %v3057_v58 = vrot.slane %v3043_v43, %v12380_v7  ;;  %v3110_v57 = vcombine.low %v16962_v52, %v16961_v47  ;;  %v3091_v9 = vcombine.low %v3069_v53, %v3076_v33  ;;  %v16966_v53 = vld [vmem:[#allocation52_spill] sm:$0xff]  ;;  %v16968_v42 = vld [vmem:[#allocation54_spill] sm:$0xff] }
  0xdd   :  { %11824 = vmatprep.mubr.msk.bf16.mxu0 %vm2528_vm15, %v2960_v12  ;;  %v3092_v61 = vcombine.low %v3083_v40, %v3090_v5  ;;  %11849 = vmatpush3.bf16.msra.mxu0 %v12051_v34  ;;  %v3111_v48 = vcombine.low %v16964_v59, %v16963_v20  ;;  %v3118_v2 = vrot.slane %v3108_v32, %v12380_v7  ;;  %v16965_v5 = vld [vmem:[#allocation53_spill] sm:$0xff]  ;;  %v16969_v40 = vld [vmem:[#allocation56_spill] sm:$0xff]  ;;  %vm6021_vm1 = vsmask.f32 3336 }
  0xde   :  { %v3125_v51 = vrot.slane %v3109_v56, %v12380_v7  ;;  %v3132_v43 = vrot.slane %v3110_v57, %v12380_v7  ;;  %11850 = vmatprep.subr.bf16.mxu0 %v12052_v55  ;;  %v3058_v36 = vcombine.low %v3050_v60, %v3057_v58  ;;  %v3099_v31 = vrot.slane %v3091_v9, %v12380_v7  ;;  %v16970_v58 = vld [vmem:[#allocation59_spill] sm:$0xff]  ;;  %vm6022_vm4 = vmor %vm6020_vm0, %vm6021_vm1 }
  0xdf   :  { %v3139_v47 = vrot.slane %v3111_v48, %v12380_v7  ;;  %v11327_v12 = vcombine.high %v16964_v59, %v16963_v20  ;;  %v3158_v33 = vcombine.low %v16966_v53, %v16965_v5  ;;  %v3159_v32 = vcombine.low %v16968_v42, %v16967_v17  ;;  %v16971_v48 = vld [vmem:[#allocation58_spill] sm:$0xff]  ;;  %v16978_v42 = vld [vmem:[#allocation69_spill] sm:$0xff]  ;;  %v16979_v53 = vld [vmem:[#allocation67_spill] sm:$0xff] }
  0xe0   :  { %v3140_v34 = vcombine.low %v3118_v2, %v3125_v51  ;;  %v3160_v56 = vcombine.low %v16969_v40, %v13138_v4  ;;  %v3106_v57 = vrot.slane %v3092_v61, %v12380_v7  ;;  %v3206_v52 = vcombine.low %v16971_v48, %v16970_v58  ;;  %v16972_v4 = vld [vmem:[#allocation61_spill] sm:$0xff]  ;;  %v16973_v40 = vld [vmem:[#allocation60_spill] sm:$0xff] }
  0xe1   :  { %v3141_v60 = vcombine.low %v3132_v43, %v3139_v47  ;;  %v3167_v9 = vrot.slane %v11327_v12, %v12380_v7  ;;  %11851 = vmatpush3.bf16.msra.mxu0 %v12052_v55  ;;  %v3174_v2 = vrot.slane %v3158_v33, %v12380_v7  ;;  %v3181_v51 = vrot.slane %v3159_v32, %v12380_v7  ;;  %v16974_v43 = vld [vmem:[#allocation63_spill] sm:$0xff]  ;;  %v16975_v47 = vld [vmem:[#allocation62_spill] sm:$0xff]  ;;  %v16977_v58 = vld [vmem:[#allocation64_spill] sm:$0xff] }
  0xe2   :  { %v3148_v59 = vrot.slane %v3140_v34, %v12380_v7  ;;  %v3188_v17 = vrot.slane %v3160_v56, %v12380_v7  ;;  %v3207_v61 = vcombine.low %v16973_v40, %v16972_v4  ;;  %v3208_v12 = vcombine.low %v16975_v47, %v16974_v43  ;;  %v16976_v4 = vld [vmem:[#allocation68_spill] sm:$0xff] }
  0xe3   :  { %v3155_v5 = vrot.slane %v3141_v60, %v12380_v7  ;;  %v11328_v48 = vcombine.high %v16975_v47, %v16974_v43  ;;  %v3189_v55 = vcombine.low %v3167_v9, %v3174_v2  ;;  %v3216_v33 = vrot.slane %v3206_v52, %v12380_v7  ;;  %v16980_v43 = vld [vmem:[#allocation72_spill] sm:$0xff] }
  0xe4   :  { %11825 = vmatmul.mubr.msk.bf16.gmra.mrb[8].mxu0 %vm2528_vm15, %v3009_v49  ;;  %v3190_v34 = vcombine.low %v3181_v51, %v3188_v17  ;;  %v3223_v32 = vrot.slane %v3207_v61, %v12380_v7  ;;  %v3230_v56 = vrot.slane %v3208_v12, %v12380_v7  ;;  %v3255_v40 = vcombine.low %v16977_v58, %v16976_v4  ;;  %v16981_v49 = vld [vmem:[#allocation70_spill] sm:$0xff] }
  0xe5   :  { %11828 = vmatprep.mubr.msk.bf16.mxu0 %vm2528_vm15, %v3058_v36  ;;  %v3237_v60 = vrot.slane %v11328_v48, %v12380_v7  ;;  %v3256_v47 = vcombine.low %v16979_v53, %v16978_v42  ;;  %v3257_v9 = vcombine.low %v16981_v49, %v16980_v43  ;;  %v3107_v17 = vcombine.low %v3099_v31, %v3106_v57  ;;  %v16982_v36 = vld [vmem:[#allocation71_spill] sm:$0xff]  ;;  %v16983_v51 = vld [vmem:[#allocation74_spill] sm:$0xff] }
  0xe6   :  { %v3156_v2 = vcombine.low %v3148_v59, %v3155_v5  ;;  %v3197_v52 = vrot.slane %v3189_v55, %v12380_v7  ;;  %v3258_v61 = vcombine.low %v16983_v51, %v16982_v36  ;;  %v3204_v12 = vrot.slane %v3190_v34, %v12380_v7  ;;  %v16986_v31 = vld [vmem:[#allocation78_spill] sm:$0xff]  ;;  %v16987_v5 = vld [vmem:[#allocation77_spill] sm:$0xff]  ;;  %v16988_v34 = vld [vmem:[#allocation80_spill] sm:$0xff] }
  0xe7   :  { %v3238_v20 = vcombine.low %v3216_v33, %v3223_v32  ;;  %v3239_v48 = vcombine.low %v3230_v56, %v3237_v60  ;;  %v3304_v4 = vcombine.low %v16985_v37, %v16984_v23  ;;  %v3265_v58 = vrot.slane %v3255_v40, %v12380_v7 }
  0xe8   :  { %v3272_v42 = vrot.slane %v3256_v47, %v12380_v7  ;;  %v3279_v43 = vrot.slane %v3257_v9, %v12380_v7  ;;  %v3305_v57 = vcombine.low %v16987_v5, %v16986_v31  ;;  %v3286_v59 = vrot.slane %v3258_v61, %v12380_v7 }
  0xe9   :  { %v11329_v55 = vcombine.high %v16987_v5, %v16986_v31  ;;  %v3307_v33 = vcombine.low %v16988_v34, %v13358_v26  ;;  %v3314_v32 = vrot.slane %v3304_v4, %v12380_v7  ;;  %v3205_v60 = vcombine.low %v3197_v52, %v3204_v12  ;;  %v16989_v4 = vld [vmem:[#allocation84_spill] sm:$0xff]  ;;  %v16990_v34 = vld [vmem:[#allocation83_spill] sm:$0xff]  ;;  %v16991_v31 = vld [vmem:[#allocation86_spill] sm:$0xff] }
  0xea   :  { %v3321_v23 = vrot.slane %v3305_v57, %v12380_v7  ;;  %v3246_v47 = vrot.slane %v3238_v20, %v12380_v7  ;;  %v3253_v9 = vrot.slane %v3239_v48, %v12380_v7  ;;  %v3287_v61 = vcombine.low %v3265_v58, %v3272_v42  ;;  %v16994_v12 = vld [vmem:[#allocation9_spill] sm:$0xff]  ;;  %v16995_v58 = vld [vmem:[#allocation10_spill] sm:$0xff] }
  0xeb   :  { %v3328_v40 = vrot.slane %v11329_v55, %v12380_v7  ;;  %v3335_v56 = vrot.slane %v3307_v33, %v12380_v7  ;;  %v3288_v5 = vcombine.low %v3279_v43, %v3286_v59  ;;  %v3353_v57 = vcombine.low %v16990_v34, %v16989_v4  ;;  %v16992_v55 = vld [vmem:[#allocation85_spill] sm:$0xff]  ;;  %v16993_v33 = vld [vmem:[#allocation88_spill] sm:$0xff] }
  0xec   :  { %11829 = vmatmul.mubr.msk.bf16.gmra.mrb[12].mxu0 %vm2528_vm15, %v3107_v17  ;;  %v3336_v51 = vcombine.low %v3314_v32, %v3321_v23  ;;  %v3354_v36 = vcombine.low %v16992_v55, %v16991_v31  ;;  %v3356_v20 = vcombine.low %v13425_v63, %v13439_v6  ;;  %v3622_v42 = vcombine.low %v12401_v16, %v16994_v12  ;;  %v16996_v31 = vld [vmem:[#allocation11_spill] sm:$0xff] }
  0xed   :  { %11832 = vmatprep.mubr.msk.bf16.mxu0 %vm2528_vm15, %v3156_v2  ;;  %v3337_v26 = vcombine.low %v3328_v40, %v3335_v56  ;;  %v3355_v2 = vcombine.low %v16993_v33, %v13422_v13  ;;  %v3623_v48 = vcombine.low %v16995_v58, %v12398_v15  ;;  %v3624_v43 = vcombine.low %v12414_v21, %v12418_v22 }
  0xee   :  { %v3344_v17 = vrot.slane %v3336_v51, %v12380_v7  ;;  %v3254_v59 = vcombine.low %v3246_v47, %v3253_v9  ;;  %v3625_v32 = vcombine.low %v16996_v31, %v12432_v27  ;;  %v3295_v23 = vrot.slane %v3287_v61, %v12380_v7 }
  0xef   :  { %v3351_v52 = vrot.slane %v3337_v26, %v12380_v7  ;;  %v3302_v40 = vrot.slane %v3288_v5, %v12380_v7  ;;  %v3363_v26 = vrot.slane %v3353_v57, %v12380_v7  ;;  %v3370_v56 = vrot.slane %v3354_v36, %v12380_v7  ;;  %v16998_v57 = vld [vmem:[#allocation13_spill] sm:$0xff] }
  0xf0   :  { %v3377_v16 = vrot.slane %v3355_v2, %v12380_v7  ;;  %v3384_v15 = vrot.slane %v3356_v20, %v12380_v7  ;;  %v3632_v21 = vrot.slane %v3622_v42, %v12380_v7  ;;  %v3639_v22 = vrot.slane %v3623_v48, %v12380_v7 }
  0xf1   :  { %v3352_v6 = vcombine.low %v3344_v17, %v3351_v52  ;;  %v3646_v47 = vrot.slane %v3624_v43, %v12380_v7  ;;  %v11356_v9 = vcombine.high %v12408_v19, %v12432_v27  ;;  %v3653_v51 = vrot.slane %v3625_v32, %v12380_v7  ;;  %v16999_v27 = vld [vmem:[#allocation14_spill] sm:$0xff] }
  0xf2   :  { %v3672_v36 = vcombine.low %v12492_v0, %v12495_v1  ;;  %v11357_v61 = vcombine.high %v12492_v0, %v12495_v1  ;;  %v3720_v17 = vcombine.low %v16998_v57, %v12560_v62  ;;  %v3721_v33 = vcombine.low %v12565_v8, %v12569_v10 }
  0xf3   :  { %v3303_v19 = vcombine.low %v3295_v23, %v3302_v40  ;;  %v3722_v2 = vcombine.low %v16999_v27, %v12577_v25  ;;  %v11358_v20 = vcombine.high %v12572_v14, %v12577_v25  ;;  %v3385_v52 = vcombine.low %v3363_v26, %v3370_v56 }
  0xf4   :  { %11833 = vmatmul.mubr.msk.bf16.gmra.mrb[16].mxu0 %vm2528_vm15, %v3205_v60  ;;  %v16997_v60 = vld [vmem:[#allocation12_spill] sm:$0xff]  ;;  %v3386_v12 = vcombine.low %v3377_v16, %v3384_v15  ;;  %v3654_v42 = vcombine.low %v3632_v21, %v3639_v22  ;;  %v3681_v0 = vrot.slane %v11356_v9, %v12380_v7  ;;  %v3655_v1 = vcombine.low %v3646_v47, %v3653_v51  ;;  %v17000_v16 = vld [vmem:[#allocation15_spill] sm:$0xff]  ;;  %v17002_v9 = vld [vmem:[#allocation17_spill] sm:$0xff] }
  0xf5   :  { %11836 = vmatprep.mubr.msk.bf16.mxu0 %vm2528_vm15, %v3254_v59  ;;  %v3674_v5 = vcombine.low %v12508_v11, %v16997_v60  ;;  %v3688_v11 = vrot.slane %v3672_v36, %v12380_v7  ;;  %v3695_v62 = vrot.slane %v11357_v61, %v12380_v7  ;;  %v3730_v8 = vrot.slane %v3720_v17, %v12380_v7  ;;  %v17001_v21 = vld [vmem:[#allocation16_spill] sm:$0xff] }
  0xf6   :  { %v3737_v10 = vrot.slane %v3721_v33, %v12380_v7  ;;  %v3744_v48 = vrot.slane %v3722_v2, %v12380_v7  ;;  %v3751_v14 = vrot.slane %v11358_v20, %v12380_v7  ;;  %v3393_v25 = vrot.slane %v3385_v52, %v12380_v7  ;;  %v17003_v2 = vld [vmem:[#allocation20_spill] sm:$0xff]  ;;  %v17004_v52 = vld [vmem:[#allocation22_spill] sm:$0xff] }
  0xf7   :  { %v3702_v58 = vrot.slane %v3674_v5, %v12380_v7  ;;  %v3400_v43 = vrot.slane %v3386_v12, %v12380_v7  ;;  %v3662_v59 = vrot.slane %v3654_v42, %v12380_v7  ;;  %v3669_v31 = vrot.slane %v3655_v1, %v12380_v7 }
  0xf8   :  { %v3703_v32 = vcombine.low %v3681_v0, %v3688_v11  ;;  %v3769_v40 = vcombine.low %v12642_v35, %v12647_v41  ;;  %v3752_v26 = vcombine.low %v3730_v8, %v3737_v10  ;;  %v11359_v56 = vcombine.high %v12642_v35, %v12647_v41  ;;  %v17005_v10 = vld [vmem:[#allocation30_spill] sm:$0xff] }
  0xf9   :  { %v3704_v23 = vcombine.low %v3695_v62, %v3702_v58  ;;  %v3771_v15 = vcombine.low %v12660_v44, %v17000_v16  ;;  %v3772_v22 = vcombine.low %v17001_v21, %v12664_v45  ;;  %v3753_v47 = vcombine.low %v3744_v48, %v3751_v14  ;;  %v17006_v14 = vld [vmem:[#allocation25_spill] sm:$0xff] }
  0xfa   :  { %v3819_v51 = vcombine.low %v17002_v9, %v12736_v39  ;;  %v3401_v36 = vcombine.low %v3393_v25, %v3400_v43  ;;  %v11360_v61 = vcombine.high %v12733_v24, %v12736_v39  ;;  %v3821_v35 = vcombine.low %v12739_v46, %v12756_v54  ;;  %v17008_v25 = vld [vmem:[#allocation28_spill] sm:$0xff] }
  0xfb   :  { %v3670_v41 = vcombine.low %v3662_v59, %v3669_v31  ;;  %v3711_v44 = vrot.slane %v3703_v32, %v12380_v7  ;;  %v3718_v60 = vrot.slane %v3704_v23, %v12380_v7  ;;  %v3779_v45 = vrot.slane %v3769_v40, %v12380_v7  ;;  %v17011_v9 = vld [vmem:[#allocation36_spill] sm:$0xff] }
  0xfc   :  { %11837 = vmatmul.mubr.msk.bf16.gmra.mrb[20].mxu0 %vm2528_vm15, %v3303_v19  ;;  %v3760_v5 = vrot.slane %v3752_v26, %v12380_v7  ;;  %v3800_v57 = vrot.slane %v3772_v22, %v12380_v7  ;;  %v3767_v24 = vrot.slane %v3753_v47, %v12380_v7  ;;  %v3835_v17 = vrot.slane %v3819_v51, %v12380_v7  ;;  %v17009_v22 = vld [vmem:[#allocation35_spill] sm:$0xff]  ;;  %v17010_v47 = vld [vmem:[#allocation34_spill] sm:$0xff]  ;;  %v17012_v51 = vld [vmem:[#allocation37_spill] sm:$0xff] }
  0xfd   :  { %11840 = vmatprep.mubr.msk.bf16.mxu0 %vm2528_vm15, %v3352_v6  ;;  %v3818_v6 = vcombine.low %v12730_v38, %v12725_v28  ;;  %v3786_v28 = vrot.slane %v11359_v56, %v12380_v7  ;;  %v3793_v38 = vrot.slane %v3771_v15, %v12380_v7  ;;  %v11361_v33 = vcombine.high %v12739_v46, %v12756_v54 }
  0xfe   :  { %v3842_v19 = vrot.slane %v11360_v61, %v12380_v7  ;;  %v3849_v27 = vrot.slane %v3821_v35, %v12380_v7  ;;  %v3868_v20 = vcombine.low %v16939_v3, %v17003_v2  ;;  %v3869_v12 = vcombine.low %v17004_v52, %v16942_v29  ;;  %v17013_v61 = vld [vmem:[#allocation39_spill] sm:$0xff]  ;;  %v17014_v35 = vld [vmem:[#allocation38_spill] sm:$0xff] }
  0xff   :  { %v3828_v39 = vrot.slane %v3818_v6, %v12380_v7  ;;  %v3870_v42 = vcombine.low %v16941_v18, %v16944_v50  ;;  %v3719_v0 = vcombine.low %v3711_v44, %v3718_v60  ;;  %v3801_v1 = vcombine.low %v3779_v45, %v3786_v28  ;;  %v17007_v50 = vld [vmem:[#allocation29_spill] sm:$0xff]  ;;  %v17016_v60 = vld [vmem:[#allocation42_spill] sm:$0xff] }
 0x100   :  { %v3768_v46 = vcombine.low %v3760_v5, %v3767_v24  ;;  %v3802_v54 = vcombine.low %v3793_v38, %v3800_v57  ;;  %v3877_v62 = vrot.slane %v11361_v33, %v12380_v7  ;;  %v3851_v58 = vcombine.low %v3842_v19, %v3849_v27  ;;  %v17015_v44 = vld [vmem:[#allocation41_spill] sm:$0xff]  ;;  %v17017_v5 = vld [vmem:[#allocation40_spill] sm:$0xff]  ;;  %v17018_v38 = vld [vmem:[#allocation46_spill] sm:$0xff] }
 0x101   :  { %v3850_v11 = vcombine.low %v3828_v39, %v3835_v17  ;;  %v3884_v8 = vrot.slane %v3868_v20, %v12380_v7  ;;  %v3891_v3 = vrot.slane %v3869_v12, %v12380_v7  ;;  %v3916_v29 = vcombine.low %v17005_v10, %v16946_v30  ;;  %v17019_v57 = vld [vmem:[#allocation45_spill] sm:$0xff]  ;;  %v17020_v17 = vld [vmem:[#allocation50_spill] sm:$0xff] }
 0x102   :  { %v3898_v48 = vrot.slane %v3870_v42, %v12380_v7  ;;  %v11362_v18 = vcombine.high %v17006_v14, %v16946_v30  ;;  %v3918_v43 = vcombine.low %v17008_v25, %v17007_v50  ;;  %v11363_v59 = vcombine.high %v17008_v25, %v17007_v50  ;;  %v17021_v33 = vld [vmem:[#allocation49_spill] sm:$0xff]  ;;  %v17023_v14 = vld [vmem:[#allocation51_spill] sm:$0xff]  ;;  %v17024_v50 = vld [vmem:[#allocation54_spill] sm:$0xff] }
 0x103   :  { %v3809_v31 = vrot.slane %v3801_v1, %v12380_v7  ;;  %v3816_v32 = vrot.slane %v3802_v54, %v12380_v7  ;;  %v3858_v23 = vrot.slane %v3850_v11, %v12380_v7  ;;  %v3865_v40 = vrot.slane %v3851_v58, %v12380_v7  ;;  %v17025_v25 = vld [vmem:[#allocation53_spill] sm:$0xff] }
 0x104   :  { %11841 = vmatmul.mubr.msk.bf16.gmra.mrb[24].mxu0 %vm2528_vm15, %v3401_v36  ;;  %v3899_v26 = vcombine.low %v3877_v62, %v3884_v8  ;;  %v3926_v56 = vrot.slane %v3916_v29, %v12380_v7  ;;  %v3900_v30 = vcombine.low %v3891_v3, %v3898_v48  ;;  %v3933_v16 = vrot.slane %v11362_v18, %v12380_v7  ;;  %v17022_v48 = vld [vmem:[#allocation52_spill] sm:$0xff] }
 0x105   :  { %11852 = vmatprep.mubr.msk.bf16.mxu0 %vm2528_vm15, %v3670_v41  ;;  %v3940_v15 = vrot.slane %v3918_v43, %v12380_v7  ;;  %v3947_v21 = vrot.slane %v11363_v59, %v12380_v7  ;;  %v3965_v6 = vcombine.low %v17010_v47, %v17009_v22  ;;  %v3966_v36 = vcombine.low %v17012_v51, %v17011_v9  ;;  %v17026_v59 = vld [vmem:[#allocation56_spill] sm:$0xff]  ;;  %v17032_v9 = vld [vmem:[#allocation63_spill] sm:$0xff] }
 0x106   :  { %v3967_v41 = vcombine.low %v17014_v35, %v17013_v61  ;;  %v3968_v45 = vcombine.low %v17016_v60, %v17015_v44  ;;  %v11364_v28 = vcombine.high %v17017_v5, %v17015_v44  ;;  %v4015_v24 = vcombine.low %v17019_v57, %v17018_v38  ;;  %v17034_v61 = vld [vmem:[#allocation66_spill] sm:$0xff] }
 0x107   :  { %v11365_v39 = vcombine.high %v17019_v57, %v17018_v38  ;;  %v4017_v19 = vcombine.low %v17021_v33, %v17020_v17  ;;  %v3817_v27 = vcombine.low %v3809_v31, %v3816_v32  ;;  %v3866_v2 = vcombine.low %v3858_v23, %v3865_v40  ;;  %v17027_v31 = vld [vmem:[#allocation57_spill] sm:$0xff]  ;;  %v17028_v23 = vld [vmem:[#allocation55_spill] sm:$0xff] }
 0x108   :  { %v3907_v20 = vrot.slane %v3899_v26, %v12380_v7  ;;  %v3914_v52 = vrot.slane %v3900_v30, %v12380_v7  ;;  %v3948_v12 = vcombine.low %v3926_v56, %v3933_v16  ;;  %v3949_v42 = vcombine.low %v3940_v15, %v3947_v21  ;;  %v17029_v15 = vld [vmem:[#allocation60_spill] sm:$0xff]  ;;  %v17030_v21 = vld [vmem:[#allocation59_spill] sm:$0xff] }
 0x109   :  { %v3982_v1 = vrot.slane %v3966_v36, %v12380_v7  ;;  %v3996_v54 = vrot.slane %v3968_v45, %v12380_v7  ;;  %v4024_v11 = vrot.slane %v11364_v28, %v12380_v7  ;;  %v4031_v62 = vrot.slane %v4015_v24, %v12380_v7  ;;  %v17033_v36 = vld [vmem:[#allocation64_spill] sm:$0xff] }
 0x10a   :  { %v4038_v58 = vrot.slane %v11365_v39, %v12380_v7  ;;  %v4045_v8 = vrot.slane %v4017_v19, %v12380_v7  ;;  %v3915_v3 = vcombine.low %v3907_v20, %v3914_v52  ;;  %v3956_v10 = vrot.slane %v3948_v12, %v12380_v7  ;;  %v17035_v20 = vld [vmem:[#allocation68_spill] sm:$0xff]  ;;  %v17036_v12 = vld [vmem:[#allocation73_spill] sm:$0xff] }
 0x10b   :  { %v3963_v29 = vrot.slane %v3949_v42, %v12380_v7  ;;  %v4063_v18 = vcombine.low %v17023_v14, %v17022_v48  ;;  %v4064_v43 = vcombine.low %v17025_v25, %v17024_v50  ;;  %v4065_v32 = vcombine.low %v17027_v31, %v17026_v59  ;;  %v17042_v14 = vld [vmem:[#allocation82_spill] sm:$0xff]  ;;  %v17043_v50 = vld [vmem:[#allocation81_spill] sm:$0xff] }
 0x10c   :  { %11853 = vmatmul.mubr.msk.bf16.vlgmr.msra.gmra.mrb[0].mxu0 %vm2528_vm15, %v3719_v0  ;;  %v3975_v0 = vrot.slane %v3965_v6, %v12380_v7  ;;  %v11366_v40 = vcombine.high %v17028_v23, %v17026_v59  ;;  %v4046_v30 = vcombine.low %v4024_v11, %v4031_v62  ;;  %v4047_v16 = vcombine.low %v4038_v58, %v4045_v8  ;;  %v17031_v6 = vld [vmem:[#allocation65_spill] sm:$0xff] }
 0x10d   :  { %11856 = vmatprep.mubr.msk.bf16.mxu0 %vm2528_vm15, %v3768_v46  ;;  %v3989_v46 = vrot.slane %v3967_v41, %v12380_v7  ;;  %v4112_v22 = vcombine.low %v17030_v21, %v17029_v15  ;;  %v11367_v47 = vcombine.high %v17030_v21, %v17029_v15  ;;  %v4114_v51 = vcombine.low %v17032_v9, %v17031_v6 }
 0x10e   :  { %v3997_v26 = vcombine.low %v3975_v0, %v3982_v1  ;;  %v4115_v35 = vcombine.low %v17034_v61, %v17033_v36  ;;  %v3964_v41 = vcombine.low %v3956_v10, %v3963_v29  ;;  %v4073_v44 = vrot.slane %v4063_v18, %v12380_v7  ;;  %v17037_v0 = vld [vmem:[#allocation69_spill] sm:$0xff]  ;;  %v17039_v10 = vld [vmem:[#allocation79_spill] sm:$0xff]  ;;  %v17040_v29 = vld [vmem:[#allocation78_spill] sm:$0xff] }
 0x10f   :  { %v3998_v56 = vcombine.low %v3989_v46, %v3996_v54  ;;  %v4080_v60 = vrot.slane %v4064_v43, %v12380_v7  ;;  %v4087_v45 = vrot.slane %v4065_v32, %v12380_v7  ;;  %v4094_v5 = vrot.slane %v11366_v40, %v12380_v7  ;;  %v17038_v46 = vld [vmem:[#allocation71_spill] sm:$0xff] }
 0x110   :  { %v4005_v28 = vrot.slane %v3997_v26, %v12380_v7  ;;  %v4054_v57 = vrot.slane %v4046_v30, %v12380_v7  ;;  %v4061_v24 = vrot.slane %v4047_v16, %v12380_v7  ;;  %v4122_v39 = vrot.slane %v4112_v22, %v12380_v7  ;;  %v17044_v22 = vld [vmem:[#allocation87_spill] sm:$0xff] }
 0x111   :  { %v4012_v38 = vrot.slane %v3998_v56, %v12380_v7  ;;  %v4129_v17 = vrot.slane %v11367_v47, %v12380_v7  ;;  %v4136_v33 = vrot.slane %v4114_v51, %v12380_v7  ;;  %v4143_v19 = vrot.slane %v4115_v35, %v12380_v7 }
 0x112   :  { %v4161_v52 = vcombine.low %v17035_v20, %v16979_v53  ;;  %v4162_v42 = vcombine.low %v17036_v12, %v16981_v49  ;;  %v11368_v1 = vcombine.high %v17037_v0, %v16981_v49  ;;  %v4164_v54 = vcombine.low %v17038_v46, %v16985_v37  ;;  %v17041_v53 = vld [vmem:[#allocation80_spill] sm:$0xff]  ;;  %v12064_v12 = vld [vmem:[%s16575_s3 + $0xa0] ss:$8 sps:$4 sm:$0xff]  }
 0x113   :  { %v4013_v11 = vcombine.low %v4005_v28, %v4012_v38  ;;  %v4062_v62 = vcombine.low %v4054_v57, %v4061_v24  ;;  %v4144_v58 = vcombine.low %v4122_v39, %v4129_v17  ;;  %v4145_v8 = vcombine.low %v4136_v33, %v4143_v19  ;;  %v12053_v33 = vld [vmem:[%s16575_s3 + $0x74] ss:$8 sps:$4 sm:$0xff]   ;;  %v12055_v19 = vld [vmem:[%s16575_s3 + $0x70] ss:$8 sps:$4 sm:$0xff]  }
 0x114   :  { %11857 = vmatmul.mubr.msk.bf16.gmra.mrb[4].mxu0 %vm2528_vm15, %v3817_v27  ;;  %v4095_v27 = vcombine.low %v4073_v44, %v4080_v60  ;;  %v4211_v48 = vcombine.low %v17040_v29, %v17039_v10  ;;  %v4212_v18 = vcombine.low %v17042_v14, %v17041_v53  ;;  %v4213_v25 = vcombine.low %v17043_v50, %v16990_v34  ;;  %v12061_v20 = vld [vmem:[%s16575_s3 + $0x90] ss:$8 sps:$4 sm:$0xff]   ;;  %v13965_v10 = vld [vmem:[%s16574_s2] ss:$0 sm:$0xff] }
 0x115   :  { %11860 = vmatprep.mubr.msk.bf16.mxu0 %vm2528_vm15, %v3866_v2  ;;  %v4096_v2 = vcombine.low %v4087_v45, %v4094_v5  ;;  %v4171_v59 = vrot.slane %v4161_v52, %v12380_v7  ;;  %v4178_v31 = vrot.slane %v4162_v42, %v12380_v7  ;;  %v4185_v32 = vrot.slane %v11368_v1, %v12380_v7  ;;  %v12062_v52 = vld [vmem:[%s16575_s3 + $0xa4] ss:$8 sps:$4 sm:$0xff]   ;;  %v12065_v42 = vld [vmem:[%s16575_s3 + $0xb4] ss:$8 sps:$4 sm:$0xff]   ;;  %v12067_v0 = vld [vmem:[%s16575_s3 + $0xb0] ss:$8 sps:$4 sm:$0xff]  }
 0x116   :  { %v4103_v49 = vrot.slane %v4095_v27, %v12380_v7  ;;  %v4152_v23 = vrot.slane %v4144_v58, %v12380_v7  ;;  %v4159_v40 = vrot.slane %v4145_v8, %v12380_v7  ;;  %v4227_v26 = vrot.slane %v4211_v48, %v12380_v7  ;;  %6897 = vmatprep.subr.bf16.mxu1 %v12053_v33  ;;  %v12056_v27 = vld [vmem:[%s16575_s3 + $0x84] ss:$8 sps:$4 sm:$0xff]  }
 0x117   :  { %v4110_v43 = vrot.slane %v4096_v2, %v12380_v7  ;;  %v4234_v56 = vrot.slane %v4212_v18, %v12380_v7  ;;  %v4241_v30 = vrot.slane %v4213_v25, %v12380_v7  ;;  %v4193_v15 = vcombine.low %v4171_v59, %v4178_v31  ;;  %6898 = vmatpush1.bf16.msra.mxu1 %v12055_v19  ;;  %v12059_v2 = vld [vmem:[%s16575_s3 + $0x94] ss:$8 sps:$4 sm:$0xff]   ;;  %v12068_v1 = vld [vmem:[%s16575_s3 + $0xc4] ss:$8 sps:$4 sm:$0xff]  }
 0x118   :  { %v4259_v47 = vcombine.low %v17044_v22, %v16992_v55  ;;  %v11370_v6 = vcombine.high %v16989_v4, %v16992_v55  ;;  %v4261_v9 = vcombine.low %v13422_v13, %v13425_v63  ;;  %v11371_v51 = vcombine.high %v13422_v13, %v13425_v63  ;;  %6899 = vmatprep.subr.bf16.mxu1 %v12056_v27  ;;  %v12076_v58 = vld [vmem:[%s16575_s3 + $0x4] ss:$8 sps:$4 sm:$0xff]  }
 0x119   :  { %v4111_v16 = vcombine.low %v4103_v49, %v4110_v43  ;;  %v4160_v36 = vcombine.low %v4152_v23, %v4159_v40  ;;  %v4243_v35 = vcombine.low %v4234_v56, %v4241_v30  ;;  %v12315_v8 = vmov 1983009808   ;;  %v17045_v49 = vld [vmem:[#allocation8_spill] sm:$0xff] }
 0x11a   :  { %v4269_v60 = vrot.slane %v4259_v47, %v12380_v7  ;;  %v4276_v45 = vrot.slane %v11370_v6, %v12380_v7  ;;  %v4283_v4 = vrot.slane %v4261_v9, %v12380_v7  ;;  %v4290_v55 = vrot.slane %v11371_v51, %v12380_v7 }
 0x11b   :  { %v4257_v63 = vrot.slane %v4243_v35, %v12380_v7  ;;  %vm6023_vm2 = vsmask.f32 5392  ;;  %vm6025_vm3 = vsmask.f32 7448  ;;  %vm7514_vm9 = vcmask 1042434  }
 0x11c   :  { %11861 = vmatmul.mubr.msk.bf16.gmra.mrb[8].mxu0 %vm2528_vm15, %v3915_v3  ;;  %v11369_v3 = vcombine.high %v17038_v46, %v16985_v37  ;;  %v4192_v37 = vrot.slane %v4164_v54, %v12380_v7  ;;  %v4291_v28 = vcombine.low %v4269_v60, %v4276_v45  ;;  %v4292_v38 = vcombine.low %v4283_v4, %v4290_v55  ;;  %v12070_v46 = vld [vmem:[%s16575_s3 + $0xc0] ss:$8 sps:$4 sm:$0xff]   ;;  %v12071_v54 = vld [vmem:[%s16575_s3 + $0xd4] ss:$8 sps:$4 sm:$0xff]   ;;  %vm6024_vm5 = vmor %vm6022_vm4, %vm6023_vm2 }
 0x11d   :  { %11864 = vmatprep.mubr.msk.bf16.mxu0 %vm2528_vm15, %v3964_v41  ;;  %v4201_v41 = vrot.slane %v4193_v15, %v12380_v7  ;;  %vm14254_vm6 = vmor %vm6024_vm5, %vm6025_vm3  ;;  %vm7516_vm11 = vcmask 1044484   ;;  %vm7518_vm13 = vcmask 1046534   ;;  %vm8716_vm0 = vcmask 1041409  }
 0x11e   :  { %v4220_v34 = vrot.slane %v11369_v3, %v12380_v7  ;;  %v4194_v21 = vcombine.low %v4185_v32, %v4192_v37  ;;  %v4299_v24 = vrot.slane %v4291_v28, %v12380_v7  ;;  %v4306_v39 = vrot.slane %v4292_v38, %v12380_v7  ;;  %vm7515_vm10 = vmor %vm7513_vm8, %vm7514_vm9 }
 0x11f   :  { %v4668_v3 = vunpack.c.l.s4 %v12315_v8  ;;  %vm7517_vm12 = vmor %vm7515_vm10, %vm7516_vm11  ;;  %vm8722_vm1 = vcmask 1043459   ;;  %vm8728_vm2 = vcmask 1045509   ;;  %vm8734_vm3 = vcmask 1047559  }
 0x120   :  { %v4242_v61 = vcombine.low %v4220_v34, %v4227_v26  ;;  %v4208_v44 = vrot.slane %v4194_v21, %v12380_v7  ;;  %v4307_v17 = vcombine.low %v4299_v24, %v4306_v39  ;;  %vm14919_vm14 = vmor %vm7517_vm12, %vm7518_vm13 }
 0x121   :  { %v4669_v29 = vunpack.c.0.s8 %v4668_v3 }
 0x122   :  { %v4250_v13 = vrot.slane %v4242_v61, %v12380_v7  ;;  %v4209_v5 = vcombine.low %v4201_v41, %v4208_v44  ;;  %v12058_v7 = vld [vmem:[%s16575_s3 + $0x80] ss:$8 sps:$4 sm:$0xff]  }
 0x123   :  { %6900 = vmatpush1.bf16.msra.mxu1 %v12058_v7  ;;  %v13970_v43 = vsub.s32 %v4669_v29, %v17045_v49  ;;  %v17058_v49 = vmov 0  }
 0x124   :  { %11865 = vmatmul.mubr.msk.bf16.gmra.mrb[12].mxu0 %vm2528_vm15, %v4013_v11  ;;  %v4258_v57 = vcombine.low %v4250_v13, %v4257_v63  ;;  %6901 = vmatprep.subr.bf16.mxu1 %v12059_v2  ;;  %v12073_v11 = vld [vmem:[%s16575_s3 + $0xd0] ss:$8 sps:$4 sm:$0xff]  }
 0x125   :  { %11868 = vmatprep.mubr.msk.bf16.mxu0 %vm2528_vm15, %v4062_v62  ;;  %v16708_v62 = vmov 0  }
 0x126   :  { %6929 = vmatprep.mubr.bf16.mxu1 %v16708_v62  ;;  %8856 = vmatprep.subr.bf16.mxu0 %v16708_v62 }
 0x127   :  { %6902 = vmatpush1.bf16.msra.mxu1 %v12061_v20 }
 0x128   :  { %6903 = vmatprep.subr.bf16.mxu1 %v12062_v52 }
 0x12b   :  { %6904 = vmatpush1.bf16.msra.mxu1 %v12064_v12 }
 0x12c   :  { %11869 = vmatmul.mubr.msk.bf16.gmra.mrb[16].mxu0 %vm2528_vm15, %v4111_v16  ;;  %6905 = vmatprep.subr.bf16.mxu1 %v12065_v42 }
 0x12d   :  { %11872 = vmatprep.mubr.msk.bf16.mxu0 %vm2528_vm15, %v4160_v36 }
 0x12f   :  { %6906 = vmatpush1.bf16.msra.mxu1 %v12067_v0 }
 0x130   :  { %6907 = vmatprep.subr.bf16.mxu1 %v12068_v1 }
 0x133   :  { %6908 = vmatpush1.bf16.msra.mxu1 %v12070_v46 }
 0x134   :  { %11873 = vmatmul.mubr.msk.bf16.gmra.mrb[20].mxu0 %vm2528_vm15, %v4209_v5  ;;  %6909 = vmatprep.subr.bf16.mxu1 %v12071_v54 }
 0x135   :  { %11876 = vmatprep.mubr.msk.bf16.mxu0 %vm2528_vm15, %v4258_v57 }
 0x137   :  { %6910 = vmatpush1.bf16.msra.mxu1 %v12073_v11 }
 0x138   :  { %7360 = vmatprep.subr.bf16.mxu1 %v12076_v58 }
 0x13c   :  { %11877 = vmatmul.mubr.msk.bf16.gmra.mrb[24].mxu0 %vm2528_vm15, %v4307_v17 }
 0x1df   :  { %v11854_v48 = vpop.f32.mrb[0].mxu0 }
 0x1e0   :  { %v4556_v53 = vadd.f32 %v11854_v48, %v13965_v10  ;;  %v4408_v14 = vpop.f32.mrb[1].mxu0 }
 0x1e1   :  { %v4554_v18 = vadd.f32 %v13965_v10, %v4408_v14  ;;  %v11855_v50 = vpop.f32.mrb[2].mxu0 }
 0x1e2   :  { %v4584_v25 = vmul.f32 0.2, %v4556_v53  ;;  %v4557_v59 = vadd.f32 %v11855_v50, %v13965_v10  ;;  %v4411_v31 = vpop.f32.mrb[3].mxu0 }
 0x1e3   :  { %v4582_v32 = vmul.f32 0.2, %v4554_v18  ;;  %v4555_v37 = vadd.f32 %v13965_v10, %v4411_v31 }
 0x1e4   :  { %v4612_v23 = vmax.f32 %v4556_v53, %v4584_v25  ;;  %v4585_v40 = vmul.f32 0.2, %v4557_v59 }
 0x1e5   :  { %v4610_v34 = vmax.f32 %v4554_v18, %v4582_v32  ;;  %v4583_v26 = vmul.f32 0.2, %v4555_v37 }
 0x1e6   :  { %v4700_v56 = vcombine.high %v4612_v23, %v4612_v23  ;;  %v4707_v30 = vrot.slane %v4612_v23, %v13970_v43  ;;  %v4613_v16 = vmax.f32 %v4557_v59, %v4585_v40 }
 0x1e7   :  { %v4666_v15 = vcombine.high %v4610_v34, %v4610_v34  ;;  %v4673_v21 = vrot.slane %v4610_v34, %v13970_v43  ;;  %v4611_v22 = vmax.f32 %v4555_v37, %v4583_v26  ;;  %v11858_v47 = vpop.f32.mrb[4].mxu0 }
 0x1e8   :  { %v4714_v6 = vrot.slane %v4700_v56, %v13970_v43  ;;  %v4715_v9 = vcombine.high %v4707_v30, %v4707_v30  ;;  %v4717_v51 = vcombine.high %v4613_v16, %v4613_v16  ;;  %v4724_v36 = vrot.slane %v4613_v16, %v13970_v43  ;;  %v4424_v61 = vpop.f32.mrb[5].mxu0 }
 0x1e9   :  { %v4680_v35 = vrot.slane %v4666_v15, %v13970_v43  ;;  %v4681_v41 = vcombine.high %v4673_v21, %v4673_v21  ;;  %v4683_v44 = vcombine.high %v4611_v22, %v4611_v22  ;;  %v4690_v60 = vrot.slane %v4611_v22, %v13970_v43  ;;  %v11859_v45 = vpop.f32.mrb[6].mxu0 }
 0x1ea   :  { %v5176_v4 = vcombine.low %v4715_v9, %v4714_v6  ;;  %v4716_v55 = vcombine.high %v4714_v6, %v4714_v6  ;;  %v4731_v13 = vrot.slane %v4717_v51, %v13970_v43  ;;  %v4732_v63 = vcombine.high %v4724_v36, %v4724_v36  ;;  %v4427_v5 = vpop.f32.mrb[7].mxu0 }
 0x1eb   :  { %v4682_v28 = vcombine.high %v4680_v35, %v4680_v35  ;;  %v5142_v38 = vcombine.low %v4673_v21, %v4681_v41  ;;  %v4697_v57 = vrot.slane %v4683_v44, %v13970_v43  ;;  %v4698_v24 = vcombine.high %v4690_v60, %v4690_v60 }
 0x1ec   :  { %v5190_v39 = vrot.slane %v5176_v4, %v13970_v43  ;;  %v4733_v17 = vcombine.high %v4731_v13, %v4731_v13  ;;  %v5192_v33 = vcombine.low %v4716_v55, %v4724_v36  ;;  %v5206_v27 = vrot.slane %v4732_v63, %v13970_v43 }
 0x1ed   :  { %v5143_v19 = vcombine.low %v4680_v35, %v4682_v28  ;;  %v4699_v7 = vcombine.high %v4697_v57, %v4697_v57  ;;  %v5159_v2 = vcombine.low %v4690_v60, %v4698_v24  ;;  %v5150_v20 = vrot.slane %v5142_v38, %v13970_v43 }
 0x1ee   :  { %v5199_v52 = vrot.slane %v5192_v33, %v13970_v43  ;;  %v5173_v12 = vrot.slane %v4697_v57, %v13970_v43  ;;  %v4560_v42 = vadd.f32 %v11858_v47, %v13965_v10  ;;  %v4558_v54 = vadd.f32 %v13965_v10, %v4424_v61 }
 0x1ef   :  { %v5157_v0 = vrot.slane %v5143_v19, %v13970_v43  ;;  %v5166_v1 = vrot.slane %v5159_v2, %v13970_v43  ;;  %v5175_v46 = vcombine.low %v4699_v7, %v4707_v30  ;;  %v11862_v11 = vpop.f32.mrb[8].mxu0  ;;  %v13993_v8 = vcombine.low %v4731_v13, %v4733_v17 }
 0x1f0   :  { %v13991_v58 = vcombine.low %v5199_v52, %v5206_v27  ;;  %v4588_v3 = vmul.f32 0.2, %v4560_v42  ;;  %v4561_v29 = vadd.f32 %v11859_v45, %v13965_v10  ;;  %v13996_v48 = vpop.f32.mrb[9].mxu0  ;;  %v4586_v50 = vmul.f32 0.2, %v4558_v54 }
 0x1f1   :  { %v5158_v53 = vcombine.low %v5150_v20, %v5157_v0  ;;  %v5174_v14 = vcombine.low %v5166_v1, %v5173_v12  ;;  %v5183_v18 = vrot.slane %v5175_v46, %v13970_v43  ;;  %v13999_v25 = vpop.f32.mrb[10].mxu0  ;;  %v4559_v26 = vadd.f32 %v13965_v10, %v4427_v5 }
 0x1f2   :  { %v11392_v59 = vpack.c.bf16 %v13991_v58, %v13991_v58  ;;  %v4616_v31 = vmax.f32 %v4560_v42, %v4588_v3  ;;  %v4589_v32 = vmul.f32 0.2, %v4561_v29  ;;  %v14003_v37 = vpop.f32.mrb[11].mxu0  ;;  %v4614_v34 = vmax.f32 %v4558_v54, %v4586_v50 }
 0x1f3   :  { %v5191_v23 = vcombine.low %v5183_v18, %v5190_v39  ;;  %v5702_v40 = vpack.c.bf16 %v5174_v14, %v5158_v53  ;;  %v5216_v56 = vrot.slane %v13993_v8, %v13970_v43  ;;  %v11391_v47 = vpack.c.bf16 %v5174_v14, %v5174_v14 }
 0x1f4   :  { %v4768_v30 = vcombine.high %v4616_v31, %v4616_v31  ;;  %v4775_v16 = vrot.slane %v4616_v31, %v13970_v43  ;;  %v4617_v15 = vmax.f32 %v4561_v29, %v4589_v32  ;;  %v14010_v21 = vrot.slane %v11392_v59, %v13970_v43 }
 0x1f5   :  { %v5703_v22 = vpack.c.bf16 %v13991_v58, %v5191_v23  ;;  %v4734_v6 = vcombine.high %v4614_v34, %v4614_v34  ;;  %v4741_v36 = vrot.slane %v4614_v34, %v13970_v43  ;;  %v14016_v35 = vrot.slane %v5702_v40, %v13970_v43 }
 0x1f6   :  { %v4782_v9 = vrot.slane %v4768_v30, %v13970_v43  ;;  %v4783_v51 = vcombine.high %v4775_v16, %v4775_v16  ;;  %v4785_v61 = vcombine.high %v4617_v15, %v4617_v15  ;;  %v4792_v44 = vrot.slane %v4617_v15, %v13970_v43 }
 0x1f7   :  { %v4748_v41 = vrot.slane %v4734_v6, %v13970_v43  ;;  %v4587_v60 = vmul.f32 0.2, %v4559_v26  ;;  %v14020_v45 = vpop.f32.mrb[12].mxu0  ;;  %v4749_v13 = vcombine.high %v4741_v36, %v4741_v36  ;;  %v4564_v24 = vadd.f32 %v11862_v11, %v13965_v10 }
 0x1f8   :  { %v4784_v4 = vcombine.high %v4782_v9, %v4782_v9  ;;  %v5258_v55 = vcombine.low %v4783_v51, %v4782_v9  ;;  %v4799_v63 = vrot.slane %v4785_v61, %v13970_v43  ;;  %v14023_v5 = vpop.f32.mrb[13].mxu0  ;;  %v4800_v38 = vcombine.high %v4792_v44, %v4792_v44 }
 0x1f9   :  { %v4750_v28 = vcombine.high %v4748_v41, %v4748_v41  ;;  %v4615_v57 = vmax.f32 %v4559_v26, %v4587_v60  ;;  %v14026_v39 = vpop.f32.mrb[14].mxu0  ;;  %v5209_v19 = vcombine.low %v4741_v36, %v4749_v13  ;;  %v4592_v46 = vmul.f32 0.2, %v4564_v24 }
 0x1fa   :  { %v5265_v17 = vrot.slane %v5258_v55, %v13970_v43  ;;  %v5272_v33 = vrot.slane %v4784_v4, %v13970_v43  ;;  %v4801_v27 = vcombine.high %v4799_v63, %v4799_v63  ;;  %v14030_v7 = vpop.f32.mrb[15].mxu0  ;;  %v5274_v20 = vcombine.low %v4792_v44, %v4800_v38 }
 0x1fb   :  { %v5225_v2 = vcombine.low %v4748_v41, %v4750_v28  ;;  %v4751_v52 = vcombine.high %v4615_v57, %v4615_v57  ;;  %v4758_v12 = vrot.slane %v4615_v57, %v13970_v43  ;;  %v5223_v0 = vrot.slane %v5209_v19, %v13970_v43 }
 0x1fc   :  { %v14033_v42 = vcombine.low %v5265_v17, %v5272_v33  ;;  %v5275_v1 = vcombine.low %v4799_v63, %v4801_v27  ;;  %v14037_v54 = vrot.slane %v11391_v47, %v13970_v43  ;;  %v14042_v3 = vrot.slane %v5703_v22, %v13970_v43 }
 0x1fd   :  { %v4765_v11 = vrot.slane %v4751_v52, %v13970_v43  ;;  %v4766_v58 = vcombine.high %v4758_v12, %v4758_v12  ;;  %v5232_v8 = vrot.slane %v5225_v2, %v13970_v43  ;;  %v5224_v53 = vcombine.low %v5216_v56, %v5223_v0 }
 0x1fe   :  { %v11394_v29 = vpack.c.bf16 %v14033_v42, %v14033_v42  ;;  %v5239_v14 = vrot.slane %v4758_v12, %v13970_v43  ;;  %v4620_v59 = vmax.f32 %v4564_v24, %v4592_v46  ;;  %v4562_v31 = vadd.f32 %v13965_v10, %v13996_v48 }
 0x1ff   :  { %v4767_v18 = vcombine.high %v4765_v11, %v4765_v11  ;;  %v5241_v50 = vcombine.low %v4766_v58, %v4765_v11  ;;  %v14049_v32 = vpop.f32.mrb[16].mxu0  ;;  %v5282_v23 = vrot.slane %v5274_v20, %v13970_v43  ;;  %v5289_v40 = vrot.slane %v5275_v1, %v13970_v43 }
 0x200   :  { %v5240_v34 = vcombine.low %v5232_v8, %v5239_v14  ;;  %v4565_v26 = vadd.f32 %v13999_v25, %v13965_v10  ;;  %v14055_v30 = vpop.f32.mrb[17].mxu0  ;;  %v14058_v56 = vrot.slane %v11394_v29, %v13970_v43  ;;  %v4836_v22 = vcombine.high %v4620_v59, %v4620_v59 }
 0x201   :  { %v5242_v15 = vcombine.low %v4767_v18, %v4775_v16  ;;  %v4843_v47 = vrot.slane %v4620_v59, %v13970_v43  ;;  %v14061_v48 = vpop.f32.mrb[18].mxu0  ;;  %v4590_v51 = vmul.f32 0.2, %v4562_v31  ;;  %v5249_v41 = vrot.slane %v5241_v50, %v13970_v43 }
 0x202   :  { %v5704_v6 = vpack.c.bf16 %v5240_v34, %v5224_v53  ;;  %v11393_v9 = vpack.c.bf16 %v5240_v34, %v5240_v34  ;;  %v4593_v36 = vmul.f32 0.2, %v4565_v26  ;;  %v14063_v61 = vpop.f32.mrb[19].mxu0  ;;  %v4850_v44 = vrot.slane %v4836_v22, %v13970_v43 }
 0x203   :  { %v5256_v25 = vrot.slane %v5242_v15, %v13970_v43  ;;  %v4563_v16 = vadd.f32 %v13965_v10, %v14003_v37  ;;  %v14070_v60 = vcombine.low %v5282_v23, %v5289_v40  ;;  %v4851_v4 = vcombine.high %v4843_v47, %v4843_v47 }
 0x204   :  { %v4618_v55 = vmax.f32 %v4562_v31, %v4590_v51  ;;  %v4621_v13 = vmax.f32 %v4565_v26, %v4593_v36  ;;  %v14073_v28 = vrot.slane %v5704_v6, %v13970_v43  ;;  %v4852_v38 = vcombine.high %v4850_v44, %v4850_v44 }
 0x205   :  { %v5257_v63 = vcombine.low %v5249_v41, %v5256_v25  ;;  %v4591_v57 = vmul.f32 0.2, %v4563_v16  ;;  %v14076_v24 = vrot.slane %v11393_v9, %v13970_v43  ;;  %v4568_v46 = vadd.f32 %v14020_v45, %v13965_v10 }
 0x206   :  { %v4802_v17 = vcombine.high %v4618_v55, %v4618_v55  ;;  %v4809_v33 = vrot.slane %v4618_v55, %v13970_v43  ;;  %v4853_v19 = vcombine.high %v4621_v13, %v4621_v13  ;;  %v5340_v27 = vcombine.low %v4850_v44, %v4852_v38 }
 0x207   :  { %17046 = vst [vmem:[#allocation19_spill] sm:$0xff] %v14076_v24  ;;  %v5705_v37 = vpack.c.bf16 %v14033_v42, %v5257_v63  ;;  %v4860_v2 = vrot.slane %v4621_v13, %v13970_v43  ;;  %v4619_v20 = vmax.f32 %v4563_v16, %v4591_v57  ;;  %v14081_v52 = vpop.f32.mrb[20].mxu0  ;;  %v14091_v58 = vcombine.high %v14073_v28, %v14073_v28 }
 0x208   :  { %v4816_v12 = vrot.slane %v4802_v17, %v13970_v43  ;;  %v4817_v0 = vcombine.high %v4809_v33, %v4809_v33  ;;  %v4867_v1 = vrot.slane %v4853_v19, %v13970_v43  ;;  %v14087_v11 = vpop.f32.mrb[21].mxu0  ;;  %v5338_v42 = vrot.slane %v4851_v4, %v13970_v43 }
 0x209   :  { %v4868_v8 = vcombine.high %v4860_v2, %v4860_v2  ;;  %v4819_v29 = vcombine.high %v4619_v20, %v4619_v20  ;;  %v14094_v53 = vpop.f32.mrb[22].mxu0  ;;  %v5348_v14 = vrot.slane %v5340_v27, %v13970_v43  ;;  %v4826_v23 = vrot.slane %v4619_v20, %v13970_v43 }
 0x20a   :  { %v5291_v18 = vcombine.low %v4809_v33, %v4817_v0  ;;  %v4869_v50 = vcombine.high %v4867_v1, %v4867_v1  ;;  %v4818_v59 = vcombine.high %v4816_v12, %v4816_v12  ;;  %v14097_v31 = vpop.f32.mrb[23].mxu0  ;;  %v4596_v34 = vmul.f32 0.2, %v4568_v46 }
 0x20b   :  { %v5341_v45 = vcombine.low %v4860_v2, %v4868_v8  ;;  %v4833_v40 = vrot.slane %v4819_v29, %v13970_v43  ;;  %v5305_v15 = vrot.slane %v4816_v12, %v13970_v43  ;;  %v4566_v22 = vadd.f32 %v13965_v10, %v14023_v5 }
 0x20c   :  { %v5298_v26 = vrot.slane %v5291_v18, %v13970_v43  ;;  %v4569_v6 = vadd.f32 %v14026_v39, %v13965_v10  ;;  %v4834_v51 = vcombine.high %v4826_v23, %v4826_v23  ;;  %v5307_v41 = vcombine.low %v4818_v59, %v4826_v23 }
 0x20d   :  { %v5355_v9 = vrot.slane %v5341_v45, %v13970_v43  ;;  %v4835_v36 = vcombine.high %v4833_v40, %v4833_v40  ;;  %v5357_v44 = vcombine.low %v4867_v1, %v4869_v50  ;;  %v4624_v16 = vmax.f32 %v4568_v46, %v4596_v34 }
 0x20e   :  { %v5306_v25 = vcombine.low %v5298_v26, %v5305_v15  ;;  %v4594_v4 = vmul.f32 0.2, %v4566_v22  ;;  %v5308_v13 = vcombine.low %v4834_v51, %v4833_v40  ;;  %v5315_v63 = vrot.slane %v5307_v41, %v13970_v43 }
 0x20f   :  { %v5356_v55 = vcombine.low %v5348_v14, %v5355_v9  ;;  %v5324_v38 = vcombine.low %v4835_v36, %v4843_v47  ;;  %v14109_v57 = vpop.f32.mrb[24].mxu0  ;;  %v14112_v5 = vrot.slane %v5705_v37, %v13970_v43  ;;  %v4904_v17 = vcombine.high %v4624_v16, %v4624_v16 }
 0x210   :  { %v5706_v39 = vpack.c.bf16 %v5306_v25, %v14070_v60  ;;  %v4911_v33 = vrot.slane %v4624_v16, %v13970_v43  ;;  %v14116_v19 = vpop.f32.mrb[25].mxu0  ;;  %v5322_v27 = vrot.slane %v5308_v13, %v13970_v43  ;;  %v4622_v20 = vmax.f32 %v4566_v22, %v4594_v4 }
 0x211   :  { %17047 = vst [vmem:[#allocation18_spill] sm:$0xff] %v14112_v5  ;;  %v5331_v2 = vrot.slane %v5324_v38, %v13970_v43  ;;  %v4597_v12 = vmul.f32 0.2, %v4569_v6  ;;  %v14120_v0 = vpop.f32.mrb[26].mxu0  ;;  %v11395_v47 = vpack.c.bf16 %v5306_v25, %v5306_v25  ;;  %v4918_v1 = vrot.slane %v4904_v17, %v13970_v43 }
 0x212   :  { %v4919_v37 = vcombine.high %v4911_v33, %v4911_v33  ;;  %v5364_v46 = vrot.slane %v5357_v44, %v13970_v43  ;;  %v14124_v60 = vpop.f32.mrb[27].mxu0  ;;  %v5323_v8 = vcombine.low %v5315_v63, %v5322_v27  ;;  %v4870_v14 = vcombine.high %v4622_v20, %v4622_v20 }
 0x213   :  { %v5339_v29 = vcombine.low %v5331_v2, %v5338_v42  ;;  %v4877_v18 = vrot.slane %v4622_v20, %v13970_v43  ;;  %v4920_v50 = vcombine.high %v4918_v1, %v4918_v1  ;;  %v4625_v45 = vmax.f32 %v4569_v6, %v4597_v12 }
 0x214   :  { %v5406_v59 = vcombine.low %v4911_v33, %v4919_v37  ;;  %v4567_v23 = vadd.f32 %v13965_v10, %v14030_v7  ;;  %v4884_v26 = vrot.slane %v4870_v14, %v13970_v43  ;;  %v14131_v22 = vrot.slane %v5706_v39, %v13970_v43 }
 0x215   :  { %v5707_v40 = vpack.c.bf16 %v5339_v29, %v5323_v8  ;;  %v11396_v34 = vpack.c.bf16 %v5339_v29, %v5339_v29  ;;  %v4885_v15 = vcombine.high %v4877_v18, %v4877_v18  ;;  %v5407_v9 = vcombine.low %v4918_v1, %v4920_v50 }
 0x216   :  { %17048 = vst [vmem:[#allocation23_spill] sm:$0xff] %v14131_v22  ;;  %v5371_v42 = vrot.slane %v4877_v18, %v13970_v43  ;;  %v4921_v51 = vcombine.high %v4625_v45, %v4625_v45  ;;  %v14135_v36 = vrot.slane %v11395_v47, %v13970_v43  ;;  %v5414_v6 = vrot.slane %v5406_v59, %v13970_v43 }
 0x217   :  { %v5373_v41 = vcombine.low %v4885_v15, %v4884_v26  ;;  %v4928_v7 = vrot.slane %v4625_v45, %v13970_v43  ;;  %v5421_v25 = vrot.slane %v5407_v9, %v13970_v43  ;;  %v4595_v4 = vmul.f32 0.2, %v4567_v23 }
 0x218   :  { %v5372_v44 = vcombine.low %v5364_v46, %v5371_v42  ;;  %v4935_v16 = vrot.slane %v4921_v51, %v13970_v43  ;;  %v14142_v13 = vrot.slane %v5707_v40, %v13970_v43  ;;  %v14145_v63 = vrot.slane %v11396_v34, %v13970_v43 }
 0x219   :  { %v4936_v38 = vcombine.high %v4928_v7, %v4928_v7  ;;  %v4572_v39 = vadd.f32 %v14049_v32, %v13965_v10  ;;  %v5381_v17 = vrot.slane %v5373_v41, %v13970_v43  ;;  %v4886_v2 = vcombine.high %v4884_v26, %v4884_v26 }
 0x21a   :  { %v5708_v33 = vpack.c.bf16 %v5372_v44, %v5356_v55  ;;  %v11397_v27 = vpack.c.bf16 %v5372_v44, %v5372_v44  ;;  %v4623_v12 = vmax.f32 %v4567_v23, %v4595_v4  ;;  %v4570_v1 = vadd.f32 %v13965_v10, %v14055_v30 }
 0x21b   :  { %v5423_v20 = vcombine.low %v4928_v7, %v4936_v38  ;;  %v4600_v47 = vmul.f32 0.2, %v4572_v39  ;;  %v5422_v37 = vcombine.low %v5414_v6, %v5421_v25  ;;  %v5437_v8 = vrot.slane %v4935_v16, %v13970_v43 }
 0x21c   :  { %v14153_v46 = vrot.slane %v5708_v33, %v13970_v43  ;;  %v4573_v32 = vadd.f32 %v14061_v48, %v13965_v10  ;;  %v4887_v55 = vcombine.high %v4623_v12, %v4623_v12  ;;  %v4894_v14 = vrot.slane %v4623_v12, %v13970_v43 }
 0x21d   :  { %v5430_v29 = vrot.slane %v5423_v20, %v13970_v43  ;;  %v4628_v18 = vmax.f32 %v4572_v39, %v4600_v47  ;;  %v14161_v50 = vrot.slane %v11397_v27, %v13970_v43  ;;  %v4598_v59 = vmul.f32 0.2, %v4570_v1 }
 0x21e   :  { %v4937_v30 = vcombine.high %v4935_v16, %v4935_v16  ;;  %v4601_v45 = vmul.f32 0.2, %v4573_v32  ;;  %v4901_v40 = vrot.slane %v4887_v55, %v13970_v43  ;;  %v4902_v34 = vcombine.high %v4894_v14, %v4894_v14 }
 0x21f   :  { %17049 = vst [vmem:[#allocation21_spill] sm:$0xff] %v14161_v50  ;;  %v5438_v23 = vcombine.low %v5430_v29, %v5437_v8  ;;  %v5374_v26 = vcombine.low %v4886_v2, %v4894_v14  ;;  %v4972_v15 = vcombine.high %v4628_v18, %v4628_v18  ;;  %v4979_v48 = vrot.slane %v4628_v18, %v13970_v43 }
 0x220   :  { %v4626_v9 = vmax.f32 %v4570_v1, %v4598_v59  ;;  %v4571_v42 = vadd.f32 %v13965_v10, %v14063_v61  ;;  %v4903_v6 = vcombine.high %v4901_v40, %v4901_v40  ;;  %v4629_v7 = vmax.f32 %v4573_v32, %v4601_v45 }
 0x221   :  { %v5710_v51 = vpack.c.bf16 %v5438_v23, %v5422_v37  ;;  %v5388_v41 = vrot.slane %v5374_v26, %v13970_v43  ;;  %v5390_v25 = vcombine.low %v4902_v34, %v4901_v40  ;;  %v4986_v44 = vrot.slane %v4972_v15, %v13970_v43 }
 0x222   :  { %v4987_v16 = vcombine.high %v4979_v48, %v4979_v48  ;;  %v4938_v4 = vcombine.high %v4626_v9, %v4626_v9  ;;  %v14171_v38 = vcombine.high %v14153_v46, %v14153_v46  ;;  %v11399_v39 = vpack.c.bf16 %v5438_v23, %v5438_v23 }
 0x223   :  { %v5389_v33 = vcombine.low %v5381_v17, %v5388_v41  ;;  %v5404_v27 = vrot.slane %v4903_v6, %v13970_v43  ;;  %v5397_v61 = vrot.slane %v5390_v25, %v13970_v43  ;;  %v4988_v2 = vcombine.high %v4986_v44, %v4986_v44 }
 0x224   :  { %v14175_v20 = vcombine.low %v4979_v48, %v4987_v16  ;;  %v4945_v12 = vrot.slane %v4626_v9, %v13970_v43  ;;  %v4952_v47 = vrot.slane %v4938_v4, %v13970_v43  ;;  %v4989_v1 = vcombine.high %v4629_v7, %v4629_v7 }
 0x225   :  { %v4996_v37 = vrot.slane %v4629_v7, %v13970_v43  ;;  %v4599_v8 = vmul.f32 0.2, %v4571_v42  ;;  %v14181_v32 = vrot.slane %v5710_v51, %v13970_v43  ;;  %v5405_v29 = vcombine.low %v5397_v61, %v5404_v27 }
 0x226   :  { %v5489_v17 = vcombine.low %v4986_v44, %v4988_v2  ;;  %v4953_v55 = vcombine.high %v4945_v12, %v4945_v12  ;;  %v5439_v14 = vcombine.low %v4937_v30, %v4945_v12  ;;  %v5003_v18 = vrot.slane %v4989_v1, %v13970_v43 }
 0x227   :  { %17050 = vst [vmem:[#allocation24_spill] sm:$0xff] %v14181_v32  ;;  %v5004_v59 = vcombine.high %v4996_v37, %v4996_v37  ;;  %v5503_v45 = vrot.slane %v4996_v37, %v13970_v43  ;;  %v5709_v23 = vpack.c.bf16 %v5405_v29, %v5389_v33  ;;  %v11398_v40 = vpack.c.bf16 %v5405_v29, %v5405_v29 }
 0x228   :  { %v5440_v34 = vcombine.low %v4953_v55, %v4952_v47  ;;  %v5496_v26 = vrot.slane %v5489_v17, %v13970_v43  ;;  %v14187_v15 = vrot.slane %v11399_v39, %v13970_v43  ;;  %v5487_v48 = vrot.slane %v14175_v20, %v13970_v43 }
 0x229   :  { %v4627_v9 = vmax.f32 %v4571_v42, %v4599_v8  ;;  %v4954_v51 = vcombine.high %v4952_v47, %v4952_v47  ;;  %v5447_v30 = vrot.slane %v5439_v14, %v13970_v43  ;;  %v5505_v7 = vcombine.low %v5004_v59, %v5003_v18 }
 0x22a   :  { %v5454_v6 = vrot.slane %v5440_v34, %v13970_v43  ;;  %v14193_v41 = vcombine.low %v5496_v26, %v5503_v45  ;;  %v14196_v25 = vrot.slane %v5709_v23, %v13970_v43  ;;  %v4576_v4 = vadd.f32 %v14081_v52, %v13965_v10 }
 0x22b   :  { %v4955_v44 = vcombine.high %v4627_v9, %v4627_v9  ;;  %v4962_v16 = vrot.slane %v4627_v9, %v13970_v43  ;;  %v14202_v42 = vrot.slane %v11398_v40, %v13970_v43  ;;  %v4574_v27 = vadd.f32 %v13965_v10, %v14087_v11 }
 0x22c   :  { %17051 = vst [vmem:[#allocation27_spill] sm:$0xff] %v14196_v25  ;;  %v5455_v39 = vcombine.low %v5447_v30, %v5454_v6  ;;  %v11401_v33 = vpack.c.bf16 %v14193_v41, %v14193_v41  ;;  %v4604_v12 = vmul.f32 0.2, %v4576_v4  ;;  %v5513_v47 = vrot.slane %v5505_v7, %v13970_v43 }
 0x22d   :  { %v4969_v61 = vrot.slane %v4955_v44, %v13970_v43  ;;  %v4970_v2 = vcombine.high %v4962_v16, %v4962_v16  ;;  %v5456_v20 = vcombine.low %v4954_v51, %v4962_v16  ;;  %v4602_v1 = vmul.f32 0.2, %v4574_v27 }
 0x22e   :  { %v14211_v52 = vrot.slane %v11401_v33, %v13970_v43  ;;  %v5005_v37 = vcombine.high %v5003_v18, %v5003_v18  ;;  %v4632_v55 = vmax.f32 %v4576_v4, %v4604_v12  ;;  %v14217_v14 = vcombine.high %v14016_v35, %v14016_v35 }
 0x22f   :  { %v4971_v8 = vcombine.high %v4969_v61, %v4969_v61  ;;  %v5463_v29 = vrot.slane %v5456_v20, %v13970_v43  ;;  %v5470_v17 = vrot.slane %v4970_v2, %v13970_v43  ;;  %v4630_v11 = vmax.f32 %v4574_v27, %v4602_v1 }
 0x230   :  { %17052 = vst [vmem:[#allocation26_spill] sm:$0xff] %v14211_v52  ;;  %v6028_v59 = vshrl.u32 %v14016_v35, 16  ;;  %v6031_v45 = vshll.u32 %v14016_v35, 16  ;;  %v5040_v34 = vcombine.high %v4632_v55, %v4632_v55  ;;  %v5047_v18 = vrot.slane %v4632_v55, %v13970_v43 }
 0x231   :  { %v5471_v23 = vcombine.low %v5463_v29, %v5470_v17  ;;  %v5472_v40 = vcombine.low %v4969_v61, %v4971_v8  ;;  %v5006_v26 = vcombine.high %v4630_v11, %v4630_v11  ;;  %v5013_v9 = vrot.slane %v4630_v11, %v13970_v43 }
 0x232   :  { %v14225_v51 = vcombine.high %v14042_v3, %v14042_v3  ;;  %v6030_v30 = vrot.slane %v6028_v59, 6  ;;  %v14229_v44 = vrot.slane %v5040_v34, %v13970_v43  ;;  %v6033_v16 = vrot.slane %v6031_v45, 7 }
 0x233   :  { %v5480_v6 = vrot.slane %v5472_v40, %v13970_v43  ;;  %v5711_v7 = vpack.c.bf16 %v5471_v23, %v5455_v39  ;;  %v5055_v4 = vcombine.high %v5047_v18, %v5047_v18  ;;  %v5020_v33 = vrot.slane %v5006_v26, %v13970_v43 }
 0x234   :  { %v5021_v27 = vcombine.high %v5013_v9, %v5013_v9  ;;  %v5506_v61 = vcombine.low %v5005_v37, %v5013_v9  ;;  %v11400_v20 = vpack.c.bf16 %v5471_v23, %v5471_v23  ;;  %v5569_v12 = vrot.slane %v14229_v44, %v13970_v43 }
 0x235   :  { %v5488_v2 = vcombine.low %v5480_v6, %v5487_v48  ;;  %v14238_v39 = vcombine.high %v14037_v54, %v14037_v54  ;;  %v5555_v1 = vcombine.low %v5047_v18, %v5055_v4  ;;  %v5022_v8 = vcombine.high %v5020_v33, %v5020_v33 }
 0x236   :  { %v5520_v29 = vrot.slane %v5506_v61, %v13970_v43  ;;  %v5522_v17 = vcombine.low %v5021_v27, %v5020_v33  ;;  %v6034_v37 = vor.u32 %v6033_v16, %v6030_v30  ;;  %v6037_v48 = vshll.u32 %v14217_v14, 16 }
 0x237   :  { %17053 = vst [vmem:[#allocation31_spill] sm:$0xff] %v14238_v39  ;;  %v5712_v55 = vpack.c.bf16 %v14193_v41, %v5488_v2  ;;  %v6041_v11 = vshrl.u32 %v14217_v14, 16  ;;  %v5562_v59 = vrot.slane %v5555_v1, %v13970_v43  ;;  %v5536_v40 = vrot.slane %v5022_v8, %v13970_v43 }
 0x238   :  { %v5521_v45 = vcombine.low %v5513_v47, %v5520_v29  ;;  %v5529_v23 = vrot.slane %v5522_v17, %v13970_v43  ;;  %v14249_v34 = vrot.slane %v5711_v7, %v13970_v43  ;;  %v6035_v18 = vrot.slane %v6034_v37, 2 }
 0x239   :  { %v6039_v26 = vrot.slane %v6037_v48, 7  ;;  %v6043_v41 = vrot.slane %v6041_v11, 6  ;;  %v14251_v9 = vcombine.low %v5562_v59, %v5569_v12  ;;  %v6047_v47 = vshll.u32 %v14037_v54, 16 }
 0x23a   :  { %v5537_v30 = vcombine.low %v5529_v23, %v5536_v40  ;;  %v6051_v16 = vshrl.u32 %v14037_v54, 16  ;;  %v14261_v4 = vrot.slane %v11400_v20, %v13970_v43  ;;  %v6057_v33 = vshll.u32 %v14238_v39, 16 }
 0x23b   :  { %v6044_v7 = vor.u32 %v6043_v41, %v6039_v26  ;;  %v6062_v27 = vshrl.u32 %v14042_v3, 16  ;;  %v11403_v61 = vpack.c.bf16 %v14251_v9, %v14251_v9  ;;  %v6049_v1 = vrot.slane %v6047_v47, 7 }
 0x23c   :  { %v5713_v2 = vpack.c.bf16 %v5537_v30, %v5521_v45  ;;  %v11402_v12 = vpack.c.bf16 %v5537_v30, %v5537_v30  ;;  %v14268_v8 = vrot.slane %v5712_v55, %v13970_v43  ;;  %v6040_v29 = vsel %vm14254_vm6, %v6035_v18, %v6039_v26 }
 0x23d   :  { %v6045_v17 = vrot.slane %v6044_v7, 2  ;;  %v6053_v20 = vrot.slane %v6051_v16, 6  ;;  %v14273_v37 = vrot.slane %v11403_v61, %v13970_v43  ;;  %v6059_v48 = vrot.slane %v6057_v33, 7 }
 0x23e   :  { %v6064_v11 = vrot.slane %v6062_v27, 6  ;;  %v6065_v59 = vshll.u32 %v14042_v3, 16  ;;  %v14277_v23 = vrot.slane %v5713_v2, %v13970_v43  ;;  %v6071_v40 = vshll.u32 %v14225_v51, 16 }
 0x23f   :  { %v6050_v45 = vsel %vm14254_vm6, %v6045_v17, %v6049_v1  ;;  %v6054_v55 = vor.u32 %v6053_v20, %v6049_v1  ;;  %v14283_v18 = vrot.slane %v11402_v12, %v13970_v43  ;;  %v4577_v30 = vadd.f32 %v14094_v53, %v13965_v10 }
 0x240   :  { %17056 = vst [vmem:[#allocation32_spill] sm:$0xff] %v14277_v23  ;;  %v6067_v26 = vrot.slane %v6065_v59, 7  ;;  %v6586_v41 = vcombine.low %v6040_v29, %v6050_v45  ;;  %v5056_v16 = vcombine.high %v14229_v44, %v14229_v44  ;;  %v4575_v7 = vadd.f32 %v13965_v10, %v14097_v31 }
 0x241   :  { %v6055_v47 = vrot.slane %v6054_v55, 2  ;;  %v4580_v33 = vadd.f32 %v14109_v57, %v13965_v10  ;;  %v14293_v61 = vrot.slane %v6071_v40, 7  ;;  %v4605_v2 = vmul.f32 0.2, %v4577_v30 }
 0x242   :  { %v6068_v27 = vor.u32 %v6067_v26, %v6064_v11  ;;  %v4578_v12 = vadd.f32 %v13965_v10, %v14116_v19  ;;  %v6594_v1 = vrot.slane %v6586_v41, %v13970_v43  ;;  %v4603_v44 = vmul.f32 0.2, %v4575_v7 }
 0x243   :  { %v6060_v53 = vsel %vm14254_vm6, %v6055_v47, %v6059_v48  ;;  %v4608_v29 = vmul.f32 0.2, %v4580_v33  ;;  %v4633_v31 = vmax.f32 %v4577_v30, %v4605_v2  ;;  %v14302_v57 = vcombine.high %v14010_v21, %v14010_v21 }
 0x244   :  { %v6069_v17 = vrot.slane %v6068_v27, 2  ;;  %v4606_v20 = vmul.f32 0.2, %v4578_v12  ;;  %v4631_v11 = vmax.f32 %v4575_v7, %v4603_v44  ;;  %v6075_v45 = vshrl.u32 %v14225_v51, 16 }
 0x245   :  { %17057 = vst [vmem:[#allocation33_spill] sm:$0xff] %v14302_v57  ;;  %v4636_v59 = vmax.f32 %v4580_v33, %v4608_v29  ;;  %v6081_v10 = vshll.u32 %v14010_v21, 16  ;;  %v5057_v48 = vcombine.high %v4633_v31, %v4633_v31  ;;  %v5064_v55 = vrot.slane %v4633_v31, %v13970_v43 }
 0x246   :  { %v6074_v19 = vsel %vm14254_vm6, %v6069_v17, %v14293_v61  ;;  %v4634_v40 = vmax.f32 %v4578_v12, %v4606_v20  ;;  %v5023_v41 = vcombine.high %v4631_v11, %v4631_v11  ;;  %v5030_v30 = vrot.slane %v4631_v11, %v13970_v43  ;;  %v12074_v12 = vld [vmem:[%s16575_s3] ss:$8 sps:$4 sm:$0xff]  }
 0x247   :  { %v6587_v26 = vcombine.low %v6060_v53, %v6074_v19  ;;  %v5108_v47 = vcombine.high %v4636_v59, %v4636_v59  ;;  %v5071_v7 = vrot.slane %v5057_v48, %v13970_v43  ;;  %v5072_v33 = vcombine.high %v5064_v55, %v5064_v55 }
 0x248   :  { %v5571_v27 = vcombine.low %v5056_v16, %v5064_v55  ;;  %v14313_v2 = vrot.slane %v4636_v59, %v13970_v43  ;;  %v5037_v29 = vrot.slane %v5023_v41, %v13970_v43  ;;  %v5038_v17 = vcombine.high %v5030_v30, %v5030_v30 }
 0x249   :  { %v6601_v44 = vrot.slane %v6587_v26, %v13970_v43  ;;  %v14318_v31 = vrot.slane %v5108_v47, %v13970_v43  ;;  %v5572_v53 = vcombine.low %v5072_v33, %v5071_v7  ;;  %v6085_v11 = vshrl.u32 %v14010_v21, 16  ;;  %v12079_v26 = vld [vmem:[%s16575_s3 + $0x14] ss:$8 sps:$4 sm:$0xff]  }
 0x24a   :  { %v5579_v20 = vrot.slane %v5571_v27, %v13970_v43  ;;  %v5123_v16 = vcombine.high %v14313_v2, %v14313_v2  ;;  %v5039_v19 = vcombine.high %v5037_v29, %v5037_v29  ;;  %v5538_v48 = vcombine.low %v5030_v30, %v5038_v17 }
 0x24b   :  { %v6602_v59 = vcombine.low %v6594_v1, %v6601_v44  ;;  %v5586_v41 = vrot.slane %v5572_v53, %v13970_v43  ;;  %v5073_v47 = vcombine.high %v5071_v7, %v5071_v7  ;;  %v5074_v33 = vcombine.high %v4634_v40, %v4634_v40 }
 0x24c   :  { %v5081_v27 = vrot.slane %v4634_v40, %v13970_v43  ;;  %v5539_v62 = vcombine.low %v5037_v29, %v5039_v19  ;;  %v14336_v1 = vcombine.low %v5123_v16, %v14318_v31  ;;  %v6077_v30 = vrot.slane %v6075_v45, 6  ;;  %v12077_v40 = vld [vmem:[%s16575_s3 + $0x10] ss:$8 sps:$4 sm:$0xff]  }
 0x24d   :  { %11435 = vmatmul.mubr.msk.bf16.vlgmr.msra.gmra.mrb[0].mxu1 %vm6860_vm7, %v6602_v59  ;;  %v6083_v44 = vrot.slane %v6081_v10, 7  ;;  %v5587_v17 = vcombine.low %v5579_v20, %v5586_v41  ;;  %v5546_v55 = vrot.slane %v5538_v48, %v13970_v43  ;;  %v5088_v53 = vrot.slane %v5074_v33, %v13970_v43  ;;  %v12082_v10 = vld [vmem:[%s16575_s3 + $0x24] ss:$8 sps:$4 sm:$0xff]  }
 0x24e   :  { %7361 = vmatpush1.bf16.msra.mxu1 %v12074_v12  ;;  %6939 = vmatprep.mubr.bf16.mxu1 %v17058_v49  ;;  %v6087_v7 = vrot.slane %v6085_v11, 6  ;;  %v5553_v29 = vrot.slane %v5539_v62, %v13970_v43  ;;  %v5089_v59 = vcombine.high %v5081_v27, %v5081_v27  ;;  %v5588_v16 = vcombine.low %v5073_v47, %v5081_v27 }
 0x24f   :  { %v6078_v45 = vor.u32 %v6077_v30, %v14293_v61  ;;  %7362 = vmatprep.subr.bf16.mxu1 %v12079_v26  ;;  %v5090_v12 = vcombine.high %v5088_v53, %v5088_v53  ;;  %v6091_v19 = vshll.u32 %v14302_v57, 16  ;;  %v6096_v11 = vshrl.u32 %v14073_v28, 16  ;;  %v12080_v30 = vld [vmem:[%s16575_s3 + $0x20] ss:$8 sps:$4 sm:$0xff]  }
 0x250   :  { %v6088_v20 = vor.u32 %v6087_v7, %v6083_v44  ;;  %v5554_v48 = vcombine.low %v5546_v55, %v5553_v29  ;;  %v5595_v41 = vrot.slane %v5588_v16, %v13970_v43  ;;  %v5602_v62 = vrot.slane %v5089_v59, %v13970_v43 }
 0x251   :  { %v6079_v33 = vrot.slane %v6078_v45, 2  ;;  %v14353_v47 = vcombine.low %v5088_v53, %v5090_v12  ;;  %v6093_v26 = vrot.slane %v6091_v19, 7  ;;  %v6098_v27 = vrot.slane %v6096_v11, 6  ;;  %v12085_v53 = vld [vmem:[%s16575_s3 + $0x34] ss:$8 sps:$4 sm:$0xff]  }
 0x252   :  { %v6089_v61 = vrot.slane %v6088_v20, 2  ;;  %7363 = vmatpush1.bf16.msra.mxu1 %v12077_v40  ;;  %v5714_v7 = vpack.c.bf16 %v14251_v9, %v5554_v48  ;;  %v5603_v57 = vcombine.low %v5595_v41, %v5602_v62  ;;  %v6099_v29 = vshll.u32 %v14073_v28, 16  ;;  %v12083_v41 = vld [vmem:[%s16575_s3 + $0x30] ss:$8 sps:$4 sm:$0xff]  }
 0x253   :  { %v6084_v55 = vsel %vm14254_vm6, %v6079_v33, %v6083_v44  ;;  %7364 = vmatprep.subr.bf16.mxu1 %v12082_v10  ;;  %v6105_v16 = vshll.u32 %v14091_v58, 16  ;;  %v6109_v9 = vshrl.u32 %v14091_v58, 16  ;;  %v6115_v11 = vshll.u32 %v14076_v24, 16  ;;  %v12261_v33 = vld [vmem:[%s16574_s2] ss:$0 sm:$0xff] }
 0x254   :  { %v5715_v45 = vpack.c.bf16 %v5603_v57, %v5587_v17  ;;  %v11404_v12 = vpack.c.bf16 %v5603_v57, %v5603_v57  ;;  %v6094_v44 = vsel %vm14254_vm6, %v6089_v61, %v6093_v26  ;;  %v6101_v10 = vrot.slane %v6099_v29, 7  ;;  %v12088_v26 = vld [vmem:[%s16575_s3 + $0x44] ss:$8 sps:$4 sm:$0xff]  }
 0x255   :  { %v6107_v20 = vrot.slane %v6105_v16, 7  ;;  %v6111_v19 = vrot.slane %v6109_v9, 6  ;;  %v6603_v48 = vcombine.low %v6084_v55, %v6094_v44  ;;  %v14378_v62 = vrot.slane %v5714_v7, %v13970_v43 }
 0x256   :  { %7365 = vmatpush1.bf16.msra.mxu1 %v12080_v30  ;;  %v14381_v17 = vrot.slane %v5715_v45, %v13970_v43  ;;  %v6102_v57 = vor.u32 %v6101_v10, %v6098_v27  ;;  %v4581_v61 = vadd.f32 %v12261_v33, %v14120_v0  ;;  %v14391_v30 = vrot.slane %v11404_v12, %v13970_v43  ;;  %v12086_v10 = vld [vmem:[%s16575_s3 + $0x40] ss:$8 sps:$4 sm:$0xff]  }
 0x257   :  { %17059 = vst [vmem:[#allocation43_spill] sm:$0xff] %v14378_v62  ;;  %7366 = vmatprep.subr.bf16.mxu1 %v12085_v53  ;;  %v6112_v7 = vor.u32 %v6111_v19, %v6107_v20  ;;  %v6117_v55 = vrot.slane %v6115_v11, 7  ;;  %v6611_v29 = vrot.slane %v6603_v48, %v13970_v43  ;;  %v5124_v9 = vcombine.high %v14318_v31, %v14318_v31  ;;  %v12091_v48 = vld [vmem:[%s16575_s3 + $0x54] ss:$8 sps:$4 sm:$0xff]  }
 0x258   :  { %v6103_v16 = vrot.slane %v6102_v57, 2  ;;  %v4609_v27 = vmul.f32 0.2, %v4581_v61  ;;  %v4579_v45 = vadd.f32 %v12261_v33, %v14124_v60  ;;  %v14399_v53 = vcombine.high %v14112_v5, %v14112_v5 }
 0x259   :  { %v6113_v0 = vrot.slane %v6112_v7, 2  ;;  %v14403_v12 = vcombine.high %v14076_v24, %v14076_v24  ;;  %v6119_v44 = vshrl.u32 %v14076_v24, 16  ;;  %v6130_v11 = vshrl.u32 %v14112_v5, 16 }
 0x25a   :  { %7367 = vmatpush1.bf16.msra.mxu1 %v12083_v41  ;;  %v6108_v31 = vsel %vm14254_vm6, %v6103_v16, %v6107_v20  ;;  %v4637_v60 = vmax.f32 %v4581_v61, %v4609_v27  ;;  %v4607_v19 = vmul.f32 0.2, %v4579_v45  ;;  %v6133_v7 = vshll.u32 %v14112_v5, 16 }
 0x25b   :  { %17060 = vst [vmem:[#allocation44_spill] sm:$0xff] %v14403_v12  ;;  %7368 = vmatprep.subr.bf16.mxu1 %v12088_v26  ;;  %v6118_v57 = vsel %vm14254_vm6, %v6113_v0, %v6117_v55  ;;  %v6121_v41 = vrot.slane %v6119_v44, 6  ;;  %v6125_v33 = vshll.u32 %v14403_v12, 16  ;;  %v14422_v26 = vcombine.high %v14058_v56, %v14058_v56  ;;  %v12089_v0 = vld [vmem:[%s16575_s3 + $0x50] ss:$8 sps:$4 sm:$0xff]  }
 0x25c   :  { %v6604_v59 = vcombine.low %v6108_v31, %v6118_v57  ;;  %v5125_v40 = vcombine.high %v4637_v60, %v4637_v60  ;;  %v5132_v20 = vrot.slane %v4637_v60, %v13970_v43  ;;  %v4635_v61 = vmax.f32 %v4579_v45, %v4607_v19  ;;  %v12094_v45 = vld [vmem:[%s16575_s3 + $0x64] ss:$8 sps:$4 sm:$0xff]  }
 0x25d   :  { %17061 = vst [vmem:[#allocation48_spill] sm:$0xff] %v14422_v26  ;;  %v6122_v16 = vor.u32 %v6121_v41, %v6117_v55  ;;  %v6132_v27 = vrot.slane %v6130_v11, 6  ;;  %v6135_v39 = vrot.slane %v6133_v7, 7  ;;  %v6127_v19 = vrot.slane %v6125_v33, 7 }
 0x25e   :  { %7369 = vmatpush1.bf16.msra.mxu1 %v12086_v10  ;;  %v6618_v44 = vrot.slane %v6604_v59, %v13970_v43  ;;  %v5139_v31 = vrot.slane %v5125_v40, %v13970_v43  ;;  %v5140_v57 = vcombine.high %v5132_v20, %v5132_v20  ;;  %v5638_v12 = vcombine.low %v5124_v9, %v5132_v20 }
 0x25f   :  { %7370 = vmatprep.subr.bf16.mxu1 %v12091_v48  ;;  %v5091_v60 = vcombine.high %v4635_v61, %v4635_v61  ;;  %v5098_v55 = vrot.slane %v4635_v61, %v13970_v43  ;;  %v6136_v10 = vor.u32 %v6135_v39, %v6132_v27  ;;  %v6123_v5 = vrot.slane %v6122_v16, 2  ;;  %v12092_v48 = vld [vmem:[%s16575_s3 + $0x60] ss:$8 sps:$4 sm:$0xff]   ;;  %v12097_v61 = vld [vmem:[%s16575_s3 + $0xe4] ss:$8 sps:$4 sm:$0xff]  }
 0x260   :  { %v6619_v11 = vcombine.low %v6611_v29, %v6618_v44  ;;  %v5141_v41 = vcombine.high %v5139_v31, %v5139_v31  ;;  %v5652_v7 = vrot.slane %v5638_v12, %v13970_v43  ;;  %v5654_v24 = vcombine.low %v5140_v57, %v5139_v31 }
 0x261   :  { %v5105_v59 = vrot.slane %v5091_v60, %v13970_v43  ;;  %v5106_v40 = vcombine.high %v5098_v55, %v5098_v55  ;;  %v6137_v9 = vrot.slane %v6136_v10, 2  ;;  %v17062_v39 = vrot.slane %v14336_v1, %v13970_v43 }
 0x262   :  { %7371 = vmatpush1.bf16.msra.mxu1 %v12089_v0  ;;  %v5661_v33 = vrot.slane %v5654_v24, %v13970_v43  ;;  %v5668_v12 = vrot.slane %v5141_v41, %v13970_v43  ;;  %v6139_v20 = vshll.u32 %v14399_v53, 16  ;;  %v6143_v0 = vshrl.u32 %v14399_v53, 16 }
 0x263   :  { %11436 = vmatmul.mubr.msk.bf16.gmra.mrb[4].mxu1 %vm6860_vm7, %v6619_v11  ;;  %v5653_v29 = vcombine.low %v17062_v39, %v5652_v7  ;;  %7372 = vmatprep.subr.bf16.mxu1 %v12094_v45  ;;  %v5107_v16 = vcombine.high %v5105_v59, %v5105_v59  ;;  %v5605_v27 = vcombine.low %v5098_v55, %v5106_v40  ;;  %v6149_v1 = vshll.u32 %v14058_v56, 16 }
 0x264   :  { %6949 = vmatprep.mubr.bf16.mxu1 %v17058_v49  ;;  %v14451_v44 = vcombine.low %v5661_v33, %v5668_v12  ;;  %v6141_v24 = vrot.slane %v6139_v20, 7  ;;  %v6153_v31 = vshrl.u32 %v14058_v56, 16  ;;  %v6159_v57 = vshll.u32 %v14422_v26, 16 }
 0x265   :  { %v5619_v45 = vrot.slane %v5605_v27, %v13970_v43  ;;  %v5621_v60 = vcombine.low %v5105_v59, %v5107_v16  ;;  %v6145_v10 = vrot.slane %v6143_v0, 6  ;;  %v6151_v11 = vrot.slane %v6149_v1, 7 }
 0x266   :  { %7373 = vmatpush1.bf16.msra.mxu1 %v12092_v48  ;;  %v5717_v55 = vpack.c.bf16 %v14451_v44, %v5653_v29  ;;  %v6128_v41 = vsel %vm14254_vm6, %v6123_v5, %v6127_v19  ;;  %v6142_v7 = vsel %vm14254_vm6, %v6137_v9, %v6141_v24  ;;  %v6155_v40 = vrot.slane %v6153_v31, 6 }
 0x267   :  { %8005 = vmatprep.subr.bf16.mxu1 %v12097_v61  ;;  %v17063_v33 = vrot.slane %v14353_v47, %v13970_v43  ;;  %v5628_v12 = vrot.slane %v5621_v60, %v13970_v43  ;;  %v6146_v48 = vor.u32 %v6145_v10, %v6141_v24  ;;  %v6161_v5 = vrot.slane %v6159_v57, 7 }
 0x268   :  { %v14468_v29 = vrot.slane %v5717_v55, %v13970_v43  ;;  %v6156_v20 = vor.u32 %v6155_v40, %v6151_v11  ;;  %v6620_v19 = vcombine.low %v6128_v41, %v6142_v7  ;;  %v17065_v9 = vrot.slane %v14313_v2, %v13970_v43 }
 0x269   :  { %v5620_v59 = vcombine.low %v17063_v33, %v5619_v45  ;;  %v6147_v16 = vrot.slane %v6146_v48, 2  ;;  %v14475_v27 = vcombine.high %v14131_v22, %v14131_v22  ;;  %v14479_v47 = vcombine.high %v14142_v13, %v14142_v13 }
 0x26a   :  { %17064 = vst [vmem:[#allocation47_spill] sm:$0xff] %v14468_v29  ;;  %v5636_v61 = vcombine.low %v5628_v12, %v17065_v9  ;;  %v6157_v0 = vrot.slane %v6156_v20, 2  ;;  %v6628_v1 = vrot.slane %v6620_v19, %v13970_v43  ;;  %v14484_v24 = vcombine.high %v14135_v36, %v14135_v36 }
 0x26b   :  { %v6164_v31 = vshrl.u32 %v14131_v22, 16  ;;  %v6152_v45 = vsel %vm14254_vm6, %v6147_v16, %v6151_v11  ;;  %v6167_v60 = vshll.u32 %v14131_v22, 16  ;;  %v6173_v41 = vshll.u32 %v14475_v27, 16 }
 0x26c   :  { %17066 = vst [vmem:[#allocation58_spill] sm:$0xff] %v14484_v24  ;;  %v5716_v2 = vpack.c.bf16 %v5636_v61, %v5620_v59  ;;  %v11405_v57 = vpack.c.bf16 %v5636_v61, %v5636_v61  ;;  %v6162_v10 = vsel %vm14254_vm6, %v6157_v0, %v6161_v5  ;;  %v6177_v7 = vshrl.u32 %v14475_v27, 16 }
 0x26d   :  { %v6166_v55 = vrot.slane %v6164_v31, 6  ;;  %v6621_v59 = vcombine.low %v6152_v45, %v6162_v10  ;;  %v6169_v12 = vrot.slane %v6167_v60, 7  ;;  %v6175_v48 = vrot.slane %v6173_v41, 7 }
 0x26e   :  { %v14495_v40 = vrot.slane %v5716_v2, %v13970_v43  ;;  %v14498_v33 = vrot.slane %v11405_v57, %v13970_v43  ;;  %v6179_v11 = vrot.slane %v6177_v7, 6  ;;  %v6183_v20 = vshll.u32 %v14135_v36, 16 }
 0x26f   :  { %v6187_v19 = vshrl.u32 %v14135_v36, 16  ;;  %v6635_v5 = vrot.slane %v6621_v59, %v13970_v43  ;;  %v6170_v9 = vor.u32 %v6169_v12, %v6166_v55  ;;  %v6193_v61 = vshll.u32 %v14484_v24, 16 }
 0x270   :  { %17067 = vst [vmem:[#allocation61_spill] sm:$0xff] %v14498_v33  ;;  %v6198_v16 = vshrl.u32 %v14142_v13, 16  ;;  %v6180_v0 = vor.u32 %v6179_v11, %v6175_v48  ;;  %v6185_v31 = vrot.slane %v6183_v20, 7  ;;  %v6201_v57 = vshll.u32 %v14142_v13, 16 }
 0x271   :  { %v6189_v2 = vrot.slane %v6187_v19, 6  ;;  %v6636_v45 = vcombine.low %v6628_v1, %v6635_v5  ;;  %v6171_v60 = vrot.slane %v6170_v9, 2  ;;  %v6195_v10 = vrot.slane %v6193_v61, 7 }
 0x272   :  { %v6200_v41 = vrot.slane %v6198_v16, 6  ;;  %v6181_v7 = vrot.slane %v6180_v0, 2  ;;  %v6203_v26 = vrot.slane %v6201_v57, 7  ;;  %v6207_v22 = vshll.u32 %v14479_v47, 16 }
 0x273   :  { %v6190_v39 = vor.u32 %v6189_v2, %v6185_v31  ;;  %11437 = vmatmul.mubr.msk.bf16.gmra.mrb[8].mxu1 %vm6860_vm7, %v6636_v45  ;;  %v6176_v55 = vsel %vm14254_vm6, %v6171_v60, %v6175_v48  ;;  %v14512_v59 = vcombine.high %v14145_v63, %v14145_v63  ;;  %v6211_v12 = vshrl.u32 %v14479_v47, 16 }
 0x274   :  { %v6217_v1 = vshll.u32 %v14145_v63, 16  ;;  %6959 = vmatprep.mubr.bf16.mxu1 %v17058_v49  ;;  %v6186_v11 = vsel %vm14254_vm6, %v6181_v7, %v6185_v31  ;;  %v6204_v19 = vor.u32 %v6203_v26, %v6200_v41  ;;  %v6209_v5 = vrot.slane %v6207_v22, 7 }
 0x275   :  { %17068 = vst [vmem:[#allocation62_spill] sm:$0xff] %v14512_v59  ;;  %v6191_v20 = vrot.slane %v6190_v39, 2  ;;  %v6637_v9 = vcombine.low %v6176_v55, %v6186_v11  ;;  %v6213_v61 = vrot.slane %v6211_v12, 6  ;;  %v6221_v48 = vshrl.u32 %v14145_v63, 16 }
 0x276   :  { %v6219_v16 = vrot.slane %v6217_v1, 7  ;;  %v6205_v2 = vrot.slane %v6204_v19, 2  ;;  %v6227_v57 = vshll.u32 %v14512_v59, 16  ;;  %v6232_v45 = vshrl.u32 %v14153_v46, 16 }
 0x277   :  { %v6196_v0 = vsel %vm14254_vm6, %v6191_v20, %v6195_v10  ;;  %v6645_v60 = vrot.slane %v6637_v9, %v13970_v43  ;;  %v6214_v24 = vor.u32 %v6213_v61, %v6209_v5  ;;  %v6223_v31 = vrot.slane %v6221_v48, 6 }
 0x278   :  { %v6235_v26 = vshll.u32 %v14153_v46, 16  ;;  %v6210_v22 = vsel %vm14254_vm6, %v6205_v2, %v6209_v5  ;;  %v6229_v39 = vrot.slane %v6227_v57, 7  ;;  %v6234_v41 = vrot.slane %v6232_v45, 6 }
 0x279   :  { %v6241_v7 = vshll.u32 %v14171_v38, 16  ;;  %v6638_v55 = vcombine.low %v6196_v0, %v6210_v22  ;;  %v6215_v10 = vrot.slane %v6214_v24, 2  ;;  %v6224_v12 = vor.u32 %v6223_v31, %v6219_v16 }
 0x27a   :  { %v6237_v1 = vrot.slane %v6235_v26, 7  ;;  %v6245_v20 = vshrl.u32 %v14171_v38, 16  ;;  %v6251_v19 = vshll.u32 %v14161_v50, 16  ;;  %v14533_v9 = vcombine.high %v14196_v25, %v14196_v25 }
 0x27b   :  { %v6243_v11 = vrot.slane %v6241_v7, 7  ;;  %v6652_v61 = vrot.slane %v6638_v55, %v13970_v43  ;;  %v6220_v5 = vsel %vm14254_vm6, %v6215_v10, %v6219_v16  ;;  %v6225_v48 = vrot.slane %v6224_v12, 2 }
 0x27c   :  { %v6238_v2 = vor.u32 %v6237_v1, %v6234_v41  ;;  %v6247_v0 = vrot.slane %v6245_v20, 6  ;;  %v6253_v24 = vrot.slane %v6251_v19, 7  ;;  %v14540_v57 = vcombine.high %v14161_v50, %v14161_v50 }
 0x27d   :  { %v14544_v45 = vcombine.high %v14202_v42, %v14202_v42  ;;  %v6653_v31 = vcombine.low %v6645_v60, %v6652_v61  ;;  %v6230_v26 = vsel %vm14254_vm6, %v6225_v48, %v6229_v39  ;;  %v6255_v7 = vshrl.u32 %v14161_v50, 16 }
 0x27e   :  { %17069 = vst [vmem:[#allocation67_spill] sm:$0xff] %v14540_v57  ;;  %v6239_v22 = vrot.slane %v6238_v2, 2  ;;  %v6248_v16 = vor.u32 %v6247_v0, %v6243_v11  ;;  %v6654_v55 = vcombine.low %v6220_v5, %v6230_v26  ;;  %v6261_v41 = vshll.u32 %v14540_v57, 16 }
 0x27f   :  { %17070 = vst [vmem:[#allocation72_spill] sm:$0xff] %v14544_v45  ;;  %v6266_v10 = vshrl.u32 %v14196_v25, 16  ;;  %11438 = vmatmul.mubr.msk.bf16.gmra.mrb[12].mxu1 %vm6860_vm7, %v6653_v31  ;;  %v6257_v1 = vrot.slane %v6255_v7, 6  ;;  %v6269_v60 = vshll.u32 %v14196_v25, 16  ;;  %v6275_v20 = vshll.u32 %v14533_v9, 16 }
 0x280   :  { %v6244_v12 = vsel %vm14254_vm6, %v6239_v22, %v6243_v11  ;;  %6969 = vmatprep.mubr.bf16.mxu1 %v17058_v49  ;;  %v6249_v39 = vrot.slane %v6248_v16, 2  ;;  %v6662_v19 = vrot.slane %v6654_v55, %v13970_v43  ;;  %v6263_v61 = vrot.slane %v6261_v41, 7 }
 0x281   :  { %v6268_v5 = vrot.slane %v6266_v10, 6  ;;  %v6258_v48 = vor.u32 %v6257_v1, %v6253_v24  ;;  %v6271_v2 = vrot.slane %v6269_v60, 7  ;;  %v6277_v0 = vrot.slane %v6275_v20, 7 }
 0x282   :  { %v6279_v31 = vshrl.u32 %v14533_v9, 16  ;;  %v6254_v11 = vsel %vm14254_vm6, %v6249_v39, %v6253_v24  ;;  %v6285_v26 = vshll.u32 %v14202_v42, 16  ;;  %v6289_v22 = vshrl.u32 %v14202_v42, 16 }
 0x283   :  { %v6295_v7 = vshll.u32 %v14544_v45, 16  ;;  %v6655_v57 = vcombine.low %v6244_v12, %v6254_v11  ;;  %v6259_v16 = vrot.slane %v6258_v48, 2  ;;  %v6272_v59 = vor.u32 %v6271_v2, %v6268_v5 }
 0x284   :  { %v6281_v55 = vrot.slane %v6279_v31, 6  ;;  %v6287_v41 = vrot.slane %v6285_v26, 7  ;;  %v6291_v10 = vrot.slane %v6289_v22, 6  ;;  %v14566_v60 = vcombine.high %v14181_v32, %v14181_v32 }
 0x285   :  { %v6297_v1 = vrot.slane %v6295_v7, 7  ;;  %v6669_v20 = vrot.slane %v6655_v57, %v13970_v43  ;;  %v6264_v24 = vsel %vm14254_vm6, %v6259_v16, %v6263_v61  ;;  %v6273_v39 = vrot.slane %v6272_v59, 2 }
 0x286   :  { %v6282_v50 = vor.u32 %v6281_v55, %v6277_v0  ;;  %v6292_v25 = vor.u32 %v6291_v10, %v6287_v41  ;;  %v14573_v12 = vcombine.high %v14249_v34, %v14249_v34  ;;  %v14577_v5 = vcombine.high %v14187_v15, %v14187_v15 }
 0x287   :  { %v6300_v48 = vshrl.u32 %v14181_v32, 16  ;;  %v6670_v2 = vcombine.low %v6662_v19, %v6669_v20  ;;  %v6278_v57 = vsel %vm14254_vm6, %v6273_v39, %v6277_v0  ;;  %v6303_v61 = vshll.u32 %v14181_v32, 16 }
 0x288   :  { %17071 = vst [vmem:[#allocation70_spill] sm:$0xff] %v14577_v5  ;;  %v6283_v31 = vrot.slane %v6282_v50, 2  ;;  %v6293_v59 = vrot.slane %v6292_v25, 2  ;;  %v6671_v11 = vcombine.low %v6264_v24, %v6278_v57  ;;  %v6309_v22 = vshll.u32 %v14566_v60, 16 }
 0x289   :  { %v6302_v26 = vrot.slane %v6300_v48, 6  ;;  %11439 = vmatmul.mubr.msk.bf16.gmra.mrb[16].mxu1 %vm6860_vm7, %v6670_v2  ;;  %v6305_v16 = vrot.slane %v6303_v61, 7  ;;  %v6313_v55 = vshrl.u32 %v14566_v60, 16  ;;  %v6319_v19 = vshll.u32 %v14187_v15, 16 }
 0x28a   :  { %v6288_v7 = vsel %vm14254_vm6, %v6283_v31, %v6287_v41  ;;  %6979 = vmatprep.mubr.bf16.mxu1 %v17058_v49  ;;  %v6298_v50 = vsel %vm14254_vm6, %v6293_v59, %v6297_v1  ;;  %v6679_v25 = vrot.slane %v6671_v11, %v13970_v43  ;;  %v6311_v0 = vrot.slane %v6309_v22, 7 }
 0x28b   :  { %v6323_v10 = vshrl.u32 %v14187_v15, 16  ;;  %v6672_v20 = vcombine.low %v6288_v7, %v6298_v50  ;;  %v6306_v24 = vor.u32 %v6305_v16, %v6302_v26  ;;  %v6315_v39 = vrot.slane %v6313_v55, 6 }
 0x28c   :  { %v6321_v48 = vrot.slane %v6319_v19, 7  ;;  %v6329_v2 = vshll.u32 %v14577_v5, 16  ;;  %v6334_v57 = vshrl.u32 %v14249_v34, 16  ;;  %v6337_v31 = vshll.u32 %v14249_v34, 16 }
 0x28d   :  { %v6325_v41 = vrot.slane %v6323_v10, 6  ;;  %v6686_v61 = vrot.slane %v6672_v20, %v13970_v43  ;;  %v6307_v45 = vrot.slane %v6306_v24, 2  ;;  %v6316_v1 = vor.u32 %v6315_v39, %v6311_v0 }
 0x28e   :  { %v6343_v59 = vshll.u32 %v14573_v12, 16  ;;  %v6331_v22 = vrot.slane %v6329_v2, 7  ;;  %v6336_v32 = vrot.slane %v6334_v57, 6  ;;  %v6339_v7 = vrot.slane %v6337_v31, 7 }
 0x28f   :  { %v6326_v11 = vor.u32 %v6325_v41, %v6321_v48  ;;  %v6687_v26 = vcombine.low %v6679_v25, %v6686_v61  ;;  %v6312_v16 = vsel %vm14254_vm6, %v6307_v45, %v6311_v0  ;;  %v6317_v55 = vrot.slane %v6316_v1, 2 }
 0x290   :  { %v6345_v19 = vrot.slane %v6343_v59, 7  ;;  %v6340_v10 = vor.u32 %v6339_v7, %v6336_v32  ;;  %v14603_v5 = vcombine.high %v14268_v8, %v14268_v8  ;;  %v14607_v20 = vcombine.high %v14261_v4, %v14261_v4 }
 0x291   :  { %v6327_v50 = vrot.slane %v6326_v11, 2  ;;  %11440 = vmatmul.mubr.msk.bf16.gmra.mrb[20].mxu1 %vm6860_vm7, %v6687_v26  ;;  %v6322_v25 = vsel %vm14254_vm6, %v6317_v55, %v6321_v48  ;;  %v6347_v24 = vshrl.u32 %v14573_v12, 16  ;;  %v6353_v45 = vshll.u32 %v14261_v4, 16 }
 0x292   :  { %17072 = vst [vmem:[#allocation74_spill] sm:$0xff] %v14607_v20  ;;  %v6357_v0 = vshrl.u32 %v14261_v4, 16  ;;  %6989 = vmatprep.mubr.bf16.mxu1 %v17058_v49  ;;  %v6341_v39 = vrot.slane %v6340_v10, 2  ;;  %v6688_v41 = vcombine.low %v6312_v16, %v6322_v25  ;;  %v6363_v2 = vshll.u32 %v14607_v20, 16 }
 0x293   :  { %v6332_v32 = vsel %vm14254_vm6, %v6327_v50, %v6331_v22  ;;  %v6349_v57 = vrot.slane %v6347_v24, 6  ;;  %v6355_v31 = vrot.slane %v6353_v45, 7  ;;  %v6368_v48 = vshrl.u32 %v14268_v8, 16 }
 0x294   :  { %v6359_v61 = vrot.slane %v6357_v0, 6  ;;  %v6346_v1 = vsel %vm14254_vm6, %v6341_v39, %v6345_v19  ;;  %v6696_v59 = vrot.slane %v6688_v41, %v13970_v43  ;;  %v6365_v11 = vrot.slane %v6363_v2, 7 }
 0x295   :  { %v6371_v7 = vshll.u32 %v14268_v8, 16  ;;  %v6689_v26 = vcombine.low %v6332_v32, %v6346_v1  ;;  %v6350_v55 = vor.u32 %v6349_v57, %v6345_v19  ;;  %v6370_v50 = vrot.slane %v6368_v48, 6 }
 0x296   :  { %v6360_v22 = vor.u32 %v6359_v61, %v6355_v31  ;;  %v6377_v10 = vshll.u32 %v14603_v5, 16  ;;  %v6381_v25 = vshrl.u32 %v14603_v5, 16  ;;  %v6387_v24 = vshll.u32 %v14211_v52, 16 }
 0x297   :  { %v6373_v16 = vrot.slane %v6371_v7, 7  ;;  %v6703_v45 = vrot.slane %v6689_v26, %v13970_v43  ;;  %v6351_v0 = vrot.slane %v6350_v55, 2  ;;  %v14630_v41 = vcombine.high %v14277_v23, %v14277_v23 }
 0x298   :  { %v6361_v39 = vrot.slane %v6360_v22, 2  ;;  %v6379_v32 = vrot.slane %v6377_v10, 7  ;;  %v6383_v19 = vrot.slane %v6381_v25, 6  ;;  %v6389_v57 = vrot.slane %v6387_v24, 7 }
 0x299   :  { %17073 = vst [vmem:[#allocation76_spill] sm:$0xff] %v14630_v41  ;;  %v6374_v2 = vor.u32 %v6373_v16, %v6370_v50  ;;  %v6704_v61 = vcombine.low %v6696_v59, %v6703_v45  ;;  %v6356_v48 = vsel %vm14254_vm6, %v6351_v0, %v6355_v31  ;;  %v14638_v7 = vcombine.high %v14211_v52, %v14211_v52 }
 0x29a   :  { %v6366_v1 = vsel %vm14254_vm6, %v6361_v39, %v6365_v11  ;;  %v6384_v55 = vor.u32 %v6383_v19, %v6379_v32  ;;  %v14642_v50 = vcombine.high %v14283_v18, %v14283_v18  ;;  %v6391_v59 = vshrl.u32 %v14211_v52, 16 }
 0x29b   :  { %17074 = vst [vmem:[#allocation75_spill] sm:$0xff] %v14638_v7  ;;  %v6375_v26 = vrot.slane %v6374_v2, 2  ;;  %v6705_v22 = vcombine.low %v6356_v48, %v6366_v1  ;;  %11441 = vmatmul.mubr.msk.bf16.gmra.mrb[24].mxu1 %vm6860_vm7, %v6704_v61  ;;  %v6397_v31 = vshll.u32 %v14638_v7, 16  ;;  %v6402_v16 = vshrl.u32 %v14277_v23, 16 }
 0x29c   :  { %17075 = vst [vmem:[#allocation77_spill] sm:$0xff] %v14642_v50  ;;  %v6405_v11 = vshll.u32 %v14277_v23, 16  ;;  %6999 = vmatprep.mubr.bf16.mxu1 %v17058_v49  ;;  %v6385_v25 = vrot.slane %v6384_v55, 2  ;;  %v6411_v45 = vshll.u32 %v14630_v41, 16  ;;  %v6393_v0 = vrot.slane %v6391_v59, 6 }
 0x29d   :  { %v6380_v10 = vsel %vm14254_vm6, %v6375_v26, %v6379_v32  ;;  %v6713_v24 = vrot.slane %v6705_v22, %v13970_v43  ;;  %v6399_v39 = vrot.slane %v6397_v31, 7  ;;  %v6404_v2 = vrot.slane %v6402_v16, 6 }
 0x29e   :  { %v6407_v19 = vrot.slane %v6405_v11, 7  ;;  %v6390_v61 = vsel %vm14254_vm6, %v6385_v25, %v6389_v57  ;;  %v6413_v48 = vrot.slane %v6411_v45, 7  ;;  %v6415_v1 = vshrl.u32 %v14630_v41, 16 }
 0x29f   :  { %v6421_v7 = vshll.u32 %v14283_v18, 16  ;;  %v6706_v20 = vcombine.low %v6380_v10, %v6390_v61  ;;  %v6394_v52 = vor.u32 %v6393_v0, %v6389_v57  ;;  %v6425_v26 = vshrl.u32 %v14283_v18, 16 }
 0x2a0   :  { %v6408_v32 = vor.u32 %v6407_v19, %v6404_v2  ;;  %v6417_v55 = vrot.slane %v6415_v1, 6  ;;  %v6431_v59 = vshll.u32 %v14642_v50, 16  ;;  %v14662_v31 = vcombine.high %v14378_v62, %v14378_v62 }
 0x2a1   :  { %v6423_v22 = vrot.slane %v6421_v7, 7  ;;  %v6720_v16 = vrot.slane %v6706_v20, %v13970_v43  ;;  %v6395_v11 = vrot.slane %v6394_v52, 2  ;;  %v6427_v45 = vrot.slane %v6425_v26, 6 }
 0x2a2   :  { %v6409_v25 = vrot.slane %v6408_v32, 2  ;;  %v6418_v23 = vor.u32 %v6417_v55, %v6413_v48  ;;  %v6433_v41 = vrot.slane %v6431_v59, 7  ;;  %v14667_v57 = vcombine.high %v14381_v17, %v14381_v17 }
 0x2a3   :  { %v14671_v7 = vcombine.high %v14273_v37, %v14273_v37  ;;  %v6721_v10 = vcombine.low %v6713_v24, %v6720_v16  ;;  %v6400_v0 = vsel %vm14254_vm6, %v6395_v11, %v6399_v39  ;;  %v6428_v52 = vor.u32 %v6427_v45, %v6423_v22 }
 0x2a4   :  { %v6414_v20 = vsel %vm14254_vm6, %v6409_v25, %v6413_v48  ;;  %v6419_v2 = vrot.slane %v6418_v23, 2  ;;  %v6436_v61 = vshrl.u32 %v14378_v62, 16  ;;  %v6439_v1 = vshll.u32 %v14378_v62, 16 }
 0x2a5   :  { %17076 = vst [vmem:[#allocation84_spill] sm:$0xff] %v14671_v7  ;;  %v6722_v19 = vcombine.low %v6400_v0, %v6414_v20  ;;  %11442 = vmatmul.mubr.msk.bf16.gmra.mrb[28].mxu1 %vm6860_vm7, %v6721_v10  ;;  %v6429_v32 = vrot.slane %v6428_v52, 2  ;;  %v6445_v26 = vshll.u32 %v14662_v31, 16  ;;  %v6449_v24 = vshrl.u32 %v14662_v31, 16 }
 0x2a6   :  { %v6455_v55 = vshll.u32 %v14273_v37, 16  ;;  %7009 = vmatprep.mubr.bf16.mxu1 %v17058_v49  ;;  %v6424_v39 = vsel %vm14254_vm6, %v6419_v2, %v6423_v22  ;;  %v6438_v48 = vrot.slane %v6436_v61, 6  ;;  %v6441_v59 = vrot.slane %v6439_v1, 7 }
 0x2a7   :  { %v6730_v23 = vrot.slane %v6722_v19, %v13970_v43  ;;  %v6434_v16 = vsel %vm14254_vm6, %v6429_v32, %v6433_v41  ;;  %v6447_v11 = vrot.slane %v6445_v26, 7  ;;  %v6451_v25 = vrot.slane %v6449_v24, 6 }
 0x2a8   :  { %v6457_v45 = vrot.slane %v6455_v55, 7  ;;  %v6723_v10 = vcombine.low %v6424_v39, %v6434_v16  ;;  %v6442_v0 = vor.u32 %v6441_v59, %v6438_v48  ;;  %v6459_v20 = vshrl.u32 %v14273_v37, 16 }
 0x2a9   :  { %v6465_v52 = vshll.u32 %v14671_v7, 16  ;;  %v6452_v50 = vor.u32 %v6451_v25, %v6447_v11  ;;  %v6470_v62 = vshrl.u32 %v14381_v17, 16  ;;  %v6473_v22 = vshll.u32 %v14381_v17, 16 }
 0x2aa   :  { %v6479_v2 = vshll.u32 %v14667_v57, 16  ;;  %v6737_v19 = vrot.slane %v6723_v10, %v13970_v43  ;;  %v6443_v61 = vrot.slane %v6442_v0, 2  ;;  %v6461_v41 = vrot.slane %v6459_v20, 6 }
 0x2ab   :  { %v6467_v1 = vrot.slane %v6465_v52, 7  ;;  %v6453_v32 = vrot.slane %v6452_v50, 2  ;;  %v6472_v26 = vrot.slane %v6470_v62, 6  ;;  %v6475_v24 = vrot.slane %v6473_v22, 7 }
 0x2ac   :  { %v6481_v55 = vrot.slane %v6479_v2, 7  ;;  %v6738_v39 = vcombine.low %v6730_v23, %v6737_v19  ;;  %v6448_v48 = vsel %vm14254_vm6, %v6443_v61, %v6447_v11  ;;  %v6462_v59 = vor.u32 %v6461_v41, %v6457_v45 }
 0x2ad   :  { %v14699_v16 = vcombine.high %v14495_v40, %v14495_v40  ;;  %v6458_v25 = vsel %vm14254_vm6, %v6453_v32, %v6457_v45  ;;  %v6476_v10 = vor.u32 %v6475_v24, %v6472_v26  ;;  %v14705_v0 = vcombine.high %v14391_v30, %v14391_v30 }
 0x2ae   :  { %v6483_v62 = vshrl.u32 %v14667_v57, 16  ;;  %11443 = vmatmul.mubr.msk.bf16.gmra.mrb[32].mxu1 %vm6860_vm7, %v6738_v39  ;;  %v6463_v50 = vrot.slane %v6462_v59, 2  ;;  %v6739_v23 = vcombine.low %v6448_v48, %v6458_v25  ;;  %v6489_v11 = vshll.u32 %v14391_v30, 16 }
 0x2af   :  { %17077 = vst [vmem:[#allocation83_spill] sm:$0xff] %v14705_v0  ;;  %v6493_v20 = vshrl.u32 %v14391_v30, 16  ;;  %7019 = vmatprep.mubr.bf16.mxu1 %v17058_v49  ;;  %v6477_v52 = vrot.slane %v6476_v10, 2  ;;  %v6499_v45 = vshll.u32 %v14705_v0, 16  ;;  %v6504_v2 = vshrl.u32 %v14495_v40, 16 }
 0x2b0   :  { %v6485_v22 = vrot.slane %v6483_v62, 6  ;;  %v6468_v19 = vsel %vm14254_vm6, %v6463_v50, %v6467_v1  ;;  %v6747_v61 = vrot.slane %v6739_v23, %v13970_v43  ;;  %v6491_v41 = vrot.slane %v6489_v11, 7 }
 0x2b1   :  { %v6495_v32 = vrot.slane %v6493_v20, 6  ;;  %v6482_v26 = vsel %vm14254_vm6, %v6477_v52, %v6481_v55  ;;  %v6501_v39 = vrot.slane %v6499_v45, 7  ;;  %v6506_v48 = vrot.slane %v6504_v2, 6 }
 0x2b2   :  { %v6486_v24 = vor.u32 %v6485_v22, %v6481_v55  ;;  %v6740_v59 = vcombine.low %v6468_v19, %v6482_v26  ;;  %v6507_v10 = vshll.u32 %v14495_v40, 16  ;;  %v6513_v62 = vshll.u32 %v14699_v16, 16 }
 0x2b3   :  { %v6496_v25 = vor.u32 %v6495_v32, %v6491_v41  ;;  %v6517_v7 = vshrl.u32 %v14699_v16, 16  ;;  %v6523_v1 = vshll.u32 %v14498_v33, 16  ;;  %v14725_v50 = vcombine.high %v14468_v29, %v14468_v29 }
 0x2b4   :  { %v6487_v0 = vrot.slane %v6486_v24, 2  ;;  %v6754_v23 = vrot.slane %v6740_v59, %v13970_v43  ;;  %v6509_v11 = vrot.slane %v6507_v10, 7  ;;  %v6515_v20 = vrot.slane %v6513_v62, 7 }
 0x2b5   :  { %v6497_v55 = vrot.slane %v6496_v25, 2  ;;  %v17078_v52 = vpack.c.bf16 %v14451_v44, %v14451_v44  ;;  %v6519_v2 = vrot.slane %v6517_v7, 6  ;;  %v14738_v19 = vcombine.high %v14498_v33, %v14498_v33 }
 0x2b6   :  { %v6492_v45 = vsel %vm14254_vm6, %v6487_v0, %v6491_v41  ;;  %v6755_v32 = vcombine.low %v6747_v61, %v6754_v23  ;;  %v6510_v24 = vor.u32 %v6509_v11, %v6506_v48  ;;  %v6525_v25 = vrot.slane %v6523_v1, 7 }
 0x2b7   :  { %v14732_v22 = vrot.slane %v17078_v52, %v13970_v43  ;;  %17080 = vst [vmem:[#allocation85_spill] sm:$0xff] %v14738_v19  ;;  %v6502_v26 = vsel %vm14254_vm6, %v6497_v55, %v6501_v39  ;;  %v6520_v59 = vor.u32 %v6519_v2, %v6515_v20  ;;  %v6527_v44 = vshrl.u32 %v14498_v33, 16 }
 0x2b8   :  { %v6756_v10 = vcombine.low %v6492_v45, %v6502_v26  ;;  %11444 = vmatmul.mubr.msk.bf16.gmra.mrb[36].mxu1 %vm6860_vm7, %v6755_v32  ;;  %v6511_v62 = vrot.slane %v6510_v24, 2  ;;  %v6538_v0 = vshrl.u32 %v14468_v29, 16  ;;  %v6541_v7 = vshll.u32 %v14468_v29, 16 }
 0x2b9   :  { %17079 = vst [vmem:[#allocation86_spill] sm:$0xff] %v14732_v22  ;;  %v6547_v41 = vshll.u32 %v14725_v50, 16  ;;  %7029 = vmatprep.mubr.bf16.mxu1 %v17058_v49  ;;  %v6521_v61 = vrot.slane %v6520_v59, 2  ;;  %v14750_v39 = vcombine.high %v14732_v22, %v14732_v22  ;;  %v6529_v48 = vrot.slane %v6527_v44, 6 }
 0x2ba   :  { %v6533_v1 = vshll.u32 %v14738_v19, 16  ;;  %v6516_v23 = vsel %vm14254_vm6, %v6511_v62, %v6515_v20  ;;  %v6540_v55 = vrot.slane %v6538_v0, 6  ;;  %v6543_v11 = vrot.slane %v6541_v7, 7 }
 0x2bb   :  { %17081 = vst [vmem:[#allocation88_spill] sm:$0xff] %v14750_v39  ;;  %v6549_v52 = vrot.slane %v6547_v41, 7  ;;  %v6526_v45 = vsel %vm14254_vm6, %v6521_v61, %v6525_v25  ;;  %v6530_v2 = vor.u32 %v6529_v48, %v6525_v25  ;;  %v6551_v32 = vshrl.u32 %v14725_v50, 16 }
 0x2bc   :  { %v6557_v26 = vshll.u32 %v14732_v22, 16  ;;  %v6757_v24 = vcombine.low %v6516_v23, %v6526_v45  ;;  %v6764_v59 = vrot.slane %v6756_v10, %v13970_v43  ;;  %v6544_v44 = vor.u32 %v6543_v11, %v6540_v55 }
 0x2bd   :  { %v6561_v19 = vshrl.u32 %v14732_v22, 16  ;;  %v6531_v33 = vrot.slane %v6530_v2, 2  ;;  %v6535_v29 = vrot.slane %v6533_v1, 7  ;;  %v6553_v20 = vrot.slane %v6551_v32, 6 }
 0x2be   :  { %v6559_v62 = vrot.slane %v6557_v26, 7  ;;  %v6771_v0 = vrot.slane %v6757_v24, %v13970_v43  ;;  %v6545_v7 = vrot.slane %v6544_v44, 2  ;;  %v6567_v25 = vshll.u32 %v14750_v39, 16 }
 0x2bf   :  { %v6563_v41 = vrot.slane %v6561_v19, 6  ;;  %v6536_v61 = vsel %vm14254_vm6, %v6531_v33, %v6535_v29  ;;  %v6554_v48 = vor.u32 %v6553_v20, %v6549_v52  ;;  %v7050_v24 = vcombine.low %v14016_v35, %v14217_v14  ;;  %v12095_v20 = vld [vmem:[%s16575_s3 + $0xe0] ss:$8 sps:$4 sm:$0xff]  }
 0x2c0   :  { %v6772_v23 = vcombine.low %v6764_v59, %v6771_v0  ;;  %v6550_v10 = vsel %vm14254_vm6, %v6545_v7, %v6549_v52  ;;  %v6569_v2 = vrot.slane %v6567_v25, 7  ;;  %v7051_v59 = vcombine.low %v14037_v54, %v14042_v3  ;;  %v12100_v7 = vld [vmem:[%s16575_s3 + $0xf4] ss:$8 sps:$4 sm:$0xff]   ;;  %v12098_v25 = vld [vmem:[%s16575_s3 + $0xf0] ss:$8 sps:$4 sm:$0xff]  }
 0x2c1   :  { %v6564_v55 = vor.u32 %v6563_v41, %v6559_v62  ;;  %v6555_v11 = vrot.slane %v6554_v48, 2  ;;  %v6773_v45 = vcombine.low %v6536_v61, %v6550_v10  ;;  %v7058_v44 = vrot.slane %v7050_v24, %v13970_v43  ;;  %v12103_v48 = vld [vmem:[%s16575_s3 + $0x104] ss:$8 sps:$4 sm:$0xff]   ;;  %v12101_v10 = vld [vmem:[%s16575_s3 + $0x100] ss:$8 sps:$4 sm:$0xff]  }
 0x2c2   :  { %11445 = vmatmul.mubr.msk.bf16.gmra.mrb[40].mxu1 %vm6860_vm7, %v6772_v23  ;;  %v7065_v6 = vrot.slane %v7051_v59, %v13970_v43  ;;  %v7068_v0 = vcombine.low %v14073_v28, %v14091_v58  ;;  %v7067_v41 = vcombine.low %v14225_v51, %v14010_v21  ;;  %v7102_v59 = vcombine.low %v14135_v36, %v14142_v13 }
 0x2c3   :  { %v6565_v1 = vrot.slane %v6564_v55, 2  ;;  %7039 = vmatprep.mubr.bf16.mxu1 %v17058_v49  ;;  %v6560_v19 = vsel %vm14254_vm6, %v6555_v11, %v6559_v62  ;;  %v6781_v32 = vrot.slane %v6773_v45, %v13970_v43  ;;  %v7085_v11 = vcombine.low %v14399_v53, %v14058_v56  ;;  %v12106_v45 = vld [vmem:[%s16575_s3 + $0x114] ss:$8 sps:$4 sm:$0xff]  }
 0x2c4   :  { %v7066_v62 = vcombine.low %v7058_v44, %v7065_v6  ;;  %v7082_v61 = vrot.slane %v7068_v0, %v13970_v43  ;;  %v7075_v23 = vrot.slane %v7067_v41, %v13970_v43  ;;  %v12112_v44 = vld [vmem:[%s16575_s3 + $0x134] ss:$8 sps:$4 sm:$0xff]   ;;  %v17084_v6 = vld [vmem:[#allocation23_spill] sm:$0xff]  ;;  %v7116_v0 = vrot.slane %v7102_v59, %v13970_v43 }
 0x2c5   :  { %v6570_v29 = vsel %vm14254_vm6, %v6565_v1, %v6569_v2  ;;  %v17082_v1 = vld [vmem:[#allocation18_spill] sm:$0xff]  ;;  %v17083_v2 = vld [vmem:[#allocation19_spill] sm:$0xff]  ;;  %v17087_v59 = vld [vmem:[#allocation24_spill] sm:$0xff] }
 0x2c6   :  { %v6774_v33 = vcombine.low %v6560_v19, %v6570_v29  ;;  %v7083_v55 = vcombine.low %v7075_v23, %v7082_v61  ;;  %v7084_v19 = vcombine.low %v17083_v2, %v17082_v1  ;;  %v12104_v29 = vld [vmem:[%s16575_s3 + $0x110] ss:$8 sps:$4 sm:$0xff]   ;;  %v7119_v23 = vcombine.low %v14153_v46, %v14171_v38 }
 0x2c8   :  { %v6788_v52 = vrot.slane %v6774_v33, %v13970_v43  ;;  %v7099_v33 = vrot.slane %v7085_v11, %v13970_v43 }
 0x2ca   :  { %v6789_v26 = vcombine.low %v6781_v32, %v6788_v52  ;;  %v12109_v32 = vld [vmem:[%s16575_s3 + $0x124] ss:$8 sps:$4 sm:$0xff]   ;;  %v7092_v52 = vrot.slane %v7084_v19, %v13970_v43 }
 0x2cb   :  { %v17085_v19 = vld [vmem:[#allocation27_spill] sm:$0xff] }
 0x2cc   :  { %11446 = vmatmul.mubr.msk.bf16.gmra.mrb[44].mxu1 %vm6860_vm7, %v6789_v26  ;;  %v12107_v26 = vld [vmem:[%s16575_s3 + $0x120] ss:$8 sps:$4 sm:$0xff]   ;;  %v7100_v24 = vcombine.low %v7092_v52, %v7099_v33 }
 0x2cd   :  { %7392 = vmatprep.mubr.bf16.mxu1 %v17058_v49 }
 0x2d4   :  { %11461 = vmatmul.mubr.msk.bf16.vlgmr.msra.gmra.mrb[0].mxu1 %vm6860_vm7, %v7066_v62  ;;  %v12110_v62 = vld [vmem:[%s16575_s3 + $0x130] ss:$8 sps:$4 sm:$0xff]  }
 0x2d5   :  { %8006 = vmatpush1.bf16.msra.mxu1 %v12095_v20  ;;  %7402 = vmatprep.mubr.bf16.mxu1 %v17058_v49  ;;  %v7101_v20 = vcombine.low %v17084_v6, %v14475_v27 }
 0x2d6   :  { %8007 = vmatprep.subr.bf16.mxu1 %v12100_v7  ;;  %v12115_v7 = vld [vmem:[%s16575_s3 + $0x144] ss:$8 sps:$4 sm:$0xff]  }
 0x2d7   :  { %v7109_v41 = vrot.slane %v7101_v20, %v13970_v43 }
 0x2d9   :  { %8008 = vmatpush1.bf16.msra.mxu1 %v12098_v25  ;;  %v12113_v25 = vld [vmem:[%s16575_s3 + $0x140] ss:$8 sps:$4 sm:$0xff]   ;;  %v7117_v61 = vcombine.low %v7109_v41, %v7116_v0  ;;  %v7169_v41 = vcombine.low %v14573_v12, %v14261_v4 }
 0x2da   :  { %8009 = vmatprep.subr.bf16.mxu1 %v12103_v48  ;;  %v7118_v48 = vcombine.low %v14479_v47, %v14145_v63 }
 0x2dc   :  { %11462 = vmatmul.mubr.msk.bf16.gmra.mrb[4].mxu1 %vm6860_vm7, %v7083_v55  ;;  %v7133_v55 = vrot.slane %v7119_v23, %v13970_v43  ;;  %v17088_v23 = vld [vmem:[#allocation76_spill] sm:$0xff] }
 0x2dd   :  { %7412 = vmatprep.mubr.bf16.mxu1 %v17058_v49  ;;  %8010 = vmatpush1.bf16.msra.mxu1 %v12101_v10  ;;  %v7126_v10 = vrot.slane %v7118_v48, %v13970_v43 }
 0x2de   :  { %8011 = vmatprep.subr.bf16.mxu1 %v12106_v45  ;;  %v7136_v45 = vcombine.low %v14533_v9, %v14202_v42 }
 0x2df   :  { %v7134_v11 = vcombine.low %v7126_v10, %v7133_v55  ;;  %v7187_v10 = vcombine.low %v17088_v23, %v14283_v18  ;;  %v17089_v55 = vld [vmem:[#allocation32_spill] sm:$0xff] }
 0x2e1   :  { %8012 = vmatpush1.bf16.msra.mxu1 %v12104_v29  ;;  %v17086_v29 = vld [vmem:[#allocation21_spill] sm:$0xff] }
 0x2e2   :  { %8013 = vmatprep.subr.bf16.mxu1 %v12109_v32  ;;  %v7135_v33 = vcombine.low %v17086_v29, %v17085_v19  ;;  %v7150_v32 = vrot.slane %v7136_v45, %v13970_v43 }
 0x2e4   :  { %11463 = vmatmul.mubr.msk.bf16.gmra.mrb[8].mxu1 %vm6860_vm7, %v7100_v24  ;;  %v7143_v52 = vrot.slane %v7135_v33, %v13970_v43  ;;  %v7153_v24 = vcombine.low %v14187_v15, %v14249_v34  ;;  %v7201_v33 = vrot.slane %v7187_v10, %v13970_v43  ;;  %v7525_v10 = vrot.slane %v14037_v54, 7 }
 0x2e5   :  { %7422 = vmatprep.mubr.bf16.mxu1 %v17058_v49  ;;  %8014 = vmatpush1.bf16.msra.mxu1 %v12107_v26 }
 0x2e6   :  { %8015 = vmatprep.subr.bf16.mxu1 %v12112_v44  ;;  %v7151_v26 = vcombine.low %v7143_v52, %v7150_v32  ;;  %v7152_v44 = vcombine.low %v17087_v59, %v14566_v60  ;;  %v7167_v20 = vrot.slane %v7153_v24, %v13970_v43  ;;  %v7527_v54 = vrot.slane %v7525_v10, 2 }
 0x2e9   :  { %8016 = vmatpush1.bf16.msra.mxu1 %v12110_v62  ;;  %v7160_v62 = vrot.slane %v7152_v44, %v13970_v43  ;;  %v7204_v44 = vcombine.low %v14273_v37, %v14381_v17 }
 0x2ea   :  { %8017 = vmatprep.subr.bf16.mxu1 %v12115_v7  ;;  %v7170_v7 = vcombine.low %v14268_v8, %v14603_v5 }
 0x2eb   :  { %v7168_v0 = vcombine.low %v7160_v62, %v7167_v20  ;;  %v7218_v62 = vrot.slane %v7204_v44, %v13970_v43 }
 0x2ec   :  { %11464 = vmatmul.mubr.msk.bf16.gmra.mrb[12].mxu1 %vm6860_vm7, %v7117_v61  ;;  %v7177_v61 = vrot.slane %v7169_v41, %v13970_v43  ;;  %v7220_v41 = vcombine.low %v14667_v57, %v14391_v30 }
 0x2ed   :  { %7432 = vmatprep.mubr.bf16.mxu1 %v17058_v49  ;;  %8018 = vmatpush1.bf16.msra.mxu1 %v12113_v25  ;;  %v7184_v25 = vrot.slane %v7170_v7, %v13970_v43  ;;  %v7221_v7 = vcombine.low %v14495_v40, %v14699_v16 }
 0x2ee   :  { %9433 = vmatprep.subr.bf16.mxu1 %v17058_v49 }
 0x2ef   :  { %v7185_v48 = vcombine.low %v7177_v61, %v7184_v25  ;;  %v7235_v25 = vrot.slane %v7221_v7, %v13970_v43  ;;  %v7522_v61 = vrot.slane %v14217_v14, 7  ;;  %v7532_v14 = vrot.slane %v14225_v51, 7 }
 0x2f0   :  { %v11473_v51 = vrot.slane %v14016_v35, 9 }
 0x2f1   :  { %v7524_v44 = vrot.slane %v7522_v61, 2 }
 0x2f4   :  { %11465 = vmatmul.mubr.msk.bf16.gmra.mrb[16].mxu1 %vm6860_vm7, %v7134_v11  ;;  %v17090_v11 = vld [vmem:[#allocation26_spill] sm:$0xff] }
 0x2f5   :  { %7442 = vmatprep.mubr.bf16.mxu1 %v17058_v49  ;;  %v7186_v45 = vcombine.low %v17090_v11, %v17089_v55 }
 0x2f7   :  { %v7194_v32 = vrot.slane %v7186_v45, %v13970_v43 }
 0x2f9   :  { %v7202_v52 = vcombine.low %v7194_v32, %v7201_v33  ;;  %v17092_v33 = vld [vmem:[#allocation47_spill] sm:$0xff]  ;;  %v17093_v32 = vld [vmem:[#allocation61_spill] sm:$0xff] }
 0x2fc   :  { %11466 = vmatmul.mubr.msk.bf16.gmra.mrb[20].mxu1 %vm6860_vm7, %v7151_v26  ;;  %v17091_v26 = vld [vmem:[#allocation43_spill] sm:$0xff] }
 0x2fd   :  { %7452 = vmatprep.mubr.bf16.mxu1 %v17058_v49  ;;  %v7203_v24 = vcombine.low %v17091_v26, %v14662_v31 }
 0x2ff   :  { %v7211_v20 = vrot.slane %v7203_v24, %v13970_v43  ;;  %v7238_v24 = vcombine.low %v14725_v50, %v14732_v22  ;;  %v7535_v22 = vrot.slane %v14010_v21, 7 }
 0x304   :  { %11467 = vmatmul.mubr.msk.bf16.gmra.mrb[24].mxu1 %vm6860_vm7, %v7168_v0  ;;  %v7219_v0 = vcombine.low %v7211_v20, %v7218_v62  ;;  %v17094_v20 = vld [vmem:[#allocation31_spill] sm:$0xff] }
 0x305   :  { %7462 = vmatprep.mubr.bf16.mxu1 %v17058_v49  ;;  %v7528_v62 = vrot.slane %v17094_v20, 7  ;;  %v7542_v20 = vrot.slane %v14091_v58, 7 }
 0x307   :  { %v7544_v35 = vrot.slane %v7542_v20, 2 }
 0x30c   :  { %11468 = vmatmul.mubr.msk.bf16.gmra.mrb[28].mxu1 %vm6860_vm7, %v7185_v48  ;;  %v7228_v48 = vrot.slane %v7220_v41, %v13970_v43  ;;  %v7252_v41 = vrot.slane %v7238_v24, %v13970_v43 }
 0x30d   :  { %7472 = vmatprep.mubr.bf16.mxu1 %v17058_v49 }
 0x30e   :  { %v7236_v45 = vcombine.low %v7228_v48, %v7235_v25  ;;  %v7526_v48 = vsel %vm14919_vm14, %v7524_v44, %v7525_v10  ;;  %v7534_v10 = vrot.slane %v7532_v14, 2  ;;  %v7545_v44 = vrot.slane %v17083_v2, 7  ;;  %v12117_v25 = vld [vmem:[#allocation2 + $0x68] sm:$0xff]  }
 0x310   :  { %v7546_v21 = vsel %vm14919_vm14, %v7544_v35, %v7545_v44 }
 0x314   :  { %11469 = vmatmul.mubr.msk.bf16.gmra.mrb[32].mxu1 %vm6860_vm7, %v7202_v52  ;;  %v7237_v52 = vcombine.low %v17093_v32, %v17092_v33 }
 0x315   :  { %7482 = vmatprep.mubr.bf16.mxu1 %v17058_v49 }
 0x316   :  { %v7245_v7 = vrot.slane %v7237_v52, %v13970_v43  ;;  %v7529_v52 = vsel %vm14919_vm14, %v7527_v54, %v7528_v62  ;;  %v7537_v62 = vrot.slane %v7535_v22, 2  ;;  %v11475_v54 = vrot.slane %v14073_v28, 9 }
 0x318   :  { %v7253_v24 = vcombine.low %v7245_v7, %v7252_v41  ;;  %v7552_v7 = vrot.slane %v14399_v53, 7  ;;  %v7536_v41 = vsel %vm14919_vm14, %v7534_v10, %v7535_v22  ;;  %v7543_v2 = vsel %vm14919_vm14, %v11475_v54, %v7542_v20  ;;  %v17099_v20 = vld [vmem:[#allocation44_spill] sm:$0xff] }
 0x319   :  { %v7548_v35 = vrot.slane %v17099_v20, 7 }
 0x31c   :  { %11470 = vmatmul.mubr.msk.bf16.gmra.mrb[36].mxu1 %vm6860_vm7, %v7219_v0  ;;  %v11474_v0 = vrot.slane %v14042_v3, 9  ;;  %v7523_v3 = vsel %vm14919_vm14, %v11473_v51, %v7522_v61 }
 0x31d   :  { %7492 = vmatprep.mubr.bf16.mxu1 %v17058_v49  ;;  %v7695_v33 = vcombine.low %v7523_v3, %v7526_v48  ;;  %v17098_v3 = vld [vmem:[#allocation48_spill] sm:$0xff] }
 0x31f   :  { %v7703_v58 = vrot.slane %v7695_v33, %v13970_v43  ;;  %v7555_v33 = vrot.slane %v14058_v56, 7  ;;  %v11476_v56 = vrot.slane %v17082_v1, 9 }
 0x321   :  { %v7557_v53 = vrot.slane %v7555_v33, 2 }
 0x324   :  { %11471 = vmatmul.mubr.msk.bf16.gmra.mrb[40].mxu1 %vm6860_vm7, %v7236_v45  ;;  %v7533_v45 = vsel %vm14919_vm14, %v11474_v0, %v7532_v14  ;;  %v17097_v0 = vld [vmem:[#allocation33_spill] sm:$0xff] }
 0x325   :  { %7502 = vmatprep.mubr.bf16.mxu1 %v17058_v49  ;;  %v7696_v39 = vcombine.low %v7529_v52, %v7533_v45  ;;  %v7538_v51 = vrot.slane %v17097_v0, 7  ;;  %v7554_v45 = vrot.slane %v7552_v7, 2  ;;  %v7558_v52 = vrot.slane %v17098_v3, 7 }
 0x326   :  { %v7575_v3 = vrot.slane %v14145_v63, 7 }
 0x327   :  { %v7710_v61 = vrot.slane %v7696_v39, %v13970_v43  ;;  %v7713_v39 = vcombine.low %v7543_v2, %v7546_v21  ;;  %v7539_v48 = vsel %vm14919_vm14, %v7537_v62, %v7538_v51  ;;  %v7556_v10 = vsel %vm14919_vm14, %v7554_v45, %v7555_v33  ;;  %v17100_v33 = vld [vmem:[#allocation58_spill] sm:$0xff] }
 0x328   :  { %v7712_v28 = vcombine.low %v7536_v41, %v7539_v48  ;;  %v7559_v0 = vsel %vm14919_vm14, %v7557_v53, %v7558_v52  ;;  %v7562_v51 = vrot.slane %v14475_v27, 7  ;;  %v7565_v62 = vrot.slane %v14135_v36, 7 }
 0x329   :  { %v7711_v14 = vcombine.low %v7703_v58, %v7710_v61  ;;  %v7727_v22 = vrot.slane %v7713_v39, %v13970_v43  ;;  %v7553_v61 = vsel %vm14919_vm14, %v11476_v56, %v7552_v7  ;;  %v7730_v54 = vcombine.low %v7556_v10, %v7559_v0 }
 0x32a   :  { %v7720_v58 = vrot.slane %v7712_v28, %v13970_v43  ;;  %v7572_v21 = vrot.slane %v14479_v47, 7  ;;  %v7564_v7 = vrot.slane %v7562_v51, 2  ;;  %v7567_v2 = vrot.slane %v7565_v62, 2 }
 0x32b   :  { %v11478_v27 = vrot.slane %v14142_v13, 9  ;;  %v7744_v36 = vrot.slane %v7730_v54, %v13970_v43  ;;  %v7582_v48 = vrot.slane %v14171_v38, 7  ;;  %v11477_v45 = vrot.slane %v17084_v6, 9 }
 0x32c   :  { %11472 = vmatmul.mubr.msk.bf16.gmra.mrb[44].mxu1 %vm6860_vm7, %v7253_v24  ;;  %v7547_v24 = vrot.slane %v7545_v44, 2  ;;  %v7728_v44 = vcombine.low %v7720_v58, %v7727_v22  ;;  %v7566_v28 = vsel %vm14919_vm14, %v7564_v7, %v7565_v62  ;;  %v7577_v6 = vrot.slane %v7575_v3, 2 }
 0x32d   :  { %8037 = vmatprep.mubr.bf16.mxu1 %v17058_v49  ;;  %v7573_v39 = vsel %vm14919_vm14, %v11478_v27, %v7572_v21  ;;  %v7563_v22 = vsel %vm14919_vm14, %v11477_v45, %v7562_v51  ;;  %v7584_v20 = vrot.slane %v7582_v48, 2  ;;  %v7585_v10 = vrot.slane %v17086_v29, 7 }
 0x32e   :  { %v7549_v1 = vsel %vm14919_vm14, %v7547_v24, %v7548_v35  ;;  %v7574_v24 = vrot.slane %v7572_v21, 2  ;;  %v7746_v38 = vcombine.low %v7563_v22, %v7566_v28  ;;  %v17101_v35 = vld [vmem:[#allocation62_spill] sm:$0xff]  ;;  %v7592_v51 = vrot.slane %v14533_v9, 7  ;;  %v17102_v9 = vld [vmem:[#allocation72_spill] sm:$0xff] }
 0x32f   :  { %v7729_v41 = vcombine.low %v7549_v1, %v7553_v61  ;;  %v7578_v56 = vrot.slane %v17101_v35, 7  ;;  %v11479_v61 = vrot.slane %v14153_v46, 9  ;;  %v7586_v0 = vsel %vm14919_vm14, %v7584_v20, %v7585_v10 }
 0x330   :  { %v7576_v63 = vsel %vm14919_vm14, %v7574_v24, %v7575_v3  ;;  %v7754_v62 = vrot.slane %v7746_v38, %v13970_v43  ;;  %v7595_v54 = vrot.slane %v14202_v42, 7  ;;  %v7594_v7 = vrot.slane %v7592_v51, 2  ;;  %v17104_v38 = vld [vmem:[#allocation70_spill] sm:$0xff] }
 0x331   :  { %v7737_v47 = vrot.slane %v7729_v41, %v13970_v43  ;;  %v7583_v29 = vsel %vm14919_vm14, %v11479_v61, %v7582_v48  ;;  %v7587_v27 = vrot.slane %v7585_v10, 2  ;;  %v11480_v42 = vrot.slane %v17085_v19, 9 }
 0x332   :  { %v7764_v41 = vcombine.low %v7583_v29, %v7586_v0  ;;  %v7597_v46 = vrot.slane %v7595_v54, 2  ;;  %v7596_v48 = vsel %vm14919_vm14, %v7594_v7, %v7595_v54  ;;  %v7602_v28 = vrot.slane %v14566_v60, 7  ;;  %v17105_v54 = vld [vmem:[#allocation74_spill] sm:$0xff] }
 0x333   :  { %v7745_v13 = vcombine.low %v7737_v47, %v7744_v36  ;;  %v17103_v36 = vld [vmem:[#allocation67_spill] sm:$0xff]  ;;  %v7593_v47 = vsel %vm14919_vm14, %v11480_v42, %v7592_v51  ;;  %v7612_v19 = vrot.slane %v14573_v12, 7  ;;  %v11482_v60 = vrot.slane %v14249_v34, 9 }
 0x334   :  { %11517 = vmatmul.mubr.msk.bf16.vlgmr.msra.gmra.mrb[0].mxu1 %vm6860_vm7, %v7711_v14  ;;  %v7568_v14 = vrot.slane %v17100_v33, 7  ;;  %v7604_v24 = vrot.slane %v7602_v28, 2  ;;  %v11481_v10 = vrot.slane %v17087_v59, 9  ;;  %v7615_v51 = vrot.slane %v14261_v4, 7 }
 0x335   :  { %8047 = vmatprep.mubr.bf16.mxu1 %v17058_v49  ;;  %v7613_v35 = vsel %vm14919_vm14, %v11482_v60, %v7612_v19  ;;  %v7614_v59 = vrot.slane %v7612_v19, 2  ;;  %v7632_v4 = vrot.slane %v17088_v23, 7 }
 0x336   :  { %v7569_v53 = vsel %vm14919_vm14, %v7567_v2, %v7568_v14  ;;  %v7598_v2 = vrot.slane %v17102_v9, 7  ;;  %v7778_v14 = vrot.slane %v7764_v41, %v13970_v43  ;;  %v7603_v34 = vsel %vm14919_vm14, %v11481_v10, %v7602_v28 }
 0x337   :  { %v7747_v52 = vcombine.low %v7569_v53, %v7573_v39  ;;  %v7588_v39 = vrot.slane %v17103_v36, 7  ;;  %v7605_v53 = vrot.slane %v14187_v15, 7  ;;  %v11483_v41 = vrot.slane %v14268_v8, 9 }
 0x338   :  { %v7599_v45 = vsel %vm14919_vm14, %v7597_v46, %v7598_v2  ;;  %v7616_v9 = vsel %vm14919_vm14, %v7614_v59, %v7615_v51  ;;  %v7635_v2 = vrot.slane %v14283_v18, 7  ;;  %v11484_v18 = vrot.slane %v17089_v55, 9 }
 0x339   :  { %v7761_v58 = vrot.slane %v7747_v52, %v13970_v43  ;;  %v7589_v52 = vsel %vm14919_vm14, %v7587_v27, %v7588_v39  ;;  %v7607_v20 = vrot.slane %v7605_v53, 2  ;;  %v7634_v27 = vrot.slane %v7632_v4, 2  ;;  %v17106_v39 = vld [vmem:[#allocation77_spill] sm:$0xff] }
 0x33a   :  { %v7780_v22 = vcombine.low %v7589_v52, %v7593_v47  ;;  %v7637_v23 = vrot.slane %v7635_v2, 2  ;;  %v7638_v42 = vrot.slane %v17106_v39, 7  ;;  %v17107_v47 = vld [vmem:[#allocation75_spill] sm:$0xff]  ;;  %v7633_v52 = vsel %vm14919_vm14, %v11484_v18, %v7632_v4  ;;  %v17110_v4 = vld [vmem:[#allocation86_spill] sm:$0xff] }
 0x33b   :  { %v7762_v1 = vcombine.low %v7754_v62, %v7761_v58  ;;  %v7606_v58 = vsel %vm14919_vm14, %v7604_v24, %v7605_v53  ;;  %v7636_v53 = vsel %vm14919_vm14, %v7634_v27, %v7635_v2 }
 0x33c   :  { %11518 = vmatmul.mubr.msk.bf16.gmra.mrb[4].mxu1 %vm6860_vm7, %v7728_v44  ;;  %v7579_v44 = vsel %vm14919_vm14, %v7577_v6, %v7578_v56  ;;  %v7608_v6 = vrot.slane %v17104_v38, 7  ;;  %v7622_v56 = vrot.slane %v14603_v5, 7  ;;  %v7788_v12 = vrot.slane %v7780_v22, %v13970_v43 }
 0x33d   :  { %8057 = vmatprep.mubr.bf16.mxu1 %v17058_v49  ;;  %v7763_v21 = vcombine.low %v7576_v63, %v7579_v44  ;;  %v7797_v5 = vcombine.low %v7603_v34, %v7606_v58  ;;  %v7625_v44 = vrot.slane %v17090_v11, 7  ;;  %v7639_v19 = vsel %vm14919_vm14, %v7637_v23, %v7638_v42 }
 0x33e   :  { %v7609_v63 = vsel %vm14919_vm14, %v7607_v20, %v7608_v6  ;;  %v7624_v62 = vrot.slane %v7622_v56, 2  ;;  %v7623_v11 = vsel %vm14919_vm14, %v11483_v41, %v7622_v56  ;;  %v7645_v22 = vrot.slane %v14273_v37, 7 }
 0x33f   :  { %v7771_v33 = vrot.slane %v7763_v21, %v13970_v43  ;;  %v7798_v0 = vcombine.low %v7609_v63, %v7613_v35  ;;  %v7617_v21 = vrot.slane %v7615_v51, 2  ;;  %v7805_v46 = vrot.slane %v7797_v5, %v13970_v43 }
 0x340   :  { %v7626_v7 = vsel %vm14919_vm14, %v7624_v62, %v7625_v44  ;;  %v7627_v28 = vrot.slane %v7625_v44, 2  ;;  %v7832_v20 = vcombine.low %v7636_v53, %v7639_v19  ;;  %v7652_v6 = vrot.slane %v14667_v57, 7 }
 0x341   :  { %v7779_v3 = vcombine.low %v7771_v33, %v7778_v14  ;;  %v7812_v29 = vrot.slane %v7798_v0, %v13970_v43  ;;  %v7815_v14 = vcombine.low %v7623_v11, %v7626_v7  ;;  %v7647_v60 = vrot.slane %v7645_v22, 2 }
 0x342   :  { %v11486_v56 = vrot.slane %v14381_v17, 9  ;;  %v7846_v37 = vrot.slane %v7832_v20, %v13970_v43  ;;  %v7662_v58 = vrot.slane %v14699_v16, 7  ;;  %v7654_v5 = vrot.slane %v7652_v6, 2  ;;  %v12116_v20 = vld [vmem:[#allocation2 + $0x60] sm:$0xff]  }
 0x343   :  { %v7813_v33 = vcombine.low %v7805_v46, %v7812_v29  ;;  %v7665_v16 = vrot.slane %v17093_v32, 7  ;;  %v17109_v29 = vld [vmem:[#allocation83_spill] sm:$0xff]  ;;  %v7672_v41 = vrot.slane %v14725_v50, 7  ;;  %v7675_v46 = vrot.slane %v17110_v4, 7  ;;  %8857 = vmatpush1.bf16.msra.mxu0 %v12116_v20 }
 0x344   :  { %11519 = vmatmul.mubr.msk.bf16.gmra.mrb[8].mxu1 %vm6860_vm7, %v7745_v13  ;;  %v7781_v13 = vcombine.low %v7596_v48, %v7599_v45  ;;  %v7829_v48 = vrot.slane %v7815_v14, %v13970_v43  ;;  %v7628_v45 = vrot.slane %v17107_v47, 7  ;;  %v7653_v57 = vsel %vm14919_vm14, %v11486_v56, %v7652_v6  ;;  %8858 = vmatprep.subr.bf16.mxu0 %v17058_v49  ;;  %v12121_v6 = vld [vmem:[#allocation2 + $0x78] sm:$0xff]   ;;  %v12126_v56 = vld [vmem:[#allocation2 + $0x140] sm:$0xff]  }
 0x345   :  { %8067 = vmatprep.mubr.bf16.mxu1 %v17058_v49  ;;  %v7664_v62 = vrot.slane %v7662_v58, 2  ;;  %v7677_v27 = vrot.slane %v7675_v46, 2 }
 0x346   :  { %v7795_v15 = vrot.slane %v7781_v13, %v13970_v43  ;;  %v7629_v55 = vsel %vm14919_vm14, %v7627_v28, %v7628_v45 }
 0x347   :  { %8859 = vmatpush1.bf16.msra.mxu0 %v12117_v25 }
 0x348   :  { %v7796_v61 = vcombine.low %v7788_v12, %v7795_v15  ;;  %v17108_v15 = vld [vmem:[#allocation84_spill] sm:$0xff]  ;;  %v11485_v12 = vrot.slane %v17091_v26, 9  ;;  %v7655_v26 = vrot.slane %v14391_v30, 7  ;;  %v7666_v30 = vsel %vm14919_vm14, %v7664_v62, %v7665_v16  ;;  %8860 = vmatprep.subr.bf16.mxu0 %v17058_v49 }
 0x349   :  { %v7648_v35 = vrot.slane %v17108_v15, 7  ;;  %v12124_v15 = vld [vmem:[#allocation2 + $0x138] sm:$0xff]  }
 0x34a   :  { %v7656_v7 = vsel %vm14919_vm14, %v7654_v5, %v7655_v26  ;;  %v12137_v5 = vld [vmem:[#allocation2 + $0x170] sm:$0xff]  }
 0x34b   :  { %v7649_v17 = vsel %vm14919_vm14, %v7647_v60, %v7648_v35  ;;  %v12123_v60 = vld [vmem:[#allocation2 + $0x80] sm:$0xff]   ;;  %v12125_v35 = vld [vmem:[#allocation2 + $0x88] sm:$0xff]  }
 0x34c   :  { %11520 = vmatmul.mubr.msk.bf16.gmra.mrb[12].mxu1 %vm6860_vm7, %v7762_v1  ;;  %v7618_v1 = vrot.slane %v17105_v54, 7  ;;  %v7849_v51 = vcombine.low %v7649_v17, %v7653_v57  ;;  %v7658_v54 = vrot.slane %v17109_v29, 7  ;;  %v12129_v57 = vld [vmem:[#allocation2 + $0x150] sm:$0xff]   ;;  %v12133_v17 = vld [vmem:[#allocation2 + $0x160] sm:$0xff]   ;;  %v12139_v29 = vld [vmem:[#allocation2 + $0x178] sm:$0xff]  }
 0x34d   :  { %8077 = vmatprep.mubr.bf16.mxu1 %v17058_v49 }
 0x34e   :  { %v7619_v8 = vsel %vm14919_vm14, %v7617_v21, %v7618_v1  ;;  %v7863_v44 = vrot.slane %v7849_v51, %v13970_v43  ;;  %v7657_v1 = vrot.slane %v7655_v26, 2  ;;  %v11487_v21 = vrot.slane %v14495_v40, 9  ;;  %v17111_v40 = vld [vmem:[#allocation85_spill] sm:$0xff]  ;;  %v17114_v26 = vld [vmem:[#allocation8_spill] sm:$0xff] }
 0x34f   :  { %v7814_v36 = vcombine.low %v7616_v9, %v7619_v8  ;;  %v7668_v14 = vrot.slane %v17111_v40, 7  ;;  %v7674_v8 = vrot.slane %v7672_v41, 2  ;;  %v12138_v51 = vld [vmem:[#allocation2 + $0xb8] sm:$0xff]   ;;  %v8210_v62 = vsub.s32 0, %v17114_v26 }
 0x350   :  { %v7663_v32 = vsel %vm14919_vm14, %v11487_v21, %v7662_v58  ;;  %v7659_v2 = vsel %vm14919_vm14, %v7657_v1, %v7658_v54  ;;  %v12132_v58 = vld [vmem:[#allocation2 + $0xa0] sm:$0xff]  }
 0x351   :  { %v7822_v13 = vrot.slane %v7814_v36, %v13970_v43  ;;  %v7866_v11 = vcombine.low %v7663_v32, %v7666_v30  ;;  %v7865_v50 = vcombine.low %v7656_v7, %v7659_v2  ;;  %v17112_v36 = vld [vmem:[#allocation88_spill] sm:$0xff]  ;;  %v7676_v45 = vsel %vm14919_vm14, %v7674_v8, %v7675_v46 }
 0x352   :  { %v7678_v23 = vrot.slane %v17112_v36, 7 }
 0x353   :  { %v7830_v24 = vcombine.low %v7822_v13, %v7829_v48  ;;  %v7880_v39 = vrot.slane %v7866_v11, %v13970_v43  ;;  %v17113_v48 = vld [vmem:[#allocation47_spill] sm:$0xff]  ;;  %v7873_v28 = vrot.slane %v7865_v50, %v13970_v43 }
 0x354   :  { %11521 = vmatmul.mubr.msk.bf16.gmra.mrb[16].mxu1 %vm6860_vm7, %v7779_v3  ;;  %v7642_v3 = vrot.slane %v14662_v31, 7  ;;  %v7831_v31 = vcombine.low %v7629_v55, %v7633_v52  ;;  %v11488_v47 = vrot.slane %v17113_v48, 9  ;;  %v7679_v53 = vsel %vm14919_vm14, %v7677_v27, %v7678_v23  ;;  %v12118_v55 = vld [vmem:[#allocation2 + $0x120] sm:$0xff]  }
 0x355   :  { %8087 = vmatprep.mubr.bf16.mxu1 %v17058_v49  ;;  %v7883_v52 = vcombine.low %v7676_v45, %v7679_v53  ;;  %9434 = vmatpush1.bf16.msra.mxu1 %v12118_v55 }
 0x356   :  { %v7644_v38 = vrot.slane %v7642_v3, 2  ;;  %v7839_v63 = vrot.slane %v7831_v31, %v13970_v43  ;;  %v7673_v18 = vsel %vm14919_vm14, %v11488_v47, %v7672_v41  ;;  %9435 = vmatprep.subr.bf16.mxu1 %v17058_v49  ;;  %v12122_v31 = vld [vmem:[#allocation2 + $0x130] sm:$0xff]  }
 0x358   :  { %v7646_v10 = vsel %vm14919_vm14, %v7644_v38, %v7645_v22  ;;  %v7847_v0 = vcombine.low %v7839_v63, %v7846_v37  ;;  %v7897_v22 = vrot.slane %v7883_v52, %v13970_v43  ;;  %v12119_v38 = vld [vmem:[#allocation2 + $0x70] sm:$0xff]   ;;  %v12131_v63 = vld [vmem:[#allocation2 + $0x158] sm:$0xff]  }
 0x359   :  { %8861 = vmatpush1.bf16.msra.mxu0 %v12119_v38  ;;  %v12127_v37 = vld [vmem:[#allocation2 + $0x90] sm:$0xff]  }
 0x35a   :  { %8862 = vmatprep.subr.bf16.mxu0 %v17058_v49 }
 0x35c   :  { %11522 = vmatmul.mubr.msk.bf16.gmra.mrb[20].mxu1 %vm6860_vm7, %v7796_v61  ;;  %v7643_v61 = vsel %vm14919_vm14, %v11485_v12, %v7642_v3  ;;  %v7881_v3 = vcombine.low %v7873_v28, %v7880_v39  ;;  %v12128_v12 = vld [vmem:[#allocation2 + $0x148] sm:$0xff]  }
 0x35d   :  { %8097 = vmatprep.mubr.bf16.mxu1 %v17058_v49  ;;  %v7848_v34 = vcombine.low %v7643_v61, %v7646_v10  ;;  %8863 = vmatpush1.bf16.msra.mxu0 %v12121_v6  ;;  %v12130_v10 = vld [vmem:[#allocation2 + $0x98] sm:$0xff]   ;;  %v12134_v61 = vld [vmem:[#allocation2 + $0xa8] sm:$0xff]  }
 0x35e   :  { %8864 = vmatprep.subr.bf16.mxu0 %v17058_v49 }
 0x35f   :  { %v7856_v59 = vrot.slane %v7848_v34, %v13970_v43  ;;  %v12135_v34 = vld [vmem:[#allocation2 + $0x168] sm:$0xff]  }
 0x361   :  { %v7864_v9 = vcombine.low %v7856_v59, %v7863_v44  ;;  %8865 = vmatpush1.bf16.msra.mxu0 %v12123_v60  ;;  %v8214_v59 = vsub.s32 1, %v17114_v26 }
 0x362   :  { %8866 = vmatprep.subr.bf16.mxu0 %v17058_v49 }
 0x364   :  { %11523 = vmatmul.mubr.msk.bf16.gmra.mrb[24].mxu1 %vm6860_vm7, %v7813_v33  ;;  %v7667_v33 = vrot.slane %v7665_v16, 2  ;;  %v8206_v16 = vld [vmem:[%s16576_s4] sm:$0x3] }
 0x365   :  { %8107 = vmatprep.mubr.bf16.mxu1 %v17058_v49  ;;  %8867 = vmatpush1.bf16.msra.mxu0 %v12125_v35  ;;  %v15154_v44 = vrot.slane %v8206_v16, %v8210_v62  ;;  %v15156_v54 = vrot.slane %v8206_v16, %v8214_v59 }
 0x366   :  { %v7669_v42 = vsel %vm14919_vm14, %v7667_v33, %v7668_v14  ;;  %8868 = vmatprep.subr.bf16.mxu0 %v17058_v49 }
 0x367   :  { %v7882_v13 = vcombine.low %v7669_v42, %v7673_v18 }
 0x369   :  { %v7890_v19 = vrot.slane %v7882_v13, %v13970_v43  ;;  %v12120_v43 = vld [vmem:[#allocation2 + $0x128] sm:$0xff]   ;;  %8869 = vmatpush1.bf16.msra.mxu0 %v12127_v37 }
 0x36a   :  { %9436 = vmatpush1.bf16.msra.mxu1 %v12120_v43  ;;  %8870 = vmatprep.subr.bf16.mxu0 %v17058_v49 }
 0x36b   :  { %9437 = vmatprep.subr.bf16.mxu1 %v17058_v49 }
 0x36c   :  { %11524 = vmatmul.mubr.msk.bf16.gmra.mrb[28].mxu1 %vm6860_vm7, %v7830_v24  ;;  %v7898_v24 = vcombine.low %v7890_v19, %v7897_v22 }
 0x36d   :  { %8117 = vmatprep.mubr.bf16.mxu1 %v17058_v49  ;;  %8871 = vmatpush1.bf16.msra.mxu0 %v12130_v10 }
 0x36e   :  { %9438 = vmatpush1.bf16.msra.mxu1 %v12122_v31  ;;  %8872 = vmatprep.subr.bf16.mxu0 %v17058_v49 }
 0x36f   :  { %9439 = vmatprep.subr.bf16.mxu1 %v17058_v49 }
 0x371   :  { %8873 = vmatpush1.bf16.msra.mxu0 %v12132_v58 }
 0x372   :  { %9440 = vmatpush1.bf16.msra.mxu1 %v12124_v15  ;;  %8874 = vmatprep.subr.bf16.mxu0 %v17058_v49 }
 0x373   :  { %9441 = vmatprep.subr.bf16.mxu1 %v17058_v49 }
 0x374   :  { %11525 = vmatmul.mubr.msk.bf16.gmra.mrb[32].mxu1 %vm6860_vm7, %v7847_v0  ;;  %v12136_v0 = vld [vmem:[#allocation2 + $0xb0] sm:$0xff]  }
 0x375   :  { %8127 = vmatprep.mubr.bf16.mxu1 %v17058_v49  ;;  %8875 = vmatpush1.bf16.msra.mxu0 %v12134_v61 }
 0x376   :  { %9442 = vmatpush1.bf16.msra.mxu1 %v12126_v56  ;;  %8876 = vmatprep.subr.bf16.mxu0 %v17058_v49 }
 0x377   :  { %9443 = vmatprep.subr.bf16.mxu1 %v17058_v49 }
 0x379   :  { %8877 = vmatpush1.bf16.msra.mxu0 %v12136_v0 }
 0x37a   :  { %9444 = vmatpush1.bf16.msra.mxu1 %v12128_v12  ;;  %8878 = vmatprep.subr.bf16.mxu0 %v17058_v49 }
 0x37b   :  { %9445 = vmatprep.subr.bf16.mxu1 %v17058_v49 }
 0x37c   :  { %11526 = vmatmul.mubr.msk.bf16.gmra.mrb[36].mxu1 %vm6860_vm7, %v7864_v9 }
 0x37d   :  { %8137 = vmatprep.mubr.bf16.mxu1 %v17058_v49  ;;  %8879 = vmatpush1.bf16.msra.mxu0 %v12138_v51 }
 0x37e   :  { %9446 = vmatpush1.bf16.msra.mxu1 %v12129_v57  ;;  %9031 = vmatprep.subr.bf16.mxu0 %v17058_v49 }
 0x37f   :  { %9447 = vmatprep.subr.bf16.mxu1 %v17058_v49 }
 0x382   :  { %9448 = vmatpush1.bf16.msra.mxu1 %v12131_v63 }
 0x383   :  { %9449 = vmatprep.subr.bf16.mxu1 %v17058_v49 }
 0x384   :  { %11527 = vmatmul.mubr.msk.bf16.gmra.mrb[40].mxu1 %vm6860_vm7, %v7881_v3 }
 0x385   :  { %8147 = vmatprep.mubr.bf16.mxu1 %v17058_v49 }
 0x386   :  { %9450 = vmatpush1.bf16.msra.mxu1 %v12133_v17 }
 0x387   :  { %9451 = vmatprep.subr.bf16.mxu1 %v17058_v49 }
 0x38a   :  { %9452 = vmatpush1.bf16.msra.mxu1 %v12135_v34 }
 0x38b   :  { %9453 = vmatprep.subr.bf16.mxu1 %v17058_v49 }
 0x38c   :  { %11528 = vmatmul.mubr.msk.bf16.gmra.mrb[44].mxu1 %vm6860_vm7, %v7898_v24 }
 0x38e   :  { %9454 = vmatpush1.bf16.msra.mxu1 %v12137_v5 }
 0x38f   :  { %9455 = vmatprep.subr.bf16.mxu1 %v17058_v49 }
 0x392   :  { %9456 = vmatpush1.bf16.msra.mxu1 %v12139_v29 }
 0x393   :  { %9837 = vmatprep.subr.bf16.mxu1 %v17058_v49 }
 0x407   :  { %v8039_v1 = vpop.f32.mrb[0].mxu1 }
 0x408   :  { %v8218_v21 = vadd.f32 %v15154_v44, %v8039_v1  ;;  %v8041_v30 = vpop.f32.mrb[1].mxu1 }
 0x409   :  { %v8219_v41 = vadd.f32 %v15156_v54, %v8041_v30  ;;  %v8043_v7 = vpop.f32.mrb[2].mxu1 }
 0x40a   :  { %v8220_v32 = vadd.f32 %v15154_v44, %v8043_v7  ;;  %v8045_v4 = vpop.f32.mrb[3].mxu1  ;;  %v8266_v9 = vmul.f32 0.2, %v8218_v21 }
 0x40b   :  { %v8221_v46 = vadd.f32 %v15156_v54, %v8045_v4  ;;  %v8267_v11 = vmul.f32 0.2, %v8219_v41 }
 0x40c   :  { %v8268_v2 = vmul.f32 0.2, %v8220_v32  ;;  %v8314_v50 = vmax.f32 %v8218_v21, %v8266_v9 }
 0x40d   :  { %v8269_v33 = vmul.f32 0.2, %v8221_v46  ;;  %v8315_v27 = vmax.f32 %v8219_v41, %v8267_v11 }
 0x40e   :  { %v8316_v40 = vmax.f32 %v8220_v32, %v8268_v2 }
 0x40f   :  { %v8317_v14 = vmax.f32 %v8221_v46, %v8269_v33  ;;  %v8049_v8 = vpop.f32.mrb[4].mxu1 }
 0x410   :  { %v8222_v36 = vadd.f32 %v15154_v44, %v8049_v8  ;;  %v8051_v23 = vpop.f32.mrb[5].mxu1 }
 0x411   :  { %v8412_v39 = vcombine.low %v8316_v40, %v8317_v14  ;;  %v11529_v42 = vcombine.low %v8317_v14, %v8317_v14  ;;  %v8413_v48 = vcombine.high %v8316_v40, %v8317_v14  ;;  %v8223_v47 = vadd.f32 %v15156_v54, %v8051_v23  ;;  %v8053_v45 = vpop.f32.mrb[6].mxu1 }
 0x412   :  { %v8270_v28 = vmul.f32 0.2, %v8222_v36  ;;  %v8055_v18 = vpop.f32.mrb[7].mxu1  ;;  %v8224_v19 = vadd.f32 %v15154_v44, %v8053_v45 }
 0x413   :  { %v15166_v53 = vpack.c.bf16 %v8412_v39, %v8314_v50  ;;  %v15168_v3 = vpack.c.bf16 %v11529_v42, %v8315_v27  ;;  %v8271_v13 = vmul.f32 0.2, %v8223_v47  ;;  %v8225_v20 = vadd.f32 %v15156_v54, %v8055_v18 }
 0x414   :  { %v8318_v52 = vmax.f32 %v8222_v36, %v8270_v28  ;;  %v8272_v6 = vmul.f32 0.2, %v8224_v19 }
 0x415   :  { %v8319_v24 = vmax.f32 %v8223_v47, %v8271_v13  ;;  %v8273_v57 = vmul.f32 0.2, %v8225_v20 }
 0x416   :  { %v11530_v22 = vcombine.low %v8413_v48, %v8318_v52  ;;  %v8320_v62 = vmax.f32 %v8224_v19, %v8272_v6 }
 0x417   :  { %v8059_v25 = vpop.f32.mrb[8].mxu1  ;;  %v8414_v55 = vcombine.low %v8318_v52, %v8319_v24  ;;  %v8415_v38 = vcombine.high %v8318_v52, %v8319_v24  ;;  %v11532_v56 = vcombine.high %v8319_v24, %v8319_v24  ;;  %v8321_v5 = vmax.f32 %v8225_v20, %v8273_v57 }
 0x418   :  { %v8061_v43 = vpop.f32.mrb[9].mxu1  ;;  %v8226_v31 = vadd.f32 %v15154_v44, %v8059_v25 }
 0x419   :  { %v8227_v60 = vadd.f32 %v15156_v54, %v8061_v43  ;;  %v8063_v15 = vpop.f32.mrb[10].mxu1  ;;  %v11531_v35 = vcombine.high %v8317_v14, %v8414_v55  ;;  %v15174_v37 = vpack.c.bf16 %v8415_v38, %v11530_v22 }
 0x41a   :  { %v8228_v12 = vadd.f32 %v15154_v44, %v8063_v15  ;;  %v8065_v10 = vpop.f32.mrb[11].mxu1  ;;  %v8274_v58 = vmul.f32 0.2, %v8226_v31 }
 0x41b   :  { %v8275_v63 = vmul.f32 0.2, %v8227_v60  ;;  %v8229_v61 = vadd.f32 %v15156_v54, %v8065_v10  ;;  %v15178_v17 = vpack.c.bf16 %v11532_v56, %v11531_v35 }
 0x41c   :  { %v8322_v0 = vmax.f32 %v8226_v31, %v8274_v58  ;;  %v8276_v51 = vmul.f32 0.2, %v8228_v12 }
 0x41d   :  { %v8323_v34 = vmax.f32 %v8227_v60, %v8275_v63  ;;  %v8277_v26 = vmul.f32 0.2, %v8229_v61 }
 0x41e   :  { %v8324_v41 = vmax.f32 %v8228_v12, %v8276_v51 }
 0x41f   :  { %v8418_v16 = vcombine.low %v8322_v0, %v8323_v34  ;;  %v11533_v59 = vcombine.low %v8323_v34, %v8323_v34  ;;  %v8069_v29 = vpop.f32.mrb[12].mxu1  ;;  %v8419_v7 = vcombine.high %v8322_v0, %v8323_v34  ;;  %v8325_v4 = vmax.f32 %v8229_v61, %v8277_v26 }
 0x420   :  { %v8071_v1 = vpop.f32.mrb[13].mxu1  ;;  %v8230_v9 = vadd.f32 %v15154_v44, %v8069_v29 }
 0x421   :  { %v15180_v21 = vpack.c.bf16 %v8418_v16, %v8320_v62  ;;  %v15182_v30 = vpack.c.bf16 %v11533_v59, %v8321_v5  ;;  %v8073_v32 = vpop.f32.mrb[14].mxu1  ;;  %v11534_v2 = vcombine.low %v8419_v7, %v8324_v41  ;;  %v8420_v33 = vcombine.low %v8324_v41, %v8325_v4 }
 0x422   :  { %v8075_v46 = vpop.f32.mrb[15].mxu1  ;;  %v8232_v11 = vadd.f32 %v15154_v44, %v8073_v32  ;;  %v8421_v40 = vcombine.high %v8324_v41, %v8325_v4  ;;  %v8231_v14 = vadd.f32 %v15156_v54, %v8071_v1  ;;  %v11536_v50 = vcombine.high %v8325_v4, %v8325_v4 }
 0x423   :  { %v11535_v8 = vcombine.high %v8323_v34, %v8420_v33  ;;  %v8233_v23 = vadd.f32 %v15156_v54, %v8075_v46  ;;  %v8278_v42 = vmul.f32 0.2, %v8230_v9 }
 0x424   :  { %v15187_v27 = vpack.c.bf16 %v8421_v40, %v11534_v2  ;;  %v8280_v36 = vmul.f32 0.2, %v8232_v11  ;;  %v8279_v48 = vmul.f32 0.2, %v8231_v14 }
 0x425   :  { %v15190_v39 = vpack.c.bf16 %v11536_v50, %v11535_v8  ;;  %v8281_v28 = vmul.f32 0.2, %v8233_v23  ;;  %v8326_v20 = vmax.f32 %v8230_v9, %v8278_v42  ;;  %v15209_v8 = vunpack.c.l.b16 %v15168_v3 }
 0x426   :  { %v8328_v45 = vmax.f32 %v8232_v11, %v8280_v36  ;;  %v8327_v25 = vmax.f32 %v8231_v14, %v8279_v48 }
 0x427   :  { %17115 = vst [vmem:[#allocation9_spill] sm:$0xff] %v15190_v39  ;;  %v8079_v47 = vpop.f32.mrb[16].mxu1  ;;  %v8329_v52 = vmax.f32 %v8233_v23, %v8281_v28  ;;  %17120 = vst [vmem:[#allocation14_spill] sm:$0xff] %v15209_v8 }
 0x428   :  { %v8081_v18 = vpop.f32.mrb[17].mxu1  ;;  %v8234_v19 = vadd.f32 %v15154_v44, %v8079_v47 }
 0x429   :  { %v8083_v13 = vpop.f32.mrb[18].mxu1  ;;  %v8235_v22 = vadd.f32 %v15156_v54, %v8081_v18  ;;  %v8424_v55 = vcombine.low %v8328_v45, %v8329_v52  ;;  %v11537_v38 = vcombine.low %v8329_v52, %v8329_v52  ;;  %v8425_v6 = vcombine.high %v8328_v45, %v8329_v52 }
 0x42a   :  { %v8085_v24 = vpop.f32.mrb[19].mxu1  ;;  %v8282_v43 = vmul.f32 0.2, %v8234_v19  ;;  %v8236_v60 = vadd.f32 %v15154_v44, %v8083_v13  ;;  %v15213_v13 = vunpack.c.h.b16 %v15166_v53 }
 0x42b   :  { %v8283_v31 = vmul.f32 0.2, %v8235_v22  ;;  %v15195_v15 = vpack.c.bf16 %v8424_v55, %v8326_v20  ;;  %v15197_v35 = vpack.c.bf16 %v11537_v38, %v8327_v25  ;;  %v8237_v12 = vadd.f32 %v15156_v54, %v8085_v24 }
 0x42c   :  { %v8330_v56 = vmax.f32 %v8234_v19, %v8282_v43  ;;  %v8284_v26 = vmul.f32 0.2, %v8236_v60  ;;  %17121 = vst [vmem:[#allocation15_spill] sm:$0xff] %v15213_v13  ;;  %v15217_v20 = vunpack.c.h.b16 %v15168_v3 }
 0x42d   :  { %17116 = vst [vmem:[#allocation10_spill] sm:$0xff] %v15195_v15  ;;  %17117 = vst [vmem:[#allocation11_spill] sm:$0xff] %v15197_v35  ;;  %v8331_v57 = vmax.f32 %v8235_v22, %v8283_v31  ;;  %v8285_v5 = vmul.f32 0.2, %v8237_v12 }
 0x42e   :  { %v11538_v0 = vcombine.low %v8425_v6, %v8330_v56  ;;  %v8332_v50 = vmax.f32 %v8236_v60, %v8284_v26  ;;  %17122 = vst [vmem:[#allocation16_spill] sm:$0xff] %v15217_v20 }
 0x42f   :  { %v8089_v10 = vpop.f32.mrb[20].mxu1  ;;  %v8426_v34 = vcombine.low %v8330_v56, %v8331_v57  ;;  %v8427_v51 = vcombine.high %v8330_v56, %v8331_v57  ;;  %v11540_v41 = vcombine.high %v8331_v57, %v8331_v57  ;;  %v8333_v36 = vmax.f32 %v8237_v12, %v8285_v5 }
 0x430   :  { %v8238_v58 = vadd.f32 %v15154_v44, %v8089_v10  ;;  %v8091_v63 = vpop.f32.mrb[21].mxu1  ;;  %v15226_v56 = vunpack.c.l.b16 %v15166_v53 }
 0x431   :  { %v8093_v61 = vpop.f32.mrb[22].mxu1  ;;  %v8239_v59 = vadd.f32 %v15156_v54, %v8091_v63  ;;  %v11539_v1 = vcombine.high %v8329_v52, %v8426_v34  ;;  %v15203_v7 = vpack.c.bf16 %v8427_v51, %v11538_v0  ;;  %v10543_v63 = vrot.slane %v15213_v13, 1 }
 0x432   :  { %v8095_v62 = vpop.f32.mrb[23].mxu1  ;;  %v8286_v16 = vmul.f32 0.2, %v8238_v58  ;;  %v8240_v29 = vadd.f32 %v15154_v44, %v8093_v61  ;;  %17125 = vst [vmem:[#allocation22_spill] sm:$0xff] %v15226_v56  ;;  %v10557_v61 = vrot.slane %v15217_v20, 1 }
 0x433   :  { %17118 = vst [vmem:[#allocation12_spill] sm:$0xff] %v15203_v7  ;;  %v8241_v32 = vadd.f32 %v15156_v54, %v8095_v62  ;;  %v8287_v46 = vmul.f32 0.2, %v8239_v59  ;;  %v15206_v11 = vpack.c.bf16 %v11540_v41, %v11539_v1 }
 0x434   :  { %v8334_v4 = vmax.f32 %v8238_v58, %v8286_v16  ;;  %v8288_v9 = vmul.f32 0.2, %v8240_v29  ;;  %v8736_v16 = vrot.slane %v15209_v8, 1 }
 0x435   :  { %17119 = vst [vmem:[#allocation13_spill] sm:$0xff] %v15206_v11  ;;  %v8289_v2 = vmul.f32 0.2, %v8241_v32  ;;  %v8335_v33 = vmax.f32 %v8239_v59, %v8287_v46  ;;  %v15245_v46 = vunpack.c.h.b16 %v15178_v17 }
 0x436   :  { %v8336_v40 = vmax.f32 %v8240_v29, %v8288_v9 }
 0x437   :  { %v8099_v14 = vpop.f32.mrb[24].mxu1  ;;  %v8337_v23 = vmax.f32 %v8241_v32, %v8289_v2  ;;  %v8430_v48 = vcombine.low %v8334_v4, %v8335_v33  ;;  %v11541_v47 = vcombine.low %v8335_v33, %v8335_v33  ;;  %v8431_v45 = vcombine.high %v8334_v4, %v8335_v33  ;;  %17129 = vst [vmem:[#allocation28_spill] sm:$0xff] %v15245_v46 }
 0x438   :  { %v8101_v42 = vpop.f32.mrb[25].mxu1  ;;  %v8242_v28 = vadd.f32 %v15154_v44, %v8099_v14  ;;  %v15242_v4 = vunpack.c.h.b16 %v15174_v37 }
 0x439   :  { %v8103_v18 = vpop.f32.mrb[26].mxu1  ;;  %v8432_v52 = vcombine.low %v8336_v40, %v8337_v23  ;;  %v8433_v19 = vcombine.high %v8336_v40, %v8337_v23  ;;  %v8243_v22 = vadd.f32 %v15156_v54, %v8101_v42  ;;  %v15219_v25 = vpack.c.bf16 %v8430_v48, %v8332_v50 }
 0x43a   :  { %v8105_v24 = vpop.f32.mrb[27].mxu1  ;;  %v15221_v55 = vpack.c.bf16 %v11541_v47, %v8333_v36  ;;  %v11542_v38 = vcombine.low %v8431_v45, %v8336_v40  ;;  %v11544_v6 = vcombine.high %v8337_v23, %v8337_v23  ;;  %v8244_v31 = vadd.f32 %v15154_v44, %v8103_v18  ;;  %17128 = vst [vmem:[#allocation29_spill] sm:$0xff] %v15242_v4 }
 0x43b   :  { %17123 = vst [vmem:[#allocation17_spill] sm:$0xff] %v15219_v25  ;;  %v11543_v43 = vcombine.high %v8335_v33, %v8432_v52  ;;  %v8245_v60 = vadd.f32 %v15156_v54, %v8105_v24  ;;  %v8290_v12 = vmul.f32 0.2, %v8242_v28  ;;  %v8291_v57 = vmul.f32 0.2, %v8243_v22 }
 0x43c   :  { %17124 = vst [vmem:[#allocation20_spill] sm:$0xff] %v15221_v55  ;;  %v15228_v10 = vpack.c.bf16 %v8433_v19, %v11542_v38  ;;  %v8292_v58 = vmul.f32 0.2, %v8244_v31  ;;  %v15248_v23 = vunpack.c.l.b16 %v15174_v37  ;;  %v15253_v45 = vunpack.c.l.b16 %v15178_v17 }
 0x43d   :  { %v15230_v3 = vpack.c.bf16 %v11544_v6, %v11543_v43  ;;  %v8293_v34 = vmul.f32 0.2, %v8245_v60  ;;  %v8338_v9 = vmax.f32 %v8242_v28, %v8290_v12  ;;  %v8339_v2 = vmax.f32 %v8243_v22, %v8291_v57 }
 0x43e   :  { %17126 = vst [vmem:[#allocation30_spill] sm:$0xff] %v15228_v10  ;;  %v8340_v59 = vmax.f32 %v8244_v31, %v8292_v58  ;;  %17130 = vst [vmem:[#allocation35_spill] sm:$0xff] %v15248_v23  ;;  %v15262_v22 = vsel %vm8716_vm0, %v15242_v4, %v10543_v63  ;;  %v15268_v17 = vsel %vm8716_vm0, %v15245_v46, %v10557_v61  ;;  %v15279_v61 = vunpack.c.h.b16 %v15180_v21 }
 0x43f   :  { %17127 = vst [vmem:[#allocation25_spill] sm:$0xff] %v15230_v3  ;;  %v8109_v51 = vpop.f32.mrb[28].mxu1  ;;  %v8341_v29 = vmax.f32 %v8245_v60, %v8293_v34  ;;  %17131 = vst [vmem:[#allocation34_spill] sm:$0xff] %v15253_v45 }
 0x440   :  { %v8111_v5 = vpop.f32.mrb[29].mxu1  ;;  %v8246_v1 = vadd.f32 %v15154_v44, %v8109_v51  ;;  %17134 = vst [vmem:[#allocation39_spill] sm:$0xff] %v15262_v22  ;;  %17135 = vst [vmem:[#allocation38_spill] sm:$0xff] %v15268_v17 }
 0x441   :  { %v8247_v41 = vadd.f32 %v15156_v54, %v8111_v5  ;;  %v8113_v32 = vpop.f32.mrb[30].mxu1  ;;  %v8436_v40 = vcombine.low %v8340_v59, %v8341_v29  ;;  %v11545_v14 = vcombine.low %v8341_v29, %v8341_v29  ;;  %v8437_v36 = vcombine.high %v8340_v59, %v8341_v29  ;;  %17137 = vst [vmem:[#allocation42_spill] sm:$0xff] %v15279_v61 }
 0x442   :  { %v8115_v33 = vpop.f32.mrb[31].mxu1  ;;  %v8294_v50 = vmul.f32 0.2, %v8246_v1  ;;  %v8248_v6 = vadd.f32 %v15154_v44, %v8113_v32  ;;  %v15276_v5 = vunpack.c.l.b16 %v15182_v30 }
 0x443   :  { %v8295_v42 = vmul.f32 0.2, %v8247_v41  ;;  %v15255_v18 = vpack.c.bf16 %v8436_v40, %v8338_v9  ;;  %v15257_v28 = vpack.c.bf16 %v11545_v14, %v8339_v2  ;;  %v8249_v58 = vadd.f32 %v15156_v54, %v8115_v33 }
 0x444   :  { %v8342_v52 = vmax.f32 %v8246_v1, %v8294_v50  ;;  %17136 = vst [vmem:[#allocation41_spill] sm:$0xff] %v15276_v5  ;;  %v15282_v1 = vunpack.c.h.b16 %v15182_v30  ;;  %v15287_v33 = vunpack.c.l.b16 %v15190_v39  ;;  %v8296_v30 = vmul.f32 0.2, %v8248_v6 }
 0x445   :  { %17132 = vst [vmem:[#allocation36_spill] sm:$0xff] %v15255_v18  ;;  %17133 = vst [vmem:[#allocation37_spill] sm:$0xff] %v15257_v28  ;;  %v8343_v24 = vmax.f32 %v8247_v41, %v8295_v42  ;;  %v8738_v0 = vrot.slane %v15276_v5, 7 }
 0x446   :  { %v11546_v60 = vcombine.low %v8437_v36, %v8342_v52  ;;  %17138 = vst [vmem:[#allocation40_spill] sm:$0xff] %v15282_v1  ;;  %v15293_v36 = vunpack.c.l.b16 %v15197_v35  ;;  %v8344_v34 = vmax.f32 %v8248_v6, %v8296_v30  ;;  %v8740_v19 = vrot.slane %v15287_v33, 6 }
 0x447   :  { %v8119_v31 = vpop.f32.mrb[32].mxu1  ;;  %v8438_v12 = vcombine.low %v8342_v52, %v8343_v24  ;;  %v8439_v57 = vcombine.high %v8342_v52, %v8343_v24  ;;  %v11548_v32 = vcombine.high %v8343_v24, %v8343_v24  ;;  %v15298_v52 = vunpack.c.l.b16 %v15180_v21 }
 0x448   :  { %v8121_v63 = vpop.f32.mrb[33].mxu1  ;;  %v8250_v40 = vadd.f32 %v15154_v44, %v8119_v31  ;;  %v8737_v21 = vsel %vm8716_vm0, %v15253_v45, %v8736_v16  ;;  %v15317_v16 = vunpack.c.l.b16 %v15221_v55  ;;  %v15321_v30 = vunpack.c.l.b16 %v15230_v3 }
 0x449   :  { %v8123_v59 = vpop.f32.mrb[34].mxu1  ;;  %v11547_v41 = vcombine.high %v8341_v29, %v8438_v12  ;;  %v15284_v9 = vpack.c.bf16 %v8439_v57, %v11546_v60  ;;  %v8251_v14 = vadd.f32 %v15156_v54, %v8121_v63  ;;  %v8297_v29 = vmul.f32 0.2, %v8249_v58  ;;  %17141 = vst [vmem:[#allocation50_spill] sm:$0xff] %v15298_v52 }
 0x44a   :  { %v8125_v2 = vpop.f32.mrb[35].mxu1  ;;  %v8252_v50 = vadd.f32 %v15154_v44, %v8123_v59  ;;  %v8298_v24 = vmul.f32 0.2, %v8250_v40  ;;  %v15303_v63 = vunpack.c.l.b16 %v15187_v27  ;;  %v8742_v57 = vrot.slane %v15293_v36, 5  ;;  %17144 = vst [vmem:[#allocation51_spill] sm:$0xff] %v15317_v16  ;;  %17145 = vst [vmem:[#allocation54_spill] sm:$0xff] %v15321_v30 }
 0x44b   :  { %17139 = vst [vmem:[#allocation46_spill] sm:$0xff] %v15284_v9  ;;  %v15295_v42 = vpack.c.bf16 %v11548_v32, %v11547_v41  ;;  %v8299_v60 = vmul.f32 0.2, %v8251_v14  ;;  %v8253_v59 = vadd.f32 %v15156_v54, %v8125_v2  ;;  %v8345_v26 = vmax.f32 %v8249_v58, %v8297_v29 }
 0x44c   :  { %v8300_v12 = vmul.f32 0.2, %v8252_v50  ;;  %17142 = vst [vmem:[#allocation49_spill] sm:$0xff] %v15303_v63  ;;  %v8346_v41 = vmax.f32 %v8250_v40, %v8298_v24  ;;  %v15314_v24 = vunpack.c.l.b16 %v15206_v11  ;;  %v8739_v62 = vsel %vm7514_vm9, %v8738_v0, %v8737_v21 }
 0x44d   :  { %17140 = vst [vmem:[#allocation45_spill] sm:$0xff] %v15295_v42  ;;  %v8347_v32 = vmax.f32 %v8251_v14, %v8299_v60  ;;  %v8301_v60 = vmul.f32 0.2, %v8253_v59  ;;  %v8748_v0 = vrot.slane %v15321_v30, 2  ;;  %v17153_v3 = vrot.slane %v15209_v8, 3 }
 0x44e   :  { %v8348_v2 = vmax.f32 %v8252_v50, %v8300_v12  ;;  %17143 = vst [vmem:[#allocation52_spill] sm:$0xff] %v15314_v24  ;;  %v15328_v12 = vunpack.c.l.b16 %v15195_v15 }
 0x44f   :  { %v8129_v37 = vpop.f32.mrb[36].mxu1  ;;  %v8442_v38 = vcombine.low %v8346_v41, %v8347_v32  ;;  %v11549_v43 = vcombine.low %v8347_v32, %v8347_v32  ;;  %v8443_v40 = vcombine.high %v8346_v41, %v8347_v32  ;;  %v8349_v41 = vmax.f32 %v8253_v59, %v8301_v60 }
 0x450   :  { %v8131_v31 = vpop.f32.mrb[37].mxu1  ;;  %17148 = vst [vmem:[#allocation57_spill] sm:$0xff] %v15328_v12  ;;  %v8254_v51 = vadd.f32 %v15154_v44, %v8129_v37  ;;  %v8746_v37 = vrot.slane %v15317_v16, 3 }
 0x451   :  { %v8133_v14 = vpop.f32.mrb[38].mxu1  ;;  %v15323_v29 = vpack.c.bf16 %v8442_v38, %v8344_v34  ;;  %v15325_v53 = vpack.c.bf16 %v11549_v43, %v8345_v26  ;;  %v11550_v50 = vcombine.low %v8443_v40, %v8348_v2  ;;  %v8741_v38 = vsel %vm8722_vm1, %v8740_v19, %v8739_v62 }
 0x452   :  { %v8256_v6 = vadd.f32 %v15154_v44, %v8133_v14  ;;  %v8135_v58 = vpop.f32.mrb[39].mxu1  ;;  %v8255_v14 = vadd.f32 %v15156_v54, %v8131_v31  ;;  %v15336_v26 = vunpack.c.l.b16 %v15203_v7  ;;  %v8444_v43 = vcombine.low %v8348_v2, %v8349_v41 }
 0x453   :  { %17146 = vst [vmem:[#allocation53_spill] sm:$0xff] %v15323_v29  ;;  %17147 = vst [vmem:[#allocation56_spill] sm:$0xff] %v15325_v53  ;;  %v8257_v48 = vadd.f32 %v15156_v54, %v8135_v58  ;;  %v8445_v34 = vcombine.high %v8348_v2, %v8349_v41  ;;  %v8744_v40 = vrot.slane %v15314_v24, 4  ;;  %v8743_v59 = vsel %vm7516_vm11, %v8742_v57, %v8741_v38 }
 0x454   :  { %v8304_v47 = vmul.f32 0.2, %v8256_v6  ;;  %17149 = vst [vmem:[#allocation55_spill] sm:$0xff] %v15336_v26  ;;  %v9314_v31 = vrot.slane %v15253_v45, 2  ;;  %v11551_v21 = vcombine.high %v8347_v32, %v8444_v43  ;;  %v11552_v60 = vcombine.high %v8349_v41, %v8349_v41 }
 0x455   :  { %v15343_v58 = vpack.c.bf16 %v8445_v34, %v11550_v50  ;;  %v8302_v62 = vmul.f32 0.2, %v8254_v51  ;;  %v8303_v13 = vmul.f32 0.2, %v8255_v14  ;;  %v8305_v2 = vmul.f32 0.2, %v8257_v48 }
 0x456   :  { %v8352_v46 = vmax.f32 %v8256_v6, %v8304_v47  ;;  %v15347_v57 = vunpack.c.l.b16 %v15219_v25  ;;  %v15350_v38 = vunpack.c.l.b16 %v15228_v10  ;;  %v15352_v17 = vpack.c.bf16 %v11552_v60, %v11551_v21 }
 0x457   :  { %v8139_v4 = vpop.f32.mrb[40].mxu1  ;;  %17150 = vst [vmem:[#allocation60_spill] sm:$0xff] %v15343_v58  ;;  %v8745_v50 = vsel %vm8728_vm2, %v8744_v40, %v8743_v59  ;;  %v8353_v41 = vmax.f32 %v8257_v48, %v8305_v2  ;;  %v8350_v6 = vmax.f32 %v8254_v51, %v8302_v62  ;;  %v9315_v10 = vsel %vm8716_vm0, %v9314_v31, %v17153_v3 }
 0x458   :  { %v8141_v19 = vpop.f32.mrb[41].mxu1  ;;  %v8258_v20 = vadd.f32 %v15154_v44, %v8139_v4  ;;  %17151 = vst [vmem:[#allocation59_spill] sm:$0xff] %v15350_v38  ;;  %17152 = vst [vmem:[#allocation65_spill] sm:$0xff] %v15352_v17  ;;  %v8747_v47 = vsel %vm7518_vm13, %v8746_v37, %v8745_v50  ;;  %v9316_v21 = vrot.slane %v15276_v5, 1  ;;  %v8351_v60 = vmax.f32 %v8255_v14, %v8303_v13 }
 0x459   :  { %v8143_v22 = vpop.f32.mrb[42].mxu1  ;;  %v8259_v34 = vadd.f32 %v15156_v54, %v8141_v19  ;;  %v15358_v4 = vsel %vm8734_vm3, %v8748_v0, %v8747_v47  ;;  %v8448_v55 = vcombine.low %v8352_v46, %v8353_v41  ;;  %v11553_v25 = vcombine.low %v8353_v41, %v8353_v41 }
 0x45a   :  { %v8145_v32 = vpop.f32.mrb[43].mxu1  ;;  %v8306_v43 = vmul.f32 0.2, %v8258_v20  ;;  %v15365_v48 = vunpack.c.l.b16 %v15255_v18  ;;  %v15368_v59 = vunpack.c.l.b16 %v15257_v28  ;;  %v8449_v51 = vcombine.high %v8352_v46, %v8353_v41 }
 0x45b   :  { %v8260_v37 = vadd.f32 %v15154_v44, %v8143_v22  ;;  %v15371_v0 = vpack.c.bf16 %v8448_v55, %v8350_v6  ;;  %v15373_v62 = vpack.c.bf16 %v11553_v25, %v8351_v60  ;;  %v8307_v3 = vmul.f32 0.2, %v8259_v34 }
 0x45c   :  { %v8354_v40 = vmax.f32 %v8258_v20, %v8306_v43  ;;  %17154 = vst [vmem:[#allocation63_spill] sm:$0xff] %v15365_v48  ;;  %17155 = vst [vmem:[#allocation64_spill] sm:$0xff] %v15368_v59  ;;  %v8261_v31 = vadd.f32 %v15156_v54, %v8145_v32  ;;  %v15377_v14 = vunpack.c.l.b16 %v15284_v9  ;;  %v9317_v50 = vsel %vm7514_vm9, %v9316_v21, %v9315_v10 }
 0x45d   :  { %17156 = vst [vmem:[#allocation66_spill] sm:$0xff] %v15371_v0  ;;  %17157 = vst [vmem:[#allocation68_spill] sm:$0xff] %v15373_v62  ;;  %v15382_v46 = vunpack.c.l.b16 %v15295_v42  ;;  %v15385_v55 = vunpack.c.l.b16 %v15323_v29  ;;  %v15388_v25 = vunpack.c.l.b16 %v15325_v53  ;;  %v15391_v22 = vunpack.c.l.b16 %v15343_v58 }
 0x45e   :  { %17158 = vst [vmem:[#allocation73_spill] sm:$0xff] %v15377_v14  ;;  %v11554_v20 = vcombine.low %v8449_v51, %v8354_v40  ;;  %v15394_v43 = vunpack.c.l.b16 %v15352_v17  ;;  %v8355_v47 = vmax.f32 %v8259_v34, %v8307_v3  ;;  %v8308_v6 = vmul.f32 0.2, %v8260_v37 }
 0x45f   :  { %v8149_v13 = vpop.f32.mrb[44].mxu1  ;;  %17159 = vst [vmem:[#allocation69_spill] sm:$0xff] %v15382_v46  ;;  %17160 = vst [vmem:[#allocation71_spill] sm:$0xff] %v15385_v55  ;;  %v8309_v21 = vmul.f32 0.2, %v8261_v31  ;;  %v15400_v53 = vunpack.c.l.b16 %v15371_v0  ;;  %v8764_v9 = vrot.slane %v15368_v59, 1  ;;  %v15404_v18 = vunpack.c.l.b16 %v15373_v62 }
 0x460   :  { %v8262_v19 = vadd.f32 %v15154_v44, %v8149_v13  ;;  %v8151_v2 = vpop.f32.mrb[45].mxu1  ;;  %17161 = vst [vmem:[#allocation79_spill] sm:$0xff] %v15388_v25  ;;  %17162 = vst [vmem:[#allocation78_spill] sm:$0xff] %v15391_v22  ;;  %v8450_v58 = vcombine.low %v8354_v40, %v8355_v47  ;;  %v8451_v42 = vcombine.high %v8354_v40, %v8355_v47  ;;  %v9143_v1 = vrot.slane %v15394_v43, 7 }
 0x461   :  { %v8153_v32 = vpop.f32.mrb[46].mxu1  ;;  %17163 = vst [vmem:[#allocation80_spill] sm:$0xff] %v15394_v43  ;;  %v8263_v51 = vadd.f32 %v15156_v54, %v8151_v2  ;;  %17164 = vst [vmem:[#allocation82_spill] sm:$0xff] %v15400_v53  ;;  %v11556_v2 = vcombine.high %v8355_v47, %v8355_v47  ;;  %v8357_v40 = vmax.f32 %v8261_v31, %v8309_v21  ;;  %v9321_v47 = vrot.slane %v15314_v24, 6 }
 0x462   :  { %v8310_v60 = vmul.f32 0.2, %v8262_v19  ;;  %v8155_v10 = vpop.f32.mrb[47].mxu1  ;;  %v8264_v13 = vadd.f32 %v15154_v44, %v8153_v32  ;;  %17165 = vst [vmem:[#allocation81_spill] sm:$0xff] %v15404_v18  ;;  %v11555_v11 = vcombine.high %v8353_v41, %v8450_v58  ;;  %v15406_v7 = vpack.c.bf16 %v8451_v42, %v11554_v20 }
 0x463   :  { %v8265_v29 = vadd.f32 %v15156_v54, %v8155_v10  ;;  %v8311_v28 = vmul.f32 0.2, %v8263_v51  ;;  %v8356_v44 = vmax.f32 %v8260_v37, %v8308_v6 }
 0x464   :  { %v8358_v17 = vmax.f32 %v8262_v19, %v8310_v60  ;;  %v8312_v34 = vmul.f32 0.2, %v8264_v13  ;;  %v15408_v0 = vpack.c.bf16 %v11556_v2, %v11555_v11  ;;  %v8765_v19 = vsel %vm8716_vm0, %v15382_v46, %v8764_v9 }
 0x465   :  { %v8313_v3 = vmul.f32 0.2, %v8265_v29  ;;  %v8359_v54 = vmax.f32 %v8263_v51, %v8311_v28  ;;  %v8766_v60 = vrot.slane %v15388_v25, 7  ;;  %v8768_v28 = vrot.slane %v15394_v43, 6 }
 0x466   :  { %v8360_v32 = vmax.f32 %v8264_v13, %v8312_v34  ;;  %v15414_v58 = vunpack.c.l.b16 %v15408_v0  ;;  %v15426_v6 = vunpack.c.l.b16 %v15406_v7 }
 0x467   :  { %v8361_v10 = vmax.f32 %v8265_v29, %v8313_v3  ;;  %v8454_v35 = vcombine.low %v8358_v17, %v8359_v54  ;;  %v11557_v15 = vcombine.low %v8359_v54, %v8359_v54  ;;  %v8455_v62 = vcombine.high %v8358_v17, %v8359_v54 }
 0x468   :  { %v8770_v29 = vrot.slane %v15404_v18, 5  ;;  %v8772_v20 = vrot.slane %v15414_v58, 4  ;;  %v9319_v17 = vrot.slane %v15293_v36, 7  ;;  %17166 = vst [vmem:[#allocation87_spill] sm:$0xff] %v15426_v6 }
 0x469   :  { %v8456_v39 = vcombine.low %v8360_v32, %v8361_v10  ;;  %v8457_v42 = vcombine.high %v8360_v32, %v8361_v10  ;;  %v15418_v11 = vpack.c.bf16 %v8454_v35, %v8356_v44  ;;  %v15420_v41 = vpack.c.bf16 %v11557_v15, %v8357_v40 }
 0x46a   :  { %v11558_v37 = vcombine.low %v8455_v62, %v8360_v32  ;;  %v11560_v31 = vcombine.high %v8361_v10, %v8361_v10  ;;  %v8767_v35 = vsel %vm7514_vm9, %v8766_v60, %v8765_v19  ;;  %v9318_v15 = vsel %vm8722_vm1, %v15287_v33, %v9317_v50 }
 0x46b   :  { %v11559_v9 = vcombine.high %v8359_v54, %v8456_v39  ;;  %v15429_v21 = vunpack.c.l.b16 %v15420_v41  ;;  %v15435_v39 = vunpack.c.l.b16 %v15418_v11  ;;  %v8769_v13 = vsel %vm8722_vm1, %v8768_v28, %v8767_v35 }
 0x46c   :  { %v15437_v62 = vpack.c.bf16 %v8457_v42, %v11558_v37  ;;  %v8771_v34 = vsel %vm7516_vm11, %v8770_v29, %v8769_v13  ;;  %v9320_v2 = vsel %vm7516_vm11, %v9319_v17, %v9318_v15  ;;  %v9323_v44 = vrot.slane %v15317_v16, 5 }
 0x46d   :  { %17167 = vst [vmem:[#allocation18_spill] sm:$0xff] %v15429_v21  ;;  %v15439_v51 = vpack.c.bf16 %v11560_v31, %v11559_v9  ;;  %v8774_v3 = vrot.slane %v15429_v21, 3  ;;  %v8773_v32 = vsel %vm8728_vm2, %v8772_v20, %v8771_v34  ;;  %v9322_v10 = vsel %vm8728_vm2, %v9321_v47, %v9320_v2 }
 0x46e   :  { %17168 = vst [vmem:[#allocation19_spill] sm:$0xff] %v15437_v62  ;;  %v15447_v54 = vunpack.c.l.b16 %v15437_v62  ;;  %v9324_v19 = vsel %vm7518_vm13, %v9323_v44, %v9322_v10  ;;  %v9325_v60 = vrot.slane %v15321_v30, 4  ;;  %v9341_v42 = vrot.slane %v15368_v59, 3 }
 0x46f   :  { %v15450_v50 = vunpack.c.l.b16 %v15439_v51  ;;  %v8775_v40 = vsel %vm7518_vm13, %v8774_v3, %v8773_v32  ;;  %v9342_v29 = vrot.slane %v15382_v46, 2  ;;  %v9344_v37 = vrot.slane %v15388_v25, 1 }
 0x470   :  { %17169 = vst [vmem:[#allocation23_spill] sm:$0xff] %v15447_v54  ;;  %v9347_v9 = vrot.slane %v15404_v18, 7  ;;  %v9326_v31 = vsel %vm8734_vm3, %v9325_v60, %v9324_v19  ;;  %v9349_v20 = vrot.slane %v15414_v58, 6  ;;  %v9351_v17 = vrot.slane %v15429_v21, 5 }
 0x471   :  { %v8776_v28 = vrot.slane %v15450_v50, 2  ;;  %v9353_v47 = vrot.slane %v15450_v50, 4  ;;  %v9343_v15 = vsel %vm8716_vm0, %v9342_v29, %v9341_v42  ;;  %v17170_v13 = vrot.slane %v15226_v56, 1 }
 0x472   :  { %v8718_v3 = vrot.slane %v15298_v52, 7  ;;  %v9345_v44 = vsel %vm7514_vm9, %v9344_v37, %v9343_v15  ;;  %v8721_v32 = vrot.slane %v15303_v63, 6  ;;  %v8724_v10 = vrot.slane %v15328_v12, 5 }
 0x473   :  { %v8777_v35 = vsel %vm8734_vm3, %v8776_v28, %v8775_v40  ;;  %v8717_v34 = vsel %vm8716_vm0, %v15248_v23, %v17170_v13  ;;  %v9346_v40 = vsel %vm8722_vm1, %v15394_v43, %v9345_v44  ;;  %v8727_v60 = vrot.slane %v15336_v26, 4 }
 0x474   :  { %v8779_v2 = vpack.c.b16 %v8777_v35, %v15358_v4  ;;  %v8720_v19 = vsel %vm7514_vm9, %v8718_v3, %v8717_v34  ;;  %v8730_v42 = vrot.slane %v15347_v57, 3  ;;  %v9348_v28 = vsel %vm7516_vm11, %v9347_v9, %v9346_v40 }
 0x475   :  { %v8723_v4 = vsel %vm8722_vm1, %v8721_v32, %v8720_v19  ;;  %v8733_v29 = vrot.slane %v15350_v38, 2  ;;  %v8750_v37 = vrot.slane %v15365_v48, 1  ;;  %v9350_v35 = vsel %vm8728_vm2, %v9349_v20, %v9348_v28 }
 0x476   :  { %11573 = vmatprep.mubr.msk.bf16.mxu0 %vm2528_vm15, %v8779_v2  ;;  %v8726_v15 = vsel %vm7516_vm11, %v8724_v10, %v8723_v4  ;;  %v8752_v13 = vrot.slane %v15385_v55, 7  ;;  %v8754_v34 = vrot.slane %v15391_v22, 6  ;;  %v9352_v3 = vsel %vm7518_vm13, %v9351_v17, %v9350_v35 }
 0x477   :  { %v8729_v2 = vsel %vm8728_vm2, %v8727_v60, %v8726_v15  ;;  %v8751_v9 = vsel %vm8716_vm0, %v15377_v14, %v8750_v37  ;;  %v8756_v44 = vrot.slane %v15400_v53, 5  ;;  %v9354_v32 = vsel %vm8734_vm3, %v9353_v47, %v9352_v3 }
 0x478   :  { %v8732_v40 = vsel %vm7518_vm13, %v8730_v42, %v8729_v2  ;;  %v8753_v20 = vsel %vm7514_vm9, %v8752_v13, %v8751_v9  ;;  %v8758_v10 = vrot.slane %v15426_v6, 4  ;;  %v9356_v19 = vpack.c.b16 %v9354_v32, %v9326_v31 }
 0x479   :  { %v8735_v28 = vsel %vm8734_vm3, %v8733_v29, %v8732_v40  ;;  %v8755_v17 = vsel %vm8722_vm1, %v8754_v34, %v8753_v20  ;;  %v8760_v60 = vrot.slane %v15435_v39, 3  ;;  %v8762_v37 = vrot.slane %v15447_v54, 2 }
 0x47a   :  { %v8757_v4 = vsel %vm7516_vm11, %v8756_v44, %v8755_v17  ;;  %v9299_v35 = vrot.slane %v15226_v56, 3  ;;  %v9300_v47 = vrot.slane %v15248_v23, 2  ;;  %11612 = vmatprep.mubr.msk.bf16.mxu1 %vm2528_vm15, %v9356_v19  ;;  %v9302_v31 = vrot.slane %v15298_v52, 1  ;;  %v12140_v44 = vld [vmem:[#allocation2] sm:$0xff]  }
 0x47b   :  { %v8759_v42 = vsel %vm8728_vm2, %v8758_v10, %v8757_v4  ;;  %v9305_v29 = vrot.slane %v15328_v12, 7  ;;  %v9307_v15 = vrot.slane %v15336_v26, 6  ;;  %v9309_v3 = vrot.slane %v15347_v57, 5 }
 0x47c   :  { %v8761_v13 = vsel %vm7518_vm13, %v8760_v60, %v8759_v42  ;;  %v9301_v34 = vsel %vm8716_vm0, %v9300_v47, %v9299_v35  ;;  %v9311_v2 = vrot.slane %v15350_v38, 4  ;;  %v9327_v40 = vrot.slane %v15365_v48, 3 }
 0x47d   :  { %v8763_v9 = vsel %vm8734_vm3, %v8762_v37, %v8761_v13  ;;  %v9303_v32 = vsel %vm7514_vm9, %v9302_v31, %v9301_v34  ;;  %v9328_v20 = vrot.slane %v15377_v14, 2  ;;  %v9330_v17 = vrot.slane %v15385_v55, 1 }
 0x47e   :  { %v8778_v10 = vpack.c.b16 %v8763_v9, %v8735_v28  ;;  %v9304_v19 = vsel %vm8722_vm1, %v15303_v63, %v9303_v32  ;;  %v9333_v60 = vrot.slane %v15400_v53, 7  ;;  %v9335_v37 = vrot.slane %v15426_v6, 6 }
 0x47f   :  { %v9306_v4 = vsel %vm7516_vm11, %v9305_v29, %v9304_v19  ;;  %v9329_v35 = vsel %vm8716_vm0, %v9328_v20, %v9327_v40  ;;  %v9337_v47 = vrot.slane %v15435_v39, 5  ;;  %v9339_v31 = vrot.slane %v15447_v54, 4  ;;  %v12142_v40 = vld [vmem:[#allocation2 + $0x8] sm:$0xff]  }
 0x480   :  { %8889 = vmatmul.mubr.bf16.vlgmr.msra.gmra.mrb[28].mxu0 %v8778_v10  ;;  %v9308_v42 = vsel %vm8728_vm2, %v9307_v15, %v9306_v4  ;;  %v9331_v28 = vsel %vm7514_vm9, %v9330_v17, %v9329_v35  ;;  %v8911_v13 = vrot.slane %v15253_v45, 7  ;;  %v8913_v9 = vrot.slane %v15276_v5, 6 }
 0x481   :  { %9032 = vmatpush1.bf16.msra.mxu0 %v12140_v44  ;;  %v9310_v34 = vsel %vm7518_vm13, %v9309_v3, %v9308_v42  ;;  %v9332_v29 = vsel %vm8722_vm1, %v15391_v22, %v9331_v28  ;;  %v8915_v32 = vrot.slane %v15287_v33, 5  ;;  %v8917_v4 = vrot.slane %v15293_v36, 4 }
 0x482   :  { %v9334_v10 = vsel %vm7516_vm11, %v9333_v60, %v9332_v29  ;;  %v8912_v19 = vsel %vm8716_vm0, %v8911_v13, %v15209_v8  ;;  %9033 = vmatprep.subr.bf16.mxu0 %v17058_v49  ;;  %v9312_v3 = vsel %vm8734_vm3, %v9311_v2, %v9310_v34  ;;  %v8919_v42 = vrot.slane %v15314_v24, 3  ;;  %v12141_v29 = vld [vmem:[#allocation2 + $0x1e0] sm:$0xff]   ;;  %v12144_v34 = vld [vmem:[#allocation2 + $0x10] sm:$0xff]  }
 0x483   :  { %v9336_v44 = vsel %vm8728_vm2, %v9335_v37, %v9334_v10  ;;  %v8914_v17 = vsel %vm7514_vm9, %v8913_v9, %v8912_v19  ;;  %v8921_v28 = vrot.slane %v15317_v16, 2  ;;  %v8939_v60 = vrot.slane %v15382_v46, 7 }
 0x484   :  { %v9338_v35 = vsel %vm7518_vm13, %v9337_v47, %v9336_v44  ;;  %v8916_v20 = vsel %vm8722_vm1, %v8915_v32, %v8914_v17  ;;  %v8941_v2 = vrot.slane %v15388_v25, 6  ;;  %v8943_v37 = vrot.slane %v15394_v43, 5 }
 0x485   :  { %v9340_v13 = vsel %vm8734_vm3, %v9339_v31, %v9338_v35  ;;  %9034 = vmatpush1.bf16.msra.mxu0 %v12142_v40  ;;  %v8923_v47 = vrot.slane %v15321_v30, 1  ;;  %v8940_v10 = vsel %vm8716_vm0, %v8939_v60, %v15368_v59  ;;  %v8945_v19 = vrot.slane %v15404_v18, 4  ;;  %v12146_v40 = vld [vmem:[#allocation2 + $0x18] sm:$0xff]  }
 0x486   :  { %v9355_v9 = vpack.c.b16 %v9340_v13, %v9312_v3  ;;  %9035 = vmatprep.subr.bf16.mxu0 %v17058_v49  ;;  %v8918_v31 = vsel %vm7516_vm11, %v8917_v4, %v8916_v20  ;;  %v8942_v32 = vsel %vm7514_vm9, %v8941_v2, %v8940_v10  ;;  %v8947_v44 = vrot.slane %v15414_v58, 3  ;;  %v12143_v10 = vld [vmem:[#allocation2 + $0x1e8] sm:$0xff]  }
 0x487   :  { %v8949_v17 = vrot.slane %v15429_v21, 2  ;;  %v8920_v3 = vsel %vm8728_vm2, %v8919_v42, %v8918_v31  ;;  %v8944_v35 = vsel %vm8722_vm1, %v8943_v37, %v8942_v32  ;;  %v8951_v60 = vrot.slane %v15450_v50, 1 }
 0x488   :  { %9466 = vmatmul.mubr.bf16.vlgmr.msra.gmra.mrb[48].mxu1 %v9355_v9  ;;  %v15569_v13 = vunpack.c.h.b16 %v15187_v27  ;;  %v8922_v20 = vsel %vm7518_vm13, %v8921_v28, %v8920_v3  ;;  %v8946_v4 = vsel %vm7516_vm11, %v8945_v19, %v8944_v35  ;;  %v9718_v2 = vrot.slane %v15253_v45, 4 }
 0x489   :  { %9838 = vmatpush1.bf16.msra.mxu1 %v12141_v29  ;;  %9036 = vmatpush1.bf16.msra.mxu0 %v12144_v34  ;;  %v8924_v9 = vsel %vm8734_vm3, %v8923_v47, %v8922_v20  ;;  %v8948_v42 = vsel %vm8728_vm2, %v8947_v44, %v8946_v4  ;;  %v9717_v37 = vrot.slane %v15209_v8, 5  ;;  %v9720_v31 = vrot.slane %v15276_v5, 3  ;;  %v12145_v4 = vld [vmem:[#allocation2 + $0x1f0] sm:$0xff]  }
 0x48a   :  { %17171 = vst [vmem:[#allocation27_spill] sm:$0xff] %v15569_v13  ;;  %9839 = vmatprep.subr.bf16.mxu1 %v17058_v49  ;;  %9037 = vmatprep.subr.bf16.mxu0 %v17058_v49  ;;  %v8950_v27 = vsel %vm7518_vm13, %v8949_v17, %v8948_v42  ;;  %v9722_v28 = vrot.slane %v15287_v33, 2  ;;  %v9745_v29 = vrot.slane %v15368_v59, 5  ;;  %v9746_v34 = vrot.slane %v15382_v46, 4  ;;  %v12148_v42 = vld [vmem:[#allocation2 + $0x20] sm:$0xff]  }
 0x48b   :  { %v8952_v47 = vsel %vm8734_vm3, %v8951_v60, %v8950_v27  ;;  %v9724_v19 = vrot.slane %v15293_v36, 1  ;;  %v9748_v32 = vrot.slane %v15388_v25, 3  ;;  %v9750_v44 = vrot.slane %v15394_v43, 2 }
 0x48c   :  { %v8954_v3 = vpack.c.b16 %v8952_v47, %v8924_v9  ;;  %v9719_v35 = vsel %vm8716_vm0, %v9718_v2, %v9717_v37  ;;  %v9747_v20 = vsel %vm8716_vm0, %v9746_v34, %v9745_v29  ;;  %v9752_v17 = vrot.slane %v15404_v18, 1 }
 0x48d   :  { %9840 = vmatpush1.bf16.msra.mxu1 %v12143_v10  ;;  %9038 = vmatpush1.bf16.msra.mxu0 %v12146_v40  ;;  %v9721_v15 = vsel %vm7514_vm9, %v9720_v31, %v9719_v35  ;;  %v9727_v60 = vrot.slane %v15317_v16, 7  ;;  %v9749_v27 = vsel %vm7514_vm9, %v9748_v32, %v9747_v20  ;;  %v9755_v61 = vrot.slane %v15429_v21, 7  ;;  %v17172_v31 = vld [vmem:[#allocation9_spill] sm:$0xff]  ;;  %v12150_v35 = vld [vmem:[#allocation2 + $0x28] sm:$0xff]  }
 0x48e   :  { %9841 = vmatprep.subr.bf16.mxu1 %v17058_v49  ;;  %9039 = vmatprep.subr.bf16.mxu0 %v17058_v49  ;;  %v9723_v2 = vsel %vm8722_vm1, %v9722_v28, %v9721_v15  ;;  %v9729_v10 = vrot.slane %v15321_v30, 6  ;;  %v9751_v40 = vsel %vm8722_vm1, %v9750_v44, %v9749_v27  ;;  %v9757_v9 = vrot.slane %v15450_v50, 6  ;;  %v12147_v44 = vld [vmem:[#allocation2 + $0x1f8] sm:$0xff]   ;;  %v17176_v32 = vld [vmem:[#allocation11_spill] sm:$0xff] }
 0x48f   :  { %11586 = vmatprep.mubr.msk.bf16.mxu0 %vm2528_vm15, %v8954_v3  ;;  %v15604_v29 = vunpack.c.h.b16 %v17172_v31  ;;  %v9725_v34 = vsel %vm7516_vm11, %v9724_v19, %v9723_v2  ;;  %v9753_v47 = vsel %vm7516_vm11, %v9752_v17, %v9751_v40  ;;  %v8897_v17 = vrot.slane %v15248_v23, 7  ;;  %v17180_v31 = vld [vmem:[#allocation13_spill] sm:$0xff]  ;;  %v17184_v3 = vld [vmem:[#allocation20_spill] sm:$0xff] }
 0x490   :  { %v9726_v15 = vsel %vm8728_vm2, %v15314_v24, %v9725_v34  ;;  %v9754_v28 = vsel %vm8728_vm2, %v15414_v58, %v9753_v47  ;;  %v8899_v27 = vrot.slane %v15298_v52, 6  ;;  %v15651_v47 = vunpack.c.h.b16 %v17180_v31 }
 0x491   :  { %17173 = vst [vmem:[#allocation21_spill] sm:$0xff] %v15604_v29  ;;  %9842 = vmatpush1.bf16.msra.mxu1 %v12145_v4  ;;  %9040 = vmatpush1.bf16.msra.mxu0 %v12148_v42  ;;  %v9728_v20 = vsel %vm7518_vm13, %v9727_v60, %v9726_v15  ;;  %v9756_v19 = vsel %vm7518_vm13, %v9755_v61, %v9754_v28  ;;  %v8925_v4 = vrot.slane %v15377_v14, 7  ;;  %v8927_v42 = vrot.slane %v15385_v55, 6  ;;  %v17174_v15 = vld [vmem:[#allocation10_spill] sm:$0xff]  ;;  %v12152_v60 = vld [vmem:[#allocation2 + $0x30] sm:$0xff]  }
 0x492   :  { %9843 = vmatprep.subr.bf16.mxu1 %v17058_v49  ;;  %9041 = vmatprep.subr.bf16.mxu0 %v17058_v49  ;;  %v9730_v2 = vsel %vm8734_vm3, %v9729_v10, %v9728_v20  ;;  %v9758_v40 = vsel %vm8734_vm3, %v9757_v9, %v9756_v19  ;;  %v15629_v28 = vunpack.c.h.b16 %v17174_v15  ;;  %v15632_v10 = vunpack.c.h.b16 %v17176_v32  ;;  %v17178_v9 = vld [vmem:[#allocation12_spill] sm:$0xff]  ;;  %v12149_v19 = vld [vmem:[#allocation2 + $0x200] sm:$0xff]   ;;  %17181 = vst [vmem:[#allocation26_spill] sm:$0xff] %v15651_v47 }
 0x493   :  { %v9760_v34 = vpack.c.b16 %v9758_v40, %v9730_v2  ;;  %v15635_v20 = vunpack.c.h.b16 %v17178_v9  ;;  %v8898_v2 = vsel %vm8716_vm0, %v8897_v17, %v15226_v56  ;;  %v8901_v40 = vrot.slane %v15303_v63, 5  ;;  %v17182_v17 = vld [vmem:[#allocation17_spill] sm:$0xff] }
 0x494   :  { %17175 = vst [vmem:[#allocation24_spill] sm:$0xff] %v15629_v28  ;;  %17177 = vst [vmem:[#allocation76_spill] sm:$0xff] %v15632_v10  ;;  %v8926_v32 = vsel %vm8716_vm0, %v8925_v4, %v15365_v48  ;;  %v8929_v15 = vrot.slane %v15391_v22, 5  ;;  %v8931_v9 = vrot.slane %v15400_v53, 4  ;;  %v15654_v37 = vunpack.c.h.b16 %v17182_v17  ;;  %v12160_v10 = vld [vmem:[#allocation2 + $0x50] sm:$0xff]  }
 0x495   :  { %17179 = vst [vmem:[#allocation32_spill] sm:$0xff] %v15635_v20  ;;  %9844 = vmatpush1.bf16.msra.mxu1 %v12147_v44  ;;  %9042 = vmatpush1.bf16.msra.mxu0 %v12150_v35  ;;  %v8900_v44 = vsel %vm7514_vm9, %v8899_v27, %v8898_v2  ;;  %v8903_v35 = vrot.slane %v15328_v12, 4  ;;  %v15657_v4 = vunpack.c.h.b16 %v17184_v3  ;;  %v8933_v61 = vrot.slane %v15426_v6, 3  ;;  %v17186_v20 = vld [vmem:[#allocation30_spill] sm:$0xff]  ;;  %v17188_v27 = vld [vmem:[#allocation25_spill] sm:$0xff] }
 0x496   :  { %11638 = vmatprep.mubr.msk.bf16.mxu1 %vm2528_vm15, %v9760_v34  ;;  %9845 = vmatprep.subr.bf16.mxu1 %v17058_v49  ;;  %v8928_v34 = vsel %vm7514_vm9, %v8927_v42, %v8926_v32  ;;  %17183 = vst [vmem:[#allocation43_spill] sm:$0xff] %v15654_v37  ;;  %v15661_v13 = vunpack.c.h.b16 %v17186_v20  ;;  %v15664_v2 = vunpack.c.h.b16 %v17188_v27  ;;  %v12151_v42 = vld [vmem:[#allocation2 + $0x208] sm:$0xff]   ;;  %v12154_v32 = vld [vmem:[#allocation2 + $0x38] sm:$0xff]   ;;  %v8905_v31 = vrot.slane %v15336_v26, 3 }
 0x497   :  { %9043 = vmatprep.subr.bf16.mxu0 %v17058_v49  ;;  %17185 = vst [vmem:[#allocation61_spill] sm:$0xff] %v15657_v4  ;;  %v8935_v17 = vrot.slane %v15435_v39, 2  ;;  %v8902_v3 = vsel %vm8722_vm1, %v8901_v40, %v8900_v44  ;;  %v8907_v20 = vrot.slane %v15347_v57, 2  ;;  %v9704_v27 = vrot.slane %v15248_v23, 4 }
 0x498   :  { %17187 = vst [vmem:[#allocation31_spill] sm:$0xff] %v15661_v13  ;;  %17189 = vst [vmem:[#allocation33_spill] sm:$0xff] %v15664_v2  ;;  %v8930_v13 = vsel %vm8722_vm1, %v8929_v15, %v8928_v34  ;;  %v9706_v62 = vrot.slane %v15298_v52, 3  ;;  %v8937_v4 = vrot.slane %v15447_v54, 1  ;;  %v9703_v40 = vrot.slane %v15226_v56, 5  ;;  %v12153_v15 = vld [vmem:[#allocation2 + $0x210] sm:$0xff]  }
 0x499   :  { %9846 = vmatpush1.bf16.msra.mxu1 %v12149_v19  ;;  %9044 = vmatpush1.bf16.msra.mxu0 %v12152_v60  ;;  %v17190_v19 = vld [vmem:[#allocation36_spill] sm:$0xff]  ;;  %v8904_v60 = vsel %vm7516_vm11, %v8903_v35, %v8902_v3  ;;  %v8932_v28 = vsel %vm7516_vm11, %v8931_v9, %v8930_v13  ;;  %v9732_v44 = vrot.slane %v15377_v14, 4  ;;  %v12156_v34 = vld [vmem:[#allocation2 + $0x40] sm:$0xff]   ;;  %v8909_v35 = vrot.slane %v15350_v38, 1  ;;  %v17192_v3 = vld [vmem:[#allocation37_spill] sm:$0xff] }
 0x49a   :  { %9847 = vmatprep.subr.bf16.mxu1 %v17058_v49  ;;  %9045 = vmatprep.subr.bf16.mxu0 %v17058_v49  ;;  %v15675_v37 = vunpack.c.h.b16 %v17190_v19  ;;  %v8934_v2 = vsel %vm8728_vm2, %v8933_v61, %v8932_v28  ;;  %v8906_v19 = vsel %vm8728_vm2, %v8905_v31, %v8904_v60  ;;  %v9734_v9 = vrot.slane %v15385_v55, 3  ;;  %v12158_v60 = vld [vmem:[#allocation2 + $0x48] sm:$0xff]  }
 0x49b   :  { %v8936_v13 = vsel %vm7518_vm13, %v8935_v17, %v8934_v2  ;;  %v8908_v61 = vsel %vm7518_vm13, %v8907_v20, %v8906_v19  ;;  %v9705_v28 = vsel %vm8716_vm0, %v9704_v27, %v9703_v40  ;;  %v15695_v31 = vunpack.c.h.b16 %v17192_v3  ;;  %v17194_v19 = vld [vmem:[#allocation46_spill] sm:$0xff]  ;;  %v12155_v3 = vld [vmem:[#allocation2 + $0x218] sm:$0xff]  }
 0x49c   :  { %17191 = vst [vmem:[#allocation48_spill] sm:$0xff] %v15675_v37  ;;  %v9707_v2 = vsel %vm7514_vm9, %v9706_v62, %v9705_v28  ;;  %v9710_v17 = vrot.slane %v15328_v12, 1  ;;  %v15701_v47 = vsel %vm8734_vm3, %v8937_v4, %v8936_v13  ;;  %v9736_v27 = vrot.slane %v15391_v22, 2  ;;  %v12157_v13 = vld [vmem:[#allocation2 + $0x220] sm:$0xff]  }
 0x49d   :  { %9848 = vmatpush1.bf16.msra.mxu1 %v12151_v42  ;;  %9046 = vmatpush1.bf16.msra.mxu0 %v12154_v32  ;;  %v9708_v42 = vrot.slane %v15303_v63, 2  ;;  %v9731_v32 = vrot.slane %v15365_v48, 5  ;;  %17193 = vst [vmem:[#allocation44_spill] sm:$0xff] %v15695_v31  ;;  %v9112_v40 = vrot.slane %v15253_v45, 1  ;;  %v15707_v29 = vunpack.c.h.b16 %v17194_v19 }
 0x49e   :  { %9849 = vmatprep.subr.bf16.mxu1 %v17058_v49  ;;  %9047 = vmatprep.subr.bf16.mxu0 %v17058_v49  ;;  %v15710_v62 = vsel %vm8734_vm3, %v8909_v35, %v8908_v61  ;;  %v9738_v4 = vrot.slane %v15400_v53, 1  ;;  %v9119_v19 = vrot.slane %v15314_v24, 5  ;;  %v10126_v55 = vrot.slane %v15287_v33, 4 }
 0x49f   :  { %v9733_v20 = vsel %vm8716_vm0, %v9732_v44, %v9731_v32  ;;  %17195 = vst [vmem:[#allocation58_spill] sm:$0xff] %v15707_v29  ;;  %v9709_v44 = vsel %vm8722_vm1, %v9708_v42, %v9707_v2  ;;  %v9140_v32 = vrot.slane %v15382_v46, 1  ;;  %v9123_v42 = vrot.slane %v15321_v30, 3 }
 0x4a0   :  { %v9735_v28 = vsel %vm7514_vm9, %v9734_v9, %v9733_v20  ;;  %v15723_v61 = vsel %vm7516_vm11, %v9710_v17, %v9709_v44  ;;  %v9117_v9 = vrot.slane %v15293_v36, 6  ;;  %v9139_v44 = vrot.slane %v15368_v59, 2 }
 0x4a1   :  { %9850 = vmatpush1.bf16.msra.mxu1 %v12153_v15  ;;  %9048 = vmatpush1.bf16.msra.mxu0 %v12156_v34  ;;  %v9111_v15 = vrot.slane %v15209_v8, 2  ;;  %v9115_v34 = vrot.slane %v15287_v33, 7  ;;  %v9737_v20 = vsel %vm8722_vm1, %v9736_v27, %v9735_v28 }
 0x4a2   :  { %9851 = vmatprep.subr.bf16.mxu1 %v17058_v49  ;;  %9049 = vmatprep.subr.bf16.mxu0 %v17058_v49  ;;  %v9739_v35 = vsel %vm7516_vm11, %v9738_v4, %v9737_v20  ;;  %v9121_v4 = vrot.slane %v15317_v16, 4  ;;  %v9147_v20 = vrot.slane %v15414_v58, 5 }
 0x4a3   :  { %v9113_v2 = vsel %vm8716_vm0, %v9112_v40, %v9111_v15  ;;  %v9740_v27 = vsel %vm8728_vm2, %v15426_v6, %v9739_v35  ;;  %v9141_v15 = vsel %vm8716_vm0, %v9140_v32, %v9139_v44  ;;  %v9149_v40 = vrot.slane %v15429_v21, 4 }
 0x4a4   :  { %v9114_v17 = vsel %vm7514_vm9, %v15276_v5, %v9113_v2  ;;  %v9142_v35 = vsel %vm7514_vm9, %v15388_v25, %v9141_v15  ;;  %v10150_v32 = vrot.slane %v15382_v46, 6  ;;  %v10152_v44 = vrot.slane %v15388_v25, 5 }
 0x4a5   :  { %9852 = vmatpush1.bf16.msra.mxu1 %v12155_v3  ;;  %9050 = vmatpush1.bf16.msra.mxu0 %v12158_v60  ;;  %v9116_v60 = vsel %vm8722_vm1, %v9115_v34, %v9114_v17  ;;  %v9145_v3 = vrot.slane %v15404_v18, 6  ;;  %v12159_v34 = vld [vmem:[#allocation2 + $0x228] sm:$0xff]   ;;  %v12162_v17 = vld [vmem:[#allocation2 + $0x58] sm:$0xff]   ;;  %v10121_v15 = vrot.slane %v15209_v8, 7  ;;  %v10156_v25 = vrot.slane %v15404_v18, 3 }
 0x4a6   :  { %9853 = vmatprep.subr.bf16.mxu1 %v17058_v49  ;;  %9051 = vmatprep.subr.bf16.mxu0 %v17058_v49  ;;  %v9118_v28 = vsel %vm7516_vm11, %v9117_v9, %v9116_v60  ;;  %v9144_v9 = vsel %vm8722_vm1, %v9143_v1, %v9142_v35  ;;  %v9151_v60 = vrot.slane %v15450_v50, 3  ;;  %v10124_v35 = vrot.slane %v15276_v5, 5 }
 0x4a7   :  { %v9120_v2 = vsel %vm8728_vm2, %v9119_v19, %v9118_v28  ;;  %v9146_v19 = vsel %vm7516_vm11, %v9145_v3, %v9144_v9  ;;  %v10122_v28 = vrot.slane %v15253_v45, 6  ;;  %v10158_v9 = vrot.slane %v15414_v58, 2 }
 0x4a8   :  { %v9148_v1 = vsel %vm8728_vm2, %v9147_v20, %v9146_v19  ;;  %v10128_v19 = vrot.slane %v15293_v36, 3  ;;  %v10160_v18 = vrot.slane %v15429_v21, 1 }
 0x4a9   :  { %9854 = vmatpush1.bf16.msra.mxu1 %v12157_v13  ;;  %9052 = vmatpush1.bf16.msra.mxu0 %v12160_v10  ;;  %v10149_v13 = vrot.slane %v15368_v59, 7  ;;  %v10154_v10 = vrot.slane %v15394_v43, 4  ;;  %v9150_v46 = vsel %vm7518_vm13, %v9149_v40, %v9148_v1  ;;  %v12161_v59 = vld [vmem:[#allocation2 + $0x230] sm:$0xff]   ;;  %v12164_v43 = vld [vmem:[#allocation2 + $0xc0] sm:$0xff]   ;;  %v9122_v40 = vsel %vm7518_vm13, %v9121_v4, %v9120_v2 }
 0x4aa   :  { %9855 = vmatprep.subr.bf16.mxu1 %v17058_v49  ;;  %9053 = vmatprep.subr.bf16.mxu0 %v17058_v49  ;;  %v9152_v20 = vsel %vm8734_vm3, %v9151_v60, %v9150_v46  ;;  %v9124_v46 = vsel %vm8734_vm3, %v9123_v42, %v9122_v40  ;;  %v17196_v1 = vpack.c.b16 %v15701_v47, %v15710_v62  ;;  %v17197_v4 = vrot.slane %v15435_v39, 7  ;;  %v12163_v42 = vld [vmem:[#allocation2 + $0x238] sm:$0xff]  }
 0x4ab   :  { %v10151_v3 = vsel %vm8716_vm0, %v10150_v32, %v10149_v13  ;;  %v10123_v32 = vsel %vm8716_vm0, %v10122_v28, %v10121_v15  ;;  %v9154_v28 = vpack.c.b16 %v9152_v20, %v9124_v46 }
 0x4ac   :  { %v10153_v5 = vsel %vm7514_vm9, %v10152_v44, %v10151_v3  ;;  %v10125_v60 = vsel %vm7514_vm9, %v10124_v35, %v10123_v32  ;;  %v10132_v44 = vrot.slane %v15317_v16, 1  ;;  %v9742_v2 = vsel %vm7518_vm13, %v17197_v4, %v9740_v27  ;;  %v12166_v35 = vld [vmem:[#allocation2 + $0xc8] sm:$0xff]   ;;  %v12169_v32 = vld [vmem:[#allocation2 + $0x2b0] sm:$0xff]  }
 0x4ad   :  { %9856 = vmatpush1.bf16.msra.mxu1 %v12159_v34  ;;  %9054 = vmatpush1.bf16.msra.mxu0 %v12162_v17  ;;  %v10130_v34 = vrot.slane %v15314_v24, 2  ;;  %v10155_v17 = vsel %vm8722_vm1, %v10154_v10, %v10153_v5  ;;  %v10127_v15 = vsel %vm8722_vm1, %v10126_v55, %v10125_v60  ;;  %v9712_v10 = vsel %vm8728_vm2, %v15336_v26, %v15723_v61 }
 0x4ae   :  { %9857 = vmatprep.subr.bf16.mxu1 %v17058_v49  ;;  %9231 = vmatprep.subr.bf16.mxu0 %v17058_v49  ;;  %v10157_v13 = vsel %vm7516_vm11, %v10156_v25, %v10155_v17  ;;  %v9715_v25 = vrot.slane %v15350_v38, 6  ;;  %v10129_v47 = vsel %vm7516_vm11, %v10128_v19, %v10127_v15  ;;  %v10585_v27 = vrot.slane %v15695_v31, 1  ;;  %v12165_v15 = vld [vmem:[#allocation2 + $0x2a0] sm:$0xff]   ;;  %v12171_v17 = vld [vmem:[#allocation2 + $0x2b8] sm:$0xff]  }
 0x4af   :  { %v10159_v5 = vsel %vm8728_vm2, %v10158_v9, %v10157_v13  ;;  %v10131_v61 = vsel %vm8728_vm2, %v10130_v34, %v10129_v47  ;;  %v17199_v9 = vld [vmem:[#allocation45_spill] sm:$0xff]  ;;  %v17202_v60 = vrot.slane %v15675_v37, 1  ;;  %v10110_v37 = vrot.slane %v15298_v52, 5 }
 0x4b0   :  { %9064 = vmatmul.mubr.bf16.vlgmr.msra.gmra.mrb[32].mxu0 %v17196_v1  ;;  %v10161_v62 = vsel %vm7518_vm13, %v10160_v18, %v10159_v5  ;;  %v15808_v20 = vunpack.c.h.b16 %v17199_v9  ;;  %v17201_v18 = vrot.slane %v15447_v54, 6  ;;  %v10133_v40 = vsel %vm7518_vm13, %v10132_v44, %v10131_v61  ;;  %v17203_v1 = vld [vmem:[#allocation53_spill] sm:$0xff]  ;;  %v17205_v44 = vld [vmem:[#allocation56_spill] sm:$0xff] }
 0x4b1   :  { %9858 = vmatpush1.bf16.msra.mxu1 %v12161_v59  ;;  %9232 = vmatpush1.bf16.msra.mxu0 %v12164_v43  ;;  %v17198_v59 = vrot.slane %v15347_v57, 7  ;;  %v10162_v34 = vsel %vm8734_vm3, %v15450_v50, %v10161_v62  ;;  %v15824_v13 = vsel %vm8716_vm0, %v15707_v29, %v17202_v60  ;;  %v15827_v4 = vunpack.c.h.b16 %v17203_v1  ;;  %v17210_v1 = vld [vmem:[#allocation68_spill] sm:$0xff]  ;;  %v17219_v31 = vld [vmem:[#allocation61_spill] sm:$0xff] }
 0x4b2   :  { %9859 = vmatprep.subr.bf16.mxu1 %v17058_v49  ;;  %11599 = vmatprep.mubr.msk.bf16.mxu0 %vm2528_vm15, %v9154_v28  ;;  %17200 = vst [vmem:[#allocation62_spill] sm:$0xff] %v15808_v20  ;;  %v9744_v19 = vsel %vm8734_vm3, %v17201_v18, %v9742_v2  ;;  %v15830_v2 = vunpack.c.h.b16 %v17205_v44  ;;  %v10134_v62 = vsel %vm8734_vm3, %v15321_v30, %v10133_v40  ;;  %v9098_v60 = vrot.slane %v15248_v23, 1 }
 0x4b3   :  { %v9714_v3 = vsel %vm7518_vm13, %v17198_v59, %v9712_v10  ;;  %9233 = vmatprep.subr.bf16.mxu0 %v17058_v49  ;;  %17204 = vst [vmem:[#allocation72_spill] sm:$0xff] %v15827_v4  ;;  %v12168_v59 = vld [vmem:[#allocation2 + $0xd0] sm:$0xff]   ;;  %v15848_v18 = vsel %vm8716_vm0, %v15808_v20, %v10585_v27  ;;  %v12167_v27 = vld [vmem:[#allocation2 + $0x2a8] sm:$0xff]   ;;  %v9101_v5 = vrot.slane %v15303_v63, 7  ;;  %v15871_v46 = vunpack.c.h.b16 %v17210_v1 }
 0x4b4   :  { %v9716_v28 = vsel %vm8734_vm3, %v9715_v25, %v9714_v3  ;;  %v17207_v25 = vld [vmem:[#allocation65_spill] sm:$0xff]  ;;  %v10164_v3 = vpack.c.b16 %v10162_v34, %v10134_v62  ;;  %v9105_v44 = vrot.slane %v15336_v26, 5  ;;  %v9126_v61 = vrot.slane %v15377_v14, 1 }
 0x4b5   :  { %9860 = vmatpush1.bf16.msra.mxu1 %v12163_v42  ;;  %9234 = vmatpush1.bf16.msra.mxu0 %v12166_v35  ;;  %v9759_v47 = vpack.c.b16 %v9744_v19, %v9716_v28  ;;  %v17206_v42 = vld [vmem:[#allocation60_spill] sm:$0xff]  ;;  %v15844_v35 = vunpack.c.h.b16 %v17207_v25  ;;  %v9097_v25 = vrot.slane %v15226_v56, 2  ;;  %v15877_v34 = vunpack.c.h.b16 %v15406_v7 }
 0x4b6   :  { %10241 = vmatprep.subr.bf16.mxu1 %v17058_v49  ;;  %9235 = vmatprep.subr.bf16.mxu0 %v17058_v49  ;;  %v15841_v9 = vunpack.c.h.b16 %v17206_v42  ;;  %v15880_v10 = vunpack.c.h.b16 %v15408_v0  ;;  %v9125_v0 = vrot.slane %v15365_v48, 2  ;;  %v9129_v62 = vrot.slane %v15391_v22, 7 }
 0x4b7   :  { %v9135_v28 = vrot.slane %v15435_v39, 4 }
 0x4b8   :  { %9870 = vmatmul.mubr.bf16.vlgmr.msra.gmra.mrb[52].mxu1 %v9759_v47  ;;  %v12170_v47 = vld [vmem:[#allocation2 + $0xd8] sm:$0xff]  }
 0x4b9   :  { %10242 = vmatpush1.bf16.msra.mxu1 %v12165_v15  ;;  %11664 = vmatprep.mubr.msk.bf16.mxu1 %vm2528_vm15, %v10164_v3  ;;  %v17208_v15 = vld [vmem:[#allocation66_spill] sm:$0xff]  ;;  %v9103_v3 = vrot.slane %v15328_v12, 6 }
 0x4ba   :  { %10243 = vmatprep.subr.bf16.mxu1 %v17058_v49  ;;  %9236 = vmatpush1.bf16.msra.mxu0 %v12168_v59  ;;  %v15866_v43 = vunpack.c.h.b16 %v17208_v15  ;;  %v9099_v59 = vsel %vm8716_vm0, %v9098_v60, %v9097_v25  ;;  %v15883_v15 = vunpack.c.h.b16 %v15418_v11  ;;  %v15888_v60 = vunpack.c.h.b16 %v15420_v41  ;;  %v12172_v25 = vld [vmem:[#allocation2 + $0xe0] sm:$0xff]  }
 0x4bb   :  { %9237 = vmatprep.subr.bf16.mxu0 %v17058_v49  ;;  %v9100_v1 = vsel %vm7514_vm9, %v15298_v52, %v9099_v59  ;;  %v15895_v11 = vunpack.c.h.b16 %v15439_v51  ;;  %v9107_v41 = vrot.slane %v15347_v57, 4  ;;  %v9131_v59 = vrot.slane %v15400_v53, 6  ;;  %v17211_v51 = vld [vmem:[#allocation71_spill] sm:$0xff] }
 0x4bc   :  { %17209 = vst [vmem:[#allocation67_spill] sm:$0xff] %v15866_v43  ;;  %v9102_v7 = vsel %vm8722_vm1, %v9101_v5, %v9100_v1  ;;  %v9127_v5 = vsel %vm8716_vm0, %v9126_v61, %v9125_v0  ;;  %v9133_v1 = vrot.slane %v15426_v6, 5  ;;  %v10108_v61 = vrot.slane %v15248_v23, 6  ;;  %v17212_v0 = vld [vmem:[#allocation38_spill] sm:$0xff] }
 0x4bd   :  { %10244 = vmatpush1.bf16.msra.mxu1 %v12167_v27  ;;  %v9104_v27 = vsel %vm7516_vm11, %v9103_v3, %v9102_v7  ;;  %v9128_v55 = vsel %vm7514_vm9, %v17211_v51, %v9127_v5  ;;  %v9137_v3 = vrot.slane %v15447_v54, 3  ;;  %v10107_v7 = vrot.slane %v15226_v56, 7  ;;  %v17215_v5 = vld [vmem:[#allocation76_spill] sm:$0xff]  ;;  %v17216_v54 = vld [vmem:[#allocation21_spill] sm:$0xff] }
 0x4be   :  { %10245 = vmatprep.subr.bf16.mxu1 %v17058_v49  ;;  %9238 = vmatpush1.bf16.msra.mxu0 %v12170_v47  ;;  %v9106_v47 = vsel %vm8728_vm2, %v9105_v44, %v9104_v27  ;;  %v12174_v44 = vld [vmem:[#allocation2 + $0xe8] sm:$0xff]   ;;  %v9130_v27 = vsel %vm8722_vm1, %v9129_v62, %v9128_v55  ;;  %v10563_v42 = vrot.slane %v17215_v5, 5  ;;  %v17218_v55 = vld [vmem:[#allocation26_spill] sm:$0xff]  ;;  %v10112_v23 = vrot.slane %v15303_v63, 4 }
 0x4bf   :  { %9239 = vmatprep.subr.bf16.mxu0 %v17058_v49  ;;  %v9132_v29 = vsel %vm7516_vm11, %v9131_v59, %v9130_v27  ;;  %v10565_v62 = vrot.slane %v17218_v55, 4  ;;  %v17221_v52 = vrot.slane %v15830_v2, 7  ;;  %v17222_v63 = vrot.slane %v15844_v35, 6 }
 0x4c0   :  { %v9134_v59 = vsel %vm8728_vm2, %v9133_v1, %v9132_v29 }
 0x4c1   :  { %10246 = vmatpush1.bf16.msra.mxu1 %v12169_v32  ;;  %v17213_v32 = vld [vmem:[#allocation40_spill] sm:$0xff] }
 0x4c2   :  { %10247 = vmatprep.subr.bf16.mxu1 %v17058_v49  ;;  %9240 = vmatpush1.bf16.msra.mxu0 %v12172_v25  ;;  %v17214_v40 = vrot.slane %v17213_v32, 7  ;;  %v17217_v25 = vrot.slane %v17216_v54, 6  ;;  %v12173_v32 = vld [vmem:[#allocation2 + $0x2c0] sm:$0xff]  }
 0x4c3   :  { %9241 = vmatprep.subr.bf16.mxu0 %v17058_v49 }
 0x4c4   :  { %v10560_v19 = vsel %vm7514_vm9, %v17214_v40, %v17212_v0  ;;  %v10567_v40 = vrot.slane %v17219_v31, 3  ;;  %v17220_v0 = vld [vmem:[#allocation33_spill] sm:$0xff] }
 0x4c5   :  { %v10562_v56 = vsel %vm8722_vm1, %v17217_v25, %v10560_v19  ;;  %v10569_v5 = vrot.slane %v17220_v0, 2  ;;  %10248 = vmatpush1.bf16.msra.mxu1 %v12171_v17  ;;  %v10588_v19 = vsel %vm7514_vm9, %v17221_v52, %v15848_v18  ;;  %v10591_v25 = vrot.slane %v15871_v46, 5 }
 0x4c6   :  { %v10564_v20 = vsel %vm7516_vm11, %v10563_v42, %v10562_v56  ;;  %10249 = vmatprep.subr.bf16.mxu1 %v17058_v49  ;;  %9242 = vmatpush1.bf16.msra.mxu0 %v12174_v44  ;;  %v12176_v56 = vld [vmem:[#allocation2 + $0xf0] sm:$0xff]   ;;  %v10109_v42 = vsel %vm8716_vm0, %v10108_v61, %v10107_v7  ;;  %v10590_v29 = vsel %vm8722_vm1, %v17222_v63, %v10588_v19  ;;  %v10595_v44 = vrot.slane %v15888_v60, 3  ;;  %v17224_v19 = vld [vmem:[#allocation19_spill] sm:$0xff] }
 0x4c7   :  { %v10566_v27 = vsel %vm8728_vm2, %v10565_v62, %v10564_v20  ;;  %v10593_v20 = vrot.slane %v15880_v10, 4  ;;  %9243 = vmatprep.subr.bf16.mxu0 %v17058_v49  ;;  %v9136_v52 = vsel %vm7518_vm13, %v9135_v28, %v9134_v59  ;;  %v10592_v1 = vsel %vm7516_vm11, %v10591_v25, %v10590_v29 }
 0x4c8   :  { %v10568_v17 = vsel %vm7518_vm13, %v10567_v40, %v10566_v27  ;;  %v10111_v7 = vsel %vm7514_vm9, %v10110_v37, %v10109_v42  ;;  %v10114_v61 = vrot.slane %v15328_v12, 3  ;;  %v10597_v63 = vrot.slane %v15895_v11, 2  ;;  %v12175_v40 = vld [vmem:[#allocation2 + $0x2c8] sm:$0xff]   ;;  %v12178_v37 = vld [vmem:[#allocation2 + $0xf8] sm:$0xff]  }
 0x4c9   :  { %v15946_v18 = vsel %vm8734_vm3, %v10569_v5, %v10568_v17  ;;  %v10594_v62 = vsel %vm8728_vm2, %v10593_v20, %v10592_v1  ;;  %10250 = vmatpush1.bf16.msra.mxu1 %v12173_v32  ;;  %v9108_v27 = vsel %vm7518_vm13, %v9107_v41, %v9106_v47  ;;  %v10116_v28 = vrot.slane %v15336_v26, 2 }
 0x4ca   :  { %17223 = vst [vmem:[#allocation70_spill] sm:$0xff] %v15946_v18  ;;  %v10136_v5 = vrot.slane %v15377_v14, 6  ;;  %v10596_v59 = vsel %vm7518_vm13, %v10595_v44, %v10594_v62  ;;  %v15959_v25 = vunpack.c.h.b16 %v17224_v19  ;;  %10251 = vmatprep.subr.bf16.mxu1 %v17058_v49  ;;  %9244 = vmatpush1.bf16.msra.mxu0 %v12176_v56  ;;  %v15963_v42 = vsel %vm8734_vm3, %v9137_v3, %v9136_v52 }
 0x4cb   :  { %v10138_v32 = vrot.slane %v17211_v51, 5  ;;  %v15967_v41 = vsel %vm8734_vm3, %v10597_v63, %v10596_v59  ;;  %9245 = vmatprep.subr.bf16.mxu0 %v17058_v49  ;;  %v10113_v47 = vsel %vm8722_vm1, %v10112_v23, %v10111_v7  ;;  %v10118_v17 = vrot.slane %v15347_v57, 1  ;;  %v12177_v23 = vld [vmem:[#allocation2 + $0x2d0] sm:$0xff]  }
 0x4cc   :  { %17225 = vst [vmem:[#allocation74_spill] sm:$0xff] %v15967_v41  ;;  %v10135_v29 = vrot.slane %v15365_v48, 7  ;;  %v17226_v20 = vrot.slane %v15350_v38, 3  ;;  %v10115_v52 = vsel %vm7516_vm11, %v10114_v61, %v10113_v47  ;;  %v10140_v1 = vrot.slane %v15391_v22, 4  ;;  %v17227_v47 = vld [vmem:[#allocation39_spill] sm:$0xff]  ;;  %v17230_v7 = vld [vmem:[#allocation24_spill] sm:$0xff] }
 0x4cd   :  { %10252 = vmatpush1.bf16.msra.mxu1 %v12175_v40  ;;  %v10117_v62 = vsel %vm8728_vm2, %v10116_v28, %v10115_v52  ;;  %v17228_v40 = vld [vmem:[#allocation42_spill] sm:$0xff]  ;;  %v10549_v44 = vrot.slane %v17230_v7, 5  ;;  %v17233_v52 = vld [vmem:[#allocation32_spill] sm:$0xff]  ;;  %v9516_v19 = vrot.slane %v15253_v45, 3  ;;  %v12179_v7 = vld [vmem:[#allocation2 + $0x2d8] sm:$0xff]  }
 0x4ce   :  { %v15978_v3 = vsel %vm8734_vm3, %v17226_v20, %v9108_v27  ;;  %v10137_v63 = vsel %vm8716_vm0, %v10136_v5, %v10135_v29  ;;  %10253 = vmatprep.subr.bf16.mxu1 %v17058_v49  ;;  %9246 = vmatpush1.bf16.msra.mxu0 %v12178_v37  ;;  %v12180_v27 = vld [vmem:[#allocation2 + $0x100] sm:$0xff]   ;;  %v17229_v20 = vrot.slane %v17228_v40, 7  ;;  %v15998_v28 = vsel %vm7518_vm13, %v10118_v17, %v10117_v62  ;;  %v17231_v37 = vld [vmem:[#allocation27_spill] sm:$0xff]  ;;  %v17234_v59 = vld [vmem:[#allocation64_spill] sm:$0xff] }
 0x4cf   :  { %v10139_v61 = vsel %vm7514_vm9, %v10138_v32, %v10137_v63  ;;  %9247 = vmatprep.subr.bf16.mxu0 %v17058_v49  ;;  %v9515_v5 = vrot.slane %v15209_v8, 4  ;;  %v17232_v29 = vrot.slane %v17231_v37, 6  ;;  %v10551_v63 = vrot.slane %v17233_v52, 4  ;;  %v17236_v17 = vld [vmem:[#allocation69_spill] sm:$0xff]  ;;  %v17237_v40 = vld [vmem:[#allocation31_spill] sm:$0xff]  ;;  %v17240_v45 = vld [vmem:[#allocation80_spill] sm:$0xff] }
 0x4d0   :  { %v10546_v56 = vsel %vm7514_vm9, %v17229_v20, %v17227_v47  ;;  %v9543_v18 = vrot.slane %v17234_v59, 4  ;;  %v17235_v20 = vld [vmem:[#allocation43_spill] sm:$0xff]  ;;  %v9544_v62 = vrot.slane %v17236_v17, 3  ;;  %v10555_v37 = vrot.slane %v17237_v40, 2 }
 0x4d1   :  { %v10548_v32 = vsel %vm8722_vm1, %v17232_v29, %v10546_v56  ;;  %v10553_v41 = vrot.slane %v17235_v20, 3  ;;  %10254 = vmatpush1.bf16.msra.mxu1 %v12177_v23  ;;  %v17238_v56 = vrot.slane %v15827_v4, 7  ;;  %v12182_v59 = vld [vmem:[#allocation2 + $0x108] sm:$0xff]   ;;  %v9548_v23 = vrot.slane %v17240_v45, 1  ;;  %v17243_v45 = vld [vmem:[#allocation41_spill] sm:$0xff] }
 0x4d2   :  { %v10550_v47 = vsel %vm7516_vm11, %v10549_v44, %v10548_v32  ;;  %10255 = vmatprep.subr.bf16.mxu1 %v17058_v49  ;;  %9248 = vmatpush1.bf16.msra.mxu0 %v12180_v27  ;;  %v17239_v44 = vld [vmem:[#allocation79_spill] sm:$0xff]  ;;  %v10577_v17 = vrot.slane %v15866_v43, 5  ;;  %v10579_v27 = vrot.slane %v15877_v34, 4  ;;  %v9518_v4 = vrot.slane %v17243_v45, 2  ;;  %v12181_v43 = vld [vmem:[#allocation2 + $0x2e0] sm:$0xff]  }
 0x4d3   :  { %v10552_v8 = vsel %vm8728_vm2, %v10551_v63, %v10550_v47  ;;  %v10574_v29 = vsel %vm7514_vm9, %v17238_v56, %v15824_v13  ;;  %v9546_v32 = vrot.slane %v17239_v44, 2  ;;  %9249 = vmatprep.subr.bf16.mxu0 %v17058_v49  ;;  %v17242_v47 = vrot.slane %v15841_v9, 6 }
 0x4d4   :  { %v10554_v20 = vsel %vm7518_vm13, %v10553_v41, %v10552_v8  ;;  %v10581_v56 = vrot.slane %v15883_v15, 3  ;;  %v10141_v44 = vsel %vm8722_vm1, %v10140_v1, %v10139_v61  ;;  %v10583_v41 = vrot.slane %v15959_v25, 2  ;;  %v12184_v1 = vld [vmem:[#allocation2 + $0x110] sm:$0xff]  }
 0x4d5   :  { %v16023_v63 = vsel %vm8734_vm3, %v10555_v37, %v10554_v20  ;;  %v10576_v13 = vsel %vm8722_vm1, %v17242_v47, %v10574_v29  ;;  %10256 = vmatpush1.bf16.msra.mxu1 %v12179_v7  ;;  %v9520_v37 = vrot.slane %v15287_v33, 1  ;;  %v9545_v20 = vsel %vm8716_vm0, %v9544_v62, %v9543_v18 }
 0x4d6   :  { %17241 = vst [vmem:[#allocation77_spill] sm:$0xff] %v16023_v63  ;;  %v10578_v8 = vsel %vm7516_vm11, %v10577_v17, %v10576_v13  ;;  %v9551_v29 = vrot.slane %v15414_v58, 7  ;;  %10257 = vmatprep.subr.bf16.mxu1 %v17058_v49  ;;  %9250 = vmatpush1.bf16.msra.mxu0 %v12182_v59  ;;  %v9523_v61 = vrot.slane %v15314_v24, 7  ;;  %v9547_v17 = vsel %vm7514_vm9, %v9546_v32, %v9545_v20  ;;  %v17245_v32 = vld [vmem:[#allocation81_spill] sm:$0xff]  ;;  %v17253_v63 = vld [vmem:[#allocation76_spill] sm:$0xff] }
 0x4d7   :  { %v10580_v47 = vsel %vm8728_vm2, %v10579_v27, %v10578_v8  ;;  %v9553_v13 = vrot.slane %v15429_v21, 6  ;;  %9251 = vmatprep.subr.bf16.mxu0 %v17058_v49  ;;  %v9517_v18 = vsel %vm8716_vm0, %v9516_v19, %v9515_v5  ;;  %v9549_v62 = vsel %vm8722_vm1, %v9548_v23, %v9547_v17 }
 0x4d8   :  { %v10582_v7 = vsel %vm7518_vm13, %v10581_v56, %v10580_v47  ;;  %v9555_v27 = vrot.slane %v15450_v50, 5  ;;  %v9519_v59 = vsel %vm7514_vm9, %v9518_v4, %v9517_v18  ;;  %v9525_v24 = vrot.slane %v15317_v16, 6  ;;  %v12183_v47 = vld [vmem:[#allocation2 + $0x2e8] sm:$0xff]   ;;  %v17258_v16 = vld [vmem:[#allocation62_spill] sm:$0xff] }
 0x4d9   :  { %v16048_v8 = vsel %vm8734_vm3, %v10583_v41, %v10582_v7  ;;  %v9550_v20 = vsel %vm7516_vm11, %v17245_v32, %v9549_v62  ;;  %10258 = vmatpush1.bf16.msra.mxu1 %v12181_v43  ;;  %v17246_v19 = vrot.slane %v15400_v53, 3  ;;  %v9521_v23 = vsel %vm8722_vm1, %v9520_v37, %v9519_v59  ;;  %v12186_v7 = vld [vmem:[#allocation2 + $0x118] sm:$0xff]   ;;  %v17247_v62 = vld [vmem:[#allocation16_spill] sm:$0xff] }
 0x4da   :  { %17244 = vst [vmem:[#allocation75_spill] sm:$0xff] %v16048_v8  ;;  %v9527_v41 = vrot.slane %v15321_v30, 5  ;;  %v9552_v4 = vsel %vm8728_vm2, %v9551_v29, %v9550_v20  ;;  %10259 = vmatprep.subr.bf16.mxu1 %v17058_v49  ;;  %9252 = vmatpush1.bf16.msra.mxu0 %v12184_v1  ;;  %v9522_v43 = vsel %vm7516_vm11, %v15293_v36, %v9521_v23  ;;  %v17248_v56 = vrot.slane %v17247_v62, 3  ;;  %v17251_v20 = vld [vmem:[#allocation40_spill] sm:$0xff] }
 0x4db   :  { %v10143_v5 = vsel %vm7516_vm11, %v17246_v19, %v10141_v44  ;;  %v9554_v18 = vsel %vm7518_vm13, %v9553_v13, %v9552_v4  ;;  %v17249_v44 = vld [vmem:[#allocation28_spill] sm:$0xff]  ;;  %9253 = vmatprep.subr.bf16.mxu0 %v17058_v49  ;;  %v9524_v29 = vsel %vm8728_vm2, %v9523_v61, %v9522_v43  ;;  %v17252_v1 = vrot.slane %v17251_v20, 1 }
 0x4dc   :  { %v17250_v19 = vrot.slane %v17249_v44, 2  ;;  %v9556_v59 = vsel %vm8734_vm3, %v9555_v27, %v9554_v18  ;;  %v10967_v23 = vrot.slane %v17253_v63, 7  ;;  %v17254_v13 = vrot.slane %v15426_v6, 2  ;;  %v12185_v61 = vld [vmem:[#allocation2 + $0x2f0] sm:$0xff]  }
 0x4dd   :  { %v9526_v8 = vsel %vm7518_vm13, %v9525_v24, %v9524_v29  ;;  %10260 = vmatpush1.bf16.msra.mxu1 %v12183_v47  ;;  %v17255_v27 = vrot.slane %v15435_v39, 1  ;;  %v12188_v24 = vld [vmem:[#allocation2 + $0x180] sm:$0xff]   ;;  %v10973_v47 = vrot.slane %v17220_v0, 4  ;;  %v17256_v29 = vld [vmem:[#allocation44_spill] sm:$0xff]  ;;  %v17259_v21 = vrot.slane %v17258_v16, 2 }
 0x4de   :  { %v10963_v37 = vsel %vm8716_vm0, %v17250_v19, %v17248_v56  ;;  %v10145_v4 = vsel %vm8728_vm2, %v17254_v13, %v10143_v5  ;;  %v10969_v19 = vrot.slane %v17218_v55, 6  ;;  %v9528_v18 = vsel %vm8734_vm3, %v9527_v41, %v9526_v8  ;;  %10261 = vmatprep.subr.bf16.mxu1 %v17058_v49  ;;  %9254 = vmatpush1.bf16.msra.mxu0 %v12186_v7  ;;  %v17260_v8 = vld [vmem:[#allocation35_spill] sm:$0xff] }
 0x4df   :  { %v10965_v17 = vsel %vm7514_vm9, %v17252_v1, %v10963_v37  ;;  %v10147_v43 = vsel %vm7518_vm13, %v17255_v27, %v10145_v4  ;;  %v10971_v1 = vrot.slane %v17219_v31, 5  ;;  %v9558_v5 = vpack.c.b16 %v9556_v59, %v9528_v18  ;;  %9635 = vmatprep.subr.bf16.mxu0 %v17058_v49 }
 0x4e0   :  { %v10966_v56 = vsel %vm8722_vm1, %v17216_v54, %v10965_v17  ;;  %v17257_v13 = vrot.slane %v17256_v29, 3  ;;  %v9502_v41 = vrot.slane %v17260_v8, 3  ;;  %v17261_v7 = vrot.slane %v15830_v2, 1  ;;  %v12190_v8 = vld [vmem:[#allocation2 + $0x188] sm:$0xff]  }
 0x4e1   :  { %v10968_v37 = vsel %vm7516_vm11, %v10967_v23, %v10966_v56  ;;  %v10995_v56 = vrot.slane %v15871_v46, 7  ;;  %10262 = vmatpush1.bf16.msra.mxu1 %v12185_v61  ;;  %v10393_v30 = vrot.slane %v15888_v60, 2 }
 0x4e2   :  { %v10970_v17 = vsel %vm8728_vm2, %v10969_v19, %v10968_v37  ;;  %v10991_v4 = vsel %vm8716_vm0, %v17259_v21, %v17257_v13  ;;  %v17262_v19 = vld [vmem:[#allocation50_spill] sm:$0xff]  ;;  %v10997_v37 = vrot.slane %v15880_v10, 6  ;;  %v12187_v13 = vld [vmem:[#allocation2 + $0x2f8] sm:$0xff]   ;;  %10263 = vmatprep.subr.bf16.mxu1 %v17058_v49 }
 0x4e3   :  { %v10972_v23 = vsel %vm7518_vm13, %v10971_v1, %v10970_v17  ;;  %v10993_v59 = vsel %vm7514_vm9, %v17261_v7, %v10991_v4  ;;  %v9504_v27 = vrot.slane %v17262_v19, 2  ;;  %v17264_v1 = vpack.c.b16 %v15963_v42, %v15978_v3  ;;  %v17265_v17 = vld [vmem:[#allocation22_spill] sm:$0xff] }
 0x4e4   :  { %v16109_v18 = vsel %vm8734_vm3, %v10973_v47, %v10972_v23  ;;  %v10994_v21 = vsel %vm8722_vm1, %v15844_v35, %v10993_v59  ;;  %v9501_v4 = vrot.slane %v17265_v17, 4  ;;  %v10999_v19 = vrot.slane %v15888_v60, 5  ;;  %v17266_v59 = vld [vmem:[#allocation23_spill] sm:$0xff] }
 0x4e5   :  { %17263 = vst [vmem:[#allocation84_spill] sm:$0xff] %v16109_v18  ;;  %9264 = vmatmul.mubr.bf16.vlgmr.msra.gmra.mrb[36].mxu0 %v17264_v1  ;;  %v10996_v7 = vsel %vm7516_vm11, %v10995_v56, %v10994_v21  ;;  %v11001_v47 = vrot.slane %v15895_v11, 4  ;;  %v10148_v61 = vsel %vm8734_vm3, %v17266_v59, %v10147_v43  ;;  %v9530_v42 = vrot.slane %v15377_v14, 3  ;;  %v17267_v21 = vld [vmem:[#allocation49_spill] sm:$0xff]  ;;  %10264 = vmatpush1.bf16.msra.mxu1 %v12187_v13 }
 0x4e6   :  { %9636 = vmatpush1.bf16.msra.mxu0 %v12188_v24  ;;  %v10998_v3 = vsel %vm8728_vm2, %v10997_v37, %v10996_v7  ;;  %11625 = vmatprep.mubr.msk.bf16.mxu0 %vm2528_vm15, %v9558_v5  ;;  %v9503_v56 = vsel %vm8716_vm0, %v9502_v41, %v9501_v4  ;;  %v9506_v1 = vrot.slane %v17267_v21, 1  ;;  %v9532_v23 = vrot.slane %v17211_v51, 2  ;;  %v12189_v21 = vld [vmem:[#allocation2 + $0x360] sm:$0xff]  }
 0x4e7   :  { %9637 = vmatprep.subr.bf16.mxu0 %v17058_v49  ;;  %v11000_v17 = vsel %vm7518_vm13, %v10999_v19, %v10998_v3  ;;  %v10120_v43 = vsel %vm8734_vm3, %v15350_v38, %v15998_v28  ;;  %v9505_v24 = vsel %vm7514_vm9, %v9504_v27, %v9503_v56  ;;  %v9529_v37 = vrot.slane %v15365_v48, 4  ;;  %10677 = vmatprep.subr.bf16.mxu1 %v17058_v49  ;;  %v12192_v28 = vld [vmem:[#allocation2 + $0x190] sm:$0xff]   ;;  %v17273_v3 = vld [vmem:[#allocation42_spill] sm:$0xff]  ;;  %v12191_v48 = vld [vmem:[#allocation2 + $0x368] sm:$0xff]  }
 0x4e8   :  { %v16139_v5 = vsel %vm8734_vm3, %v11001_v47, %v11000_v17  ;;  %v10163_v4 = vpack.c.b16 %v10148_v61, %v10120_v43  ;;  %v9509_v27 = vrot.slane %v15336_v26, 7  ;;  %v9534_v47 = vrot.slane %v15391_v22, 1  ;;  %v17269_v43 = vld [vmem:[#allocation15_spill] sm:$0xff]  ;;  %v17283_v51 = vld [vmem:[#allocation58_spill] sm:$0xff] }
 0x4e9   :  { %17268 = vst [vmem:[#allocation83_spill] sm:$0xff] %v16139_v5  ;;  %v9531_v17 = vsel %vm8716_vm0, %v9530_v42, %v9529_v37  ;;  %v9507_v13 = vsel %vm8722_vm1, %v9506_v1, %v9505_v24  ;;  %v17270_v19 = vrot.slane %v17269_v43, 3  ;;  %v9537_v37 = vrot.slane %v15426_v6, 7  ;;  %v17275_v24 = vld [vmem:[#allocation24_spill] sm:$0xff] }
 0x4ea   :  { %9638 = vmatpush1.bf16.msra.mxu0 %v12190_v8  ;;  %v9533_v56 = vsel %vm7514_vm9, %v9532_v23, %v9531_v17  ;;  %v17271_v8 = vld [vmem:[#allocation29_spill] sm:$0xff]  ;;  %10274 = vmatmul.mubr.bf16.vlgmr.msra.gmra.mrb[56].mxu1 %v10163_v4  ;;  %v9508_v42 = vsel %vm7516_vm11, %v15328_v12, %v9507_v13  ;;  %v17274_v26 = vrot.slane %v17273_v3, 1  ;;  %v10953_v61 = vrot.slane %v17275_v24, 7  ;;  %v17276_v23 = vld [vmem:[#allocation74_spill] sm:$0xff] }
 0x4eb   :  { %9639 = vmatprep.subr.bf16.mxu0 %v17058_v49  ;;  %v17272_v41 = vrot.slane %v17271_v8, 2  ;;  %10678 = vmatpush1.bf16.msra.mxu1 %v12189_v21  ;;  %v17277_v17 = vld [vmem:[#allocation70_spill] sm:$0xff]  ;;  %v10955_v12 = vrot.slane %v17233_v52, 6  ;;  %v16177_v21 = vsel %vm8728_vm2, %v9509_v27, %v9508_v42  ;;  %v17284_v27 = vrot.slane %v17283_v51, 2 }
 0x4ec   :  { %v17278_v22 = vpack.c.b16 %v17276_v23, %v17277_v17  ;;  %10679 = vmatprep.subr.bf16.mxu1 %v17058_v49  ;;  %v17280_v23 = vld [vmem:[#allocation43_spill] sm:$0xff]  ;;  %v10367_v38 = vrot.slane %v17220_v0, 1 }
 0x4ed   :  { %v10949_v7 = vsel %vm8716_vm0, %v17272_v41, %v17270_v19  ;;  %v17279_v19 = vld [vmem:[#allocation27_spill] sm:$0xff]  ;;  %v10957_v17 = vrot.slane %v17280_v23, 5  ;;  %v10959_v41 = vrot.slane %v17237_v40, 4 }
 0x4ee   :  { %v10951_v1 = vsel %vm7514_vm9, %v17274_v26, %v10949_v7  ;;  %11690 = vmatprep.mubr.msk.bf16.mxu1 %vm2528_vm15, %v17278_v22  ;;  %9640 = vmatpush1.bf16.msra.mxu0 %v12192_v28  ;;  %v12194_v26 = vld [vmem:[#allocation2 + $0x198] sm:$0xff]   ;;  %v9535_v7 = vsel %vm8722_vm1, %v9534_v47, %v9533_v56  ;;  %v17281_v28 = vld [vmem:[#allocation48_spill] sm:$0xff] }
 0x4ef   :  { %v10952_v13 = vsel %vm8722_vm1, %v17279_v19, %v10951_v1  ;;  %9641 = vmatprep.subr.bf16.mxu0 %v17058_v49  ;;  %v9536_v1 = vsel %vm7516_vm11, %v15400_v53, %v9535_v7  ;;  %v17282_v6 = vrot.slane %v17281_v28, 3  ;;  %v17285_v56 = vld [vmem:[#allocation72_spill] sm:$0xff]  ;;  %v17287_v7 = vld [vmem:[#allocation67_spill] sm:$0xff]  ;;  %10680 = vmatpush1.bf16.msra.mxu1 %v12191_v48  ;;  %v10987_v48 = vrot.slane %v15959_v25, 4 }
 0x4f0   :  { %v10954_v22 = vsel %vm7516_vm11, %v10953_v61, %v10952_v13  ;;  %v16193_v47 = vsel %vm8728_vm2, %v9537_v37, %v9536_v1  ;;  %v17286_v13 = vrot.slane %v17285_v56, 1  ;;  %v10981_v53 = vrot.slane %v17287_v7, 7  ;;  %10681 = vmatprep.subr.bf16.mxu1 %v17058_v49 }
 0x4f1   :  { %v10956_v4 = vsel %vm8728_vm2, %v10955_v12, %v10954_v22  ;;  %v10977_v42 = vsel %vm8716_vm0, %v17284_v27, %v17282_v6  ;;  %v12193_v12 = vld [vmem:[#allocation2 + $0x370] sm:$0xff]   ;;  %v17288_v22 = vld [vmem:[#allocation69_spill] sm:$0xff]  ;;  %v10983_v37 = vrot.slane %v15877_v34, 6  ;;  %v10985_v1 = vrot.slane %v15883_v15, 5 }
 0x4f2   :  { %v10958_v61 = vsel %vm7518_vm13, %v10957_v17, %v10956_v4  ;;  %v10979_v14 = vsel %vm7514_vm9, %v17286_v13, %v10977_v42  ;;  %9642 = vmatpush1.bf16.msra.mxu0 %v12194_v26  ;;  %v12196_v4 = vld [vmem:[#allocation2 + $0x1a0] sm:$0xff]   ;;  %v17290_v27 = vrot.slane %v17249_v44, 7  ;;  %v17291_v42 = vrot.slane %v17251_v20, 6 }
 0x4f3   :  { %v16202_v5 = vsel %vm8734_vm3, %v10959_v41, %v10958_v61  ;;  %v10980_v6 = vsel %vm8722_vm1, %v15841_v9, %v10979_v14  ;;  %9643 = vmatprep.subr.bf16.mxu0 %v17058_v49  ;;  %v10361_v61 = vrot.slane %v17253_v63, 4  ;;  %10682 = vmatpush1.bf16.msra.mxu1 %v12193_v12  ;;  %v10395_v12 = vrot.slane %v15895_v11, 1 }
 0x4f4   :  { %17289 = vst [vmem:[#allocation86_spill] sm:$0xff] %v16202_v5  ;;  %v10982_v17 = vsel %vm7516_vm11, %v10981_v53, %v10980_v6  ;;  %v10356_v41 = vsel %vm8716_vm0, %v17290_v27, %v17247_v62  ;;  %v10363_v53 = vrot.slane %v17218_v55, 3  ;;  %v17292_v6 = vrot.slane %v17216_v54, 5  ;;  %10683 = vmatprep.subr.bf16.mxu1 %v17058_v49 }
 0x4f5   :  { %v10984_v14 = vsel %vm8728_vm2, %v10983_v37, %v10982_v17  ;;  %v10358_v26 = vsel %vm7514_vm9, %v17291_v42, %v10356_v41  ;;  %v10365_v27 = vrot.slane %v17219_v31, 2  ;;  %v12195_v37 = vld [vmem:[#allocation2 + $0x378] sm:$0xff]   ;;  %v17294_v42 = vrot.slane %v17258_v16, 7 }
 0x4f6   :  { %v10986_v13 = vsel %vm7518_vm13, %v10985_v1, %v10984_v14  ;;  %v10360_v18 = vsel %vm8722_vm1, %v17292_v6, %v10358_v26  ;;  %v10389_v14 = vrot.slane %v15871_v46, 4  ;;  %9644 = vmatpush1.bf16.msra.mxu0 %v12196_v4  ;;  %v12198_v26 = vld [vmem:[#allocation2 + $0x1a8] sm:$0xff]  }
 0x4f7   :  { %v16229_v17 = vsel %vm8734_vm3, %v10987_v48, %v10986_v13  ;;  %v10362_v41 = vsel %vm7516_vm11, %v10361_v61, %v10360_v18  ;;  %v10384_v1 = vsel %vm8716_vm0, %v17294_v42, %v17256_v29  ;;  %v17295_v48 = vrot.slane %v15830_v2, 6  ;;  %9645 = vmatprep.subr.bf16.mxu0 %v17058_v49  ;;  %10684 = vmatpush1.bf16.msra.mxu1 %v12195_v37 }
 0x4f8   :  { %17293 = vst [vmem:[#allocation85_spill] sm:$0xff] %v16229_v17  ;;  %v10364_v6 = vsel %vm8728_vm2, %v10363_v53, %v10362_v41  ;;  %v10391_v61 = vrot.slane %v15880_v10, 3  ;;  %v17296_v42 = vrot.slane %v15844_v35, 5  ;;  %10685 = vmatprep.subr.bf16.mxu1 %v17058_v49 }
 0x4f9   :  { %v10386_v18 = vsel %vm7514_vm9, %v17295_v48, %v10384_v1  ;;  %v10366_v13 = vsel %vm7518_vm13, %v10365_v27, %v10364_v6  ;;  %v17297_v1 = vrot.slane %v17271_v8, 7  ;;  %v10347_v27 = vrot.slane %v17275_v24, 4  ;;  %v12197_v6 = vld [vmem:[#allocation2 + $0x380] sm:$0xff]  }
 0x4fa   :  { %v10388_v4 = vsel %vm8722_vm1, %v17296_v42, %v10386_v18  ;;  %v16253_v53 = vsel %vm8734_vm3, %v10367_v38, %v10366_v13  ;;  %v17298_v42 = vrot.slane %v17273_v3, 6  ;;  %v10349_v38 = vrot.slane %v17233_v52, 3  ;;  %9646 = vmatpush1.bf16.msra.mxu0 %v12198_v26 }
 0x4fb   :  { %v10390_v41 = vsel %vm7516_vm11, %v10389_v14, %v10388_v4  ;;  %v10342_v48 = vsel %vm8716_vm0, %v17297_v1, %v17269_v43  ;;  %v10351_v13 = vrot.slane %v17280_v23, 2  ;;  %v12200_v14 = vld [vmem:[#allocation2 + $0x1b0] sm:$0xff]   ;;  %v17299_v1 = vrot.slane %v17279_v19, 5  ;;  %9647 = vmatprep.subr.bf16.mxu0 %v17058_v49  ;;  %10686 = vmatpush1.bf16.msra.mxu1 %v12197_v6 }
 0x4fc   :  { %v10392_v18 = vsel %vm8728_vm2, %v10391_v61, %v10390_v41  ;;  %v10344_v5 = vsel %vm7514_vm9, %v17298_v42, %v10342_v48  ;;  %v10353_v61 = vrot.slane %v17237_v40, 1  ;;  %v17300_v41 = vrot.slane %v17283_v51, 7  ;;  %10687 = vmatprep.subr.bf16.mxu1 %v17058_v49 }
 0x4fd   :  { %v10394_v4 = vsel %vm7518_vm13, %v10393_v30, %v10392_v18  ;;  %v10346_v37 = vsel %vm8722_vm1, %v17299_v1, %v10344_v5  ;;  %v17301_v30 = vrot.slane %v17285_v56, 6  ;;  %v10375_v5 = vrot.slane %v17287_v7, 4 }
 0x4fe   :  { %v10370_v48 = vsel %vm8716_vm0, %v17300_v41, %v17281_v28  ;;  %v16279_v42 = vsel %vm8734_vm3, %v10395_v12, %v10394_v4  ;;  %v10348_v26 = vsel %vm7516_vm11, %v10347_v27, %v10346_v37  ;;  %v17302_v41 = vrot.slane %v15841_v9, 5  ;;  %v12199_v4 = vld [vmem:[#allocation2 + $0x388] sm:$0xff]   ;;  %9648 = vmatpush1.bf16.msra.mxu0 %v12200_v14 }
 0x4ff   :  { %v10372_v18 = vsel %vm7514_vm9, %v17301_v30, %v10370_v48  ;;  %v10398_v1 = vpack.c.b16 %v16279_v42, %v16253_v53  ;;  %v10350_v17 = vsel %vm8728_vm2, %v10349_v38, %v10348_v26  ;;  %v10377_v12 = vrot.slane %v15877_v34, 3  ;;  %v12202_v38 = vld [vmem:[#allocation2 + $0x1b8] sm:$0xff]   ;;  %9649 = vmatprep.subr.bf16.mxu0 %v17058_v49  ;;  %10688 = vmatpush1.bf16.msra.mxu1 %v12199_v4  ;;  %v12241_v53 = vld [vmem:[#allocation2 + $0x328] sm:$0xff]  }
 0x500   :  { %v10374_v59 = vsel %vm8722_vm1, %v17302_v41, %v10372_v18  ;;  %v10352_v27 = vsel %vm7518_vm13, %v10351_v13, %v10350_v17  ;;  %v10379_v48 = vrot.slane %v15883_v15, 2  ;;  %v10381_v30 = vrot.slane %v15959_v25, 1  ;;  %10689 = vmatprep.subr.bf16.mxu1 %v17058_v49 }
 0x501   :  { %v10376_v37 = vsel %vm7516_vm11, %v10375_v5, %v10374_v59  ;;  %v16299_v26 = vsel %vm8734_vm3, %v10353_v61, %v10352_v27  ;;  %v17303_v6 = vrot.slane %v17247_v62, 2  ;;  %v17304_v41 = vrot.slane %v17249_v44, 1 }
 0x502   :  { %v10378_v18 = vsel %vm8728_vm2, %v10377_v12, %v10376_v37  ;;  %v10765_v59 = vrot.slane %v17253_v63, 6  ;;  %v10767_v61 = vrot.slane %v17218_v55, 5  ;;  %v10769_v5 = vrot.slane %v17219_v31, 4  ;;  %9650 = vmatpush1.bf16.msra.mxu0 %v12202_v38 }
 0x503   :  { %v10761_v17 = vsel %vm8716_vm0, %v17304_v41, %v17303_v6  ;;  %v10380_v13 = vsel %vm7518_vm13, %v10379_v48, %v10378_v18  ;;  %v17305_v62 = vrot.slane %v17216_v54, 7  ;;  %v10771_v63 = vrot.slane %v17220_v0, 3  ;;  %v12204_v0 = vld [vmem:[#allocation2 + $0x1c0] sm:$0xff]   ;;  %9651 = vmatprep.subr.bf16.mxu0 %v17058_v49 }
 0x504   :  { %v10762_v14 = vsel %vm7514_vm9, %v17251_v20, %v10761_v17  ;;  %v16315_v12 = vsel %vm8734_vm3, %v10381_v30, %v10380_v13  ;;  %v17306_v27 = vrot.slane %v17256_v29, 2  ;;  %v17307_v37 = vrot.slane %v17258_v16, 1  ;;  %v12201_v20 = vld [vmem:[#allocation2 + $0x390] sm:$0xff]  }
 0x505   :  { %v10764_v44 = vsel %vm8722_vm1, %v17305_v62, %v10762_v14  ;;  %v10397_v31 = vpack.c.b16 %v16315_v12, %v16299_v26  ;;  %v10793_v30 = vrot.slane %v15871_v46, 6  ;;  %v17308_v29 = vrot.slane %v15844_v35, 7  ;;  %10690 = vmatpush1.bf16.msra.mxu1 %v12201_v20  ;;  %v12203_v14 = vld [vmem:[#allocation2 + $0x398] sm:$0xff]   ;;  %v12206_v62 = vld [vmem:[#allocation2 + $0x1c8] sm:$0xff]   ;;  %v12252_v26 = vld [vmem:[#allocation2 + $0x3e0] sm:$0xff]  }
 0x506   :  { %v10789_v48 = vsel %vm8716_vm0, %v17307_v37, %v17306_v27  ;;  %v10766_v55 = vsel %vm7516_vm11, %v10765_v59, %v10764_v44  ;;  %v10795_v18 = vrot.slane %v15880_v10, 5  ;;  %v10797_v6 = vrot.slane %v15888_v60, 4  ;;  %10691 = vmatprep.subr.bf16.mxu1 %v17058_v49  ;;  %9652 = vmatpush1.bf16.msra.mxu0 %v12204_v0  ;;  %v12253_v12 = vld [vmem:[#allocation2 + $0x3e8] sm:$0xff]  }
 0x507   :  { %v10790_v54 = vsel %vm7514_vm9, %v15830_v2, %v10789_v48  ;;  %v10768_v16 = vsel %vm8728_vm2, %v10767_v61, %v10766_v55  ;;  %v10799_v41 = vrot.slane %v15895_v11, 3  ;;  %v17309_v38 = vrot.slane %v17269_v43, 2  ;;  %9653 = vmatprep.subr.bf16.mxu0 %v17058_v49 }
 0x508   :  { %v10792_v4 = vsel %vm8722_vm1, %v17308_v29, %v10790_v54  ;;  %v10770_v2 = vsel %vm7518_vm13, %v10769_v5, %v10768_v16  ;;  %v17310_v17 = vrot.slane %v17271_v8, 1  ;;  %v10751_v13 = vrot.slane %v17275_v24, 6  ;;  %v12205_v54 = vld [vmem:[#allocation2 + $0x3a0] sm:$0xff]  }
 0x509   :  { %v10794_v46 = vsel %vm7516_vm11, %v10793_v30, %v10792_v4  ;;  %v16349_v59 = vsel %vm8734_vm3, %v10771_v63, %v10770_v2  ;;  %v17311_v43 = vrot.slane %v17279_v19, 7  ;;  %v10753_v61 = vrot.slane %v17233_v52, 5  ;;  %10692 = vmatpush1.bf16.msra.mxu1 %v12203_v14  ;;  %v17315_v30 = vld [vmem:[#allocation79_spill] sm:$0xff]  ;;  %v17316_v29 = vld [vmem:[#allocation34_spill] sm:$0xff] }
 0x50a   :  { %v10747_v35 = vsel %vm8716_vm0, %v17310_v17, %v17309_v38  ;;  %v10796_v10 = vsel %vm8728_vm2, %v10795_v18, %v10794_v46  ;;  %v10755_v5 = vrot.slane %v17280_v23, 4  ;;  %v10757_v44 = vrot.slane %v17237_v40, 3  ;;  %10693 = vmatprep.subr.bf16.mxu1 %v17058_v49  ;;  %9654 = vmatpush1.bf16.msra.mxu0 %v12206_v62  ;;  %v17319_v46 = vld [vmem:[#allocation14_spill] sm:$0xff] }
 0x50b   :  { %v10748_v60 = vsel %vm7514_vm9, %v17273_v3, %v10747_v35  ;;  %v10798_v11 = vsel %vm7518_vm13, %v10797_v6, %v10796_v10  ;;  %v17312_v63 = vrot.slane %v17281_v28, 2  ;;  %v17313_v19 = vrot.slane %v17283_v51, 1  ;;  %9655 = vmatprep.subr.bf16.mxu0 %v17058_v49 }
 0x50c   :  { %v10750_v8 = vsel %vm8722_vm1, %v17311_v43, %v10748_v60  ;;  %v16363_v3 = vsel %vm8734_vm3, %v10799_v41, %v10798_v11  ;;  %v10779_v48 = vrot.slane %v17287_v7, 6  ;;  %v17314_v28 = vrot.slane %v15841_v9, 7  ;;  %v12208_v9 = vld [vmem:[#allocation2 + $0x1d0] sm:$0xff]   ;;  %v12207_v11 = vld [vmem:[#allocation2 + $0x3a8] sm:$0xff]  }
 0x50d   :  { %v10752_v24 = vsel %vm7516_vm11, %v10751_v13, %v10750_v8  ;;  %v10775_v27 = vsel %vm8716_vm0, %v17313_v19, %v17312_v63  ;;  %v10802_v52 = vpack.c.b16 %v16363_v3, %v16349_v59  ;;  %v10781_v20 = vrot.slane %v15877_v34, 5  ;;  %v17317_v34 = vld [vmem:[#allocation64_spill] sm:$0xff]  ;;  %10694 = vmatpush1.bf16.msra.mxu1 %v12205_v54  ;;  %v17324_v19 = vld [vmem:[#allocation23_spill] sm:$0xff] }
 0x50e   :  { %v10754_v23 = vsel %vm8728_vm2, %v10753_v61, %v10752_v24  ;;  %v10776_v37 = vsel %vm7514_vm9, %v17285_v56, %v10775_v27  ;;  %v10783_v55 = vrot.slane %v15883_v15, 4  ;;  %v9950_v0 = vrot.slane %v17315_v30, 4  ;;  %v17318_v15 = vld [vmem:[#allocation80_spill] sm:$0xff]  ;;  %10695 = vmatprep.subr.bf16.mxu1 %v17058_v49  ;;  %9656 = vmatpush1.bf16.msra.mxu0 %v12208_v9 }
 0x50f   :  { %v10756_v40 = vsel %vm7518_vm13, %v10755_v5, %v10754_v23  ;;  %v10778_v51 = vsel %vm8722_vm1, %v17314_v28, %v10776_v37  ;;  %v10785_v7 = vrot.slane %v15959_v25, 3  ;;  %v9920_v4 = vrot.slane %v17316_v29, 5  ;;  %v17322_v61 = vld [vmem:[#allocation52_spill] sm:$0xff]  ;;  %9657 = vmatprep.subr.bf16.mxu0 %v17058_v49  ;;  %v17330_v29 = vld [vmem:[#allocation51_spill] sm:$0xff] }
 0x510   :  { %v16387_v16 = vsel %vm8734_vm3, %v10757_v44, %v10756_v40  ;;  %v10780_v56 = vsel %vm7516_vm11, %v10779_v48, %v10778_v51  ;;  %v9947_v18 = vrot.slane %v17317_v34, 6  ;;  %v9952_v6 = vrot.slane %v17318_v15, 3  ;;  %v17326_v48 = vld [vmem:[#allocation54_spill] sm:$0xff]  ;;  %v12209_v28 = vld [vmem:[#allocation2 + $0x3b0] sm:$0xff]  }
 0x511   :  { %v10782_v2 = vsel %vm8728_vm2, %v10781_v20, %v10780_v56  ;;  %v9919_v41 = vrot.slane %v17319_v46, 6  ;;  %v9922_v38 = vrot.slane %v17243_v45, 4  ;;  %v9954_v25 = vrot.slane %v17245_v32, 2  ;;  %10696 = vmatpush1.bf16.msra.mxu1 %v12207_v11  ;;  %v17327_v20 = vld [vmem:[#allocation18_spill] sm:$0xff]  ;;  %v12216_v46 = vld [vmem:[#allocation2 + $0x250] sm:$0xff]  }
 0x512   :  { %v10784_v17 = vsel %vm7518_vm13, %v10783_v55, %v10782_v2  ;;  %v9924_v35 = vrot.slane %v15287_v33, 3  ;;  %v17320_v10 = vrot.slane %v17288_v22, 5  ;;  %v9956_v13 = vrot.slane %v15414_v58, 1  ;;  %v12210_v58 = vld [vmem:[#allocation2 + $0x1d8] sm:$0xff]   ;;  %10697 = vmatprep.subr.bf16.mxu1 %v17058_v49  ;;  %v17328_v55 = vld [vmem:[#allocation59_spill] sm:$0xff]  ;;  %v12213_v2 = vld [vmem:[#allocation2 + $0x420] sm:$0xff]  }
 0x513   :  { %v16407_v14 = vsel %vm8734_vm3, %v10785_v7, %v10784_v17  ;;  %v17321_v45 = vrot.slane %v15435_v39, 6  ;;  %v9926_v43 = vrot.slane %v15293_v36, 2  ;;  %v9921_v8 = vsel %vm8716_vm0, %v9920_v4, %v9919_v41  ;;  %9658 = vmatpush1.bf16.msra.mxu0 %v12210_v58  ;;  %v17331_v41 = vld [vmem:[#allocation75_spill] sm:$0xff]  ;;  %v12217_v11 = vld [vmem:[#allocation2 + $0x430] sm:$0xff]  }
 0x514   :  { %v9949_v60 = vsel %vm8716_vm0, %v17320_v10, %v9947_v18  ;;  %v10801_v22 = vpack.c.b16 %v16407_v14, %v16387_v16  ;;  %v9928_v5 = vrot.slane %v17322_v61, 1  ;;  %v9959_v24 = vrot.slane %v15450_v50, 7  ;;  %10039 = vmatprep.subr.bf16.mxu0 %v17058_v49  ;;  %v12211_v18 = vld [vmem:[#allocation2 + $0x3b8] sm:$0xff]   ;;  %v17334_v17 = vld [vmem:[#allocation83_spill] sm:$0xff]  ;;  %v12224_v58 = vld [vmem:[#allocation2 + $0x270] sm:$0xff]  }
 0x515   :  { %v9540_v32 = vsel %vm7518_vm13, %v17321_v45, %v16193_v47  ;;  %v9951_v33 = vsel %vm7514_vm9, %v9950_v0, %v9949_v60  ;;  %v17323_v36 = vrot.slane %v15347_v57, 6  ;;  %v9923_v44 = vsel %vm7514_vm9, %v9922_v38, %v9921_v8  ;;  %v12212_v0 = vld [vmem:[#allocation2 + $0x240] sm:$0xff]   ;;  %10698 = vmatpush1.bf16.msra.mxu1 %v12209_v28  ;;  %v17332_v38 = vld [vmem:[#allocation77_spill] sm:$0xff]  ;;  %v12215_v60 = vld [vmem:[#allocation2 + $0x428] sm:$0xff]  }
 0x516   :  { %v9953_v62 = vsel %vm8722_vm1, %v9952_v6, %v9951_v33  ;;  %v17325_v27 = vrot.slane %v17324_v19, 5  ;;  %v9925_v37 = vsel %vm8722_vm1, %v9924_v35, %v9923_v44  ;;  %v9931_v40 = vrot.slane %v17326_v48, 7  ;;  %10699 = vmatprep.subr.bf16.mxu1 %v17058_v49  ;;  %v12214_v6 = vld [vmem:[#allocation2 + $0x248] sm:$0xff]   ;;  %v17335_v35 = vld [vmem:[#allocation84_spill] sm:$0xff]  ;;  %v12220_v45 = vld [vmem:[#allocation2 + $0x260] sm:$0xff]  }
 0x517   :  { %v9512_v47 = vsel %vm7518_vm13, %v17323_v36, %v16177_v21  ;;  %v9955_v63 = vsel %vm7516_vm11, %v9954_v25, %v9953_v62  ;;  %v9927_v51 = vsel %vm7516_vm11, %v9926_v43, %v9925_v37  ;;  %v17329_v54 = vrot.slane %v17328_v55, 5  ;;  %v12222_v43 = vld [vmem:[#allocation2 + $0x268] sm:$0xff]   ;;  %v12221_v33 = vld [vmem:[#allocation2 + $0x440] sm:$0xff]   ;;  %v12226_v61 = vld [vmem:[#allocation2 + $0x278] sm:$0xff]  }
 0x518   :  { %v9542_v23 = vsel %vm8734_vm3, %v17325_v27, %v9540_v32  ;;  %v9957_v50 = vsel %vm8728_vm2, %v9956_v13, %v9955_v63  ;;  %v9929_v56 = vsel %vm8728_vm2, %v9928_v5, %v9927_v51  ;;  %v17333_v25 = vpack.c.b16 %v17331_v41, %v17332_v38  ;;  %v12218_v13 = vld [vmem:[#allocation2 + $0x258] sm:$0xff]   ;;  %v12223_v8 = vld [vmem:[#allocation2 + $0x448] sm:$0xff]   ;;  %v12225_v5 = vld [vmem:[#allocation2 + $0x450] sm:$0xff]  }
 0x519   :  { %v9958_v21 = vsel %vm7518_vm13, %v17327_v20, %v9957_v50  ;;  %v9514_v30 = vsel %vm8734_vm3, %v17329_v54, %v9512_v47  ;;  %v9930_v4 = vsel %vm7518_vm13, %v17330_v29, %v9929_v56  ;;  %10700 = vmatpush1.bf16.msra.mxu1 %v12211_v18  ;;  %v17336_v10 = vpack.c.b16 %v17334_v17, %v17335_v35  ;;  %v12219_v32 = vld [vmem:[#allocation2 + $0x438] sm:$0xff]   ;;  %v12228_v62 = vld [vmem:[#allocation2 + $0x280] sm:$0xff]   ;;  %v17338_v44 = vld [vmem:[#allocation71_spill] sm:$0xff] }
 0x51a   :  { %v9960_v7 = vsel %vm8734_vm3, %v9959_v24, %v9958_v21  ;;  %v9557_v9 = vpack.c.b16 %v9542_v23, %v9514_v30  ;;  %v9932_v34 = vsel %vm8734_vm3, %v9931_v40, %v9930_v4  ;;  %11081 = vmatprep.subr.bf16.mxu1 %v17058_v49  ;;  %v17337_v24 = vld [vmem:[#allocation73_spill] sm:$0xff]  ;;  %v9936_v63 = vrot.slane %v17338_v44, 4  ;;  %v12230_v27 = vld [vmem:[#allocation2 + $0x288] sm:$0xff]   ;;  %v17341_v50 = vld [vmem:[#allocation50_spill] sm:$0xff] }
 0x51b   :  { %v9962_v15 = vpack.c.b16 %v9960_v7, %v9932_v34  ;;  %v9934_v36 = vrot.slane %v17337_v24, 5  ;;  %v12227_v47 = vld [vmem:[#allocation2 + $0x458] sm:$0xff]   ;;  %v17339_v23 = vld [vmem:[#allocation35_spill] sm:$0xff]  ;;  %v9908_v28 = vrot.slane %v17341_v50, 4  ;;  %v17342_v51 = vld [vmem:[#allocation22_spill] sm:$0xff]  ;;  %v9945_v35 = vrot.slane %v17324_v19, 7 }
 0x51c   :  { %9668 = vmatmul.mubr.bf16.vlgmr.msra.gmra.mrb[40].mxu0 %v9557_v9  ;;  %10710 = vmatmul.mubr.bf16.vlgmr.msra.gmra.mrb[60].mxu1 %v17333_v25  ;;  %v9906_v37 = vrot.slane %v17339_v23, 5  ;;  %v17340_v48 = vld [vmem:[#allocation63_spill] sm:$0xff]  ;;  %v9905_v20 = vrot.slane %v17342_v51, 6  ;;  %v17343_v54 = vld [vmem:[#allocation78_spill] sm:$0xff]  ;;  %v12232_v29 = vld [vmem:[#allocation2 + $0x290] sm:$0xff]  }
 0x51d   :  { %10040 = vmatpush1.bf16.msra.mxu0 %v12212_v0  ;;  %11651 = vmatprep.mubr.msk.bf16.mxu0 %vm2528_vm15, %v9962_v15  ;;  %v9933_v40 = vrot.slane %v17340_v48, 6  ;;  %v9938_v30 = vrot.slane %v17343_v54, 3  ;;  %v12229_v0 = vld [vmem:[#allocation2 + $0x460] sm:$0xff]   ;;  %v17345_v34 = vld [vmem:[#allocation49_spill] sm:$0xff]  ;;  %v17346_v15 = vld [vmem:[#allocation87_spill] sm:$0xff] }
 0x51e   :  { %10041 = vmatprep.subr.bf16.mxu0 %v17058_v49  ;;  %11082 = vmatpush1.bf16.msra.mxu1 %v12213_v2  ;;  %v17344_v7 = vld [vmem:[#allocation82_spill] sm:$0xff]  ;;  %v9907_v4 = vsel %vm8716_vm0, %v9906_v37, %v9905_v20  ;;  %v9910_v18 = vrot.slane %v17345_v34, 3  ;;  %v17348_v38 = vld [vmem:[#allocation55_spill] sm:$0xff]  ;;  %v12242_v48 = vld [vmem:[#allocation2 + $0x330] sm:$0xff]  }
 0x51f   :  { %11716 = vmatprep.mubr.msk.bf16.mxu1 %vm2528_vm15, %v17336_v10  ;;  %11083 = vmatprep.subr.bf16.mxu1 %v17058_v49  ;;  %v9935_v21 = vsel %vm8716_vm0, %v9934_v36, %v9933_v40  ;;  %v9940_v9 = vrot.slane %v17344_v7, 2  ;;  %v9909_v2 = vsel %vm7514_vm9, %v9908_v28, %v9907_v4  ;;  %v9914_v25 = vrot.slane %v17348_v38, 1  ;;  %v12231_v10 = vld [vmem:[#allocation2 + $0x468] sm:$0xff]   ;;  %v17349_v36 = vld [vmem:[#allocation85_spill] sm:$0xff]  ;;  %v12256_v38 = vld [vmem:[#allocation2 + $0x400] sm:$0xff]  }
 0x520   :  { %v9937_v56 = vsel %vm7514_vm9, %v9936_v63, %v9935_v21  ;;  %v12237_v24 = vld [vmem:[#allocation2 + $0x308] sm:$0xff]   ;;  %v12239_v63 = vld [vmem:[#allocation2 + $0x318] sm:$0xff]   ;;  %v12244_v21 = vld [vmem:[#allocation2 + $0x340] sm:$0xff]  }
 0x521   :  { %10042 = vmatpush1.bf16.msra.mxu0 %v12214_v6  ;;  %v9942_v6 = vrot.slane %v17346_v15, 1  ;;  %v9939_v17 = vsel %vm8722_vm1, %v9938_v30, %v9937_v56  ;;  %v12243_v40 = vld [vmem:[#allocation2 + $0x338] sm:$0xff]   ;;  %v12245_v54 = vld [vmem:[#allocation2 + $0x348] sm:$0xff]   ;;  %v12246_v30 = vld [vmem:[#allocation2 + $0x350] sm:$0xff]  }
 0x522   :  { %10043 = vmatprep.subr.bf16.mxu0 %v17058_v49  ;;  %11084 = vmatpush1.bf16.msra.mxu1 %v12215_v60  ;;  %v9941_v60 = vsel %vm7516_vm11, %v9940_v9, %v9939_v17  ;;  %v12248_v56 = vld [vmem:[#allocation2 + $0x3c0] sm:$0xff]   ;;  %v12249_v7 = vld [vmem:[#allocation2 + $0x3c8] sm:$0xff]   ;;  %v12250_v9 = vld [vmem:[#allocation2 + $0x3d0] sm:$0xff]  }
 0x523   :  { %11085 = vmatprep.subr.bf16.mxu1 %v17058_v49  ;;  %v12255_v15 = vld [vmem:[#allocation2 + $0x3f8] sm:$0xff]   ;;  %v12258_v17 = vld [vmem:[#allocation2 + $0x410] sm:$0xff]  }
 0x525   :  { %10044 = vmatpush1.bf16.msra.mxu0 %v12216_v46  ;;  %v17347_v46 = vld [vmem:[#allocation57_spill] sm:$0xff] }
 0x526   :  { %10045 = vmatprep.subr.bf16.mxu0 %v17058_v49  ;;  %11086 = vmatpush1.bf16.msra.mxu1 %v12217_v11  ;;  %v9912_v41 = vrot.slane %v17347_v46, 2  ;;  %v9911_v11 = vsel %vm8722_vm1, %v9910_v18, %v9909_v2  ;;  %v12254_v18 = vld [vmem:[#allocation2 + $0x3f0] sm:$0xff]  }
 0x527   :  { %11087 = vmatprep.subr.bf16.mxu1 %v17058_v49 }
 0x529   :  { %10046 = vmatpush1.bf16.msra.mxu0 %v12218_v13  ;;  %v12234_v13 = vld [vmem:[#allocation2 + $0x298] sm:$0xff]  }
 0x52a   :  { %10047 = vmatprep.subr.bf16.mxu0 %v17058_v49  ;;  %11088 = vmatpush1.bf16.msra.mxu1 %v12219_v32  ;;  %v9943_v32 = vsel %vm8728_vm2, %v9942_v6, %v9941_v60 }
 0x52b   :  { %11089 = vmatprep.subr.bf16.mxu1 %v17058_v49  ;;  %v9944_v19 = vsel %vm7518_vm13, %v15435_v39, %v9943_v32  ;;  %v12235_v39 = vld [vmem:[#allocation2 + $0x478] sm:$0xff]  }
 0x52d   :  { %10048 = vmatpush1.bf16.msra.mxu0 %v12220_v45  ;;  %v9917_v45 = vrot.slane %v17328_v55, 7 }
 0x52e   :  { %10049 = vmatprep.subr.bf16.mxu0 %v17058_v49  ;;  %11090 = vmatpush1.bf16.msra.mxu1 %v12221_v33 }
 0x52f   :  { %11091 = vmatprep.subr.bf16.mxu1 %v17058_v49 }
 0x531   :  { %10050 = vmatpush1.bf16.msra.mxu0 %v12222_v43  ;;  %v9913_v43 = vsel %vm7516_vm11, %v9912_v41, %v9911_v11 }
 0x532   :  { %10051 = vmatprep.subr.bf16.mxu0 %v17058_v49  ;;  %11092 = vmatpush1.bf16.msra.mxu1 %v12223_v8  ;;  %v9915_v33 = vsel %vm8728_vm2, %v9914_v25, %v9913_v43  ;;  %v12233_v8 = vld [vmem:[#allocation2 + $0x470] sm:$0xff]   ;;  %v12257_v25 = vld [vmem:[#allocation2 + $0x408] sm:$0xff]  }
 0x533   :  { %11093 = vmatprep.subr.bf16.mxu1 %v17058_v49 }
 0x535   :  { %10052 = vmatpush1.bf16.msra.mxu0 %v12224_v58  ;;  %v9946_v58 = vsel %vm8734_vm3, %v9945_v35, %v9944_v19  ;;  %v12259_v35 = vld [vmem:[#allocation2 + $0x418] sm:$0xff]  }
 0x536   :  { %10053 = vmatprep.subr.bf16.mxu0 %v17058_v49  ;;  %11094 = vmatpush1.bf16.msra.mxu1 %v12225_v5  ;;  %v12236_v5 = vld [vmem:[#allocation2 + $0x300] sm:$0xff]  }
 0x537   :  { %11095 = vmatprep.subr.bf16.mxu1 %v17058_v49 }
 0x539   :  { %10054 = vmatpush1.bf16.msra.mxu0 %v12226_v61  ;;  %v9916_v61 = vsel %vm7518_vm13, %v15347_v57, %v9915_v33  ;;  %v12238_v57 = vld [vmem:[#allocation2 + $0x310] sm:$0xff]  }
 0x53a   :  { %10055 = vmatprep.subr.bf16.mxu0 %v17058_v49  ;;  %11096 = vmatpush1.bf16.msra.mxu1 %v12227_v47  ;;  %v9918_v55 = vsel %vm8734_vm3, %v9917_v45, %v9916_v61  ;;  %v17350_v47 = vld [vmem:[#allocation86_spill] sm:$0xff] }
 0x53b   :  { %11097 = vmatprep.subr.bf16.mxu1 %v17058_v49  ;;  %v17351_v44 = vpack.c.b16 %v17349_v36, %v17350_v47 }
 0x53d   :  { %10056 = vmatpush1.bf16.msra.mxu0 %v12228_v62  ;;  %v9961_v62 = vpack.c.b16 %v9946_v58, %v9918_v55 }
 0x53e   :  { %10057 = vmatprep.subr.bf16.mxu0 %v17058_v49  ;;  %11098 = vmatpush1.bf16.msra.mxu1 %v12229_v0  ;;  %v12247_v0 = vld [vmem:[#allocation2 + $0x358] sm:$0xff]  }
 0x53f   :  { %11099 = vmatprep.subr.bf16.mxu1 %v17058_v49 }
 0x541   :  { %10058 = vmatpush1.bf16.msra.mxu0 %v12230_v27  ;;  %v12240_v27 = vld [vmem:[#allocation2 + $0x320] sm:$0xff]  }
 0x542   :  { %10059 = vmatprep.subr.bf16.mxu0 %v17058_v49  ;;  %11100 = vmatpush1.bf16.msra.mxu1 %v12231_v10 }
 0x543   :  { %11101 = vmatprep.subr.bf16.mxu1 %v17058_v49 }
 0x545   :  { %10060 = vmatpush1.bf16.msra.mxu0 %v12232_v29  ;;  %v12251_v29 = vld [vmem:[#allocation2 + $0x3d8] sm:$0xff]  }
 0x546   :  { %10061 = vmatprep.subr.bf16.mxu0 %v17058_v49  ;;  %11102 = vmatpush1.bf16.msra.mxu1 %v12233_v8 }
 0x547   :  { %11103 = vmatprep.subr.bf16.mxu1 %v17058_v49 }
 0x549   :  { %10062 = vmatpush1.bf16.msra.mxu0 %v12234_v13 }
 0x54a   :  { %10475 = vmatprep.subr.bf16.mxu0 %v17058_v49  ;;  %11104 = vmatpush1.bf16.msra.mxu1 %v12235_v39 }
 0x54c   :  { %10072 = vmatmul.mubr.bf16.vlgmr.msra.gmra.mrb[44].mxu0 %v9961_v62 }
 0x54d   :  { %10476 = vmatpush1.bf16.msra.mxu0 %v12236_v5  ;;  %11677 = vmatprep.mubr.msk.bf16.mxu0 %vm2528_vm15, %v10398_v1 }
 0x54e   :  { %10477 = vmatprep.subr.bf16.mxu0 %v17058_v49  ;;  %11114 = vmatmul.mubr.bf16.vlgmr.msra.gmra.mrb[64].mxu1 %v17351_v44 }
 0x551   :  { %10478 = vmatpush1.bf16.msra.mxu0 %v12237_v24 }
 0x552   :  { %10479 = vmatprep.subr.bf16.mxu0 %v17058_v49 }
 0x553   :  { %v8890_v42 = vpop.f32.mrb[28].mxu0 }
 0x554   :  { %v8892_v1 = vpop.f32.mrb[29].mxu0 }
 0x555   :  { %10480 = vmatpush1.bf16.msra.mxu0 %v12238_v57  ;;  %v8893_v23 = vpop.f32.mrb[30].mxu0 }
 0x556   :  { %10481 = vmatprep.subr.bf16.mxu0 %v17058_v49  ;;  %v8895_v37 = vpop.f32.mrb[31].mxu0 }
 0x559   :  { %10482 = vmatpush1.bf16.msra.mxu0 %v12239_v63 }
 0x55a   :  { %10483 = vmatprep.subr.bf16.mxu0 %v17058_v49 }
 0x55b   :  { %v16524_v50 = vpop.f32.mrb[48].mxu1 }
 0x55c   :  { %v9469_v28 = vpop.f32.mrb[49].mxu1 }
 0x55d   :  { %10484 = vmatpush1.bf16.msra.mxu0 %v12240_v27  ;;  %v16527_v51 = vpop.f32.mrb[50].mxu1 }
 0x55e   :  { %10485 = vmatprep.subr.bf16.mxu0 %v17058_v49  ;;  %v9472_v20 = vpop.f32.mrb[51].mxu1 }
 0x561   :  { %10486 = vmatpush1.bf16.msra.mxu0 %v12241_v53 }
 0x562   :  { %10487 = vmatprep.subr.bf16.mxu0 %v17058_v49 }
 0x565   :  { %10488 = vmatpush1.bf16.msra.mxu0 %v12242_v48 }
 0x566   :  { %10489 = vmatprep.subr.bf16.mxu0 %v17058_v49 }
 0x569   :  { %10490 = vmatpush1.bf16.msra.mxu0 %v12243_v40 }
 0x56a   :  { %10491 = vmatprep.subr.bf16.mxu0 %v17058_v49 }
 0x56d   :  { %10492 = vmatpush1.bf16.msra.mxu0 %v12244_v21 }
 0x56e   :  { %10493 = vmatprep.subr.bf16.mxu0 %v17058_v49 }
 0x571   :  { %10494 = vmatpush1.bf16.msra.mxu0 %v12245_v54 }
 0x572   :  { %10495 = vmatprep.subr.bf16.mxu0 %v17058_v49 }
 0x575   :  { %10496 = vmatpush1.bf16.msra.mxu0 %v12246_v30 }
 0x576   :  { %10497 = vmatprep.subr.bf16.mxu0 %v17058_v49 }
 0x579   :  { %10498 = vmatpush1.bf16.msra.mxu0 %v12247_v0 }
 0x57a   :  { %10879 = vmatprep.subr.bf16.mxu0 %v17058_v49 }
 0x57c   :  { %10508 = vmatmul.mubr.bf16.vlgmr.msra.gmra.mrb[48].mxu0 %v10397_v31 }
 0x57d   :  { %10880 = vmatpush1.bf16.msra.mxu0 %v12248_v56  ;;  %11703 = vmatprep.mubr.msk.bf16.mxu0 %vm2528_vm15, %v10802_v52 }
 0x57e   :  { %10881 = vmatprep.subr.bf16.mxu0 %v17058_v49 }
 0x581   :  { %10882 = vmatpush1.bf16.msra.mxu0 %v12249_v7 }
 0x582   :  { %10883 = vmatprep.subr.bf16.mxu0 %v17058_v49 }
 0x583   :  { %v9065_v31 = vpop.f32.mrb[32].mxu0 }
 0x584   :  { %v9066_v59 = vadd.f32 %v9065_v31, %v8890_v42  ;;  %v9067_v3 = vpop.f32.mrb[33].mxu0 }
 0x585   :  { %10884 = vmatpush1.bf16.msra.mxu0 %v12250_v9  ;;  %v9068_v52 = vpop.f32.mrb[34].mxu0 }
 0x586   :  { %10885 = vmatprep.subr.bf16.mxu0 %v17058_v49  ;;  %v9069_v4 = vadd.f32 %v9068_v52, %v8893_v23  ;;  %v9070_v34 = vpop.f32.mrb[35].mxu0 }
 0x589   :  { %10886 = vmatpush1.bf16.msra.mxu0 %v12251_v29 }
 0x58a   :  { %10887 = vmatprep.subr.bf16.mxu0 %v17058_v49 }
 0x58b   :  { %v9871_v6 = vpop.f32.mrb[52].mxu1 }
 0x58c   :  { %v9873_v2 = vpop.f32.mrb[53].mxu1 }
 0x58d   :  { %10888 = vmatpush1.bf16.msra.mxu0 %v12252_v26  ;;  %v9874_v46 = vpop.f32.mrb[54].mxu1 }
 0x58e   :  { %10889 = vmatprep.subr.bf16.mxu0 %v17058_v49  ;;  %v9876_v41 = vpop.f32.mrb[55].mxu1 }
 0x591   :  { %10890 = vmatpush1.bf16.msra.mxu0 %v12253_v12  ;;  %v11717_v12 = vld [vmem:[%s16578_s6] ss:$0 sm:$0xff] }
 0x592   :  { %10891 = vmatprep.subr.bf16.mxu0 %v17058_v49 }
 0x595   :  { %10892 = vmatpush1.bf16.msra.mxu0 %v12254_v18 }
 0x596   :  { %10893 = vmatprep.subr.bf16.mxu0 %v17058_v49 }
 0x599   :  { %10894 = vmatpush1.bf16.msra.mxu0 %v12255_v15 }
 0x59a   :  { %10895 = vmatprep.subr.bf16.mxu0 %v17058_v49 }
 0x59d   :  { %10896 = vmatpush1.bf16.msra.mxu0 %v12256_v38 }
 0x59e   :  { %10897 = vmatprep.subr.bf16.mxu0 %v17058_v49 }
 0x5a1   :  { %10898 = vmatpush1.bf16.msra.mxu0 %v12257_v25 }
 0x5a2   :  { %10899 = vmatprep.subr.bf16.mxu0 %v17058_v49 }
 0x5a5   :  { %10900 = vmatpush1.bf16.msra.mxu0 %v12258_v17 }
 0x5a6   :  { %10901 = vmatprep.subr.bf16.mxu0 %v17058_v49 }
 0x5a9   :  { %10902 = vmatpush1.bf16.msra.mxu0 %v12259_v35 }
 0x5ac   :  { %10912 = vmatmul.mubr.bf16.vlgmr.msra.gmra.mrb[52].mxu0 %v10801_v22 }
 0x5b8   :  { %v9265_v10 = vpop.f32.mrb[36].mxu0 }
 0x5b9   :  { %v9272_v60 = vadd.f32 %v9265_v10, %v9066_v59  ;;  %v9267_v13 = vpop.f32.mrb[37].mxu0 }
 0x5ba   :  { %v9268_v11 = vpop.f32.mrb[38].mxu0 }
 0x5bb   :  { %v9273_v45 = vadd.f32 %v9268_v11, %v9069_v4  ;;  %v9270_v32 = vpop.f32.mrb[39].mxu0  ;;  %v9474_v43 = vadd.f32 %v16524_v50, %v9272_v60 }
 0x5bd   :  { %v9475_v19 = vadd.f32 %v16527_v51, %v9273_v45  ;;  %v10275_v33 = vpop.f32.mrb[56].mxu1 }
 0x5be   :  { %v10277_v58 = vpop.f32.mrb[57].mxu1 }
 0x5bf   :  { %v10278_v8 = vpop.f32.mrb[58].mxu1 }
 0x5c0   :  { %v10280_v61 = vpop.f32.mrb[59].mxu1 }
 0x5ef   :  { %v9669_v49 = vpop.f32.mrb[40].mxu0  ;;  %v10711_v24 = vpop.f32.mrb[60].mxu1 }
 0x5f0   :  { %v9676_v55 = vadd.f32 %v9669_v49, %v9474_v43  ;;  %v9671_v5 = vpop.f32.mrb[41].mxu0  ;;  %v10713_v57 = vpop.f32.mrb[61].mxu1 }
 0x5f1   :  { %v9672_v62 = vpop.f32.mrb[42].mxu0  ;;  %v10714_v36 = vpop.f32.mrb[62].mxu1 }
 0x5f2   :  { %v9677_v16 = vadd.f32 %v9672_v62, %v9475_v19  ;;  %v9674_v14 = vpop.f32.mrb[43].mxu0  ;;  %v9878_v22 = vadd.f32 %v9871_v6, %v9676_v55  ;;  %v10716_v47 = vpop.f32.mrb[63].mxu1 }
 0x5f4   :  { %v9879_v39 = vadd.f32 %v9874_v46, %v9677_v16 }
 0x61f   :  { %v10073_v44 = vpop.f32.mrb[44].mxu0 }
 0x620   :  { %v10080_v63 = vadd.f32 %v10073_v44, %v9878_v22  ;;  %v10075_v27 = vpop.f32.mrb[45].mxu0 }
 0x621   :  { %v10076_v53 = vpop.f32.mrb[46].mxu0  ;;  %v11115_v48 = vpop.f32.mrb[64].mxu1 }
 0x622   :  { %v10081_v42 = vadd.f32 %v10076_v53, %v9879_v39  ;;  %v10078_v1 = vpop.f32.mrb[47].mxu0  ;;  %v10282_v23 = vadd.f32 %v10275_v33, %v10080_v63  ;;  %v11117_v40 = vpop.f32.mrb[65].mxu1 }
 0x623   :  { %v11118_v50 = vpop.f32.mrb[66].mxu1 }
 0x624   :  { %v10283_v37 = vadd.f32 %v10278_v8, %v10081_v42  ;;  %v11120_v28 = vpop.f32.mrb[67].mxu1 }
 0x64f   :  { %v10509_v51 = vpop.f32.mrb[48].mxu0 }
 0x650   :  { %v10516_v20 = vadd.f32 %v10509_v51, %v10282_v23  ;;  %v10511_v21 = vpop.f32.mrb[49].mxu0 }
 0x651   :  { %v10512_v54 = vpop.f32.mrb[50].mxu0 }
 0x652   :  { %v10517_v30 = vadd.f32 %v10512_v54, %v10283_v37  ;;  %v10514_v0 = vpop.f32.mrb[51].mxu0  ;;  %v10718_v56 = vadd.f32 %v10711_v24, %v10516_v20 }
 0x654   :  { %v10719_v7 = vadd.f32 %v10714_v36, %v10517_v30 }
 0x67f   :  { %v10913_v9 = vpop.f32.mrb[52].mxu0 }
 0x680   :  { %v10920_v29 = vadd.f32 %v10913_v9, %v10718_v56  ;;  %v10915_v26 = vpop.f32.mrb[53].mxu0 }
 0x681   :  { %v10916_v31 = vpop.f32.mrb[54].mxu0 }
 0x682   :  { %v11122_v59 = vadd.f32 %v11115_v48, %v10920_v29  ;;  %v10921_v3 = vadd.f32 %v10916_v31, %v10719_v7  ;;  %v10918_v52 = vpop.f32.mrb[55].mxu0 }
 0x684   :  { %v11131_v4 = vadd.f32 %v11717_v12, %v11122_v59  ;;  %v11123_v34 = vadd.f32 %v11118_v50, %v10921_v3 }
 0x686   :  { %11133 = vst [vmem:[#allocation5] sm:$0xff] %v11131_v4  ;;  %v11132_v18 = vadd.f32 %v11717_v12, %v11123_v34 }
 0x688   :  { %11134 = vst [vmem:[#allocation5 + $0x8] sm:$0xff] %v11132_v18 }
 0x689   :  { %12295 = shalt.err (!%p12292_p12)
}
 0x68a   :  { %s12296_s20 = scalar_lea.hbm %s16579_s7, 256 }
 0x68b   :  { %p12297_p13 = scmp.ne.s32.totalorder %s16579_s7, %s12296_s20  ;;  %p12300_p0 = scmp.lt.u32.totalorder %s12296_s20, %s16579_s7 }
 0x68d   :  { %p12302_p1 = pnand %p12300_p0, %p12297_p13 }
 0x68f   :  { %12305 = shalt.err (!%p12302_p1)
}
 0x690   :  { %s12317_s24 = smov 128   ;;  %s12318_s25 = smov 8  }
 0x691   :  { %11146 = dma.vmem_to_hbm [thread:$0]  %s11141_s17, 256, %s16579_s7, [#allocation4], %s12317_s24, %s12317_s24, %s12318_s25  }
 0x692   :  { %12308 = dma.done.wait [#allocation4], 256  }
 0x693   :  { %12309 = vsyncadd [#allocation4], 4294967040 }
 0x694   :  { %11150 = vsyncpa [#allocation3], 1 }
 0x695   :  { %11151 = vsyncpa [#allocation4], 1 }

</bundles_post_ra>
